<compile_context>
chip_gen: v6e
topology: v6e:2x2x1
jax: 0.10.0
libtpu: 0.0.40
codegen_flags: <defaults>
</compile_context>

<pallas_src>
import math
from functools import partial

import jax
import jax.numpy as jnp
from jax.experimental import pallas as pl
from jax.experimental.pallas import tpu as pltpu

EXPANSION = 4  # Bottle2neck.expansion


def _round_up(x, m):
    return ((x + m - 1) // m) * m


# --------------------------- Pallas kernels ---------------------------------

def _mm_bias_kernel(a_ref, w_ref, b_ref, o_ref, acc_ref, *, act):
    k = pl.program_id(2)

    @pl.when(k == 0)
    def _():
        acc_ref[...] = jnp.zeros_like(acc_ref)

    acc_ref[...] += jnp.dot(a_ref[...], w_ref[...],
                            preferred_element_type=jnp.float32)

    @pl.when(k == pl.num_programs(2) - 1)
    def _():
        y = acc_ref[...] + b_ref[...]
        if act:
            y = jnp.maximum(y, 0.0)
        o_ref[...] = y.astype(o_ref.dtype)


def _mm_bias_res_kernel(a_ref, w_ref, b_ref, r_ref, o_ref, acc_ref, *, act):
    k = pl.program_id(2)

    @pl.when(k == 0)
    def _():
        acc_ref[...] = jnp.zeros_like(acc_ref)

    acc_ref[...] += jnp.dot(a_ref[...], w_ref[...],
                            preferred_element_type=jnp.float32)

    @pl.when(k == pl.num_programs(2) - 1)
    def _():
        y = acc_ref[...] + b_ref[...] + r_ref[...].astype(jnp.float32)
        if act:
            y = jnp.maximum(y, 0.0)
        o_ref[...] = y.astype(o_ref.dtype)


def matmul_bias_act(a, w, bias, act=True, residual=None,
                    out_dtype=jnp.bfloat16):
    """out = act((a @ w) + bias [+ residual]);  a:[M,K], w:[K,N] (bf16 MXU)."""
    M, K = a.shape
    K2, N = w.shape
    assert K == K2

    # ---- tile selection --------------------------------------------------
    Mr = _round_up(M, 16)                 # 16: bf16 sublane packing friendly
    tm = min(256, Mr)
    Mp = _round_up(M, tm)

    Np = _round_up(N, 128)
    tn = 256 if (Np % 256 == 0) else 128  # 256-wide feeds v6e/v7x MXU

    Kp = _round_up(K, 128)
    if Kp <= 512:                         # single k-step for almost all convs
        tk = Kp
    else:
        tk = 512
        Kp = _round_up(K, tk)

    # ---- padded bf16 operands (pads fuse under jit) ----------------------
    a_p = jnp.zeros((Mp, Kp), jnp.bfloat16).at[:M, :K].set(
        a.astype(jnp.bfloat16))
    w_p = jnp.zeros((Kp, Np), jnp.bfloat16).at[:K, :N].set(
        w.astype(jnp.bfloat16))
    b_p = jnp.zeros((1, Np), jnp.float32).at[:, :N].set(
        bias.reshape(1, N).astype(jnp.float32))

    grid = (Mp // tm, Np // tn, Kp // tk)

    in_specs = [
        pl.BlockSpec((tm, tk), lambda i, j, k: (i, k)),
        pl.BlockSpec((tk, tn), lambda i, j, k: (k, j)),
        pl.BlockSpec((1, tn), lambda i, j, k: (0, j)),
    ]
    args = [a_p, w_p, b_p]
    if residual is not None:
        r_p = jnp.zeros((Mp, Np), jnp.bfloat16).at[:M, :N].set(
            residual.astype(jnp.bfloat16))
        in_specs.append(pl.BlockSpec((tm, tn), lambda i, j, k: (i, j)))
        args.append(r_p)
        kernel = partial(_mm_bias_res_kernel, act=act)
    else:
        kernel = partial(_mm_bias_kernel, act=act)

    out = pl.pallas_call(
        kernel,
        out_shape=jax.ShapeDtypeStruct((Mp, Np), out_dtype),
        grid_spec=pltpu.PrefetchScalarGridSpec(
            num_scalar_prefetch=0,
            grid=grid,
            in_specs=in_specs,
            out_specs=pl.BlockSpec((tm, tn), lambda i, j, k: (i, j)),
            scratch_shapes=[pltpu.VMEM((tm, tn), jnp.float32)],
        ),
        compiler_params=pltpu.CompilerParams(
            dimension_semantics=("parallel", "parallel", "arbitrary")),
    )(*args)
    return out[:M, :N]


# --------------------------- conv / pool glue --------------------------------

def _im2col(x, kh, kw, stride, pad):
    # x: [N, H, W, C] (bf16) -> flattened patches [N*Ho*Wo, kh*kw*C]
    # TODO(synk): 3x3 patches are materialized in HBM; a kh*kw grid axis with
    # offset index_maps would avoid the 9x patch tensor for large inputs.
    x = jnp.pad(x, ((0, 0), (pad, pad), (pad, pad), (0, 0)))
    N, H, W, C = x.shape
    Ho = (H - kh) // stride + 1
    Wo = (W - kw) // stride + 1
    cols = []
    for i in range(kh):
        for j in range(kw):
            cols.append(x[:, i:i + stride * Ho:stride,
                          j:j + stride * Wo:stride, :])
    patches = jnp.stack(cols, axis=3)            # [N, Ho, Wo, kh*kw, C]
    return patches.reshape(N * Ho * Wo, kh * kw * C), Ho, Wo


def conv1x1_bn_act(x, wmat, bias, stride=1, act=True, residual=None):
    """1x1 conv + folded BN [+ residual] [+ ReLU]; im2col is a pure reshape."""
    if stride > 1:
        x = x[:, ::stride, ::stride, :]
    Nb, H, W, C = x.shape
    a = x.reshape(Nb * H * W, C)
    res = None
    if residual is not None:
        res = residual.reshape(Nb * H * W, residual.shape[-1])
    out = matmul_bias_act(a, wmat, bias, act=act, residual=res)
    return out.reshape(Nb, H, W, -1)


def conv3x3_bn_act(x, wmat, bias, stride=1, act=True):
    Nb = x.shape[0]
    a, Ho, Wo = _im2col(x, 3, 3, stride, 1)
    out = matmul_bias_act(a, wmat, bias, act=act)
    return out.reshape(Nb, Ho, Wo, -1)


def avg_pool3x3(x, stride):
    # nn.AvgPool2d(kernel_size=3, stride=stride, padding=1) (count_include_pad)
    # TODO(synk): minor op kept in plain JAX (not a hot path).
    xp = jnp.pad(x.astype(jnp.float32), ((0, 0), (1, 1), (1, 1), (0, 0)))
    N, H, W, C = xp.shape
    Ho = (H - 3) // stride + 1
    Wo = (W - 3) // stride + 1
    s = jnp.zeros((N, Ho, Wo, C), jnp.float32)
    for i in range(3):
        for j in range(3):
            s = s + xp[:, i:i + stride * Ho:stride,
                       j:j + stride * Wo:stride, :]
    return (s / 9.0).astype(jnp.bfloat16)


# --------------------------- raw parameters (PyTorch-style) ------------------

def _kaiming(key, cout, cin, kh, kw):
    # kaiming_normal_, mode='fan_out', nonlinearity='relu'
    fan_out = cout * kh * kw
    std = math.sqrt(2.0 / fan_out)
    return jax.random.normal(key, (cout, cin, kh, kw), jnp.float32) * std


def _bn_params(c):
    # gamma=1, beta=0 (per module init); running_mean=0, running_var=1.
    # TODO(synk): training-mode batch-statistics BN not implemented; BN is
    # fused as inference-mode affine scale/bias into the Pallas GEMM.
    return {"gamma": jnp.ones((c,), jnp.float32),
            "beta": jnp.zeros((c,), jnp.float32),
            "mean": jnp.zeros((c,), jnp.float32),
            "var": jnp.ones((c,), jnp.float32)}


def make_block_params(key, inplanes, planes, stride, has_downsample,
                      baseWidth, scale):
    width = int(math.floor(planes * (baseWidth / 64.0)))
    nums = 1 if scale == 1 else scale - 1
    keys = jax.random.split(key, nums + 3)
    p = {
        "width": width, "scale": scale, "stride": stride,
        "stype": "stage" if has_downsample else "normal",
        "conv1_w": _kaiming(keys[0], width * scale, inplanes, 1, 1),
        "bn1": _bn_params(width * scale),
        "convs_w": [_kaiming(keys[1 + i], width, width, 3, 3)
                    for i in range(nums)],
        "bns": [_bn_params(width) for _ in range(nums)],
        "conv3_w": _kaiming(keys[1 + nums], planes * EXPANSION,
                            width * scale, 1, 1),
        "bn3": _bn_params(planes * EXPANSION),
        "downsample": None,
    }
    if has_downsample:
        p["downsample"] = {
            "w": _kaiming(keys[2 + nums], planes * EXPANSION, inplanes, 1, 1),
            "bn": _bn_params(planes * EXPANSION),
        }
    return p


def make_res2net_params(key, layers, in_planes=16, baseWidth=26, scale=4):
    keys = jax.random.split(key, 1 + sum(layers))
    params = {
        "conv1_w": _kaiming(keys[0], in_planes, 1, 3, 3),
        "bn1": _bn_params(in_planes),
        "layers": [],
    }
    inplanes = in_planes
    ki = 1
    for li, nblocks in enumerate(layers):
        planes = in_planes * (2 ** li)
        layer_stride = 1 if li == 0 else 2
        blocks = []
        for b in range(nblocks):
            s = layer_stride if b == 0 else 1
            ds = (b == 0) and (s != 1 or inplanes != planes * EXPANSION)
            blocks.append(make_block_params(keys[ki], inplanes, planes, s, ds,
                                            baseWidth, scale))
            ki += 1
            inplanes = planes * EXPANSION
        params["layers"].append(blocks)
    return params


# --------------------------- inference-param prep (fuse BN into weights) -----

def _fuse_conv_bn(w, bn, eps=1e-5):
    """conv weight [Cout,Cin,kh,kw] + BN stats -> (bf16 GEMM weight [K,N],
    f32 bias [N]) with the BN scale folded into the weight columns."""
    Cout, Cin, kh, kw = w.shape
    scale = bn["gamma"] / jnp.sqrt(bn["var"] + eps)
    bias = bn["beta"] - bn["mean"] * scale
    wmat = jnp.transpose(w, (2, 3, 1, 0)).reshape(kh * kw * Cin, Cout)
    wmat = (wmat * scale[None, :]).astype(jnp.bfloat16)
    return wmat, bias.astype(jnp.float32)


def prepare_block(p):
    width, scale = p["width"], p["scale"]
    stride, stype = p["stride"], p["stype"]
    nums = 1 if scale == 1 else scale - 1
    q = {"width": width, "scale": scale, "stride": stride,
         "stype": stype, "nums": nums}
    q["c1_w"], q["c1_b"] = _fuse_conv_bn(p["conv1_w"], p["bn1"])

    fused = [_fuse_conv_bn(p["convs_w"][i], p["bns"][i]) for i in range(nums)]
    if stype == "stage":
        # The nums split convs are independent -> one GEMM with a
        # block-diagonal weight over the input splits (channel-fast im2col
        # layout: (kpos, cin)).
        big = jnp.zeros((9, scale * width, nums * width), jnp.float32)
        for i, (wm, _) in enumerate(fused):
            big = big.at[:, i * width:(i + 1) * width,
                         i * width:(i + 1) * width].set(
                wm.astype(jnp.float32).reshape(9, width, width))
        q["split_w"] = big.reshape(9 * scale * width,
                                   nums * width).astype(jnp.bfloat16)
        q["split_b"] = jnp.concatenate([b for _, b in fused])
    else:
        q["convs_w"] = [wm for wm, _ in fused]
        q["convs_b"] = [b for _, b in fused]

    q["c3_w"], q["c3_b"] = _fuse_conv_bn(p["conv3_w"], p["bn3"])
    if p["downsample"] is not None:
        q["ds_w"], q["ds_b"] = _fuse_conv_bn(p["downsample"]["w"],
                                             p["downsample"]["bn"])
    else:
        q["ds_w"], q["ds_b"] = None, None
    return q


def prepare_res2net(params):
    stem_w, stem_b = _fuse_conv_bn(params["conv1_w"], params["bn1"])
    return {
        "stem_w": stem_w, "stem_b": stem_b,
        "layers": [[prepare_block(b) for b in layer]
                   for layer in params["layers"]],
    }


# --------------------------- forward ------------------------------------------

def bottle2neck_forward(q, x):
    width, scale = q["width"], q["scale"]
    stride, stype, nums = q["stride"], q["stype"], q["nums"]

    out = conv1x1_bn_act(x, q["c1_w"], q["c1_b"], act=True)

    if stype == "stage":
        # all splits independent: one im2col of the full tensor + one GEMM
        Nb = out.shape[0]
        a, Ho, Wo = _im2col(out, 3, 3, stride, 1)
        sp = matmul_bias_act(a, q["split_w"], q["split_b"], act=True)
        sp = sp.reshape(Nb, Ho, Wo, nums * width)
        if scale != 1:
            last = avg_pool3x3(out[..., nums * width:], stride)
            out = jnp.concatenate([sp, last], axis=-1)
        else:
            out = sp
    else:
        # sequential split path (stride == 1 for "normal" blocks)
        spx = [out[..., i * width:(i + 1) * width] for i in range(scale)]
        parts = []
        sp = spx[0]
        for i in range(nums):
            if i > 0:
                sp = sp + spx[i]
            sp = conv3x3_bn_act(sp, q["convs_w"][i], q["convs_b"][i],
                                stride=1, act=True)
            parts.append(sp)
        if scale != 1:
            parts.append(spx[nums])
        out = jnp.concatenate(parts, axis=-1)

    if q["ds_w"] is not None:
        residual = conv1x1_bn_act(x, q["ds_w"], q["ds_b"],
                                  stride=stride, act=False)
    else:
        residual = x

    # conv3 + bn3 + residual add + relu fused in one Pallas GEMM kernel
    out = conv1x1_bn_act(out, q["c3_w"], q["c3_b"], act=True,
                         residual=residual)
    return out


def res2net_forward(prepared, x_nchw):
    x = jnp.transpose(x_nchw, (0, 2, 3, 1)).astype(jnp.bfloat16)  # NCHW->NHWC
    Nb = x.shape[0]
    # stem: 3x3, stride 2, pad 3
    a, Ho, Wo = _im2col(x, 3, 3, 2, 3)
    x = matmul_bias_act(a, prepared["stem_w"], prepared["stem_b"], act=True)
    x = x.reshape(Nb, Ho, Wo, -1)
    for layer in prepared["layers"]:
        for blk in layer:
            x = bottle2neck_forward(blk, x)
    # NHWC -> NCHW, back to f32 to match the PyTorch reference dtype
    return jnp.transpose(x, (0, 3, 1, 2)).astype(jnp.float32)


# --------------------------- main ---------------------------------------------

if __name__ == "__main__":
    key = jax.random.PRNGKey(0)
    kp, kx = jax.random.split(key)

    in_planes = 16
    layers = [1, 1, 1, 1]
    raw_params = make_res2net_params(kp, layers=layers, in_planes=in_planes,
                                     baseWidth=26, scale=4)
    prepared = prepare_res2net(raw_params)

    # PyTorch-style NCHW input with a single input channel (conv1 expects 1).
    x = jax.random.normal(kx, (2, 1, 32, 32), jnp.float32)

    fwd = jax.jit(lambda inp: res2net_forward(prepared, inp))
    y = fwd(x)
    jax.block_until_ready(y)

    expected = (2, in_planes * 8 * EXPANSION, 3, 3)
    assert y.shape == expected, (y.shape, expected)
    print("KERNEL_OK")
</pallas_src>

<mosaic_0001>
module attributes {stable_mosaic.version = 11 : i64} {
  func.func @_mm_bias_kernel(%arg0: i32, %arg1: i32, %arg2: i32, %arg3: memref<256x128xbf16, #tpu.memory_space<vmem>>, %arg4: memref<128x128xbf16, #tpu.memory_space<vmem>>, %arg5: memref<1x128xf32, #tpu.memory_space<vmem>>, %arg6: memref<256x128xbf16, #tpu.memory_space<vmem>>, %arg7: memref<256x128xf32, #tpu.memory_space<vmem>>) attributes {dimension_semantics = [#tpu.dimension_semantics<parallel>, #tpu.dimension_semantics<parallel>, #tpu.dimension_semantics<arbitrary>], iteration_bounds = array<i64: 3, 1, 1>, scalar_prefetch = 0 : i64, scratch_operands = 1 : i64, tpu.core_type = #tpu.core_type<tc>, window_params = [{transform_indices = @transform_0, window_bounds = array<i64: 256, 128>}, {transform_indices = @transform_1, window_bounds = array<i64: 128, 128>}, {transform_indices = @transform_2, window_bounds = array<i64: 1, 128>}, {transform_indices = @transform_3, window_bounds = array<i64: 256, 128>}]} {
    %c0_i32 = arith.constant 0 : i32
    %0 = arith.cmpi eq, %arg2, %c0_i32 : i32
    %1 = arith.extui %0 : i1 to i32
    %c0_i32_0 = arith.constant 0 : i32
    %2 = arith.cmpi ne, %1, %c0_i32_0 : i32
    scf.if %2 {
      %cst_10 = arith.constant 0.000000e+00 : f32
      %12 = vector.broadcast %cst_10 : f32 to vector<256x128xf32>
      %c0_11 = arith.constant 0 : index
      %c0_12 = arith.constant 0 : index
      %13 = vector.load %arg7[%c0_11, %c0_12] : memref<256x128xf32, #tpu.memory_space<vmem>>, vector<256x128xf32>
      tpu.vector_store %arg7[%c0_11, %c0_12], %12 {strides = array<i32>} : memref<256x128xf32, #tpu.memory_space<vmem>>, vector<256x128xf32>,
    } else {
    }
    %c0 = arith.constant 0 : index
    %c0_1 = arith.constant 0 : index
    %3 = vector.load %arg7[%c0, %c0_1] : memref<256x128xf32, #tpu.memory_space<vmem>>, vector<256x128xf32>
    %c0_2 = arith.constant 0 : index
    %c0_3 = arith.constant 0 : index
    %4 = vector.load %arg3[%c0_2, %c0_3] : memref<256x128xbf16, #tpu.memory_space<vmem>>, vector<256x128xbf16>
    %c0_4 = arith.constant 0 : index
    %c0_5 = arith.constant 0 : index
    %5 = vector.load %arg4[%c0_4, %c0_5] : memref<128x128xbf16, #tpu.memory_space<vmem>>, vector<128x128xbf16>
    %cst = arith.constant dense<0.000000e+00> : vector<256x128xf32>
    %6 = tpu.matmul %4, %5, %cst {dimension_numbers = #tpu.dot_dimension_numbers<[1], [0], [0], [1], [0, 0, 1, 1], [], []>} : vector<256x128xbf16>, vector<128x128xbf16>, vector<256x128xf32> -> vector<256x128xf32>
    %7 = arith.addf %3, %6 : vector<256x128xf32>
    %c0_6 = arith.constant 0 : index
    %c0_7 = arith.constant 0 : index
    %8 = vector.load %arg7[%c0_6, %c0_7] : memref<256x128xf32, #tpu.memory_space<vmem>>, vector<256x128xf32>
    tpu.vector_store %arg7[%c0_6, %c0_7], %7 {strides = array<i32>} : memref<256x128xf32, #tpu.memory_space<vmem>>, vector<256x128xf32>,
    %c0_i32_8 = arith.constant 0 : i32
    %9 = arith.cmpi eq, %arg2, %c0_i32_8 : i32
    %10 = arith.extui %9 : i1 to i32
    %c0_i32_9 = arith.constant 0 : i32
    %11 = arith.cmpi ne, %10, %c0_i32_9 : i32
    scf.if %11 {
      %c0_10 = arith.constant 0 : index
      %c0_11 = arith.constant 0 : index
      %12 = vector.load %arg7[%c0_10, %c0_11] : memref<256x128xf32, #tpu.memory_space<vmem>>, vector<256x128xf32>
      %c0_12 = arith.constant 0 : index
      %c0_13 = arith.constant 0 : index
      %13 = vector.load %arg5[%c0_12, %c0_13] : memref<1x128xf32, #tpu.memory_space<vmem>>, vector<1x128xf32>
      %14 = vector.broadcast %13 : vector<1x128xf32> to vector<256x128xf32>
      %15 = arith.addf %12, %14 : vector<256x128xf32>
      %cst_14 = arith.constant 0.000000e+00 : f32
      %16 = vector.broadcast %cst_14 : f32 to vector<256x128xf32>
      %17 = arith.maximumf %15, %16 : vector<256x128xf32>
      %18 = arith.truncf %17 : vector<256x128xf32> to vector<256x128xbf16>
      %c0_15 = arith.constant 0 : index
      %c0_16 = arith.constant 0 : index
      %19 = vector.load %arg6[%c0_15, %c0_16] : memref<256x128xbf16, #tpu.memory_space<vmem>>, vector<256x128xbf16>
      tpu.vector_store %arg6[%c0_15, %c0_16], %18 {strides = array<i32>} : memref<256x128xbf16, #tpu.memory_space<vmem>>, vector<256x128xbf16>,
    } else {
    }
    return
  }
  func.func @transform_0(%arg0: i32, %arg1: i32, %arg2: i32) -> (i32, i32) {
    %c0_i32 = arith.constant 0 : i32
    return %arg0, %arg2 : i32, i32
  }
  func.func @transform_1(%arg0: i32, %arg1: i32, %arg2: i32) -> (i32, i32) {
    %c0_i32 = arith.constant 0 : i32
    return %arg2, %arg1 : i32, i32
  }
  func.func @transform_2(%arg0: i32, %arg1: i32, %arg2: i32) -> (i32, i32) {
    %c0_i32 = arith.constant 0 : i32
    %c0_i32_0 = arith.constant 0 : i32
    return %c0_i32, %arg1 : i32, i32
  }
  func.func @transform_3(%arg0: i32, %arg1: i32, %arg2: i32) -> (i32, i32) {
    %c0_i32 = arith.constant 0 : i32
    return %arg0, %arg1 : i32, i32
  }
}

module attributes {stable_mosaic.version = 11 : i64} {
  func.func @_mm_bias_kernel(%arg0: i32, %arg1: i32, %arg2: i32, %arg3: memref<256x256xbf16, #tpu.memory_space<vmem>>, %arg4: memref<256x128xbf16, #tpu.memory_space<vmem>>, %arg5: memref<1x128xf32, #tpu.memory_space<vmem>>, %arg6: memref<256x128xbf16, #tpu.memory_space<vmem>>, %arg7: memref<256x128xf32, #tpu.memory_space<vmem>>) attributes {dimension_semantics = [#tpu.dimension_semantics<parallel>, #tpu.dimension_semantics<parallel>, #tpu.dimension_semantics<arbitrary>], iteration_bounds = array<i64: 3, 1, 1>, scalar_prefetch = 0 : i64, scratch_operands = 1 : i64, tpu.core_type = #tpu.core_type<tc>, window_params = [{transform_indices = @transform_0, window_bounds = array<i64: 256, 256>}, {transform_indices = @transform_1, window_bounds = array<i64: 256, 128>}, {transform_indices = @transform_2, window_bounds = array<i64: 1, 128>}, {transform_indices = @transform_3, window_bounds = array<i64: 256, 128>}]} {
    %c0_i32 = arith.constant 0 : i32
    %0 = arith.cmpi eq, %arg2, %c0_i32 : i32
    %1 = arith.extui %0 : i1 to i32
    %c0_i32_0 = arith.constant 0 : i32
    %2 = arith.cmpi ne, %1, %c0_i32_0 : i32
    scf.if %2 {
      %cst_10 = arith.constant 0.000000e+00 : f32
      %12 = vector.broadcast %cst_10 : f32 to vector<256x128xf32>
      %c0_11 = arith.constant 0 : index
      %c0_12 = arith.constant 0 : index
      %13 = vector.load %arg7[%c0_11, %c0_12] : memref<256x128xf32, #tpu.memory_space<vmem>>, vector<256x128xf32>
      tpu.vector_store %arg7[%c0_11, %c0_12], %12 {strides = array<i32>} : memref<256x128xf32, #tpu.memory_space<vmem>>, vector<256x128xf32>,
    } else {
    }
    %c0 = arith.constant 0 : index
    %c0_1 = arith.constant 0 : index
    %3 = vector.load %arg7[%c0, %c0_1] : memref<256x128xf32, #tpu.memory_space<vmem>>, vector<256x128xf32>
    %c0_2 = arith.constant 0 : index
    %c0_3 = arith.constant 0 : index
    %4 = vector.load %arg3[%c0_2, %c0_3] : memref<256x256xbf16, #tpu.memory_space<vmem>>, vector<256x256xbf16>
    %c0_4 = arith.constant 0 : index
    %c0_5 = arith.constant 0 : index
    %5 = vector.load %arg4[%c0_4, %c0_5] : memref<256x128xbf16, #tpu.memory_space<vmem>>, vector<256x128xbf16>
    %cst = arith.constant dense<0.000000e+00> : vector<256x128xf32>
    %6 = tpu.matmul %4, %5, %cst {dimension_numbers = #tpu.dot_dimension_numbers<[1], [0], [0], [1], [0, 0, 1, 1], [], []>} : vector<256x256xbf16>, vector<256x128xbf16>, vector<256x128xf32> -> vector<256x128xf32>
    %7 = arith.addf %3, %6 : vector<256x128xf32>
    %c0_6 = arith.constant 0 : index
    %c0_7 = arith.constant 0 : index
    %8 = vector.load %arg7[%c0_6, %c0_7] : memref<256x128xf32, #tpu.memory_space<vmem>>, vector<256x128xf32>
    tpu.vector_store %arg7[%c0_6, %c0_7], %7 {strides = array<i32>} : memref<256x128xf32, #tpu.memory_space<vmem>>, vector<256x128xf32>,
    %c0_i32_8 = arith.constant 0 : i32
    %9 = arith.cmpi eq, %arg2, %c0_i32_8 : i32
    %10 = arith.extui %9 : i1 to i32
    %c0_i32_9 = arith.constant 0 : i32
    %11 = arith.cmpi ne, %10, %c0_i32_9 : i32
    scf.if %11 {
      %c0_10 = arith.constant 0 : index
      %c0_11 = arith.constant 0 : index
      %12 = vector.load %arg7[%c0_10, %c0_11] : memref<256x128xf32, #tpu.memory_space<vmem>>, vector<256x128xf32>
      %c0_12 = arith.constant 0 : index
      %c0_13 = arith.constant 0 : index
      %13 = vector.load %arg5[%c0_12, %c0_13] : memref<1x128xf32, #tpu.memory_space<vmem>>, vector<1x128xf32>
      %14 = vector.broadcast %13 : vector<1x128xf32> to vector<256x128xf32>
      %15 = arith.addf %12, %14 : vector<256x128xf32>
      %cst_14 = arith.constant 0.000000e+00 : f32
      %16 = vector.broadcast %cst_14 : f32 to vector<256x128xf32>
      %17 = arith.maximumf %15, %16 : vector<256x128xf32>
      %18 = arith.truncf %17 : vector<256x128xf32> to vector<256x128xbf16>
      %c0_15 = arith.constant 0 : index
      %c0_16 = arith.constant 0 : index
      %19 = vector.load %arg6[%c0_15, %c0_16] : memref<256x128xbf16, #tpu.memory_space<vmem>>, vector<256x128xbf16>
      tpu.vector_store %arg6[%c0_15, %c0_16], %18 {strides = array<i32>} : memref<256x128xbf16, #tpu.memory_space<vmem>>, vector<256x128xbf16>,
    } else {
    }
    return
  }
  func.func @transform_0(%arg0: i32, %arg1: i32, %arg2: i32) -> (i32, i32) {
    %c0_i32 = arith.constant 0 : i32
    return %arg0, %arg2 : i32, i32
  }
  func.func @transform_1(%arg0: i32, %arg1: i32, %arg2: i32) -> (i32, i32) {
    %c0_i32 = arith.constant 0 : i32
    return %arg2, %arg1 : i32, i32
  }
  func.func @transform_2(%arg0: i32, %arg1: i32, %arg2: i32) -> (i32, i32) {
    %c0_i32 = arith.constant 0 : i32
    %c0_i32_0 = arith.constant 0 : i32
    return %c0_i32, %arg1 : i32, i32
  }
  func.func @transform_3(%arg0: i32, %arg1: i32, %arg2: i32) -> (i32, i32) {
    %c0_i32 = arith.constant 0 : i32
    return %arg0, %arg1 : i32, i32
  }
}

module attributes {stable_mosaic.version = 11 : i64} {
  func.func @_mm_bias_kernel(%arg0: i32, %arg1: i32, %arg2: i32, %arg3: memref<256x128xbf16, #tpu.memory_space<vmem>>, %arg4: memref<128x128xbf16, #tpu.memory_space<vmem>>, %arg5: memref<1x128xf32, #tpu.memory_space<vmem>>, %arg6: memref<256x128xbf16, #tpu.memory_space<vmem>>, %arg7: memref<256x128xf32, #tpu.memory_space<vmem>>) attributes {dimension_semantics = [#tpu.dimension_semantics<parallel>, #tpu.dimension_semantics<parallel>, #tpu.dimension_semantics<arbitrary>], iteration_bounds = array<i64: 3, 1, 1>, scalar_prefetch = 0 : i64, scratch_operands = 1 : i64, tpu.core_type = #tpu.core_type<tc>, window_params = [{transform_indices = @transform_0, window_bounds = array<i64: 256, 128>}, {transform_indices = @transform_1, window_bounds = array<i64: 128, 128>}, {transform_indices = @transform_2, window_bounds = array<i64: 1, 128>}, {transform_indices = @transform_3, window_bounds = array<i64: 256, 128>}]} {
    %c0_i32 = arith.constant 0 : i32
    %0 = arith.cmpi eq, %arg2, %c0_i32 : i32
    %1 = arith.extui %0 : i1 to i32
    %c0_i32_0 = arith.constant 0 : i32
    %2 = arith.cmpi ne, %1, %c0_i32_0 : i32
    scf.if %2 {
      %cst_10 = arith.constant 0.000000e+00 : f32
      %12 = vector.broadcast %cst_10 : f32 to vector<256x128xf32>
      %c0_11 = arith.constant 0 : index
      %c0_12 = arith.constant 0 : index
      %13 = vector.load %arg7[%c0_11, %c0_12] : memref<256x128xf32, #tpu.memory_space<vmem>>, vector<256x128xf32>
      tpu.vector_store %arg7[%c0_11, %c0_12], %12 {strides = array<i32>} : memref<256x128xf32, #tpu.memory_space<vmem>>, vector<256x128xf32>,
    } else {
    }
    %c0 = arith.constant 0 : index
    %c0_1 = arith.constant 0 : index
    %3 = vector.load %arg7[%c0, %c0_1] : memref<256x128xf32, #tpu.memory_space<vmem>>, vector<256x128xf32>
    %c0_2 = arith.constant 0 : index
    %c0_3 = arith.constant 0 : index
    %4 = vector.load %arg3[%c0_2, %c0_3] : memref<256x128xbf16, #tpu.memory_space<vmem>>, vector<256x128xbf16>
    %c0_4 = arith.constant 0 : index
    %c0_5 = arith.constant 0 : index
    %5 = vector.load %arg4[%c0_4, %c0_5] : memref<128x128xbf16, #tpu.memory_space<vmem>>, vector<128x128xbf16>
    %cst = arith.constant dense<0.000000e+00> : vector<256x128xf32>
    %6 = tpu.matmul %4, %5, %cst {dimension_numbers = #tpu.dot_dimension_numbers<[1], [0], [0], [1], [0, 0, 1, 1], [], []>} : vector<256x128xbf16>, vector<128x128xbf16>, vector<256x128xf32> -> vector<256x128xf32>
    %7 = arith.addf %3, %6 : vector<256x128xf32>
    %c0_6 = arith.constant 0 : index
    %c0_7 = arith.constant 0 : index
    %8 = vector.load %arg7[%c0_6, %c0_7] : memref<256x128xf32, #tpu.memory_space<vmem>>, vector<256x128xf32>
    tpu.vector_store %arg7[%c0_6, %c0_7], %7 {strides = array<i32>} : memref<256x128xf32, #tpu.memory_space<vmem>>, vector<256x128xf32>,
    %c0_i32_8 = arith.constant 0 : i32
    %9 = arith.cmpi eq, %arg2, %c0_i32_8 : i32
    %10 = arith.extui %9 : i1 to i32
    %c0_i32_9 = arith.constant 0 : i32
    %11 = arith.cmpi ne, %10, %c0_i32_9 : i32
    scf.if %11 {
      %c0_10 = arith.constant 0 : index
      %c0_11 = arith.constant 0 : index
      %12 = vector.load %arg7[%c0_10, %c0_11] : memref<256x128xf32, #tpu.memory_space<vmem>>, vector<256x128xf32>
      %c0_12 = arith.constant 0 : index
      %c0_13 = arith.constant 0 : index
      %13 = vector.load %arg5[%c0_12, %c0_13] : memref<1x128xf32, #tpu.memory_space<vmem>>, vector<1x128xf32>
      %14 = vector.broadcast %13 : vector<1x128xf32> to vector<256x128xf32>
      %15 = arith.addf %12, %14 : vector<256x128xf32>
      %16 = arith.truncf %15 : vector<256x128xf32> to vector<256x128xbf16>
      %c0_14 = arith.constant 0 : index
      %c0_15 = arith.constant 0 : index
      %17 = vector.load %arg6[%c0_14, %c0_15] : memref<256x128xbf16, #tpu.memory_space<vmem>>, vector<256x128xbf16>
      tpu.vector_store %arg6[%c0_14, %c0_15], %16 {strides = array<i32>} : memref<256x128xbf16, #tpu.memory_space<vmem>>, vector<256x128xbf16>,
    } else {
    }
    return
  }
  func.func @transform_0(%arg0: i32, %arg1: i32, %arg2: i32) -> (i32, i32) {
    %c0_i32 = arith.constant 0 : i32
    return %arg0, %arg2 : i32, i32
  }
  func.func @transform_1(%arg0: i32, %arg1: i32, %arg2: i32) -> (i32, i32) {
    %c0_i32 = arith.constant 0 : i32
    return %arg2, %arg1 : i32, i32
  }
  func.func @transform_2(%arg0: i32, %arg1: i32, %arg2: i32) -> (i32, i32) {
    %c0_i32 = arith.constant 0 : i32
    %c0_i32_0 = arith.constant 0 : i32
    return %c0_i32, %arg1 : i32, i32
  }
  func.func @transform_3(%arg0: i32, %arg1: i32, %arg2: i32) -> (i32, i32) {
    %c0_i32 = arith.constant 0 : i32
    return %arg0, %arg1 : i32, i32
  }
}

module attributes {stable_mosaic.version = 11 : i64} {
  func.func @_mm_bias_res_kernel(%arg0: i32, %arg1: i32, %arg2: i32, %arg3: memref<256x128xbf16, #tpu.memory_space<vmem>>, %arg4: memref<128x128xbf16, #tpu.memory_space<vmem>>, %arg5: memref<1x128xf32, #tpu.memory_space<vmem>>, %arg6: memref<256x128xbf16, #tpu.memory_space<vmem>>, %arg7: memref<256x128xbf16, #tpu.memory_space<vmem>>, %arg8: memref<256x128xf32, #tpu.memory_space<vmem>>) attributes {dimension_semantics = [#tpu.dimension_semantics<parallel>, #tpu.dimension_semantics<parallel>, #tpu.dimension_semantics<arbitrary>], iteration_bounds = array<i64: 3, 1, 1>, scalar_prefetch = 0 : i64, scratch_operands = 1 : i64, tpu.core_type = #tpu.core_type<tc>, window_params = [{transform_indices = @transform_0, window_bounds = array<i64: 256, 128>}, {transform_indices = @transform_1, window_bounds = array<i64: 128, 128>}, {transform_indices = @transform_2, window_bounds = array<i64: 1, 128>}, {transform_indices = @transform_3, window_bounds = array<i64: 256, 128>}, {transform_indices = @transform_4, window_bounds = array<i64: 256, 128>}]} {
    %c0_i32 = arith.constant 0 : i32
    %0 = arith.cmpi eq, %arg2, %c0_i32 : i32
    %1 = arith.extui %0 : i1 to i32
    %c0_i32_0 = arith.constant 0 : i32
    %2 = arith.cmpi ne, %1, %c0_i32_0 : i32
    scf.if %2 {
      %cst_10 = arith.constant 0.000000e+00 : f32
      %12 = vector.broadcast %cst_10 : f32 to vector<256x128xf32>
      %c0_11 = arith.constant 0 : index
      %c0_12 = arith.constant 0 : index
      %13 = vector.load %arg8[%c0_11, %c0_12] : memref<256x128xf32, #tpu.memory_space<vmem>>, vector<256x128xf32>
      tpu.vector_store %arg8[%c0_11, %c0_12], %12 {strides = array<i32>} : memref<256x128xf32, #tpu.memory_space<vmem>>, vector<256x128xf32>,
    } else {
    }
    %c0 = arith.constant 0 : index
    %c0_1 = arith.constant 0 : index
    %3 = vector.load %arg8[%c0, %c0_1] : memref<256x128xf32, #tpu.memory_space<vmem>>, vector<256x128xf32>
    %c0_2 = arith.constant 0 : index
    %c0_3 = arith.constant 0 : index
    %4 = vector.load %arg3[%c0_2, %c0_3] : memref<256x128xbf16, #tpu.memory_space<vmem>>, vector<256x128xbf16>
    %c0_4 = arith.constant 0 : index
    %c0_5 = arith.constant 0 : index
    %5 = vector.load %arg4[%c0_4, %c0_5] : memref<128x128xbf16, #tpu.memory_space<vmem>>, vector<128x128xbf16>
    %cst = arith.constant dense<0.000000e+00> : vector<256x128xf32>
    %6 = tpu.matmul %4, %5, %cst {dimension_numbers = #tpu.dot_dimension_numbers<[1], [0], [0], [1], [0, 0, 1, 1], [], []>} : vector<256x128xbf16>, vector<128x128xbf16>, vector<256x128xf32> -> vector<256x128xf32>
    %7 = arith.addf %3, %6 : vector<256x128xf32>
    %c0_6 = arith.constant 0 : index
    %c0_7 = arith.constant 0 : index
    %8 = vector.load %arg8[%c0_6, %c0_7] : memref<256x128xf32, #tpu.memory_space<vmem>>, vector<256x128xf32>
    tpu.vector_store %arg8[%c0_6, %c0_7], %7 {strides = array<i32>} : memref<256x128xf32, #tpu.memory_space<vmem>>, vector<256x128xf32>,
    %c0_i32_8 = arith.constant 0 : i32
    %9 = arith.cmpi eq, %arg2, %c0_i32_8 : i32
    %10 = arith.extui %9 : i1 to i32
    %c0_i32_9 = arith.constant 0 : i32
    %11 = arith.cmpi ne, %10, %c0_i32_9 : i32
    scf.if %11 {
      %c0_10 = arith.constant 0 : index
      %c0_11 = arith.constant 0 : index
      %12 = vector.load %arg8[%c0_10, %c0_11] : memref<256x128xf32, #tpu.memory_space<vmem>>, vector<256x128xf32>
      %c0_12 = arith.constant 0 : index
      %c0_13 = arith.constant 0 : index
      %13 = vector.load %arg5[%c0_12, %c0_13] : memref<1x128xf32, #tpu.memory_space<vmem>>, vector<1x128xf32>
      %14 = vector.broadcast %13 : vector<1x128xf32> to vector<256x128xf32>
      %15 = arith.addf %12, %14 : vector<256x128xf32>
      %c0_14 = arith.constant 0 : index
      %c0_15 = arith.constant 0 : index
      %16 = vector.load %arg6[%c0_14, %c0_15] : memref<256x128xbf16, #tpu.memory_space<vmem>>, vector<256x128xbf16>
      %17 = arith.extf %16 : vector<256x128xbf16> to vector<256x128xf32>
      %18 = arith.addf %15, %17 : vector<256x128xf32>
      %cst_16 = arith.constant 0.000000e+00 : f32
      %19 = vector.broadcast %cst_16 : f32 to vector<256x128xf32>
      %20 = arith.maximumf %18, %19 : vector<256x128xf32>
      %21 = arith.truncf %20 : vector<256x128xf32> to vector<256x128xbf16>
      %c0_17 = arith.constant 0 : index
      %c0_18 = arith.constant 0 : index
      %22 = vector.load %arg7[%c0_17, %c0_18] : memref<256x128xbf16, #tpu.memory_space<vmem>>, vector<256x128xbf16>
      tpu.vector_store %arg7[%c0_17, %c0_18], %21 {strides = array<i32>} : memref<256x128xbf16, #tpu.memory_space<vmem>>, vector<256x128xbf16>,
    } else {
    }
    return
  }
  func.func @transform_0(%arg0: i32, %arg1: i32, %arg2: i32) -> (i32, i32) {
    %c0_i32 = arith.constant 0 : i32
    return %arg0, %arg2 : i32, i32
  }
  func.func @transform_1(%arg0: i32, %arg1: i32, %arg2: i32) -> (i32, i32) {
    %c0_i32 = arith.constant 0 : i32
    return %arg2, %arg1 : i32, i32
  }
  func.func @transform_2(%arg0: i32, %arg1: i32, %arg2: i32) -> (i32, i32) {
    %c0_i32 = arith.constant 0 : i32
    %c0_i32_0 = arith.constant 0 : i32
    return %c0_i32, %arg1 : i32, i32
  }
  func.func @transform_3(%arg0: i32, %arg1: i32, %arg2: i32) -> (i32, i32) {
    %c0_i32 = arith.constant 0 : i32
    return %arg0, %arg1 : i32, i32
  }
  func.func @transform_4(%arg0: i32, %arg1: i32, %arg2: i32) -> (i32, i32) {
    %c0_i32 = arith.constant 0 : i32
    return %arg0, %arg1 : i32, i32
  }
}

module attributes {stable_mosaic.version = 11 : i64} {
  func.func @_mm_bias_kernel(%arg0: i32, %arg1: i32, %arg2: i32, %arg3: memref<256x128xbf16, #tpu.memory_space<vmem>>, %arg4: memref<128x128xbf16, #tpu.memory_space<vmem>>, %arg5: memref<1x128xf32, #tpu.memory_space<vmem>>, %arg6: memref<256x128xbf16, #tpu.memory_space<vmem>>, %arg7: memref<256x128xf32, #tpu.memory_space<vmem>>) attributes {dimension_semantics = [#tpu.dimension_semantics<parallel>, #tpu.dimension_semantics<parallel>, #tpu.dimension_semantics<arbitrary>], iteration_bounds = array<i64: 3, 1, 1>, scalar_prefetch = 0 : i64, scratch_operands = 1 : i64, tpu.core_type = #tpu.core_type<tc>, window_params = [{transform_indices = @transform_0, window_bounds = array<i64: 256, 128>}, {transform_indices = @transform_1, window_bounds = array<i64: 128, 128>}, {transform_indices = @transform_2, window_bounds = array<i64: 1, 128>}, {transform_indices = @transform_3, window_bounds = array<i64: 256, 128>}]} {
    %c0_i32 = arith.constant 0 : i32
    %0 = arith.cmpi eq, %arg2, %c0_i32 : i32
    %1 = arith.extui %0 : i1 to i32
    %c0_i32_0 = arith.constant 0 : i32
    %2 = arith.cmpi ne, %1, %c0_i32_0 : i32
    scf.if %2 {
      %cst_10 = arith.constant 0.000000e+00 : f32
      %12 = vector.broadcast %cst_10 : f32 to vector<256x128xf32>
      %c0_11 = arith.constant 0 : index
      %c0_12 = arith.constant 0 : index
      %13 = vector.load %arg7[%c0_11, %c0_12] : memref<256x128xf32, #tpu.memory_space<vmem>>, vector<256x128xf32>
      tpu.vector_store %arg7[%c0_11, %c0_12], %12 {strides = array<i32>} : memref<256x128xf32, #tpu.memory_space<vmem>>, vector<256x128xf32>,
    } else {
    }
    %c0 = arith.constant 0 : index
    %c0_1 = arith.constant 0 : index
    %3 = vector.load %arg7[%c0, %c0_1] : memref<256x128xf32, #tpu.memory_space<vmem>>, vector<256x128xf32>
    %c0_2 = arith.constant 0 : index
    %c0_3 = arith.constant 0 : index
    %4 = vector.load %arg3[%c0_2, %c0_3] : memref<256x128xbf16, #tpu.memory_space<vmem>>, vector<256x128xbf16>
    %c0_4 = arith.constant 0 : index
    %c0_5 = arith.constant 0 : index
    %5 = vector.load %arg4[%c0_4, %c0_5] : memref<128x128xbf16, #tpu.memory_space<vmem>>, vector<128x128xbf16>
    %cst = arith.constant dense<0.000000e+00> : vector<256x128xf32>
    %6 = tpu.matmul %4, %5, %cst {dimension_numbers = #tpu.dot_dimension_numbers<[1], [0], [0], [1], [0, 0, 1, 1], [], []>} : vector<256x128xbf16>, vector<128x128xbf16>, vector<256x128xf32> -> vector<256x128xf32>
    %7 = arith.addf %3, %6 : vector<256x128xf32>
    %c0_6 = arith.constant 0 : index
    %c0_7 = arith.constant 0 : index
    %8 = vector.load %arg7[%c0_6, %c0_7] : memref<256x128xf32, #tpu.memory_space<vmem>>, vector<256x128xf32>
    tpu.vector_store %arg7[%c0_6, %c0_7], %7 {strides = array<i32>} : memref<256x128xf32, #tpu.memory_space<vmem>>, vector<256x128xf32>,
    %c0_i32_8 = arith.constant 0 : i32
    %9 = arith.cmpi eq, %arg2, %c0_i32_8 : i32
    %10 = arith.extui %9 : i1 to i32
    %c0_i32_9 = arith.constant 0 : i32
    %11 = arith.cmpi ne, %10, %c0_i32_9 : i32
    scf.if %11 {
      %c0_10 = arith.constant 0 : index
      %c0_11 = arith.constant 0 : index
      %12 = vector.load %arg7[%c0_10, %c0_11] : memref<256x128xf32, #tpu.memory_space<vmem>>, vector<256x128xf32>
      %c0_12 = arith.constant 0 : index
      %c0_13 = arith.constant 0 : index
      %13 = vector.load %arg5[%c0_12, %c0_13] : memref<1x128xf32, #tpu.memory_space<vmem>>, vector<1x128xf32>
      %14 = vector.broadcast %13 : vector<1x128xf32> to vector<256x128xf32>
      %15 = arith.addf %12, %14 : vector<256x128xf32>
      %cst_14 = arith.constant 0.000000e+00 : f32
      %16 = vector.broadcast %cst_14 : f32 to vector<256x128xf32>
      %17 = arith.maximumf %15, %16 : vector<256x128xf32>
      %18 = arith.truncf %17 : vector<256x128xf32> to vector<256x128xbf16>
      %c0_15 = arith.constant 0 : index
      %c0_16 = arith.constant 0 : index
      %19 = vector.load %arg6[%c0_15, %c0_16] : memref<256x128xbf16, #tpu.memory_space<vmem>>, vector<256x128xbf16>
      tpu.vector_store %arg6[%c0_15, %c0_16], %18 {strides = array<i32>} : memref<256x128xbf16, #tpu.memory_space<vmem>>, vector<256x128xbf16>,
    } else {
    }
    return
  }
  func.func @transform_0(%arg0: i32, %arg1: i32, %arg2: i32) -> (i32, i32) {
    %c0_i32 = arith.constant 0 : i32
    return %arg0, %arg2 : i32, i32
  }
  func.func @transform_1(%arg0: i32, %arg1: i32, %arg2: i32) -> (i32, i32) {
    %c0_i32 = arith.constant 0 : i32
    return %arg2, %arg1 : i32, i32
  }
  func.func @transform_2(%arg0: i32, %arg1: i32, %arg2: i32) -> (i32, i32) {
    %c0_i32 = arith.constant 0 : i32
    %c0_i32_0 = arith.constant 0 : i32
    return %c0_i32, %arg1 : i32, i32
  }
  func.func @transform_3(%arg0: i32, %arg1: i32, %arg2: i32) -> (i32, i32) {
    %c0_i32 = arith.constant 0 : i32
    return %arg0, %arg1 : i32, i32
  }
}

module attributes {stable_mosaic.version = 11 : i64} {
  func.func @_mm_bias_kernel(%arg0: i32, %arg1: i32, %arg2: i32, %arg3: memref<176x512xbf16, #tpu.memory_space<vmem>>, %arg4: memref<512x128xbf16, #tpu.memory_space<vmem>>, %arg5: memref<1x128xf32, #tpu.memory_space<vmem>>, %arg6: memref<176x128xbf16, #tpu.memory_space<vmem>>, %arg7: memref<176x128xf32, #tpu.memory_space<vmem>>) attributes {dimension_semantics = [#tpu.dimension_semantics<parallel>, #tpu.dimension_semantics<parallel>, #tpu.dimension_semantics<arbitrary>], iteration_bounds = array<i64: 1, 1, 1>, scalar_prefetch = 0 : i64, scratch_operands = 1 : i64, tpu.core_type = #tpu.core_type<tc>, window_params = [{transform_indices = @transform_0, window_bounds = array<i64: 176, 512>}, {transform_indices = @transform_1, window_bounds = array<i64: 512, 128>}, {transform_indices = @transform_2, window_bounds = array<i64: 1, 128>}, {transform_indices = @transform_3, window_bounds = array<i64: 176, 128>}]} {
    %c0_i32 = arith.constant 0 : i32
    %0 = arith.cmpi eq, %arg2, %c0_i32 : i32
    %1 = arith.extui %0 : i1 to i32
    %c0_i32_0 = arith.constant 0 : i32
    %2 = arith.cmpi ne, %1, %c0_i32_0 : i32
    scf.if %2 {
      %cst_10 = arith.constant 0.000000e+00 : f32
      %12 = vector.broadcast %cst_10 : f32 to vector<176x128xf32>
      %c0_11 = arith.constant 0 : index
      %c0_12 = arith.constant 0 : index
      %13 = vector.load %arg7[%c0_11, %c0_12] : memref<176x128xf32, #tpu.memory_space<vmem>>, vector<176x128xf32>
      tpu.vector_store %arg7[%c0_11, %c0_12], %12 {strides = array<i32>} : memref<176x128xf32, #tpu.memory_space<vmem>>, vector<176x128xf32>,
    } else {
    }
    %c0 = arith.constant 0 : index
    %c0_1 = arith.constant 0 : index
    %3 = vector.load %arg7[%c0, %c0_1] : memref<176x128xf32, #tpu.memory_space<vmem>>, vector<176x128xf32>
    %c0_2 = arith.constant 0 : index
    %c0_3 = arith.constant 0 : index
    %4 = vector.load %arg3[%c0_2, %c0_3] : memref<176x512xbf16, #tpu.memory_space<vmem>>, vector<176x512xbf16>
    %c0_4 = arith.constant 0 : index
    %c0_5 = arith.constant 0 : index
    %5 = vector.load %arg4[%c0_4, %c0_5] : memref<512x128xbf16, #tpu.memory_space<vmem>>, vector<512x128xbf16>
    %cst = arith.constant dense<0.000000e+00> : vector<176x128xf32>
    %6 = tpu.matmul %4, %5, %cst {dimension_numbers = #tpu.dot_dimension_numbers<[1], [0], [0], [1], [0, 0, 1, 1], [], []>} : vector<176x512xbf16>, vector<512x128xbf16>, vector<176x128xf32> -> vector<176x128xf32>
    %7 = arith.addf %3, %6 : vector<176x128xf32>
    %c0_6 = arith.constant 0 : index
    %c0_7 = arith.constant 0 : index
    %8 = vector.load %arg7[%c0_6, %c0_7] : memref<176x128xf32, #tpu.memory_space<vmem>>, vector<176x128xf32>
    tpu.vector_store %arg7[%c0_6, %c0_7], %7 {strides = array<i32>} : memref<176x128xf32, #tpu.memory_space<vmem>>, vector<176x128xf32>,
    %c0_i32_8 = arith.constant 0 : i32
    %9 = arith.cmpi eq, %arg2, %c0_i32_8 : i32
    %10 = arith.extui %9 : i1 to i32
    %c0_i32_9 = arith.constant 0 : i32
    %11 = arith.cmpi ne, %10, %c0_i32_9 : i32
    scf.if %11 {
      %c0_10 = arith.constant 0 : index
      %c0_11 = arith.constant 0 : index
      %12 = vector.load %arg7[%c0_10, %c0_11] : memref<176x128xf32, #tpu.memory_space<vmem>>, vector<176x128xf32>
      %c0_12 = arith.constant 0 : index
      %c0_13 = arith.constant 0 : index
      %13 = vector.load %arg5[%c0_12, %c0_13] : memref<1x128xf32, #tpu.memory_space<vmem>>, vector<1x128xf32>
      %14 = vector.broadcast %13 : vector<1x128xf32> to vector<176x128xf32>
      %15 = arith.addf %12, %14 : vector<176x128xf32>
      %cst_14 = arith.constant 0.000000e+00 : f32
      %16 = vector.broadcast %cst_14 : f32 to vector<176x128xf32>
      %17 = arith.maximumf %15, %16 : vector<176x128xf32>
      %18 = arith.truncf %17 : vector<176x128xf32> to vector<176x128xbf16>
      %c0_15 = arith.constant 0 : index
      %c0_16 = arith.constant 0 : index
      %19 = vector.load %arg6[%c0_15, %c0_16] : memref<176x128xbf16, #tpu.memory_space<vmem>>, vector<176x128xbf16>
      tpu.vector_store %arg6[%c0_15, %c0_16], %18 {strides = array<i32>} : memref<176x128xbf16, #tpu.memory_space<vmem>>, vector<176x128xbf16>,
    } else {
    }
    return
  }
  func.func @transform_0(%arg0: i32, %arg1: i32, %arg2: i32) -> (i32, i32) {
    %c0_i32 = arith.constant 0 : i32
    return %arg0, %arg2 : i32, i32
  }
  func.func @transform_1(%arg0: i32, %arg1: i32, %arg2: i32) -> (i32, i32) {
    %c0_i32 = arith.constant 0 : i32
    return %arg2, %arg1 : i32, i32
  }
  func.func @transform_2(%arg0: i32, %arg1: i32, %arg2: i32) -> (i32, i32) {
    %c0_i32 = arith.constant 0 : i32
    %c0_i32_0 = arith.constant 0 : i32
    return %c0_i32, %arg1 : i32, i32
  }
  func.func @transform_3(%arg0: i32, %arg1: i32, %arg2: i32) -> (i32, i32) {
    %c0_i32 = arith.constant 0 : i32
    return %arg0, %arg1 : i32, i32
  }
}

module attributes {stable_mosaic.version = 11 : i64} {
  func.func @_mm_bias_kernel(%arg0: i32, %arg1: i32, %arg2: i32, %arg3: memref<176x128xbf16, #tpu.memory_space<vmem>>, %arg4: memref<128x128xbf16, #tpu.memory_space<vmem>>, %arg5: memref<1x128xf32, #tpu.memory_space<vmem>>, %arg6: memref<176x128xbf16, #tpu.memory_space<vmem>>, %arg7: memref<176x128xf32, #tpu.memory_space<vmem>>) attributes {dimension_semantics = [#tpu.dimension_semantics<parallel>, #tpu.dimension_semantics<parallel>, #tpu.dimension_semantics<arbitrary>], iteration_bounds = array<i64: 1, 1, 1>, scalar_prefetch = 0 : i64, scratch_operands = 1 : i64, tpu.core_type = #tpu.core_type<tc>, window_params = [{transform_indices = @transform_0, window_bounds = array<i64: 176, 128>}, {transform_indices = @transform_1, window_bounds = array<i64: 128, 128>}, {transform_indices = @transform_2, window_bounds = array<i64: 1, 128>}, {transform_indices = @transform_3, window_bounds = array<i64: 176, 128>}]} {
    %c0_i32 = arith.constant 0 : i32
    %0 = arith.cmpi eq, %arg2, %c0_i32 : i32
    %1 = arith.extui %0 : i1 to i32
    %c0_i32_0 = arith.constant 0 : i32
    %2 = arith.cmpi ne, %1, %c0_i32_0 : i32
    scf.if %2 {
      %cst_10 = arith.constant 0.000000e+00 : f32
      %12 = vector.broadcast %cst_10 : f32 to vector<176x128xf32>
      %c0_11 = arith.constant 0 : index
      %c0_12 = arith.constant 0 : index
      %13 = vector.load %arg7[%c0_11, %c0_12] : memref<176x128xf32, #tpu.memory_space<vmem>>, vector<176x128xf32>
      tpu.vector_store %arg7[%c0_11, %c0_12], %12 {strides = array<i32>} : memref<176x128xf32, #tpu.memory_space<vmem>>, vector<176x128xf32>,
    } else {
    }
    %c0 = arith.constant 0 : index
    %c0_1 = arith.constant 0 : index
    %3 = vector.load %arg7[%c0, %c0_1] : memref<176x128xf32, #tpu.memory_space<vmem>>, vector<176x128xf32>
    %c0_2 = arith.constant 0 : index
    %c0_3 = arith.constant 0 : index
    %4 = vector.load %arg3[%c0_2, %c0_3] : memref<176x128xbf16, #tpu.memory_space<vmem>>, vector<176x128xbf16>
    %c0_4 = arith.constant 0 : index
    %c0_5 = arith.constant 0 : index
    %5 = vector.load %arg4[%c0_4, %c0_5] : memref<128x128xbf16, #tpu.memory_space<vmem>>, vector<128x128xbf16>
    %cst = arith.constant dense<0.000000e+00> : vector<176x128xf32>
    %6 = tpu.matmul %4, %5, %cst {dimension_numbers = #tpu.dot_dimension_numbers<[1], [0], [0], [1], [0, 0, 1, 1], [], []>} : vector<176x128xbf16>, vector<128x128xbf16>, vector<176x128xf32> -> vector<176x128xf32>
    %7 = arith.addf %3, %6 : vector<176x128xf32>
    %c0_6 = arith.constant 0 : index
    %c0_7 = arith.constant 0 : index
    %8 = vector.load %arg7[%c0_6, %c0_7] : memref<176x128xf32, #tpu.memory_space<vmem>>, vector<176x128xf32>
    tpu.vector_store %arg7[%c0_6, %c0_7], %7 {strides = array<i32>} : memref<176x128xf32, #tpu.memory_space<vmem>>, vector<176x128xf32>,
    %c0_i32_8 = arith.constant 0 : i32
    %9 = arith.cmpi eq, %arg2, %c0_i32_8 : i32
    %10 = arith.extui %9 : i1 to i32
    %c0_i32_9 = arith.constant 0 : i32
    %11 = arith.cmpi ne, %10, %c0_i32_9 : i32
    scf.if %11 {
      %c0_10 = arith.constant 0 : index
      %c0_11 = arith.constant 0 : index
      %12 = vector.load %arg7[%c0_10, %c0_11] : memref<176x128xf32, #tpu.memory_space<vmem>>, vector<176x128xf32>
      %c0_12 = arith.constant 0 : index
      %c0_13 = arith.constant 0 : index
      %13 = vector.load %arg5[%c0_12, %c0_13] : memref<1x128xf32, #tpu.memory_space<vmem>>, vector<1x128xf32>
      %14 = vector.broadcast %13 : vector<1x128xf32> to vector<176x128xf32>
      %15 = arith.addf %12, %14 : vector<176x128xf32>
      %16 = arith.truncf %15 : vector<176x128xf32> to vector<176x128xbf16>
      %c0_14 = arith.constant 0 : index
      %c0_15 = arith.constant 0 : index
      %17 = vector.load %arg6[%c0_14, %c0_15] : memref<176x128xbf16, #tpu.memory_space<vmem>>, vector<176x128xbf16>
      tpu.vector_store %arg6[%c0_14, %c0_15], %16 {strides = array<i32>} : memref<176x128xbf16, #tpu.memory_space<vmem>>, vector<176x128xbf16>,
    } else {
    }
    return
  }
  func.func @transform_0(%arg0: i32, %arg1: i32, %arg2: i32) -> (i32, i32) {
    %c0_i32 = arith.constant 0 : i32
    return %arg0, %arg2 : i32, i32
  }
  func.func @transform_1(%arg0: i32, %arg1: i32, %arg2: i32) -> (i32, i32) {
    %c0_i32 = arith.constant 0 : i32
    return %arg2, %arg1 : i32, i32
  }
  func.func @transform_2(%arg0: i32, %arg1: i32, %arg2: i32) -> (i32, i32) {
    %c0_i32 = arith.constant 0 : i32
    %c0_i32_0 = arith.constant 0 : i32
    return %c0_i32, %arg1 : i32, i32
  }
  func.func @transform_3(%arg0: i32, %arg1: i32, %arg2: i32) -> (i32, i32) {
    %c0_i32 = arith.constant 0 : i32
    return %arg0, %arg1 : i32, i32
  }
}

module attributes {stable_mosaic.version = 11 : i64} {
  func.func @_mm_bias_res_kernel(%arg0: i32, %arg1: i32, %arg2: i32, %arg3: memref<176x128xbf16, #tpu.memory_space<vmem>>, %arg4: memref<128x128xbf16, #tpu.memory_space<vmem>>, %arg5: memref<1x128xf32, #tpu.memory_space<vmem>>, %arg6: memref<176x128xbf16, #tpu.memory_space<vmem>>, %arg7: memref<176x128xbf16, #tpu.memory_space<vmem>>, %arg8: memref<176x128xf32, #tpu.memory_space<vmem>>) attributes {dimension_semantics = [#tpu.dimension_semantics<parallel>, #tpu.dimension_semantics<parallel>, #tpu.dimension_semantics<arbitrary>], iteration_bounds = array<i64: 1, 1, 1>, scalar_prefetch = 0 : i64, scratch_operands = 1 : i64, tpu.core_type = #tpu.core_type<tc>, window_params = [{transform_indices = @transform_0, window_bounds = array<i64: 176, 128>}, {transform_indices = @transform_1, window_bounds = array<i64: 128, 128>}, {transform_indices = @transform_2, window_bounds = array<i64: 1, 128>}, {transform_indices = @transform_3, window_bounds = array<i64: 176, 128>}, {transform_indices = @transform_4, window_bounds = array<i64: 176, 128>}]} {
    %c0_i32 = arith.constant 0 : i32
    %0 = arith.cmpi eq, %arg2, %c0_i32 : i32
    %1 = arith.extui %0 : i1 to i32
    %c0_i32_0 = arith.constant 0 : i32
    %2 = arith.cmpi ne, %1, %c0_i32_0 : i32
    scf.if %2 {
      %cst_10 = arith.constant 0.000000e+00 : f32
      %12 = vector.broadcast %cst_10 : f32 to vector<176x128xf32>
      %c0_11 = arith.constant 0 : index
      %c0_12 = arith.constant 0 : index
      %13 = vector.load %arg8[%c0_11, %c0_12] : memref<176x128xf32, #tpu.memory_space<vmem>>, vector<176x128xf32>
      tpu.vector_store %arg8[%c0_11, %c0_12], %12 {strides = array<i32>} : memref<176x128xf32, #tpu.memory_space<vmem>>, vector<176x128xf32>,
    } else {
    }
    %c0 = arith.constant 0 : index
    %c0_1 = arith.constant 0 : index
    %3 = vector.load %arg8[%c0, %c0_1] : memref<176x128xf32, #tpu.memory_space<vmem>>, vector<176x128xf32>
    %c0_2 = arith.constant 0 : index
    %c0_3 = arith.constant 0 : index
    %4 = vector.load %arg3[%c0_2, %c0_3] : memref<176x128xbf16, #tpu.memory_space<vmem>>, vector<176x128xbf16>
    %c0_4 = arith.constant 0 : index
    %c0_5 = arith.constant 0 : index
    %5 = vector.load %arg4[%c0_4, %c0_5] : memref<128x128xbf16, #tpu.memory_space<vmem>>, vector<128x128xbf16>
    %cst = arith.constant dense<0.000000e+00> : vector<176x128xf32>
    %6 = tpu.matmul %4, %5, %cst {dimension_numbers = #tpu.dot_dimension_numbers<[1], [0], [0], [1], [0, 0, 1, 1], [], []>} : vector<176x128xbf16>, vector<128x128xbf16>, vector<176x128xf32> -> vector<176x128xf32>
    %7 = arith.addf %3, %6 : vector<176x128xf32>
    %c0_6 = arith.constant 0 : index
    %c0_7 = arith.constant 0 : index
    %8 = vector.load %arg8[%c0_6, %c0_7] : memref<176x128xf32, #tpu.memory_space<vmem>>, vector<176x128xf32>
    tpu.vector_store %arg8[%c0_6, %c0_7], %7 {strides = array<i32>} : memref<176x128xf32, #tpu.memory_space<vmem>>, vector<176x128xf32>,
    %c0_i32_8 = arith.constant 0 : i32
    %9 = arith.cmpi eq, %arg2, %c0_i32_8 : i32
    %10 = arith.extui %9 : i1 to i32
    %c0_i32_9 = arith.constant 0 : i32
    %11 = arith.cmpi ne, %10, %c0_i32_9 : i32
    scf.if %11 {
      %c0_10 = arith.constant 0 : index
      %c0_11 = arith.constant 0 : index
      %12 = vector.load %arg8[%c0_10, %c0_11] : memref<176x128xf32, #tpu.memory_space<vmem>>, vector<176x128xf32>
      %c0_12 = arith.constant 0 : index
      %c0_13 = arith.constant 0 : index
      %13 = vector.load %arg5[%c0_12, %c0_13] : memref<1x128xf32, #tpu.memory_space<vmem>>, vector<1x128xf32>
      %14 = vector.broadcast %13 : vector<1x128xf32> to vector<176x128xf32>
      %15 = arith.addf %12, %14 : vector<176x128xf32>
      %c0_14 = arith.constant 0 : index
      %c0_15 = arith.constant 0 : index
      %16 = vector.load %arg6[%c0_14, %c0_15] : memref<176x128xbf16, #tpu.memory_space<vmem>>, vector<176x128xbf16>
      %17 = arith.extf %16 : vector<176x128xbf16> to vector<176x128xf32>
      %18 = arith.addf %15, %17 : vector<176x128xf32>
      %cst_16 = arith.constant 0.000000e+00 : f32
      %19 = vector.broadcast %cst_16 : f32 to vector<176x128xf32>
      %20 = arith.maximumf %18, %19 : vector<176x128xf32>
      %21 = arith.truncf %20 : vector<176x128xf32> to vector<176x128xbf16>
      %c0_17 = arith.constant 0 : index
      %c0_18 = arith.constant 0 : index
      %22 = vector.load %arg7[%c0_17, %c0_18] : memref<176x128xbf16, #tpu.memory_space<vmem>>, vector<176x128xbf16>
      tpu.vector_store %arg7[%c0_17, %c0_18], %21 {strides = array<i32>} : memref<176x128xbf16, #tpu.memory_space<vmem>>, vector<176x128xbf16>,
    } else {
    }
    return
  }
  func.func @transform_0(%arg0: i32, %arg1: i32, %arg2: i32) -> (i32, i32) {
    %c0_i32 = arith.constant 0 : i32
    return %arg0, %arg2 : i32, i32
  }
  func.func @transform_1(%arg0: i32, %arg1: i32, %arg2: i32) -> (i32, i32) {
    %c0_i32 = arith.constant 0 : i32
    return %arg2, %arg1 : i32, i32
  }
  func.func @transform_2(%arg0: i32, %arg1: i32, %arg2: i32) -> (i32, i32) {
    %c0_i32 = arith.constant 0 : i32
    %c0_i32_0 = arith.constant 0 : i32
    return %c0_i32, %arg1 : i32, i32
  }
  func.func @transform_3(%arg0: i32, %arg1: i32, %arg2: i32) -> (i32, i32) {
    %c0_i32 = arith.constant 0 : i32
    return %arg0, %arg1 : i32, i32
  }
  func.func @transform_4(%arg0: i32, %arg1: i32, %arg2: i32) -> (i32, i32) {
    %c0_i32 = arith.constant 0 : i32
    return %arg0, %arg1 : i32, i32
  }
}

module attributes {stable_mosaic.version = 11 : i64} {
  func.func @_mm_bias_kernel(%arg0: i32, %arg1: i32, %arg2: i32, %arg3: memref<176x128xbf16, #tpu.memory_space<vmem>>, %arg4: memref<128x128xbf16, #tpu.memory_space<vmem>>, %arg5: memref<1x128xf32, #tpu.memory_space<vmem>>, %arg6: memref<176x128xbf16, #tpu.memory_space<vmem>>, %arg7: memref<176x128xf32, #tpu.memory_space<vmem>>) attributes {dimension_semantics = [#tpu.dimension_semantics<parallel>, #tpu.dimension_semantics<parallel>, #tpu.dimension_semantics<arbitrary>], iteration_bounds = array<i64: 1, 1, 1>, scalar_prefetch = 0 : i64, scratch_operands = 1 : i64, tpu.core_type = #tpu.core_type<tc>, window_params = [{transform_indices = @transform_0, window_bounds = array<i64: 176, 128>}, {transform_indices = @transform_1, window_bounds = array<i64: 128, 128>}, {transform_indices = @transform_2, window_bounds = array<i64: 1, 128>}, {transform_indices = @transform_3, window_bounds = array<i64: 176, 128>}]} {
    %c0_i32 = arith.constant 0 : i32
    %0 = arith.cmpi eq, %arg2, %c0_i32 : i32
    %1 = arith.extui %0 : i1 to i32
    %c0_i32_0 = arith.constant 0 : i32
    %2 = arith.cmpi ne, %1, %c0_i32_0 : i32
    scf.if %2 {
      %cst_10 = arith.constant 0.000000e+00 : f32
      %12 = vector.broadcast %cst_10 : f32 to vector<176x128xf32>
      %c0_11 = arith.constant 0 : index
      %c0_12 = arith.constant 0 : index
      %13 = vector.load %arg7[%c0_11, %c0_12] : memref<176x128xf32, #tpu.memory_space<vmem>>, vector<176x128xf32>
      tpu.vector_store %arg7[%c0_11, %c0_12], %12 {strides = array<i32>} : memref<176x128xf32, #tpu.memory_space<vmem>>, vector<176x128xf32>,
    } else {
    }
    %c0 = arith.constant 0 : index
    %c0_1 = arith.constant 0 : index
    %3 = vector.load %arg7[%c0, %c0_1] : memref<176x128xf32, #tpu.memory_space<vmem>>, vector<176x128xf32>
    %c0_2 = arith.constant 0 : index
    %c0_3 = arith.constant 0 : index
    %4 = vector.load %arg3[%c0_2, %c0_3] : memref<176x128xbf16, #tpu.memory_space<vmem>>, vector<176x128xbf16>
    %c0_4 = arith.constant 0 : index
    %c0_5 = arith.constant 0 : index
    %5 = vector.load %arg4[%c0_4, %c0_5] : memref<128x128xbf16, #tpu.memory_space<vmem>>, vector<128x128xbf16>
    %cst = arith.constant dense<0.000000e+00> : vector<176x128xf32>
    %6 = tpu.matmul %4, %5, %cst {dimension_numbers = #tpu.dot_dimension_numbers<[1], [0], [0], [1], [0, 0, 1, 1], [], []>} : vector<176x128xbf16>, vector<128x128xbf16>, vector<176x128xf32> -> vector<176x128xf32>
    %7 = arith.addf %3, %6 : vector<176x128xf32>
    %c0_6 = arith.constant 0 : index
    %c0_7 = arith.constant 0 : index
    %8 = vector.load %arg7[%c0_6, %c0_7] : memref<176x128xf32, #tpu.memory_space<vmem>>, vector<176x128xf32>
    tpu.vector_store %arg7[%c0_6, %c0_7], %7 {strides = array<i32>} : memref<176x128xf32, #tpu.memory_space<vmem>>, vector<176x128xf32>,
    %c0_i32_8 = arith.constant 0 : i32
    %9 = arith.cmpi eq, %arg2, %c0_i32_8 : i32
    %10 = arith.extui %9 : i1 to i32
    %c0_i32_9 = arith.constant 0 : i32
    %11 = arith.cmpi ne, %10, %c0_i32_9 : i32
    scf.if %11 {
      %c0_10 = arith.constant 0 : index
      %c0_11 = arith.constant 0 : index
      %12 = vector.load %arg7[%c0_10, %c0_11] : memref<176x128xf32, #tpu.memory_space<vmem>>, vector<176x128xf32>
      %c0_12 = arith.constant 0 : index
      %c0_13 = arith.constant 0 : index
      %13 = vector.load %arg5[%c0_12, %c0_13] : memref<1x128xf32, #tpu.memory_space<vmem>>, vector<1x128xf32>
      %14 = vector.broadcast %13 : vector<1x128xf32> to vector<176x128xf32>
      %15 = arith.addf %12, %14 : vector<176x128xf32>
      %cst_14 = arith.constant 0.000000e+00 : f32
      %16 = vector.broadcast %cst_14 : f32 to vector<176x128xf32>
      %17 = arith.maximumf %15, %16 : vector<176x128xf32>
      %18 = arith.truncf %17 : vector<176x128xf32> to vector<176x128xbf16>
      %c0_15 = arith.constant 0 : index
      %c0_16 = arith.constant 0 : index
      %19 = vector.load %arg6[%c0_15, %c0_16] : memref<176x128xbf16, #tpu.memory_space<vmem>>, vector<176x128xbf16>
      tpu.vector_store %arg6[%c0_15, %c0_16], %18 {strides = array<i32>} : memref<176x128xbf16, #tpu.memory_space<vmem>>, vector<176x128xbf16>,
    } else {
    }
    return
  }
  func.func @transform_0(%arg0: i32, %arg1: i32, %arg2: i32) -> (i32, i32) {
    %c0_i32 = arith.constant 0 : i32
    return %arg0, %arg2 : i32, i32
  }
  func.func @transform_1(%arg0: i32, %arg1: i32, %arg2: i32) -> (i32, i32) {
    %c0_i32 = arith.constant 0 : i32
    return %arg2, %arg1 : i32, i32
  }
  func.func @transform_2(%arg0: i32, %arg1: i32, %arg2: i32) -> (i32, i32) {
    %c0_i32 = arith.constant 0 : i32
    %c0_i32_0 = arith.constant 0 : i32
    return %c0_i32, %arg1 : i32, i32
  }
  func.func @transform_3(%arg0: i32, %arg1: i32, %arg2: i32) -> (i32, i32) {
    %c0_i32 = arith.constant 0 : i32
    return %arg0, %arg1 : i32, i32
  }
}

module attributes {stable_mosaic.version = 11 : i64} {
  func.func @_mm_bias_kernel(%arg0: i32, %arg1: i32, %arg2: i32, %arg3: memref<64x512xbf16, #tpu.memory_space<vmem>>, %arg4: memref<512x128xbf16, #tpu.memory_space<vmem>>, %arg5: memref<1x128xf32, #tpu.memory_space<vmem>>, %arg6: memref<64x128xbf16, #tpu.memory_space<vmem>>, %arg7: memref<64x128xf32, #tpu.memory_space<vmem>>) attributes {dimension_semantics = [#tpu.dimension_semantics<parallel>, #tpu.dimension_semantics<parallel>, #tpu.dimension_semantics<arbitrary>], iteration_bounds = array<i64: 1, 1, 2>, scalar_prefetch = 0 : i64, scratch_operands = 1 : i64, tpu.core_type = #tpu.core_type<tc>, window_params = [{transform_indices = @transform_0, window_bounds = array<i64: 64, 512>}, {transform_indices = @transform_1, window_bounds = array<i64: 512, 128>}, {transform_indices = @transform_2, window_bounds = array<i64: 1, 128>}, {transform_indices = @transform_3, window_bounds = array<i64: 64, 128>}]} {
    %c0_i32 = arith.constant 0 : i32
    %0 = arith.cmpi eq, %arg2, %c0_i32 : i32
    %1 = arith.extui %0 : i1 to i32
    %c0_i32_0 = arith.constant 0 : i32
    %2 = arith.cmpi ne, %1, %c0_i32_0 : i32
    scf.if %2 {
      %cst_9 = arith.constant 0.000000e+00 : f32
      %12 = vector.broadcast %cst_9 : f32 to vector<64x128xf32>
      %c0_10 = arith.constant 0 : index
      %c0_11 = arith.constant 0 : index
      %13 = vector.load %arg7[%c0_10, %c0_11] : memref<64x128xf32, #tpu.memory_space<vmem>>, vector<64x128xf32>
      tpu.vector_store %arg7[%c0_10, %c0_11], %12 {strides = array<i32>} : memref<64x128xf32, #tpu.memory_space<vmem>>, vector<64x128xf32>,
    } else {
    }
    %c0 = arith.constant 0 : index
    %c0_1 = arith.constant 0 : index
    %3 = vector.load %arg7[%c0, %c0_1] : memref<64x128xf32, #tpu.memory_space<vmem>>, vector<64x128xf32>
    %c0_2 = arith.constant 0 : index
    %c0_3 = arith.constant 0 : index
    %4 = vector.load %arg3[%c0_2, %c0_3] : memref<64x512xbf16, #tpu.memory_space<vmem>>, vector<64x512xbf16>
    %c0_4 = arith.constant 0 : index
    %c0_5 = arith.constant 0 : index
    %5 = vector.load %arg4[%c0_4, %c0_5] : memref<512x128xbf16, #tpu.memory_space<vmem>>, vector<512x128xbf16>
    %cst = arith.constant dense<0.000000e+00> : vector<64x128xf32>
    %6 = tpu.matmul %4, %5, %cst {dimension_numbers = #tpu.dot_dimension_numbers<[1], [0], [0], [1], [0, 0, 1, 1], [], []>} : vector<64x512xbf16>, vector<512x128xbf16>, vector<64x128xf32> -> vector<64x128xf32>
    %7 = arith.addf %3, %6 : vector<64x128xf32>
    %c0_6 = arith.constant 0 : index
    %c0_7 = arith.constant 0 : index
    %8 = vector.load %arg7[%c0_6, %c0_7] : memref<64x128xf32, #tpu.memory_space<vmem>>, vector<64x128xf32>
    tpu.vector_store %arg7[%c0_6, %c0_7], %7 {strides = array<i32>} : memref<64x128xf32, #tpu.memory_space<vmem>>, vector<64x128xf32>,
    %c1_i32 = arith.constant 1 : i32
    %9 = arith.cmpi eq, %arg2, %c1_i32 : i32
    %10 = arith.extui %9 : i1 to i32
    %c0_i32_8 = arith.constant 0 : i32
    %11 = arith.cmpi ne, %10, %c0_i32_8 : i32
    scf.if %11 {
      %c0_9 = arith.constant 0 : index
      %c0_10 = arith.constant 0 : index
      %12 = vector.load %arg7[%c0_9, %c0_10] : memref<64x128xf32, #tpu.memory_space<vmem>>, vector<64x128xf32>
      %c0_11 = arith.constant 0 : index
      %c0_12 = arith.constant 0 : index
      %13 = vector.load %arg5[%c0_11, %c0_12] : memref<1x128xf32, #tpu.memory_space<vmem>>, vector<1x128xf32>
      %14 = vector.broadcast %13 : vector<1x128xf32> to vector<64x128xf32>
      %15 = arith.addf %12, %14 : vector<64x128xf32>
      %cst_13 = arith.constant 0.000000e+00 : f32
      %16 = vector.broadcast %cst_13 : f32 to vector<64x128xf32>
      %17 = arith.maximumf %15, %16 : vector<64x128xf32>
      %18 = arith.truncf %17 : vector<64x128xf32> to vector<64x128xbf16>
      %c0_14 = arith.constant 0 : index
      %c0_15 = arith.constant 0 : index
      %19 = vector.load %arg6[%c0_14, %c0_15] : memref<64x128xbf16, #tpu.memory_space<vmem>>, vector<64x128xbf16>
      tpu.vector_store %arg6[%c0_14, %c0_15], %18 {strides = array<i32>} : memref<64x128xbf16, #tpu.memory_space<vmem>>, vector<64x128xbf16>,
    } else {
    }
    return
  }
  func.func @transform_0(%arg0: i32, %arg1: i32, %arg2: i32) -> (i32, i32) {
    %c0_i32 = arith.constant 0 : i32
    return %arg0, %arg2 : i32, i32
  }
  func.func @transform_1(%arg0: i32, %arg1: i32, %arg2: i32) -> (i32, i32) {
    %c0_i32 = arith.constant 0 : i32
    return %arg2, %arg1 : i32, i32
  }
  func.func @transform_2(%arg0: i32, %arg1: i32, %arg2: i32) -> (i32, i32) {
    %c0_i32 = arith.constant 0 : i32
    %c0_i32_0 = arith.constant 0 : i32
    return %c0_i32, %arg1 : i32, i32
  }
  func.func @transform_3(%arg0: i32, %arg1: i32, %arg2: i32) -> (i32, i32) {
    %c0_i32 = arith.constant 0 : i32
    return %arg0, %arg1 : i32, i32
  }
}

module attributes {stable_mosaic.version = 11 : i64} {
  func.func @_mm_bias_res_kernel(%arg0: i32, %arg1: i32, %arg2: i32, %arg3: memref<64x128xbf16, #tpu.memory_space<vmem>>, %arg4: memref<128x256xbf16, #tpu.memory_space<vmem>>, %arg5: memref<1x256xf32, #tpu.memory_space<vmem>>, %arg6: memref<64x256xbf16, #tpu.memory_space<vmem>>, %arg7: memref<64x256xbf16, #tpu.memory_space<vmem>>, %arg8: memref<64x256xf32, #tpu.memory_space<vmem>>) attributes {dimension_semantics = [#tpu.dimension_semantics<parallel>, #tpu.dimension_semantics<parallel>, #tpu.dimension_semantics<arbitrary>], iteration_bounds = array<i64: 1, 1, 1>, scalar_prefetch = 0 : i64, scratch_operands = 1 : i64, tpu.core_type = #tpu.core_type<tc>, window_params = [{transform_indices = @transform_0, window_bounds = array<i64: 64, 128>}, {transform_indices = @transform_1, window_bounds = array<i64: 128, 256>}, {transform_indices = @transform_2, window_bounds = array<i64: 1, 256>}, {transform_indices = @transform_3, window_bounds = array<i64: 64, 256>}, {transform_indices = @transform_4, window_bounds = array<i64: 64, 256>}]} {
    %c0_i32 = arith.constant 0 : i32
    %0 = arith.cmpi eq, %arg2, %c0_i32 : i32
    %1 = arith.extui %0 : i1 to i32
    %c0_i32_0 = arith.constant 0 : i32
    %2 = arith.cmpi ne, %1, %c0_i32_0 : i32
    scf.if %2 {
      %cst_10 = arith.constant 0.000000e+00 : f32
      %12 = vector.broadcast %cst_10 : f32 to vector<64x256xf32>
      %c0_11 = arith.constant 0 : index
      %c0_12 = arith.constant 0 : index
      %13 = vector.load %arg8[%c0_11, %c0_12] : memref<64x256xf32, #tpu.memory_space<vmem>>, vector<64x256xf32>
      tpu.vector_store %arg8[%c0_11, %c0_12], %12 {strides = array<i32>} : memref<64x256xf32, #tpu.memory_space<vmem>>, vector<64x256xf32>,
    } else {
    }
    %c0 = arith.constant 0 : index
    %c0_1 = arith.constant 0 : index
    %3 = vector.load %arg8[%c0, %c0_1] : memref<64x256xf32, #tpu.memory_space<vmem>>, vector<64x256xf32>
    %c0_2 = arith.constant 0 : index
    %c0_3 = arith.constant 0 : index
    %4 = vector.load %arg3[%c0_2, %c0_3] : memref<64x128xbf16, #tpu.memory_space<vmem>>, vector<64x128xbf16>
    %c0_4 = arith.constant 0 : index
    %c0_5 = arith.constant 0 : index
    %5 = vector.load %arg4[%c0_4, %c0_5] : memref<128x256xbf16, #tpu.memory_space<vmem>>, vector<128x256xbf16>
    %cst = arith.constant dense<0.000000e+00> : vector<64x256xf32>
    %6 = tpu.matmul %4, %5, %cst {dimension_numbers = #tpu.dot_dimension_numbers<[1], [0], [0], [1], [0, 0, 1, 1], [], []>} : vector<64x128xbf16>, vector<128x256xbf16>, vector<64x256xf32> -> vector<64x256xf32>
    %7 = arith.addf %3, %6 : vector<64x256xf32>
    %c0_6 = arith.constant 0 : index
    %c0_7 = arith.constant 0 : index
    %8 = vector.load %arg8[%c0_6, %c0_7] : memref<64x256xf32, #tpu.memory_space<vmem>>, vector<64x256xf32>
    tpu.vector_store %arg8[%c0_6, %c0_7], %7 {strides = array<i32>} : memref<64x256xf32, #tpu.memory_space<vmem>>, vector<64x256xf32>,
    %c0_i32_8 = arith.constant 0 : i32
    %9 = arith.cmpi eq, %arg2, %c0_i32_8 : i32
    %10 = arith.extui %9 : i1 to i32
    %c0_i32_9 = arith.constant 0 : i32
    %11 = arith.cmpi ne, %10, %c0_i32_9 : i32
    scf.if %11 {
      %c0_10 = arith.constant 0 : index
      %c0_11 = arith.constant 0 : index
      %12 = vector.load %arg8[%c0_10, %c0_11] : memref<64x256xf32, #tpu.memory_space<vmem>>, vector<64x256xf32>
      %c0_12 = arith.constant 0 : index
      %c0_13 = arith.constant 0 : index
      %13 = vector.load %arg5[%c0_12, %c0_13] : memref<1x256xf32, #tpu.memory_space<vmem>>, vector<1x256xf32>
      %14 = vector.broadcast %13 : vector<1x256xf32> to vector<64x256xf32>
      %15 = arith.addf %12, %14 : vector<64x256xf32>
      %c0_14 = arith.constant 0 : index
      %c0_15 = arith.constant 0 : index
      %16 = vector.load %arg6[%c0_14, %c0_15] : memref<64x256xbf16, #tpu.memory_space<vmem>>, vector<64x256xbf16>
      %17 = arith.extf %16 : vector<64x256xbf16> to vector<64x256xf32>
      %18 = arith.addf %15, %17 : vector<64x256xf32>
      %cst_16 = arith.constant 0.000000e+00 : f32
      %19 = vector.broadcast %cst_16 : f32 to vector<64x256xf32>
      %20 = arith.maximumf %18, %19 : vector<64x256xf32>
      %21 = arith.truncf %20 : vector<64x256xf32> to vector<64x256xbf16>
      %c0_17 = arith.constant 0 : index
      %c0_18 = arith.constant 0 : index
      %22 = vector.load %arg7[%c0_17, %c0_18] : memref<64x256xbf16, #tpu.memory_space<vmem>>, vector<64x256xbf16>
      tpu.vector_store %arg7[%c0_17, %c0_18], %21 {strides = array<i32>} : memref<64x256xbf16, #tpu.memory_space<vmem>>, vector<64x256xbf16>,
    } else {
    }
    return
  }
  func.func @transform_0(%arg0: i32, %arg1: i32, %arg2: i32) -> (i32, i32) {
    %c0_i32 = arith.constant 0 : i32
    return %arg0, %arg2 : i32, i32
  }
  func.func @transform_1(%arg0: i32, %arg1: i32, %arg2: i32) -> (i32, i32) {
    %c0_i32 = arith.constant 0 : i32
    return %arg2, %arg1 : i32, i32
  }
  func.func @transform_2(%arg0: i32, %arg1: i32, %arg2: i32) -> (i32, i32) {
    %c0_i32 = arith.constant 0 : i32
    %c0_i32_0 = arith.constant 0 : i32
    return %c0_i32, %arg1 : i32, i32
  }
  func.func @transform_3(%arg0: i32, %arg1: i32, %arg2: i32) -> (i32, i32) {
    %c0_i32 = arith.constant 0 : i32
    return %arg0, %arg1 : i32, i32
  }
  func.func @transform_4(%arg0: i32, %arg1: i32, %arg2: i32) -> (i32, i32) {
    %c0_i32 = arith.constant 0 : i32
    return %arg0, %arg1 : i32, i32
  }
}

module attributes {stable_mosaic.version = 11 : i64} {
  func.func @_mm_bias_kernel(%arg0: i32, %arg1: i32, %arg2: i32, %arg3: memref<64x128xbf16, #tpu.memory_space<vmem>>, %arg4: memref<128x256xbf16, #tpu.memory_space<vmem>>, %arg5: memref<1x256xf32, #tpu.memory_space<vmem>>, %arg6: memref<64x256xbf16, #tpu.memory_space<vmem>>, %arg7: memref<64x256xf32, #tpu.memory_space<vmem>>) attributes {dimension_semantics = [#tpu.dimension_semantics<parallel>, #tpu.dimension_semantics<parallel>, #tpu.dimension_semantics<arbitrary>], iteration_bounds = array<i64: 1, 1, 1>, scalar_prefetch = 0 : i64, scratch_operands = 1 : i64, tpu.core_type = #tpu.core_type<tc>, window_params = [{transform_indices = @transform_0, window_bounds = array<i64: 64, 128>}, {transform_indices = @transform_1, window_bounds = array<i64: 128, 256>}, {transform_indices = @transform_2, window_bounds = array<i64: 1, 256>}, {transform_indices = @transform_3, window_bounds = array<i64: 64, 256>}]} {
    %c0_i32 = arith.constant 0 : i32
    %0 = arith.cmpi eq, %arg2, %c0_i32 : i32
    %1 = arith.extui %0 : i1 to i32
    %c0_i32_0 = arith.constant 0 : i32
    %2 = arith.cmpi ne, %1, %c0_i32_0 : i32
    scf.if %2 {
      %cst_10 = arith.constant 0.000000e+00 : f32
      %12 = vector.broadcast %cst_10 : f32 to vector<64x256xf32>
      %c0_11 = arith.constant 0 : index
      %c0_12 = arith.constant 0 : index
      %13 = vector.load %arg7[%c0_11, %c0_12] : memref<64x256xf32, #tpu.memory_space<vmem>>, vector<64x256xf32>
      tpu.vector_store %arg7[%c0_11, %c0_12], %12 {strides = array<i32>} : memref<64x256xf32, #tpu.memory_space<vmem>>, vector<64x256xf32>,
    } else {
    }
    %c0 = arith.constant 0 : index
    %c0_1 = arith.constant 0 : index
    %3 = vector.load %arg7[%c0, %c0_1] : memref<64x256xf32, #tpu.memory_space<vmem>>, vector<64x256xf32>
    %c0_2 = arith.constant 0 : index
    %c0_3 = arith.constant 0 : index
    %4 = vector.load %arg3[%c0_2, %c0_3] : memref<64x128xbf16, #tpu.memory_space<vmem>>, vector<64x128xbf16>
    %c0_4 = arith.constant 0 : index
    %c0_5 = arith.constant 0 : index
    %5 = vector.load %arg4[%c0_4, %c0_5] : memref<128x256xbf16, #tpu.memory_space<vmem>>, vector<128x256xbf16>
    %cst = arith.constant dense<0.000000e+00> : vector<64x256xf32>
    %6 = tpu.matmul %4, %5, %cst {dimension_numbers = #tpu.dot_dimension_numbers<[1], [0], [0], [1], [0, 0, 1, 1], [], []>} : vector<64x128xbf16>, vector<128x256xbf16>, vector<64x256xf32> -> vector<64x256xf32>
    %7 = arith.addf %3, %6 : vector<64x256xf32>
    %c0_6 = arith.constant 0 : index
    %c0_7 = arith.constant 0 : index
    %8 = vector.load %arg7[%c0_6, %c0_7] : memref<64x256xf32, #tpu.memory_space<vmem>>, vector<64x256xf32>
    tpu.vector_store %arg7[%c0_6, %c0_7], %7 {strides = array<i32>} : memref<64x256xf32, #tpu.memory_space<vmem>>, vector<64x256xf32>,
    %c0_i32_8 = arith.constant 0 : i32
    %9 = arith.cmpi eq, %arg2, %c0_i32_8 : i32
    %10 = arith.extui %9 : i1 to i32
    %c0_i32_9 = arith.constant 0 : i32
    %11 = arith.cmpi ne, %10, %c0_i32_9 : i32
    scf.if %11 {
      %c0_10 = arith.constant 0 : index
      %c0_11 = arith.constant 0 : index
      %12 = vector.load %arg7[%c0_10, %c0_11] : memref<64x256xf32, #tpu.memory_space<vmem>>, vector<64x256xf32>
      %c0_12 = arith.constant 0 : index
      %c0_13 = arith.constant 0 : index
      %13 = vector.load %arg5[%c0_12, %c0_13] : memref<1x256xf32, #tpu.memory_space<vmem>>, vector<1x256xf32>
      %14 = vector.broadcast %13 : vector<1x256xf32> to vector<64x256xf32>
      %15 = arith.addf %12, %14 : vector<64x256xf32>
      %16 = arith.truncf %15 : vector<64x256xf32> to vector<64x256xbf16>
      %c0_14 = arith.constant 0 : index
      %c0_15 = arith.constant 0 : index
      %17 = vector.load %arg6[%c0_14, %c0_15] : memref<64x256xbf16, #tpu.memory_space<vmem>>, vector<64x256xbf16>
      tpu.vector_store %arg6[%c0_14, %c0_15], %16 {strides = array<i32>} : memref<64x256xbf16, #tpu.memory_space<vmem>>, vector<64x256xbf16>,
    } else {
    }
    return
  }
  func.func @transform_0(%arg0: i32, %arg1: i32, %arg2: i32) -> (i32, i32) {
    %c0_i32 = arith.constant 0 : i32
    return %arg0, %arg2 : i32, i32
  }
  func.func @transform_1(%arg0: i32, %arg1: i32, %arg2: i32) -> (i32, i32) {
    %c0_i32 = arith.constant 0 : i32
    return %arg2, %arg1 : i32, i32
  }
  func.func @transform_2(%arg0: i32, %arg1: i32, %arg2: i32) -> (i32, i32) {
    %c0_i32 = arith.constant 0 : i32
    %c0_i32_0 = arith.constant 0 : i32
    return %c0_i32, %arg1 : i32, i32
  }
  func.func @transform_3(%arg0: i32, %arg1: i32, %arg2: i32) -> (i32, i32) {
    %c0_i32 = arith.constant 0 : i32
    return %arg0, %arg1 : i32, i32
  }
}

module attributes {stable_mosaic.version = 11 : i64} {
  func.func @_mm_bias_kernel(%arg0: i32, %arg1: i32, %arg2: i32, %arg3: memref<64x256xbf16, #tpu.memory_space<vmem>>, %arg4: memref<256x256xbf16, #tpu.memory_space<vmem>>, %arg5: memref<1x256xf32, #tpu.memory_space<vmem>>, %arg6: memref<64x256xbf16, #tpu.memory_space<vmem>>, %arg7: memref<64x256xf32, #tpu.memory_space<vmem>>) attributes {dimension_semantics = [#tpu.dimension_semantics<parallel>, #tpu.dimension_semantics<parallel>, #tpu.dimension_semantics<arbitrary>], iteration_bounds = array<i64: 1, 1, 1>, scalar_prefetch = 0 : i64, scratch_operands = 1 : i64, tpu.core_type = #tpu.core_type<tc>, window_params = [{transform_indices = @transform_0, window_bounds = array<i64: 64, 256>}, {transform_indices = @transform_1, window_bounds = array<i64: 256, 256>}, {transform_indices = @transform_2, window_bounds = array<i64: 1, 256>}, {transform_indices = @transform_3, window_bounds = array<i64: 64, 256>}]} {
    %c0_i32 = arith.constant 0 : i32
    %0 = arith.cmpi eq, %arg2, %c0_i32 : i32
    %1 = arith.extui %0 : i1 to i32
    %c0_i32_0 = arith.constant 0 : i32
    %2 = arith.cmpi ne, %1, %c0_i32_0 : i32
    scf.if %2 {
      %cst_10 = arith.constant 0.000000e+00 : f32
      %12 = vector.broadcast %cst_10 : f32 to vector<64x256xf32>
      %c0_11 = arith.constant 0 : index
      %c0_12 = arith.constant 0 : index
      %13 = vector.load %arg7[%c0_11, %c0_12] : memref<64x256xf32, #tpu.memory_space<vmem>>, vector<64x256xf32>
      tpu.vector_store %arg7[%c0_11, %c0_12], %12 {strides = array<i32>} : memref<64x256xf32, #tpu.memory_space<vmem>>, vector<64x256xf32>,
    } else {
    }
    %c0 = arith.constant 0 : index
    %c0_1 = arith.constant 0 : index
    %3 = vector.load %arg7[%c0, %c0_1] : memref<64x256xf32, #tpu.memory_space<vmem>>, vector<64x256xf32>
    %c0_2 = arith.constant 0 : index
    %c0_3 = arith.constant 0 : index
    %4 = vector.load %arg3[%c0_2, %c0_3] : memref<64x256xbf16, #tpu.memory_space<vmem>>, vector<64x256xbf16>
    %c0_4 = arith.constant 0 : index
    %c0_5 = arith.constant 0 : index
    %5 = vector.load %arg4[%c0_4, %c0_5] : memref<256x256xbf16, #tpu.memory_space<vmem>>, vector<256x256xbf16>
    %cst = arith.constant dense<0.000000e+00> : vector<64x256xf32>
    %6 = tpu.matmul %4, %5, %cst {dimension_numbers = #tpu.dot_dimension_numbers<[1], [0], [0], [1], [0, 0, 1, 1], [], []>} : vector<64x256xbf16>, vector<256x256xbf16>, vector<64x256xf32> -> vector<64x256xf32>
    %7 = arith.addf %3, %6 : vector<64x256xf32>
    %c0_6 = arith.constant 0 : index
    %c0_7 = arith.constant 0 : index
    %8 = vector.load %arg7[%c0_6, %c0_7] : memref<64x256xf32, #tpu.memory_space<vmem>>, vector<64x256xf32>
    tpu.vector_store %arg7[%c0_6, %c0_7], %7 {strides = array<i32>} : memref<64x256xf32, #tpu.memory_space<vmem>>, vector<64x256xf32>,
    %c0_i32_8 = arith.constant 0 : i32
    %9 = arith.cmpi eq, %arg2, %c0_i32_8 : i32
    %10 = arith.extui %9 : i1 to i32
    %c0_i32_9 = arith.constant 0 : i32
    %11 = arith.cmpi ne, %10, %c0_i32_9 : i32
    scf.if %11 {
      %c0_10 = arith.constant 0 : index
      %c0_11 = arith.constant 0 : index
      %12 = vector.load %arg7[%c0_10, %c0_11] : memref<64x256xf32, #tpu.memory_space<vmem>>, vector<64x256xf32>
      %c0_12 = arith.constant 0 : index
      %c0_13 = arith.constant 0 : index
      %13 = vector.load %arg5[%c0_12, %c0_13] : memref<1x256xf32, #tpu.memory_space<vmem>>, vector<1x256xf32>
      %14 = vector.broadcast %13 : vector<1x256xf32> to vector<64x256xf32>
      %15 = arith.addf %12, %14 : vector<64x256xf32>
      %cst_14 = arith.constant 0.000000e+00 : f32
      %16 = vector.broadcast %cst_14 : f32 to vector<64x256xf32>
      %17 = arith.maximumf %15, %16 : vector<64x256xf32>
      %18 = arith.truncf %17 : vector<64x256xf32> to vector<64x256xbf16>
      %c0_15 = arith.constant 0 : index
      %c0_16 = arith.constant 0 : index
      %19 = vector.load %arg6[%c0_15, %c0_16] : memref<64x256xbf16, #tpu.memory_space<vmem>>, vector<64x256xbf16>
      tpu.vector_store %arg6[%c0_15, %c0_16], %18 {strides = array<i32>} : memref<64x256xbf16, #tpu.memory_space<vmem>>, vector<64x256xbf16>,
    } else {
    }
    return
  }
  func.func @transform_0(%arg0: i32, %arg1: i32, %arg2: i32) -> (i32, i32) {
    %c0_i32 = arith.constant 0 : i32
    return %arg0, %arg2 : i32, i32
  }
  func.func @transform_1(%arg0: i32, %arg1: i32, %arg2: i32) -> (i32, i32) {
    %c0_i32 = arith.constant 0 : i32
    return %arg2, %arg1 : i32, i32
  }
  func.func @transform_2(%arg0: i32, %arg1: i32, %arg2: i32) -> (i32, i32) {
    %c0_i32 = arith.constant 0 : i32
    %c0_i32_0 = arith.constant 0 : i32
    return %c0_i32, %arg1 : i32, i32
  }
  func.func @transform_3(%arg0: i32, %arg1: i32, %arg2: i32) -> (i32, i32) {
    %c0_i32 = arith.constant 0 : i32
    return %arg0, %arg1 : i32, i32
  }
}

module attributes {stable_mosaic.version = 11 : i64} {
  func.func @_mm_bias_kernel(%arg0: i32, %arg1: i32, %arg2: i32, %arg3: memref<32x512xbf16, #tpu.memory_space<vmem>>, %arg4: memref<512x256xbf16, #tpu.memory_space<vmem>>, %arg5: memref<1x256xf32, #tpu.memory_space<vmem>>, %arg6: memref<32x256xbf16, #tpu.memory_space<vmem>>, %arg7: memref<32x256xf32, #tpu.memory_space<vmem>>) attributes {dimension_semantics = [#tpu.dimension_semantics<parallel>, #tpu.dimension_semantics<parallel>, #tpu.dimension_semantics<arbitrary>], iteration_bounds = array<i64: 1, 1, 4>, scalar_prefetch = 0 : i64, scratch_operands = 1 : i64, tpu.core_type = #tpu.core_type<tc>, window_params = [{transform_indices = @transform_0, window_bounds = array<i64: 32, 512>}, {transform_indices = @transform_1, window_bounds = array<i64: 512, 256>}, {transform_indices = @transform_2, window_bounds = array<i64: 1, 256>}, {transform_indices = @transform_3, window_bounds = array<i64: 32, 256>}]} {
    %c0_i32 = arith.constant 0 : i32
    %0 = arith.cmpi eq, %arg2, %c0_i32 : i32
    %1 = arith.extui %0 : i1 to i32
    %c0_i32_0 = arith.constant 0 : i32
    %2 = arith.cmpi ne, %1, %c0_i32_0 : i32
    scf.if %2 {
      %cst_9 = arith.constant 0.000000e+00 : f32
      %12 = vector.broadcast %cst_9 : f32 to vector<32x256xf32>
      %c0_10 = arith.constant 0 : index
      %c0_11 = arith.constant 0 : index
      %13 = vector.load %arg7[%c0_10, %c0_11] : memref<32x256xf32, #tpu.memory_space<vmem>>, vector<32x256xf32>
      tpu.vector_store %arg7[%c0_10, %c0_11], %12 {strides = array<i32>} : memref<32x256xf32, #tpu.memory_space<vmem>>, vector<32x256xf32>,
    } else {
    }
    %c0 = arith.constant 0 : index
    %c0_1 = arith.constant 0 : index
    %3 = vector.load %arg7[%c0, %c0_1] : memref<32x256xf32, #tpu.memory_space<vmem>>, vector<32x256xf32>
    %c0_2 = arith.constant 0 : index
    %c0_3 = arith.constant 0 : index
    %4 = vector.load %arg3[%c0_2, %c0_3] : memref<32x512xbf16, #tpu.memory_space<vmem>>, vector<32x512xbf16>
    %c0_4 = arith.constant 0 : index
    %c0_5 = arith.constant 0 : index
    %5 = vector.load %arg4[%c0_4, %c0_5] : memref<512x256xbf16, #tpu.memory_space<vmem>>, vector<512x256xbf16>
    %cst = arith.constant dense<0.000000e+00> : vector<32x256xf32>
    %6 = tpu.matmul %4, %5, %cst {dimension_numbers = #tpu.dot_dimension_numbers<[1], [0], [0], [1], [0, 0, 1, 1], [], []>} : vector<32x512xbf16>, vector<512x256xbf16>, vector<32x256xf32> -> vector<32x256xf32>
    %7 = arith.addf %3, %6 : vector<32x256xf32>
    %c0_6 = arith.constant 0 : index
    %c0_7 = arith.constant 0 : index
    %8 = vector.load %arg7[%c0_6, %c0_7] : memref<32x256xf32, #tpu.memory_space<vmem>>, vector<32x256xf32>
    tpu.vector_store %arg7[%c0_6, %c0_7], %7 {strides = array<i32>} : memref<32x256xf32, #tpu.memory_space<vmem>>, vector<32x256xf32>,
    %c3_i32 = arith.constant 3 : i32
    %9 = arith.cmpi eq, %arg2, %c3_i32 : i32
    %10 = arith.extui %9 : i1 to i32
    %c0_i32_8 = arith.constant 0 : i32
    %11 = arith.cmpi ne, %10, %c0_i32_8 : i32
    scf.if %11 {
      %c0_9 = arith.constant 0 : index
      %c0_10 = arith.constant 0 : index
      %12 = vector.load %arg7[%c0_9, %c0_10] : memref<32x256xf32, #tpu.memory_space<vmem>>, vector<32x256xf32>
      %c0_11 = arith.constant 0 : index
      %c0_12 = arith.constant 0 : index
      %13 = vector.load %arg5[%c0_11, %c0_12] : memref<1x256xf32, #tpu.memory_space<vmem>>, vector<1x256xf32>
      %14 = vector.broadcast %13 : vector<1x256xf32> to vector<32x256xf32>
      %15 = arith.addf %12, %14 : vector<32x256xf32>
      %cst_13 = arith.constant 0.000000e+00 : f32
      %16 = vector.broadcast %cst_13 : f32 to vector<32x256xf32>
      %17 = arith.maximumf %15, %16 : vector<32x256xf32>
      %18 = arith.truncf %17 : vector<32x256xf32> to vector<32x256xbf16>
      %c0_14 = arith.constant 0 : index
      %c0_15 = arith.constant 0 : index
      %19 = vector.load %arg6[%c0_14, %c0_15] : memref<32x256xbf16, #tpu.memory_space<vmem>>, vector<32x256xbf16>
      tpu.vector_store %arg6[%c0_14, %c0_15], %18 {strides = array<i32>} : memref<32x256xbf16, #tpu.memory_space<vmem>>, vector<32x256xbf16>,
    } else {
    }
    return
  }
  func.func @transform_0(%arg0: i32, %arg1: i32, %arg2: i32) -> (i32, i32) {
    %c0_i32 = arith.constant 0 : i32
    return %arg0, %arg2 : i32, i32
  }
  func.func @transform_1(%arg0: i32, %arg1: i32, %arg2: i32) -> (i32, i32) {
    %c0_i32 = arith.constant 0 : i32
    return %arg2, %arg1 : i32, i32
  }
  func.func @transform_2(%arg0: i32, %arg1: i32, %arg2: i32) -> (i32, i32) {
    %c0_i32 = arith.constant 0 : i32
    %c0_i32_0 = arith.constant 0 : i32
    return %c0_i32, %arg1 : i32, i32
  }
  func.func @transform_3(%arg0: i32, %arg1: i32, %arg2: i32) -> (i32, i32) {
    %c0_i32 = arith.constant 0 : i32
    return %arg0, %arg1 : i32, i32
  }
}

module attributes {stable_mosaic.version = 11 : i64} {
  func.func @_mm_bias_res_kernel(%arg0: i32, %arg1: i32, %arg2: i32, %arg3: memref<32x256xbf16, #tpu.memory_space<vmem>>, %arg4: memref<256x256xbf16, #tpu.memory_space<vmem>>, %arg5: memref<1x256xf32, #tpu.memory_space<vmem>>, %arg6: memref<32x256xbf16, #tpu.memory_space<vmem>>, %arg7: memref<32x256xbf16, #tpu.memory_space<vmem>>, %arg8: memref<32x256xf32, #tpu.memory_space<vmem>>) attributes {dimension_semantics = [#tpu.dimension_semantics<parallel>, #tpu.dimension_semantics<parallel>, #tpu.dimension_semantics<arbitrary>], iteration_bounds = array<i64: 1, 2, 1>, scalar_prefetch = 0 : i64, scratch_operands = 1 : i64, tpu.core_type = #tpu.core_type<tc>, window_params = [{transform_indices = @transform_0, window_bounds = array<i64: 32, 256>}, {transform_indices = @transform_1, window_bounds = array<i64: 256, 256>}, {transform_indices = @transform_2, window_bounds = array<i64: 1, 256>}, {transform_indices = @transform_3, window_bounds = array<i64: 32, 256>}, {transform_indices = @transform_4, window_bounds = array<i64: 32, 256>}]} {
    %c0_i32 = arith.constant 0 : i32
    %0 = arith.cmpi eq, %arg2, %c0_i32 : i32
    %1 = arith.extui %0 : i1 to i32
    %c0_i32_0 = arith.constant 0 : i32
    %2 = arith.cmpi ne, %1, %c0_i32_0 : i32
    scf.if %2 {
      %cst_10 = arith.constant 0.000000e+00 : f32
      %12 = vector.broadcast %cst_10 : f32 to vector<32x256xf32>
      %c0_11 = arith.constant 0 : index
      %c0_12 = arith.constant 0 : index
      %13 = vector.load %arg8[%c0_11, %c0_12] : memref<32x256xf32, #tpu.memory_space<vmem>>, vector<32x256xf32>
      tpu.vector_store %arg8[%c0_11, %c0_12], %12 {strides = array<i32>} : memref<32x256xf32, #tpu.memory_space<vmem>>, vector<32x256xf32>,
    } else {
    }
    %c0 = arith.constant 0 : index
    %c0_1 = arith.constant 0 : index
    %3 = vector.load %arg8[%c0, %c0_1] : memref<32x256xf32, #tpu.memory_space<vmem>>, vector<32x256xf32>
    %c0_2 = arith.constant 0 : index
    %c0_3 = arith.constant 0 : index
    %4 = vector.load %arg3[%c0_2, %c0_3] : memref<32x256xbf16, #tpu.memory_space<vmem>>, vector<32x256xbf16>
    %c0_4 = arith.constant 0 : index
    %c0_5 = arith.constant 0 : index
    %5 = vector.load %arg4[%c0_4, %c0_5] : memref<256x256xbf16, #tpu.memory_space<vmem>>, vector<256x256xbf16>
    %cst = arith.constant dense<0.000000e+00> : vector<32x256xf32>
    %6 = tpu.matmul %4, %5, %cst {dimension_numbers = #tpu.dot_dimension_numbers<[1], [0], [0], [1], [0, 0, 1, 1], [], []>} : vector<32x256xbf16>, vector<256x256xbf16>, vector<32x256xf32> -> vector<32x256xf32>
    %7 = arith.addf %3, %6 : vector<32x256xf32>
    %c0_6 = arith.constant 0 : index
    %c0_7 = arith.constant 0 : index
    %8 = vector.load %arg8[%c0_6, %c0_7] : memref<32x256xf32, #tpu.memory_space<vmem>>, vector<32x256xf32>
    tpu.vector_store %arg8[%c0_6, %c0_7], %7 {strides = array<i32>} : memref<32x256xf32, #tpu.memory_space<vmem>>, vector<32x256xf32>,
    %c0_i32_8 = arith.constant 0 : i32
    %9 = arith.cmpi eq, %arg2, %c0_i32_8 : i32
    %10 = arith.extui %9 : i1 to i32
    %c0_i32_9 = arith.constant 0 : i32
    %11 = arith.cmpi ne, %10, %c0_i32_9 : i32
    scf.if %11 {
      %c0_10 = arith.constant 0 : index
      %c0_11 = arith.constant 0 : index
      %12 = vector.load %arg8[%c0_10, %c0_11] : memref<32x256xf32, #tpu.memory_space<vmem>>, vector<32x256xf32>
      %c0_12 = arith.constant 0 : index
      %c0_13 = arith.constant 0 : index
      %13 = vector.load %arg5[%c0_12, %c0_13] : memref<1x256xf32, #tpu.memory_space<vmem>>, vector<1x256xf32>
      %14 = vector.broadcast %13 : vector<1x256xf32> to vector<32x256xf32>
      %15 = arith.addf %12, %14 : vector<32x256xf32>
      %c0_14 = arith.constant 0 : index
      %c0_15 = arith.constant 0 : index
      %16 = vector.load %arg6[%c0_14, %c0_15] : memref<32x256xbf16, #tpu.memory_space<vmem>>, vector<32x256xbf16>
      %17 = arith.extf %16 : vector<32x256xbf16> to vector<32x256xf32>
      %18 = arith.addf %15, %17 : vector<32x256xf32>
      %cst_16 = arith.constant 0.000000e+00 : f32
      %19 = vector.broadcast %cst_16 : f32 to vector<32x256xf32>
      %20 = arith.maximumf %18, %19 : vector<32x256xf32>
      %21 = arith.truncf %20 : vector<32x256xf32> to vector<32x256xbf16>
      %c0_17 = arith.constant 0 : index
      %c0_18 = arith.constant 0 : index
      %22 = vector.load %arg7[%c0_17, %c0_18] : memref<32x256xbf16, #tpu.memory_space<vmem>>, vector<32x256xbf16>
      tpu.vector_store %arg7[%c0_17, %c0_18], %21 {strides = array<i32>} : memref<32x256xbf16, #tpu.memory_space<vmem>>, vector<32x256xbf16>,
    } else {
    }
    return
  }
  func.func @transform_0(%arg0: i32, %arg1: i32, %arg2: i32) -> (i32, i32) {
    %c0_i32 = arith.constant 0 : i32
    return %arg0, %arg2 : i32, i32
  }
  func.func @transform_1(%arg0: i32, %arg1: i32, %arg2: i32) -> (i32, i32) {
    %c0_i32 = arith.constant 0 : i32
    return %arg2, %arg1 : i32, i32
  }
  func.func @transform_2(%arg0: i32, %arg1: i32, %arg2: i32) -> (i32, i32) {
    %c0_i32 = arith.constant 0 : i32
    %c0_i32_0 = arith.constant 0 : i32
    return %c0_i32, %arg1 : i32, i32
  }
  func.func @transform_3(%arg0: i32, %arg1: i32, %arg2: i32) -> (i32, i32) {
    %c0_i32 = arith.constant 0 : i32
    return %arg0, %arg1 : i32, i32
  }
  func.func @transform_4(%arg0: i32, %arg1: i32, %arg2: i32) -> (i32, i32) {
    %c0_i32 = arith.constant 0 : i32
    return %arg0, %arg1 : i32, i32
  }
}

module attributes {stable_mosaic.version = 11 : i64} {
  func.func @_mm_bias_kernel(%arg0: i32, %arg1: i32, %arg2: i32, %arg3: memref<32x256xbf16, #tpu.memory_space<vmem>>, %arg4: memref<256x256xbf16, #tpu.memory_space<vmem>>, %arg5: memref<1x256xf32, #tpu.memory_space<vmem>>, %arg6: memref<32x256xbf16, #tpu.memory_space<vmem>>, %arg7: memref<32x256xf32, #tpu.memory_space<vmem>>) attributes {dimension_semantics = [#tpu.dimension_semantics<parallel>, #tpu.dimension_semantics<parallel>, #tpu.dimension_semantics<arbitrary>], iteration_bounds = array<i64: 1, 2, 1>, scalar_prefetch = 0 : i64, scratch_operands = 1 : i64, tpu.core_type = #tpu.core_type<tc>, window_params = [{transform_indices = @transform_0, window_bounds = array<i64: 32, 256>}, {transform_indices = @transform_1, window_bounds = array<i64: 256, 256>}, {transform_indices = @transform_2, window_bounds = array<i64: 1, 256>}, {transform_indices = @transform_3, window_bounds = array<i64: 32, 256>}]} {
    %c0_i32 = arith.constant 0 : i32
    %0 = arith.cmpi eq, %arg2, %c0_i32 : i32
    %1 = arith.extui %0 : i1 to i32
    %c0_i32_0 = arith.constant 0 : i32
    %2 = arith.cmpi ne, %1, %c0_i32_0 : i32
    scf.if %2 {
      %cst_10 = arith.constant 0.000000e+00 : f32
      %12 = vector.broadcast %cst_10 : f32 to vector<32x256xf32>
      %c0_11 = arith.constant 0 : index
      %c0_12 = arith.constant 0 : index
      %13 = vector.load %arg7[%c0_11, %c0_12] : memref<32x256xf32, #tpu.memory_space<vmem>>, vector<32x256xf32>
      tpu.vector_store %arg7[%c0_11, %c0_12], %12 {strides = array<i32>} : memref<32x256xf32, #tpu.memory_space<vmem>>, vector<32x256xf32>,
    } else {
    }
    %c0 = arith.constant 0 : index
    %c0_1 = arith.constant 0 : index
    %3 = vector.load %arg7[%c0, %c0_1] : memref<32x256xf32, #tpu.memory_space<vmem>>, vector<32x256xf32>
    %c0_2 = arith.constant 0 : index
    %c0_3 = arith.constant 0 : index
    %4 = vector.load %arg3[%c0_2, %c0_3] : memref<32x256xbf16, #tpu.memory_space<vmem>>, vector<32x256xbf16>
    %c0_4 = arith.constant 0 : index
    %c0_5 = arith.constant 0 : index
    %5 = vector.load %arg4[%c0_4, %c0_5] : memref<256x256xbf16, #tpu.memory_space<vmem>>, vector<256x256xbf16>
    %cst = arith.constant dense<0.000000e+00> : vector<32x256xf32>
    %6 = tpu.matmul %4, %5, %cst {dimension_numbers = #tpu.dot_dimension_numbers<[1], [0], [0], [1], [0, 0, 1, 1], [], []>} : vector<32x256xbf16>, vector<256x256xbf16>, vector<32x256xf32> -> vector<32x256xf32>
    %7 = arith.addf %3, %6 : vector<32x256xf32>
    %c0_6 = arith.constant 0 : index
    %c0_7 = arith.constant 0 : index
    %8 = vector.load %arg7[%c0_6, %c0_7] : memref<32x256xf32, #tpu.memory_space<vmem>>, vector<32x256xf32>
    tpu.vector_store %arg7[%c0_6, %c0_7], %7 {strides = array<i32>} : memref<32x256xf32, #tpu.memory_space<vmem>>, vector<32x256xf32>,
    %c0_i32_8 = arith.constant 0 : i32
    %9 = arith.cmpi eq, %arg2, %c0_i32_8 : i32
    %10 = arith.extui %9 : i1 to i32
    %c0_i32_9 = arith.constant 0 : i32
    %11 = arith.cmpi ne, %10, %c0_i32_9 : i32
    scf.if %11 {
      %c0_10 = arith.constant 0 : index
      %c0_11 = arith.constant 0 : index
      %12 = vector.load %arg7[%c0_10, %c0_11] : memref<32x256xf32, #tpu.memory_space<vmem>>, vector<32x256xf32>
      %c0_12 = arith.constant 0 : index
      %c0_13 = arith.constant 0 : index
      %13 = vector.load %arg5[%c0_12, %c0_13] : memref<1x256xf32, #tpu.memory_space<vmem>>, vector<1x256xf32>
      %14 = vector.broadcast %13 : vector<1x256xf32> to vector<32x256xf32>
      %15 = arith.addf %12, %14 : vector<32x256xf32>
      %16 = arith.truncf %15 : vector<32x256xf32> to vector<32x256xbf16>
      %c0_14 = arith.constant 0 : index
      %c0_15 = arith.constant 0 : index
      %17 = vector.load %arg6[%c0_14, %c0_15] : memref<32x256xbf16, #tpu.memory_space<vmem>>, vector<32x256xbf16>
      tpu.vector_store %arg6[%c0_14, %c0_15], %16 {strides = array<i32>} : memref<32x256xbf16, #tpu.memory_space<vmem>>, vector<32x256xbf16>,
    } else {
    }
    return
  }
  func.func @transform_0(%arg0: i32, %arg1: i32, %arg2: i32) -> (i32, i32) {
    %c0_i32 = arith.constant 0 : i32
    return %arg0, %arg2 : i32, i32
  }
  func.func @transform_1(%arg0: i32, %arg1: i32, %arg2: i32) -> (i32, i32) {
    %c0_i32 = arith.constant 0 : i32
    return %arg2, %arg1 : i32, i32
  }
  func.func @transform_2(%arg0: i32, %arg1: i32, %arg2: i32) -> (i32, i32) {
    %c0_i32 = arith.constant 0 : i32
    %c0_i32_0 = arith.constant 0 : i32
    return %c0_i32, %arg1 : i32, i32
  }
  func.func @transform_3(%arg0: i32, %arg1: i32, %arg2: i32) -> (i32, i32) {
    %c0_i32 = arith.constant 0 : i32
    return %arg0, %arg1 : i32, i32
  }
}

</mosaic_0001>

<bundles_post_ra>
// kernel: _lambda_.17
= control target key start
LH: loop header
LB: loop body
LE: loop exit
PB: predicated region body
PF: predicated region fallthrough
CT: control target
= control target key end

     0   :  { %8 = vsyncpa [#allocation4], 0  ;;  %s1538_s12 = smov 0   ;;  %s1540_s13 = smov 0   ;;  %s1676_s0 = inlined_call_operand.vmem [shape: bf16[768,128], index: 0, kind: input, shape index: {}]   ;;  %s1677_s1 = inlined_call_operand.hbm [shape: bf16[128,128], index: 1, kind: input, shape index: {}]   ;;  %s1678_s2 = inlined_call_operand.vmem [shape: f32[1,128], index: 2, kind: input, shape index: {}]   ;;  %s1679_s3 = inlined_call_operand.vmem [shape: bf16[768,128], index: 3, kind: output, shape index: {}]  }
   0x1   :  { %s1542_s14 = smov 0  }
   0x2 LB: > { %s1114_s15 = sadd.s32 4294967295, %s1513_s14   ;;  %s33_s16 = sadd.s32 1, %s1509_s13  ;;  %s1513_s14 = sphi %s1542_s14, %s14_s14   ;;  %s1509_s13 = sphi %s1540_s13, %s1683_s13   ;;  %s1505_s12 = sphi %s1538_s12, %s1682_s12  }
   0x3   : > { %p35_p0 = scmp.ge.s32.totalorder %s33_s16, 3  ;;  %p1116_p1 = scmp.ge.s32.totalorder %s1513_s14, 1 }
   0x4   : > { %p148_p2 = scmp.lt.s32.totalorder %s1513_s14, 4  ;;  %p1563_p4 = scmp.eq.s32.totalorder %s1114_s15, 0 }
   0x5   : > { %s1685_s16 = smov (%p35_p0, %s33_s16), 0  ;;  %s1515_s19 = smov [#allocation3]  }
   0x6   : > { %p1559_p3 = pnand %p1116_p1, %p148_p2  ;;  %s164_s20 = sshll.u32 %s1515_s19, 4  ;;  %s165_s20 = int_to_ptr.vmem [resolvable:$true] %s164_s20 }
   0x7   : > { %s1472_s21 = scalar_lea.vmem %s165_s20, 1024  ;;  %p1480_p11 = scmp.lt.s32.totalorder %s165_s20, %s165_s20 }
   0x8   : > { %p1404_p5 = pneg %p1559_p3  ;;  %p1473_p8 = scmp.ne.s32.totalorder %s165_s20, %s1472_s21 }
   0x9   : > { %p1481_p12 = scmp.lt.s32.totalorder %s1472_s21, %s1472_s21 }
   0xa   : > { %p1405_p6 = pnand %p1563_p4, %p1404_p5 }
   0xb   : > { %p1482_p13 = por %p1481_p12, %p1480_p11 }
   0xc   : > { %p1463_p7 = pneg %p1405_p6 }
   0xe   : > { %p1475_p9 = pnand %p1473_p8, %p1463_p7 }
  0x10   : > { %p1476_p10 = pneg %p1475_p9 }
  0x12   : > { %p1483_p0 = pnand %p1482_p13, %p1476_p10 }
  0x14   : > { %1486 = shalt.err (!%p1483_p0)
}
  0x15   : > { %s1516_s22 = smov 64   ;;  %s1517_s23 = smov 4  }
  0x16   : > { %1407 = dma.hbm_to_vmem [thread:$0]  (!%p1405_p6), %s1677_s1, 1024, %s165_s20, [#allocation4], %s1516_s22, %s1516_s22, %s1517_s23  }
  0x17   : > { %198 = sbr.rel (%p1559_p3) target bundleno = 292 (0x124), region = 32 }
  0x1c   : > { %1500 = dma.done.wait (%p1563_p4), [#allocation4], 1024  }
  0x1d   : > { %1502 = vsyncadd (%p1563_p4), [#allocation4], 4294966272  ;;  %s1122_s26 = sshll.u32 %s1505_s12, 5  ;;  %v1437_v0 = vld [vmem:[#allocation3 + $0x38] sm:$0xff]   ;;  %v1438_v1 = vld [vmem:[#allocation3 + $0x30] sm:$0xff]  }
  0x1e   : > { %p232_p1 = scmp.lt.s32.totalorder %s1122_s26, 95  ;;  %1336 = vmatprep.subr.bf16.mxu0 %v1437_v0  ;;  %1384 = vmatprep.subr.bf16.mxu1 %v1437_v0  ;;  %v1439_v2 = vld [vmem:[#allocation3 + $0x28] sm:$0xff]   ;;  %v1440_v3 = vld [vmem:[#allocation3 + $0x20] sm:$0xff]   ;;  %v1441_v6 = vld [vmem:[#allocation3 + $0x18] sm:$0xff]  }
  0x1f   : > { %1337 = vmatpush3.bf16.msra.mxu0 %v1437_v0  ;;  %1392 = vmatpush3.bf16.msra.mxu1 %v1437_v0  ;;  %v1442_v7 = vld [vmem:[#allocation3 + $0x10] sm:$0xff]   ;;  %v1443_v8 = vld [vmem:[#allocation3 + $0x8] sm:$0xff]   ;;  %v1444_v9 = vld [vmem:[#allocation3] sm:$0xff]  }
  0x20   : > { %s1687_s26 = smov (!%p232_p1, %s1122_s26), 95  ;;  %1338 = vmatprep.subr.bf16.mxu0 %v1438_v1  ;;  %1385 = vmatprep.subr.bf16.mxu1 %v1438_v1  ;;  %v1610_v24 = vld [vmem:[%s1678_s2] ss:$0 sm:$0xff] }
  0x21   : > { %s1123_s27 = sshll.u32 %s1687_s26, 2 }
  0x22   : > { %s1589_s30 = scalar_lea.vmem %s1676_s0, %s1123_s27  ;;  %s1625_s8 = scalar_lea.vmem %s1679_s3, %s1123_s27 }
  0x23   : > { %1339 = vmatpush3.bf16.msra.mxu0 %v1438_v1  ;;  %1393 = vmatpush3.bf16.msra.mxu1 %v1438_v1  ;;  %v1445_v4 = vld [vmem:[%s1589_s30] sm:$0xff]   ;;  %v1447_v10 = vld [vmem:[%s1589_s30 + $0x8] sm:$0xff]   ;;  %v1449_v12 = vld [vmem:[%s1589_s30 + $0x10] sm:$0xff]  }
  0x24   : > { %1340 = vmatprep.subr.bf16.mxu0 %v1439_v2  ;;  %1386 = vmatprep.subr.bf16.mxu1 %v1439_v2  ;;  %v1446_v5 = vld [vmem:[%s1589_s30 + $0x40] sm:$0xff]   ;;  %v1448_v11 = vld [vmem:[%s1589_s30 + $0x48] sm:$0xff]   ;;  %v1450_v13 = vld [vmem:[%s1589_s30 + $0x50] sm:$0xff]  }
  0x25   : > { %1352 = vmatprep.mubr.bf16.mxu0 %v1445_v4  ;;  %1368 = vmatprep.mubr.bf16.mxu1 %v1446_v5  ;;  %v1451_v14 = vld [vmem:[%s1589_s30 + $0x18] sm:$0xff]   ;;  %v1453_v16 = vld [vmem:[%s1589_s30 + $0x20] sm:$0xff]   ;;  %v1455_v18 = vld [vmem:[%s1589_s30 + $0x28] sm:$0xff]  }
  0x26   : > { %v1452_v15 = vld [vmem:[%s1589_s30 + $0x58] sm:$0xff]   ;;  %v1454_v17 = vld [vmem:[%s1589_s30 + $0x60] sm:$0xff]   ;;  %v1456_v19 = vld [vmem:[%s1589_s30 + $0x68] sm:$0xff]  }
  0x27   : > { %1341 = vmatpush3.bf16.msra.mxu0 %v1439_v2  ;;  %1394 = vmatpush3.bf16.msra.mxu1 %v1439_v2  ;;  %v1457_v20 = vld [vmem:[%s1589_s30 + $0x30] sm:$0xff]   ;;  %v1459_v22 = vld [vmem:[%s1589_s30 + $0x38] sm:$0xff]  }
  0x28   : > { %1342 = vmatprep.subr.bf16.mxu0 %v1440_v3  ;;  %1387 = vmatprep.subr.bf16.mxu1 %v1440_v3  ;;  %v1458_v21 = vld [vmem:[%s1589_s30 + $0x70] sm:$0xff]   ;;  %v1460_v23 = vld [vmem:[%s1589_s30 + $0x78] sm:$0xff]  }
  0x2b   : > { %1343 = vmatpush3.bf16.msra.mxu0 %v1440_v3  ;;  %1395 = vmatpush3.bf16.msra.mxu1 %v1440_v3 }
  0x2c   : > { %1344 = vmatprep.subr.bf16.mxu0 %v1441_v6  ;;  %1388 = vmatprep.subr.bf16.mxu1 %v1441_v6 }
  0x2f   : > { %1345 = vmatpush3.bf16.msra.mxu0 %v1441_v6  ;;  %1396 = vmatpush3.bf16.msra.mxu1 %v1441_v6 }
  0x30   : > { %1346 = vmatprep.subr.bf16.mxu0 %v1442_v7  ;;  %1389 = vmatprep.subr.bf16.mxu1 %v1442_v7 }
  0x33   : > { %1347 = vmatpush3.bf16.msra.mxu0 %v1442_v7  ;;  %1397 = vmatpush3.bf16.msra.mxu1 %v1442_v7 }
  0x34   : > { %1348 = vmatprep.subr.bf16.mxu0 %v1443_v8  ;;  %1390 = vmatprep.subr.bf16.mxu1 %v1443_v8 }
  0x37   : > { %1349 = vmatpush3.bf16.msra.mxu0 %v1443_v8  ;;  %1398 = vmatpush3.bf16.msra.mxu1 %v1443_v8 }
  0x38   : > { %1350 = vmatprep.subr.bf16.mxu0 %v1444_v9  ;;  %1391 = vmatprep.subr.bf16.mxu1 %v1444_v9 }
  0x3b   : > { %1351 = vmatpush3.bf16.msra.mxu0 %v1444_v9  ;;  %1399 = vmatpush3.bf16.msra.mxu1 %v1444_v9 }
  0x3e   : > { %1353 = vmatmul.mubr.bf16.vlgmr.msra.gmra.mxu0 %v1447_v10  ;;  %1369 = vmatmul.mubr.bf16.vlgmr.msra.gmra.mxu1 %v1448_v11 }
  0x3f   : > { %1356 = vmatprep.mubr.bf16.mxu0 %v1449_v12  ;;  %1372 = vmatprep.mubr.bf16.mxu1 %v1450_v13 }
  0x46   : > { %1357 = vmatmul.mubr.bf16.gmra.mxu0 %v1451_v14  ;;  %1373 = vmatmul.mubr.bf16.gmra.mxu1 %v1452_v15 }
  0x47   : > { %1360 = vmatprep.mubr.bf16.mxu0 %v1453_v16  ;;  %1376 = vmatprep.mubr.bf16.mxu1 %v1454_v17 }
  0x4e   : > { %1361 = vmatmul.mubr.bf16.gmra.mxu0 %v1455_v18  ;;  %1377 = vmatmul.mubr.bf16.gmra.mxu1 %v1456_v19 }
  0x4f   : > { %1364 = vmatprep.mubr.bf16.mxu0 %v1457_v20  ;;  %1380 = vmatprep.mubr.bf16.mxu1 %v1458_v21 }
  0x56   : > { %1365 = vmatmul.mubr.bf16.gmra.mxu0 %v1459_v22  ;;  %1381 = vmatmul.mubr.bf16.gmra.mxu1 %v1460_v23 }
  0xfe   : > { %v1354_v25 = vpop.f32.mrf.mxu0  ;;  %v1370_v26 = vpop.f32.mrf.mxu1 }
  0xff   : > { %v783_v27 = vadd.f32 %v1354_v25, %v1610_v24  ;;  %v799_v28 = vadd.f32 %v1370_v26, %v1610_v24 }
 0x100   : > { %v548_v29 = vpop.f32.mrf.mxu0  ;;  %v612_v30 = vpop.f32.mrf.mxu1 }
 0x101   : > { %v781_v31 = vadd.f32 %v1610_v24, %v548_v29  ;;  %v797_v32 = vadd.f32 %v1610_v24, %v612_v30  ;;  %v815_v37 = vmax.f32 %v783_v27, 0.0  ;;  %v831_v38 = vmax.f32 %v799_v28, 0.0 }
 0x102   : > { %v1355_v33 = vpop.f32.mrf.mxu0  ;;  %v1371_v34 = vpop.f32.mrf.mxu1 }
 0x103   : > { %v784_v35 = vadd.f32 %v1355_v33, %v1610_v24  ;;  %v800_v36 = vadd.f32 %v1371_v34, %v1610_v24  ;;  %v813_v45 = vmax.f32 %v781_v31, 0.0  ;;  %v829_v46 = vmax.f32 %v797_v32, 0.0 }
 0x104   : > { %v551_v39 = vpop.f32.mrf.mxu0  ;;  %v615_v40 = vpop.f32.mrf.mxu1 }
 0x105   : > { %v816_v41 = vmax.f32 %v784_v35, 0.0  ;;  %v832_v42 = vmax.f32 %v800_v36, 0.0  ;;  %v782_v43 = vadd.f32 %v1610_v24, %v551_v39  ;;  %v798_v44 = vadd.f32 %v1610_v24, %v615_v40 }
 0x106   : > { %v1358_v47 = vpop.f32.mrf.mxu0  ;;  %v1374_v48 = vpop.f32.mrf.mxu1 }
 0x107   : > { %v1225_v49 = vpack.c.bf16 %v816_v41, %v815_v37  ;;  %v1265_v50 = vpack.c.bf16 %v832_v42, %v831_v38  ;;  %v814_v51 = vmax.f32 %v782_v43, 0.0  ;;  %v830_v52 = vmax.f32 %v798_v44, 0.0 }
 0x108   : > { %v787_v53 = vadd.f32 %v1358_v47, %v1610_v24  ;;  %v803_v54 = vadd.f32 %v1374_v48, %v1610_v24  ;;  %v564_v55 = vpop.f32.mrf.mxu0  ;;  %v628_v56 = vpop.f32.mrf.mxu1 }
 0x109   : > { %1297 = vst [vmem:[%s1625_s8 + $0x8] sm:$0xff] %v1225_v49   ;;  %1305 = vst [vmem:[%s1625_s8 + $0x48] sm:$0xff] %v1265_v50   ;;  %v1220_v57 = vpack.c.bf16 %v814_v51, %v813_v45  ;;  %v1260_v58 = vpack.c.bf16 %v830_v52, %v829_v46  ;;  %v785_v59 = vadd.f32 %v1610_v24, %v564_v55 }
 0x10a   : > { %v801_v60 = vadd.f32 %v1610_v24, %v628_v56  ;;  %v1359_v61 = vpop.f32.mrf.mxu0  ;;  %v1375_v62 = vpop.f32.mrf.mxu1  ;;  %v819_v1 = vmax.f32 %v787_v53, 0.0  ;;  %v835_v2 = vmax.f32 %v803_v54, 0.0 }
 0x10b   : > { %1221 = vst [vmem:[%s1625_s8] sm:$0xff] %v1220_v57   ;;  %1304 = vst [vmem:[%s1625_s8 + $0x40] sm:$0xff] %v1260_v58   ;;  %v788_v63 = vadd.f32 %v1359_v61, %v1610_v24  ;;  %v804_v0 = vadd.f32 %v1375_v62, %v1610_v24  ;;  %v817_v9 = vmax.f32 %v785_v59, 0.0 }
 0x10c   : > { %v567_v3 = vpop.f32.mrf.mxu0  ;;  %v631_v4 = vpop.f32.mrf.mxu1  ;;  %v833_v10 = vmax.f32 %v801_v60, 0.0 }
 0x10d   : > { %v820_v5 = vmax.f32 %v788_v63, 0.0  ;;  %v836_v6 = vmax.f32 %v804_v0, 0.0  ;;  %v786_v7 = vadd.f32 %v1610_v24, %v567_v3  ;;  %v802_v8 = vadd.f32 %v1610_v24, %v631_v4 }
 0x10e   : > { %v1362_v11 = vpop.f32.mrf.mxu0  ;;  %v1378_v12 = vpop.f32.mrf.mxu1 }
 0x10f   : > { %v1235_v13 = vpack.c.bf16 %v820_v5, %v819_v1  ;;  %v1275_v14 = vpack.c.bf16 %v836_v6, %v835_v2  ;;  %v818_v15 = vmax.f32 %v786_v7, 0.0  ;;  %v834_v16 = vmax.f32 %v802_v8, 0.0 }
 0x110   : > { %v791_v17 = vadd.f32 %v1362_v11, %v1610_v24  ;;  %v807_v18 = vadd.f32 %v1378_v12, %v1610_v24  ;;  %v580_v19 = vpop.f32.mrf.mxu0  ;;  %v644_v20 = vpop.f32.mrf.mxu1 }
 0x111   : > { %1299 = vst [vmem:[%s1625_s8 + $0x18] sm:$0xff] %v1235_v13   ;;  %1307 = vst [vmem:[%s1625_s8 + $0x58] sm:$0xff] %v1275_v14   ;;  %v1230_v21 = vpack.c.bf16 %v818_v15, %v817_v9  ;;  %v1270_v22 = vpack.c.bf16 %v834_v16, %v833_v10  ;;  %v789_v23 = vadd.f32 %v1610_v24, %v580_v19 }
 0x112   : > { %v805_v25 = vadd.f32 %v1610_v24, %v644_v20  ;;  %v1363_v26 = vpop.f32.mrf.mxu0  ;;  %v1379_v27 = vpop.f32.mrf.mxu1  ;;  %v823_v30 = vmax.f32 %v791_v17, 0.0  ;;  %v839_v31 = vmax.f32 %v807_v18, 0.0 }
 0x113   : > { %1298 = vst [vmem:[%s1625_s8 + $0x10] sm:$0xff] %v1230_v21   ;;  %1306 = vst [vmem:[%s1625_s8 + $0x50] sm:$0xff] %v1270_v22   ;;  %v792_v28 = vadd.f32 %v1363_v26, %v1610_v24  ;;  %v808_v29 = vadd.f32 %v1379_v27, %v1610_v24  ;;  %v821_v38 = vmax.f32 %v789_v23, 0.0 }
 0x114   : > { %v583_v32 = vpop.f32.mrf.mxu0  ;;  %v647_v33 = vpop.f32.mrf.mxu1  ;;  %v837_v39 = vmax.f32 %v805_v25, 0.0 }
 0x115   : > { %v824_v34 = vmax.f32 %v792_v28, 0.0  ;;  %v840_v35 = vmax.f32 %v808_v29, 0.0  ;;  %v790_v36 = vadd.f32 %v1610_v24, %v583_v32  ;;  %v806_v37 = vadd.f32 %v1610_v24, %v647_v33 }
 0x116   : > { %v1366_v40 = vpop.f32.mrf.mxu0  ;;  %v1382_v41 = vpop.f32.mrf.mxu1 }
 0x117   : > { %v1245_v42 = vpack.c.bf16 %v824_v34, %v823_v30  ;;  %v1285_v43 = vpack.c.bf16 %v840_v35, %v839_v31  ;;  %v822_v44 = vmax.f32 %v790_v36, 0.0  ;;  %v838_v45 = vmax.f32 %v806_v37, 0.0 }
 0x118   : > { %v795_v46 = vadd.f32 %v1366_v40, %v1610_v24  ;;  %v811_v47 = vadd.f32 %v1382_v41, %v1610_v24  ;;  %v596_v48 = vpop.f32.mrf.mxu0  ;;  %v660_v49 = vpop.f32.mrf.mxu1 }
 0x119   : > { %1301 = vst [vmem:[%s1625_s8 + $0x28] sm:$0xff] %v1245_v42   ;;  %1309 = vst [vmem:[%s1625_s8 + $0x68] sm:$0xff] %v1285_v43   ;;  %v1240_v50 = vpack.c.bf16 %v822_v44, %v821_v38  ;;  %v1280_v51 = vpack.c.bf16 %v838_v45, %v837_v39  ;;  %v793_v52 = vadd.f32 %v1610_v24, %v596_v48 }
 0x11a   : > { %v809_v53 = vadd.f32 %v1610_v24, %v660_v49  ;;  %v1367_v54 = vpop.f32.mrf.mxu0  ;;  %v1383_v55 = vpop.f32.mrf.mxu1  ;;  %v827_v58 = vmax.f32 %v795_v46, 0.0  ;;  %v843_v59 = vmax.f32 %v811_v47, 0.0 }
 0x11b   : > { %1300 = vst [vmem:[%s1625_s8 + $0x20] sm:$0xff] %v1240_v50   ;;  %1308 = vst [vmem:[%s1625_s8 + $0x60] sm:$0xff] %v1280_v51   ;;  %v796_v56 = vadd.f32 %v1367_v54, %v1610_v24  ;;  %v812_v57 = vadd.f32 %v1383_v55, %v1610_v24  ;;  %v825_v2 = vmax.f32 %v793_v52, 0.0 }
 0x11c   : > { %v599_v60 = vpop.f32.mrf.mxu0  ;;  %v663_v61 = vpop.f32.mrf.mxu1  ;;  %v841_v3 = vmax.f32 %v809_v53, 0.0 }
 0x11d   : > { %v828_v62 = vmax.f32 %v796_v56, 0.0  ;;  %v844_v63 = vmax.f32 %v812_v57, 0.0  ;;  %v794_v0 = vadd.f32 %v1610_v24, %v599_v60  ;;  %v810_v1 = vadd.f32 %v1610_v24, %v663_v61 }
 0x11f   : > { %v1255_v4 = vpack.c.bf16 %v828_v62, %v827_v58  ;;  %v1295_v5 = vpack.c.bf16 %v844_v63, %v843_v59  ;;  %v826_v6 = vmax.f32 %v794_v0, 0.0  ;;  %v842_v7 = vmax.f32 %v810_v1, 0.0 }
 0x121   : > { %1303 = vst [vmem:[%s1625_s8 + $0x38] sm:$0xff] %v1255_v4   ;;  %1311 = vst [vmem:[%s1625_s8 + $0x78] sm:$0xff] %v1295_v5   ;;  %v1250_v8 = vpack.c.bf16 %v826_v6, %v825_v2  ;;  %v1290_v9 = vpack.c.bf16 %v842_v7, %v841_v3 }
 0x123   : > { %1302 = vst [vmem:[%s1625_s8 + $0x30] sm:$0xff] %v1250_v8   ;;  %1310 = vst [vmem:[%s1625_s8 + $0x70] sm:$0xff] %v1290_v9  }
 0x124 PF: > { %s14_s14 = sadd.s32 1, %s1513_s14   ;;  %s1682_s12 = smov %s1509_s13 }
 0x125   : > { %p11_p2 = scmp.ge.s32.totalorder %s14_s14, 5   ;;  %s1683_s13 = smov %s1685_s16 }
 0x127   :  { %13 = sbr.rel (!%p11_p2) target bundleno = 2 (0x2), region = 79 }
 0x12c   :  { %1033 = vsyncpa [#allocation4], 1 }
 0x12d   :  { %1035 = vsyncpa [#allocation4 + $0x1], 1 }

// kernel: _lambda_.19
= control target key start
LH: loop header
LB: loop body
LE: loop exit
PB: predicated region body
PF: predicated region fallthrough
CT: control target
= control target key end

     0   :  { %s1744_s12 = smov 0   ;;  %s1746_s13 = smov 0   ;;  %s1918_s0 = inlined_call_operand.vmem [shape: bf16[768,256], index: 0, kind: input, shape index: {}]   ;;  %s1919_s1 = inlined_call_operand.vmem [shape: bf16[256,128], index: 1, kind: input, shape index: {}]   ;;  %s1920_s2 = inlined_call_operand.vmem [shape: f32[1,128], index: 2, kind: input, shape index: {}]   ;;  %s1921_s3 = inlined_call_operand.vmem [shape: bf16[768,128], index: 3, kind: output, shape index: {}]  }
   0x1   :  { %s1748_s14 = smov 0  }
   0x2 LB: > { %s32_s15 = sadd.s32 1, %s1718_s13  ;;  %p1267_p0 = scmp.ge.s32.totalorder %s1722_s14, 1  ;;  %s1722_s14 = sphi %s1748_s14, %s13_s14   ;;  %s1718_s13 = sphi %s1746_s13, %s1923_s13   ;;  %s1714_s12 = sphi %s1744_s12, %s1922_s12  }
   0x3   : > { %p34_p1 = scmp.ge.s32.totalorder %s32_s15, 3  ;;  %p191_p2 = scmp.lt.s32.totalorder %s1722_s14, 4 }
   0x5   : > { %s1925_s15 = smov (%p34_p1, %s32_s15), 0  ;;  %p192_p3 = pnand %p1267_p0, %p191_p2 }
   0x6   : > { %s1268_s18 = sshll.u32 (!%p192_p3), %s1714_s12, 5 }
   0x7   : > { %195 = sbr.rel (%p192_p3) target bundleno = 309 (0x135), region = 32  ;;  %p236_p4 = scmp.lt.s32.totalorder (!%p192_p3), %s1268_s18, 95 }
   0xc   : > { %v1636_v0 = vld [vmem:[%s1919_s1 + $0x78] sm:$0xff]   ;;  %v1638_v2 = vld [vmem:[%s1919_s1 + $0x70] sm:$0xff]   ;;  %v1640_v4 = vld [vmem:[%s1919_s1 + $0x68] sm:$0xff]   ;;  %s1927_s18 = smov (!%p236_p4, %s1268_s18), 95 }
   0xd   : > { %v1637_v1 = vld [vmem:[%s1919_s1 + $0x38] sm:$0xff]   ;;  %1484 = vmatprep.subr.bf16.mxu0 %v1636_v0  ;;  %1596 = vmatprep.subr.bf16.mxu1 %v1636_v0  ;;  %v1639_v3 = vld [vmem:[%s1919_s1 + $0x30] sm:$0xff]   ;;  %v1641_v5 = vld [vmem:[%s1919_s1 + $0x28] sm:$0xff]   ;;  %s1356_s6 = sshll.u32 %s1927_s18, 3  ;;  %s1272_s5 = sshll.u32 %s1927_s18, 2 }
   0xe   : > { %1485 = vmatpush3.bf16.msra.mxu0 %v1637_v1  ;;  %1604 = vmatpush3.bf16.msra.mxu1 %v1637_v1  ;;  %v1642_v6 = vld [vmem:[%s1919_s1 + $0x60] sm:$0xff]   ;;  %v1644_v8 = vld [vmem:[%s1919_s1 + $0x58] sm:$0xff]   ;;  %s1795_s11 = scalar_lea.vmem %s1918_s0, %s1356_s6  ;;  %v1646_v10 = vld [vmem:[%s1919_s1 + $0x50] sm:$0xff]   ;;  %s1863_s8 = scalar_lea.vmem %s1921_s3, %s1272_s5 }
   0xf   : > { %1486 = vmatprep.subr.bf16.mxu0 %v1638_v2  ;;  %1597 = vmatprep.subr.bf16.mxu1 %v1638_v2  ;;  %v1643_v7 = vld [vmem:[%s1919_s1 + $0x20] sm:$0xff]   ;;  %v1645_v9 = vld [vmem:[%s1919_s1 + $0x18] sm:$0xff]   ;;  %v1647_v13 = vld [vmem:[%s1919_s1 + $0x10] sm:$0xff]  }
  0x10   : > { %v1654_v11 = vld [vmem:[%s1795_s11 + $0x4] ss:$8 sps:$4 sm:$0xff]   ;;  %v1652_v18 = vld [vmem:[%s1795_s11] ss:$8 sps:$4 sm:$0xff]   ;;  %v1658_v20 = vld [vmem:[%s1795_s11 + $0x14] ss:$8 sps:$4 sm:$0xff]  }
  0x11   : > { %v1657_v12 = vld [vmem:[%s1795_s11 + $0x84] ss:$8 sps:$4 sm:$0xff]   ;;  %688 = vmatprep.mubr.bf16.mxu0 %v1654_v11  ;;  %v1655_v19 = vld [vmem:[%s1795_s11 + $0x80] ss:$8 sps:$4 sm:$0xff]   ;;  %v1660_v21 = vld [vmem:[%s1795_s11 + $0x94] ss:$8 sps:$4 sm:$0xff]  }
  0x12   : > { %1487 = vmatpush3.bf16.msra.mxu0 %v1639_v3  ;;  %1605 = vmatpush3.bf16.msra.mxu1 %v1639_v3  ;;  %v1648_v14 = vld [vmem:[%s1919_s1 + $0x48] sm:$0xff]   ;;  %v1650_v16 = vld [vmem:[%s1919_s1 + $0x40] sm:$0xff]   ;;  %v1662_v22 = vld [vmem:[%s1795_s11 + $0x10] ss:$8 sps:$4 sm:$0xff]  }
  0x13   : > { %1488 = vmatprep.subr.bf16.mxu0 %v1640_v4  ;;  %1598 = vmatprep.subr.bf16.mxu1 %v1640_v4  ;;  %v1649_v15 = vld [vmem:[%s1919_s1 + $0x8] sm:$0xff]   ;;  %v1651_v17 = vld [vmem:[%s1919_s1] sm:$0xff]   ;;  %v1663_v23 = vld [vmem:[%s1795_s11 + $0x90] ss:$8 sps:$4 sm:$0xff]  }
  0x14   : > { %752 = vmatprep.mubr.bf16.mxu1 %v1657_v12  ;;  %v1664_v24 = vld [vmem:[%s1795_s11 + $0x24] ss:$8 sps:$4 sm:$0xff]   ;;  %v1668_v26 = vld [vmem:[%s1795_s11 + $0x20] ss:$8 sps:$4 sm:$0xff]   ;;  %v1670_v28 = vld [vmem:[%s1795_s11 + $0x34] ss:$8 sps:$4 sm:$0xff]  }
  0x15   : > { %v1666_v25 = vld [vmem:[%s1795_s11 + $0xa4] ss:$8 sps:$4 sm:$0xff]   ;;  %v1669_v27 = vld [vmem:[%s1795_s11 + $0xa0] ss:$8 sps:$4 sm:$0xff]   ;;  %v1672_v29 = vld [vmem:[%s1795_s11 + $0xb4] ss:$8 sps:$4 sm:$0xff]  }
  0x16   : > { %1489 = vmatpush3.bf16.msra.mxu0 %v1641_v5  ;;  %1606 = vmatpush3.bf16.msra.mxu1 %v1641_v5  ;;  %v1674_v30 = vld [vmem:[%s1795_s11 + $0x30] ss:$8 sps:$4 sm:$0xff]   ;;  %v1676_v32 = vld [vmem:[%s1795_s11 + $0x44] ss:$8 sps:$4 sm:$0xff]   ;;  %v1680_v34 = vld [vmem:[%s1795_s11 + $0x40] ss:$8 sps:$4 sm:$0xff]  }
  0x17   : > { %1490 = vmatprep.subr.bf16.mxu0 %v1642_v6  ;;  %1599 = vmatprep.subr.bf16.mxu1 %v1642_v6  ;;  %v1675_v31 = vld [vmem:[%s1795_s11 + $0xb0] ss:$8 sps:$4 sm:$0xff]   ;;  %v1678_v33 = vld [vmem:[%s1795_s11 + $0xc4] ss:$8 sps:$4 sm:$0xff]   ;;  %v1681_v35 = vld [vmem:[%s1795_s11 + $0xc0] ss:$8 sps:$4 sm:$0xff]  }
  0x18   : > { %v1682_v36 = vld [vmem:[%s1795_s11 + $0x54] ss:$8 sps:$4 sm:$0xff]   ;;  %v1686_v38 = vld [vmem:[%s1795_s11 + $0x50] ss:$8 sps:$4 sm:$0xff]   ;;  %v1688_v40 = vld [vmem:[%s1795_s11 + $0x64] ss:$8 sps:$4 sm:$0xff]  }
  0x19   : > { %v1684_v37 = vld [vmem:[%s1795_s11 + $0xd4] ss:$8 sps:$4 sm:$0xff]   ;;  %v1687_v39 = vld [vmem:[%s1795_s11 + $0xd0] ss:$8 sps:$4 sm:$0xff]   ;;  %v1690_v41 = vld [vmem:[%s1795_s11 + $0xe4] ss:$8 sps:$4 sm:$0xff]  }
  0x1a   : > { %1491 = vmatpush3.bf16.msra.mxu0 %v1643_v7  ;;  %1607 = vmatpush3.bf16.msra.mxu1 %v1643_v7  ;;  %v1692_v42 = vld [vmem:[%s1795_s11 + $0x60] ss:$8 sps:$4 sm:$0xff]   ;;  %v1694_v44 = vld [vmem:[%s1795_s11 + $0x74] ss:$8 sps:$4 sm:$0xff]   ;;  %v1698_v46 = vld [vmem:[%s1795_s11 + $0x70] ss:$8 sps:$4 sm:$0xff]  }
  0x1b   : > { %1492 = vmatprep.subr.bf16.mxu0 %v1644_v8  ;;  %1600 = vmatprep.subr.bf16.mxu1 %v1644_v8  ;;  %v1693_v43 = vld [vmem:[%s1795_s11 + $0xe0] ss:$8 sps:$4 sm:$0xff]   ;;  %v1696_v45 = vld [vmem:[%s1795_s11 + $0xf4] ss:$8 sps:$4 sm:$0xff]   ;;  %v1699_v47 = vld [vmem:[%s1795_s11 + $0xf0] ss:$8 sps:$4 sm:$0xff]  }
  0x1c   : > { %v1853_v53 = vld [vmem:[%s1920_s2] ss:$0 sm:$0xff] }
  0x1e   : > { %1493 = vmatpush3.bf16.msra.mxu0 %v1645_v9  ;;  %1608 = vmatpush3.bf16.msra.mxu1 %v1645_v9 }
  0x1f   : > { %1494 = vmatprep.subr.bf16.mxu0 %v1646_v10  ;;  %1601 = vmatprep.subr.bf16.mxu1 %v1646_v10 }
  0x22   : > { %1495 = vmatpush3.bf16.msra.mxu0 %v1647_v13  ;;  %1609 = vmatpush3.bf16.msra.mxu1 %v1647_v13 }
  0x23   : > { %1496 = vmatprep.subr.bf16.mxu0 %v1648_v14  ;;  %1602 = vmatprep.subr.bf16.mxu1 %v1648_v14 }
  0x26   : > { %1497 = vmatpush3.bf16.msra.mxu0 %v1649_v15  ;;  %1610 = vmatpush3.bf16.msra.mxu1 %v1649_v15 }
  0x27   : > { %1498 = vmatprep.subr.bf16.mxu0 %v1650_v16  ;;  %1603 = vmatprep.subr.bf16.mxu1 %v1650_v16 }
  0x2a   : > { %1499 = vmatpush3.bf16.msra.mxu0 %v1651_v17  ;;  %1611 = vmatpush3.bf16.msra.mxu1 %v1651_v17 }
  0x2d   : > { %689 = vmatmul.mubr.bf16.vlgmr.msra.gmra.mxu0 %v1652_v18  ;;  %753 = vmatmul.mubr.bf16.vlgmr.msra.gmra.mxu1 %v1655_v19 }
  0x2e   : > { %696 = vmatprep.mubr.bf16.mxu0 %v1658_v20  ;;  %760 = vmatprep.mubr.bf16.mxu1 %v1660_v21 }
  0x35   : > { %697 = vmatmul.mubr.bf16.gmra.mxu0 %v1662_v22  ;;  %761 = vmatmul.mubr.bf16.gmra.mxu1 %v1663_v23 }
  0x36   : > { %704 = vmatprep.mubr.bf16.mxu0 %v1664_v24  ;;  %768 = vmatprep.mubr.bf16.mxu1 %v1666_v25 }
  0x3d   : > { %705 = vmatmul.mubr.bf16.gmra.mxu0 %v1668_v26  ;;  %769 = vmatmul.mubr.bf16.gmra.mxu1 %v1669_v27 }
  0x3e   : > { %712 = vmatprep.mubr.bf16.mxu0 %v1670_v28  ;;  %776 = vmatprep.mubr.bf16.mxu1 %v1672_v29 }
  0x45   : > { %713 = vmatmul.mubr.bf16.gmra.mxu0 %v1674_v30  ;;  %777 = vmatmul.mubr.bf16.gmra.mxu1 %v1675_v31 }
  0x46   : > { %720 = vmatprep.mubr.bf16.mxu0 %v1676_v32  ;;  %784 = vmatprep.mubr.bf16.mxu1 %v1678_v33 }
  0x4d   : > { %721 = vmatmul.mubr.bf16.gmra.mxu0 %v1680_v34  ;;  %785 = vmatmul.mubr.bf16.gmra.mxu1 %v1681_v35 }
  0x4e   : > { %728 = vmatprep.mubr.bf16.mxu0 %v1682_v36  ;;  %792 = vmatprep.mubr.bf16.mxu1 %v1684_v37 }
  0x55   : > { %729 = vmatmul.mubr.bf16.gmra.mxu0 %v1686_v38  ;;  %793 = vmatmul.mubr.bf16.gmra.mxu1 %v1687_v39 }
  0x56   : > { %736 = vmatprep.mubr.bf16.mxu0 %v1688_v40  ;;  %800 = vmatprep.mubr.bf16.mxu1 %v1690_v41 }
  0x5d   : > { %737 = vmatmul.mubr.bf16.gmra.mxu0 %v1692_v42  ;;  %801 = vmatmul.mubr.bf16.gmra.mxu1 %v1693_v43 }
  0x5e   : > { %744 = vmatprep.mubr.bf16.mxu0 %v1694_v44  ;;  %808 = vmatprep.mubr.bf16.mxu1 %v1696_v45 }
  0x65   : > { %745 = vmatmul.mubr.bf16.gmra.mxu0 %v1698_v46  ;;  %809 = vmatmul.mubr.bf16.gmra.mxu1 %v1699_v47 }
  0xed   : > { %v1500_v48 = vpop.f32.mrf.mxu0  ;;  %v1548_v49 = vpop.f32.mrf.mxu1 }
  0xef   : > { %v1501_v50 = vpop.f32.mrf.mxu0  ;;  %v1549_v51 = vpop.f32.mrf.mxu1 }
  0xf0   : > { %v1502_v52 = vadd.f32 %v1501_v50, %v1500_v48  ;;  %v1550_v54 = vadd.f32 %v1549_v51, %v1548_v49 }
  0xf1   : > { %v1503_v55 = vpop.f32.mrf.mxu0  ;;  %v1551_v56 = vpop.f32.mrf.mxu1 }
  0xf2   : > { %v923_v57 = vadd.f32 %v1502_v52, %v1853_v53  ;;  %v939_v58 = vadd.f32 %v1550_v54, %v1853_v53 }
  0xf3   : > { %v1504_v59 = vpop.f32.mrf.mxu0  ;;  %v1552_v60 = vpop.f32.mrf.mxu1 }
  0xf4   : > { %v1505_v61 = vadd.f32 %v1504_v59, %v1503_v55  ;;  %v1553_v62 = vadd.f32 %v1552_v60, %v1551_v56  ;;  %v955_v3 = vmax.f32 %v923_v57, 0.0  ;;  %v971_v4 = vmax.f32 %v939_v58, 0.0 }
  0xf5   : > { %v1506_v63 = vpop.f32.mrf.mxu0  ;;  %v1554_v0 = vpop.f32.mrf.mxu1 }
  0xf6   : > { %v924_v1 = vadd.f32 %v1505_v61, %v1853_v53  ;;  %v940_v2 = vadd.f32 %v1553_v62, %v1853_v53 }
  0xf7   : > { %v1507_v5 = vpop.f32.mrf.mxu0  ;;  %v1555_v6 = vpop.f32.mrf.mxu1 }
  0xf8   : > { %v956_v7 = vmax.f32 %v924_v1, 0.0  ;;  %v972_v8 = vmax.f32 %v940_v2, 0.0  ;;  %v1508_v9 = vadd.f32 %v1507_v5, %v1506_v63  ;;  %v1556_v10 = vadd.f32 %v1555_v6, %v1554_v0 }
  0xf9   : > { %v1509_v11 = vpop.f32.mrf.mxu0  ;;  %v1557_v12 = vpop.f32.mrf.mxu1 }
  0xfa   : > { %v1392_v13 = vpack.c.bf16 %v956_v7, %v955_v3  ;;  %v1432_v14 = vpack.c.bf16 %v972_v8, %v971_v4  ;;  %v925_v15 = vadd.f32 %v1508_v9, %v1853_v53  ;;  %v941_v16 = vadd.f32 %v1556_v10, %v1853_v53 }
  0xfb   : > { %v1510_v17 = vpop.f32.mrf.mxu0  ;;  %v1558_v18 = vpop.f32.mrf.mxu1 }
  0xfc   : > { %1393 = vst [vmem:[%s1863_s8] sm:$0xff] %v1392_v13   ;;  %1476 = vst [vmem:[%s1863_s8 + $0x40] sm:$0xff] %v1432_v14   ;;  %v1511_v19 = vadd.f32 %v1510_v17, %v1509_v11  ;;  %v1559_v20 = vadd.f32 %v1558_v18, %v1557_v12  ;;  %v957_v25 = vmax.f32 %v925_v15, 0.0  ;;  %v973_v26 = vmax.f32 %v941_v16, 0.0 }
  0xfd   : > { %v1512_v21 = vpop.f32.mrf.mxu0  ;;  %v1560_v22 = vpop.f32.mrf.mxu1 }
  0xfe   : > { %v926_v23 = vadd.f32 %v1511_v19, %v1853_v53  ;;  %v942_v24 = vadd.f32 %v1559_v20, %v1853_v53 }
  0xff   : > { %v1513_v27 = vpop.f32.mrf.mxu0  ;;  %v1561_v28 = vpop.f32.mrf.mxu1 }
 0x100   : > { %v958_v29 = vmax.f32 %v926_v23, 0.0  ;;  %v974_v30 = vmax.f32 %v942_v24, 0.0  ;;  %v1514_v31 = vadd.f32 %v1513_v27, %v1512_v21  ;;  %v1562_v32 = vadd.f32 %v1561_v28, %v1560_v22 }
 0x101   : > { %v1515_v33 = vpop.f32.mrf.mxu0  ;;  %v1563_v34 = vpop.f32.mrf.mxu1 }
 0x102   : > { %v1397_v35 = vpack.c.bf16 %v958_v29, %v957_v25  ;;  %v1437_v36 = vpack.c.bf16 %v974_v30, %v973_v26  ;;  %v927_v37 = vadd.f32 %v1514_v31, %v1853_v53  ;;  %v943_v38 = vadd.f32 %v1562_v32, %v1853_v53 }
 0x103   : > { %v1516_v39 = vpop.f32.mrf.mxu0  ;;  %v1564_v40 = vpop.f32.mrf.mxu1 }
 0x104   : > { %1469 = vst [vmem:[%s1863_s8 + $0x8] sm:$0xff] %v1397_v35   ;;  %1477 = vst [vmem:[%s1863_s8 + $0x48] sm:$0xff] %v1437_v36   ;;  %v1517_v41 = vadd.f32 %v1516_v39, %v1515_v33  ;;  %v1565_v42 = vadd.f32 %v1564_v40, %v1563_v34  ;;  %v959_v47 = vmax.f32 %v927_v37, 0.0  ;;  %v975_v48 = vmax.f32 %v943_v38, 0.0 }
 0x105   : > { %v1518_v43 = vpop.f32.mrf.mxu0  ;;  %v1566_v44 = vpop.f32.mrf.mxu1 }
 0x106   : > { %v928_v45 = vadd.f32 %v1517_v41, %v1853_v53  ;;  %v944_v46 = vadd.f32 %v1565_v42, %v1853_v53 }
 0x107   : > { %v1519_v49 = vpop.f32.mrf.mxu0  ;;  %v1567_v50 = vpop.f32.mrf.mxu1 }
 0x108   : > { %v960_v51 = vmax.f32 %v928_v45, 0.0  ;;  %v976_v52 = vmax.f32 %v944_v46, 0.0  ;;  %v1520_v54 = vadd.f32 %v1519_v49, %v1518_v43  ;;  %v1568_v55 = vadd.f32 %v1567_v50, %v1566_v44 }
 0x109   : > { %v1521_v56 = vpop.f32.mrf.mxu0  ;;  %v1569_v57 = vpop.f32.mrf.mxu1 }
 0x10a   : > { %v1402_v58 = vpack.c.bf16 %v960_v51, %v959_v47  ;;  %v1442_v59 = vpack.c.bf16 %v976_v52, %v975_v48  ;;  %v929_v60 = vadd.f32 %v1520_v54, %v1853_v53  ;;  %v945_v61 = vadd.f32 %v1568_v55, %v1853_v53 }
 0x10b   : > { %v1522_v62 = vpop.f32.mrf.mxu0  ;;  %v1570_v63 = vpop.f32.mrf.mxu1 }
 0x10c   : > { %1470 = vst [vmem:[%s1863_s8 + $0x10] sm:$0xff] %v1402_v58   ;;  %1478 = vst [vmem:[%s1863_s8 + $0x50] sm:$0xff] %v1442_v59   ;;  %v1523_v0 = vadd.f32 %v1522_v62, %v1521_v56  ;;  %v1571_v1 = vadd.f32 %v1570_v63, %v1569_v57  ;;  %v961_v6 = vmax.f32 %v929_v60, 0.0  ;;  %v977_v7 = vmax.f32 %v945_v61, 0.0 }
 0x10d   : > { %v1524_v2 = vpop.f32.mrf.mxu0  ;;  %v1572_v3 = vpop.f32.mrf.mxu1 }
 0x10e   : > { %v930_v4 = vadd.f32 %v1523_v0, %v1853_v53  ;;  %v946_v5 = vadd.f32 %v1571_v1, %v1853_v53 }
 0x10f   : > { %v1525_v8 = vpop.f32.mrf.mxu0  ;;  %v1573_v9 = vpop.f32.mrf.mxu1 }
 0x110   : > { %v962_v10 = vmax.f32 %v930_v4, 0.0  ;;  %v978_v11 = vmax.f32 %v946_v5, 0.0  ;;  %v1526_v12 = vadd.f32 %v1525_v8, %v1524_v2  ;;  %v1574_v13 = vadd.f32 %v1573_v9, %v1572_v3 }
 0x111   : > { %v1527_v14 = vpop.f32.mrf.mxu0  ;;  %v1575_v15 = vpop.f32.mrf.mxu1 }
 0x112   : > { %v1407_v16 = vpack.c.bf16 %v962_v10, %v961_v6  ;;  %v1447_v17 = vpack.c.bf16 %v978_v11, %v977_v7  ;;  %v931_v18 = vadd.f32 %v1526_v12, %v1853_v53  ;;  %v947_v19 = vadd.f32 %v1574_v13, %v1853_v53 }
 0x113   : > { %v1528_v20 = vpop.f32.mrf.mxu0  ;;  %v1576_v21 = vpop.f32.mrf.mxu1 }
 0x114   : > { %1471 = vst [vmem:[%s1863_s8 + $0x18] sm:$0xff] %v1407_v16   ;;  %1479 = vst [vmem:[%s1863_s8 + $0x58] sm:$0xff] %v1447_v17   ;;  %v1529_v22 = vadd.f32 %v1528_v20, %v1527_v14  ;;  %v1577_v23 = vadd.f32 %v1576_v21, %v1575_v15  ;;  %v963_v28 = vmax.f32 %v931_v18, 0.0  ;;  %v979_v29 = vmax.f32 %v947_v19, 0.0 }
 0x115   : > { %v1530_v24 = vpop.f32.mrf.mxu0  ;;  %v1578_v25 = vpop.f32.mrf.mxu1 }
 0x116   : > { %v932_v26 = vadd.f32 %v1529_v22, %v1853_v53  ;;  %v948_v27 = vadd.f32 %v1577_v23, %v1853_v53 }
 0x117   : > { %v1531_v30 = vpop.f32.mrf.mxu0  ;;  %v1579_v31 = vpop.f32.mrf.mxu1 }
 0x118   : > { %v964_v32 = vmax.f32 %v932_v26, 0.0  ;;  %v980_v33 = vmax.f32 %v948_v27, 0.0  ;;  %v1532_v34 = vadd.f32 %v1531_v30, %v1530_v24  ;;  %v1580_v35 = vadd.f32 %v1579_v31, %v1578_v25 }
 0x119   : > { %v1533_v36 = vpop.f32.mrf.mxu0  ;;  %v1581_v37 = vpop.f32.mrf.mxu1 }
 0x11a   : > { %v1412_v38 = vpack.c.bf16 %v964_v32, %v963_v28  ;;  %v1452_v39 = vpack.c.bf16 %v980_v33, %v979_v29  ;;  %v933_v40 = vadd.f32 %v1532_v34, %v1853_v53  ;;  %v949_v41 = vadd.f32 %v1580_v35, %v1853_v53 }
 0x11b   : > { %v1534_v42 = vpop.f32.mrf.mxu0  ;;  %v1582_v43 = vpop.f32.mrf.mxu1 }
 0x11c   : > { %1472 = vst [vmem:[%s1863_s8 + $0x20] sm:$0xff] %v1412_v38   ;;  %1480 = vst [vmem:[%s1863_s8 + $0x60] sm:$0xff] %v1452_v39   ;;  %v1535_v44 = vadd.f32 %v1534_v42, %v1533_v36  ;;  %v1583_v45 = vadd.f32 %v1582_v43, %v1581_v37  ;;  %v965_v50 = vmax.f32 %v933_v40, 0.0  ;;  %v981_v51 = vmax.f32 %v949_v41, 0.0 }
 0x11d   : > { %v1536_v46 = vpop.f32.mrf.mxu0  ;;  %v1584_v47 = vpop.f32.mrf.mxu1 }
 0x11e   : > { %v934_v48 = vadd.f32 %v1535_v44, %v1853_v53  ;;  %v950_v49 = vadd.f32 %v1583_v45, %v1853_v53 }
 0x11f   : > { %v1537_v52 = vpop.f32.mrf.mxu0  ;;  %v1585_v54 = vpop.f32.mrf.mxu1 }
 0x120   : > { %v966_v55 = vmax.f32 %v934_v48, 0.0  ;;  %v982_v56 = vmax.f32 %v950_v49, 0.0  ;;  %v1538_v57 = vadd.f32 %v1537_v52, %v1536_v46  ;;  %v1586_v58 = vadd.f32 %v1585_v54, %v1584_v47 }
 0x121   : > { %v1539_v59 = vpop.f32.mrf.mxu0  ;;  %v1587_v60 = vpop.f32.mrf.mxu1 }
 0x122   : > { %v1417_v61 = vpack.c.bf16 %v966_v55, %v965_v50  ;;  %v1457_v62 = vpack.c.bf16 %v982_v56, %v981_v51  ;;  %v935_v63 = vadd.f32 %v1538_v57, %v1853_v53  ;;  %v951_v0 = vadd.f32 %v1586_v58, %v1853_v53 }
 0x123   : > { %v1540_v1 = vpop.f32.mrf.mxu0  ;;  %v1588_v2 = vpop.f32.mrf.mxu1 }
 0x124   : > { %1473 = vst [vmem:[%s1863_s8 + $0x28] sm:$0xff] %v1417_v61   ;;  %1481 = vst [vmem:[%s1863_s8 + $0x68] sm:$0xff] %v1457_v62   ;;  %v1541_v3 = vadd.f32 %v1540_v1, %v1539_v59  ;;  %v1589_v4 = vadd.f32 %v1588_v2, %v1587_v60  ;;  %v967_v9 = vmax.f32 %v935_v63, 0.0  ;;  %v983_v10 = vmax.f32 %v951_v0, 0.0 }
 0x125   : > { %v1542_v5 = vpop.f32.mrf.mxu0  ;;  %v1590_v6 = vpop.f32.mrf.mxu1 }
 0x126   : > { %v936_v7 = vadd.f32 %v1541_v3, %v1853_v53  ;;  %v952_v8 = vadd.f32 %v1589_v4, %v1853_v53 }
 0x127   : > { %v1543_v11 = vpop.f32.mrf.mxu0  ;;  %v1591_v12 = vpop.f32.mrf.mxu1 }
 0x128   : > { %v968_v13 = vmax.f32 %v936_v7, 0.0  ;;  %v984_v14 = vmax.f32 %v952_v8, 0.0  ;;  %v1544_v15 = vadd.f32 %v1543_v11, %v1542_v5  ;;  %v1592_v16 = vadd.f32 %v1591_v12, %v1590_v6 }
 0x129   : > { %v1545_v17 = vpop.f32.mrf.mxu0  ;;  %v1593_v18 = vpop.f32.mrf.mxu1 }
 0x12a   : > { %v1422_v19 = vpack.c.bf16 %v968_v13, %v967_v9  ;;  %v1462_v20 = vpack.c.bf16 %v984_v14, %v983_v10  ;;  %v937_v23 = vadd.f32 %v1544_v15, %v1853_v53  ;;  %v953_v24 = vadd.f32 %v1592_v16, %v1853_v53 }
 0x12b   : > { %v1546_v21 = vpop.f32.mrf.mxu0  ;;  %v1594_v22 = vpop.f32.mrf.mxu1 }
 0x12c   : > { %1474 = vst [vmem:[%s1863_s8 + $0x30] sm:$0xff] %v1422_v19   ;;  %1482 = vst [vmem:[%s1863_s8 + $0x70] sm:$0xff] %v1462_v20   ;;  %v1547_v25 = vadd.f32 %v1546_v21, %v1545_v17  ;;  %v1595_v26 = vadd.f32 %v1594_v22, %v1593_v18  ;;  %v969_v29 = vmax.f32 %v937_v23, 0.0  ;;  %v985_v30 = vmax.f32 %v953_v24, 0.0 }
 0x12e   : > { %v938_v27 = vadd.f32 %v1547_v25, %v1853_v53  ;;  %v954_v28 = vadd.f32 %v1595_v26, %v1853_v53 }
 0x130   : > { %v970_v31 = vmax.f32 %v938_v27, 0.0  ;;  %v986_v32 = vmax.f32 %v954_v28, 0.0 }
 0x132   : > { %v1427_v33 = vpack.c.bf16 %v970_v31, %v969_v29  ;;  %v1467_v34 = vpack.c.bf16 %v986_v32, %v985_v30 }
 0x134   : > { %1475 = vst [vmem:[%s1863_s8 + $0x38] sm:$0xff] %v1427_v33   ;;  %1483 = vst [vmem:[%s1863_s8 + $0x78] sm:$0xff] %v1467_v34  }
 0x135 PF: > { %s13_s14 = sadd.s32 1, %s1722_s14   ;;  %s1922_s12 = smov %s1718_s13 }
 0x136   : > { %p10_p5 = scmp.ge.s32.totalorder %s13_s14, 5   ;;  %s1923_s13 = smov %s1925_s15 }
 0x138   :  { %12 = sbr.rel (!%p10_p5) target bundleno = 2 (0x2), region = 76 }

// kernel: _lambda_.20
= control target key start
LH: loop header
LB: loop body
LE: loop exit
PB: predicated region body
PF: predicated region fallthrough
CT: control target
= control target key end

     0   :  { %s1467_s12 = smov 0   ;;  %s1469_s13 = smov 0   ;;  %s1604_s0 = inlined_call_operand.vmem [shape: bf16[768,128], index: 0, kind: input, shape index: {}]   ;;  %s1605_s1 = inlined_call_operand.vmem [shape: bf16[128,128], index: 1, kind: input, shape index: {}]   ;;  %s1606_s2 = inlined_call_operand.vmem [shape: f32[1,128], index: 2, kind: input, shape index: {}]   ;;  %s1607_s3 = inlined_call_operand.vmem [shape: bf16[768,128], index: 3, kind: output, shape index: {}]  }
   0x1   :  { %s1471_s14 = smov 0  }
   0x2 LB: > { %s32_s15 = sadd.s32 1, %s1441_s13  ;;  %p1096_p0 = scmp.ge.s32.totalorder %s1445_s14, 1  ;;  %s1445_s14 = sphi %s1471_s14, %s13_s14   ;;  %s1441_s13 = sphi %s1469_s13, %s1609_s13   ;;  %s1437_s12 = sphi %s1467_s12, %s1608_s12  }
   0x3   : > { %p34_p1 = scmp.ge.s32.totalorder %s32_s15, 3  ;;  %p188_p2 = scmp.lt.s32.totalorder %s1445_s14, 4 }
   0x5   : > { %s1611_s15 = smov (%p34_p1, %s32_s15), 0  ;;  %p189_p3 = pnand %p1096_p0, %p188_p2 }
   0x6   : > { %s1097_s18 = sshll.u32 (!%p189_p3), %s1437_s12, 5 }
   0x7   : > { %192 = sbr.rel (%p189_p3) target bundleno = 273 (0x111), region = 32  ;;  %p230_p4 = scmp.lt.s32.totalorder (!%p189_p3), %s1097_s18, 95 }
   0xc   : > { %v1399_v0 = vld [vmem:[%s1605_s1 + $0x38] sm:$0xff]   ;;  %v1400_v1 = vld [vmem:[%s1605_s1 + $0x30] sm:$0xff]   ;;  %s1613_s18 = smov (!%p230_p4, %s1097_s18), 95  ;;  %v1401_v2 = vld [vmem:[%s1605_s1 + $0x28] sm:$0xff]  }
   0xd   : > { %1311 = vmatprep.subr.bf16.mxu0 %v1399_v0  ;;  %1359 = vmatprep.subr.bf16.mxu1 %v1399_v0  ;;  %s1098_s23 = sshll.u32 %s1613_s18, 2  ;;  %v1402_v3 = vld [vmem:[%s1605_s1 + $0x20] sm:$0xff]   ;;  %v1403_v6 = vld [vmem:[%s1605_s1 + $0x18] sm:$0xff]   ;;  %v1404_v7 = vld [vmem:[%s1605_s1 + $0x10] sm:$0xff]  }
   0xe   : > { %1312 = vmatpush3.bf16.msra.mxu0 %v1399_v0  ;;  %1367 = vmatpush3.bf16.msra.mxu1 %v1399_v0  ;;  %s1502_s26 = scalar_lea.vmem %s1604_s0, %s1098_s23  ;;  %v1405_v8 = vld [vmem:[%s1605_s1 + $0x8] sm:$0xff]   ;;  %v1406_v9 = vld [vmem:[%s1605_s1] sm:$0xff]   ;;  %s1551_s17 = scalar_lea.vmem %s1607_s3, %s1098_s23 }
   0xf   : > { %1313 = vmatprep.subr.bf16.mxu0 %v1400_v1  ;;  %1360 = vmatprep.subr.bf16.mxu1 %v1400_v1  ;;  %v1407_v4 = vld [vmem:[%s1502_s26] sm:$0xff]   ;;  %v1409_v10 = vld [vmem:[%s1502_s26 + $0x8] sm:$0xff]   ;;  %v1411_v12 = vld [vmem:[%s1502_s26 + $0x10] sm:$0xff]  }
  0x10   : > { %v1408_v5 = vld [vmem:[%s1502_s26 + $0x40] sm:$0xff]   ;;  %1327 = vmatprep.mubr.bf16.mxu0 %v1407_v4  ;;  %v1410_v11 = vld [vmem:[%s1502_s26 + $0x48] sm:$0xff]   ;;  %v1412_v13 = vld [vmem:[%s1502_s26 + $0x50] sm:$0xff]  }
  0x11   : > { %1343 = vmatprep.mubr.bf16.mxu1 %v1408_v5  ;;  %v1413_v14 = vld [vmem:[%s1502_s26 + $0x18] sm:$0xff]   ;;  %v1415_v16 = vld [vmem:[%s1502_s26 + $0x20] sm:$0xff]   ;;  %v1417_v18 = vld [vmem:[%s1502_s26 + $0x28] sm:$0xff]  }
  0x12   : > { %1314 = vmatpush3.bf16.msra.mxu0 %v1400_v1  ;;  %1368 = vmatpush3.bf16.msra.mxu1 %v1400_v1  ;;  %v1414_v15 = vld [vmem:[%s1502_s26 + $0x58] sm:$0xff]   ;;  %v1416_v17 = vld [vmem:[%s1502_s26 + $0x60] sm:$0xff]   ;;  %v1418_v19 = vld [vmem:[%s1502_s26 + $0x68] sm:$0xff]  }
  0x13   : > { %1315 = vmatprep.subr.bf16.mxu0 %v1401_v2  ;;  %1361 = vmatprep.subr.bf16.mxu1 %v1401_v2  ;;  %v1419_v20 = vld [vmem:[%s1502_s26 + $0x30] sm:$0xff]   ;;  %v1421_v22 = vld [vmem:[%s1502_s26 + $0x38] sm:$0xff]   ;;  %v1538_v26 = vld [vmem:[%s1606_s2] ss:$0 sm:$0xff] }
  0x14   : > { %v1420_v21 = vld [vmem:[%s1502_s26 + $0x70] sm:$0xff]   ;;  %v1422_v23 = vld [vmem:[%s1502_s26 + $0x78] sm:$0xff]  }
  0x16   : > { %1316 = vmatpush3.bf16.msra.mxu0 %v1401_v2  ;;  %1369 = vmatpush3.bf16.msra.mxu1 %v1401_v2 }
  0x17   : > { %1317 = vmatprep.subr.bf16.mxu0 %v1402_v3  ;;  %1362 = vmatprep.subr.bf16.mxu1 %v1402_v3 }
  0x1a   : > { %1318 = vmatpush3.bf16.msra.mxu0 %v1402_v3  ;;  %1370 = vmatpush3.bf16.msra.mxu1 %v1402_v3 }
  0x1b   : > { %1319 = vmatprep.subr.bf16.mxu0 %v1403_v6  ;;  %1363 = vmatprep.subr.bf16.mxu1 %v1403_v6 }
  0x1e   : > { %1320 = vmatpush3.bf16.msra.mxu0 %v1403_v6  ;;  %1371 = vmatpush3.bf16.msra.mxu1 %v1403_v6 }
  0x1f   : > { %1321 = vmatprep.subr.bf16.mxu0 %v1404_v7  ;;  %1364 = vmatprep.subr.bf16.mxu1 %v1404_v7 }
  0x22   : > { %1322 = vmatpush3.bf16.msra.mxu0 %v1404_v7  ;;  %1372 = vmatpush3.bf16.msra.mxu1 %v1404_v7 }
  0x23   : > { %1323 = vmatprep.subr.bf16.mxu0 %v1405_v8  ;;  %1365 = vmatprep.subr.bf16.mxu1 %v1405_v8 }
  0x26   : > { %1324 = vmatpush3.bf16.msra.mxu0 %v1405_v8  ;;  %1373 = vmatpush3.bf16.msra.mxu1 %v1405_v8 }
  0x27   : > { %1325 = vmatprep.subr.bf16.mxu0 %v1406_v9  ;;  %1366 = vmatprep.subr.bf16.mxu1 %v1406_v9 }
  0x2a   : > { %1326 = vmatpush3.bf16.msra.mxu0 %v1406_v9  ;;  %1374 = vmatpush3.bf16.msra.mxu1 %v1406_v9 }
  0x2d   : > { %1328 = vmatmul.mubr.bf16.vlgmr.msra.gmra.mxu0 %v1409_v10  ;;  %1344 = vmatmul.mubr.bf16.vlgmr.msra.gmra.mxu1 %v1410_v11 }
  0x2e   : > { %1331 = vmatprep.mubr.bf16.mxu0 %v1411_v12  ;;  %1347 = vmatprep.mubr.bf16.mxu1 %v1412_v13 }
  0x35   : > { %1332 = vmatmul.mubr.bf16.gmra.mxu0 %v1413_v14  ;;  %1348 = vmatmul.mubr.bf16.gmra.mxu1 %v1414_v15 }
  0x36   : > { %1335 = vmatprep.mubr.bf16.mxu0 %v1415_v16  ;;  %1351 = vmatprep.mubr.bf16.mxu1 %v1416_v17 }
  0x3d   : > { %1336 = vmatmul.mubr.bf16.gmra.mxu0 %v1417_v18  ;;  %1352 = vmatmul.mubr.bf16.gmra.mxu1 %v1418_v19 }
  0x3e   : > { %1339 = vmatprep.mubr.bf16.mxu0 %v1419_v20  ;;  %1355 = vmatprep.mubr.bf16.mxu1 %v1420_v21 }
  0x45   : > { %1340 = vmatmul.mubr.bf16.gmra.mxu0 %v1421_v22  ;;  %1356 = vmatmul.mubr.bf16.gmra.mxu1 %v1422_v23 }
  0xed   : > { %v1329_v24 = vpop.f32.mrf.mxu0  ;;  %v1345_v25 = vpop.f32.mrf.mxu1 }
  0xee   : > { %v789_v31 = vadd.f32 %v1329_v24, %v1538_v26  ;;  %v805_v32 = vadd.f32 %v1345_v25, %v1538_v26 }
  0xef   : > { %v554_v27 = vpop.f32.mrf.mxu0  ;;  %v618_v28 = vpop.f32.mrf.mxu1 }
  0xf0   : > { %v787_v35 = vadd.f32 %v1538_v26, %v554_v27  ;;  %v803_v36 = vadd.f32 %v1538_v26, %v618_v28 }
  0xf1   : > { %v1330_v29 = vpop.f32.mrf.mxu0  ;;  %v1346_v30 = vpop.f32.mrf.mxu1 }
  0xf2   : > { %v790_v33 = vadd.f32 %v1330_v29, %v1538_v26  ;;  %v806_v34 = vadd.f32 %v1346_v30, %v1538_v26 }
  0xf3   : > { %v557_v37 = vpop.f32.mrf.mxu0  ;;  %v621_v38 = vpop.f32.mrf.mxu1 }
  0xf4   : > { %v1200_v39 = vpack.c.bf16 %v790_v33, %v789_v31  ;;  %v1240_v40 = vpack.c.bf16 %v806_v34, %v805_v32  ;;  %v788_v41 = vadd.f32 %v1538_v26, %v557_v37  ;;  %v804_v42 = vadd.f32 %v1538_v26, %v621_v38 }
  0xf5   : > { %v1333_v43 = vpop.f32.mrf.mxu0  ;;  %v1349_v44 = vpop.f32.mrf.mxu1 }
  0xf6   : > { %1272 = vst [vmem:[%s1551_s17 + $0x8] sm:$0xff] %v1200_v39   ;;  %1280 = vst [vmem:[%s1551_s17 + $0x48] sm:$0xff] %v1240_v40   ;;  %v1195_v45 = vpack.c.bf16 %v788_v41, %v787_v35  ;;  %v1235_v46 = vpack.c.bf16 %v804_v42, %v803_v36  ;;  %v793_v51 = vadd.f32 %v1333_v43, %v1538_v26 }
  0xf7   : > { %v570_v47 = vpop.f32.mrf.mxu0  ;;  %v634_v48 = vpop.f32.mrf.mxu1  ;;  %v809_v52 = vadd.f32 %v1349_v44, %v1538_v26 }
  0xf8   : > { %1196 = vst [vmem:[%s1551_s17] sm:$0xff] %v1195_v45   ;;  %1279 = vst [vmem:[%s1551_s17 + $0x40] sm:$0xff] %v1235_v46   ;;  %v791_v55 = vadd.f32 %v1538_v26, %v570_v47  ;;  %v807_v56 = vadd.f32 %v1538_v26, %v634_v48 }
  0xf9   : > { %v1334_v49 = vpop.f32.mrf.mxu0  ;;  %v1350_v50 = vpop.f32.mrf.mxu1 }
  0xfa   : > { %v794_v53 = vadd.f32 %v1334_v49, %v1538_v26  ;;  %v810_v54 = vadd.f32 %v1350_v50, %v1538_v26 }
  0xfb   : > { %v573_v57 = vpop.f32.mrf.mxu0  ;;  %v637_v58 = vpop.f32.mrf.mxu1 }
  0xfc   : > { %v1210_v59 = vpack.c.bf16 %v794_v53, %v793_v51  ;;  %v1250_v60 = vpack.c.bf16 %v810_v54, %v809_v52  ;;  %v792_v61 = vadd.f32 %v1538_v26, %v573_v57  ;;  %v808_v62 = vadd.f32 %v1538_v26, %v637_v58 }
  0xfd   : > { %v1337_v63 = vpop.f32.mrf.mxu0  ;;  %v1353_v0 = vpop.f32.mrf.mxu1 }
  0xfe   : > { %1274 = vst [vmem:[%s1551_s17 + $0x18] sm:$0xff] %v1210_v59   ;;  %1282 = vst [vmem:[%s1551_s17 + $0x58] sm:$0xff] %v1250_v60   ;;  %v1205_v1 = vpack.c.bf16 %v792_v61, %v791_v55  ;;  %v1245_v2 = vpack.c.bf16 %v808_v62, %v807_v56  ;;  %v797_v7 = vadd.f32 %v1337_v63, %v1538_v26 }
  0xff   : > { %v586_v3 = vpop.f32.mrf.mxu0  ;;  %v650_v4 = vpop.f32.mrf.mxu1  ;;  %v813_v8 = vadd.f32 %v1353_v0, %v1538_v26 }
 0x100   : > { %1273 = vst [vmem:[%s1551_s17 + $0x10] sm:$0xff] %v1205_v1   ;;  %1281 = vst [vmem:[%s1551_s17 + $0x50] sm:$0xff] %v1245_v2   ;;  %v795_v11 = vadd.f32 %v1538_v26, %v586_v3  ;;  %v811_v12 = vadd.f32 %v1538_v26, %v650_v4 }
 0x101   : > { %v1338_v5 = vpop.f32.mrf.mxu0  ;;  %v1354_v6 = vpop.f32.mrf.mxu1 }
 0x102   : > { %v798_v9 = vadd.f32 %v1338_v5, %v1538_v26  ;;  %v814_v10 = vadd.f32 %v1354_v6, %v1538_v26 }
 0x103   : > { %v589_v13 = vpop.f32.mrf.mxu0  ;;  %v653_v14 = vpop.f32.mrf.mxu1 }
 0x104   : > { %v1220_v15 = vpack.c.bf16 %v798_v9, %v797_v7  ;;  %v1260_v16 = vpack.c.bf16 %v814_v10, %v813_v8  ;;  %v796_v17 = vadd.f32 %v1538_v26, %v589_v13  ;;  %v812_v18 = vadd.f32 %v1538_v26, %v653_v14 }
 0x105   : > { %v1341_v19 = vpop.f32.mrf.mxu0  ;;  %v1357_v20 = vpop.f32.mrf.mxu1 }
 0x106   : > { %1276 = vst [vmem:[%s1551_s17 + $0x28] sm:$0xff] %v1220_v15   ;;  %1284 = vst [vmem:[%s1551_s17 + $0x68] sm:$0xff] %v1260_v16   ;;  %v1215_v21 = vpack.c.bf16 %v796_v17, %v795_v11  ;;  %v1255_v22 = vpack.c.bf16 %v812_v18, %v811_v12  ;;  %v801_v28 = vadd.f32 %v1341_v19, %v1538_v26 }
 0x107   : > { %v602_v23 = vpop.f32.mrf.mxu0  ;;  %v666_v24 = vpop.f32.mrf.mxu1  ;;  %v817_v29 = vadd.f32 %v1357_v20, %v1538_v26 }
 0x108   : > { %1275 = vst [vmem:[%s1551_s17 + $0x20] sm:$0xff] %v1215_v21   ;;  %1283 = vst [vmem:[%s1551_s17 + $0x60] sm:$0xff] %v1255_v22   ;;  %v799_v32 = vadd.f32 %v1538_v26, %v602_v23  ;;  %v815_v33 = vadd.f32 %v1538_v26, %v666_v24 }
 0x109   : > { %v1342_v25 = vpop.f32.mrf.mxu0  ;;  %v1358_v27 = vpop.f32.mrf.mxu1 }
 0x10a   : > { %v802_v30 = vadd.f32 %v1342_v25, %v1538_v26  ;;  %v818_v31 = vadd.f32 %v1358_v27, %v1538_v26 }
 0x10b   : > { %v605_v34 = vpop.f32.mrf.mxu0  ;;  %v669_v35 = vpop.f32.mrf.mxu1 }
 0x10c   : > { %v1230_v36 = vpack.c.bf16 %v802_v30, %v801_v28  ;;  %v1270_v37 = vpack.c.bf16 %v818_v31, %v817_v29  ;;  %v800_v38 = vadd.f32 %v1538_v26, %v605_v34  ;;  %v816_v39 = vadd.f32 %v1538_v26, %v669_v35 }
 0x10e   : > { %1278 = vst [vmem:[%s1551_s17 + $0x38] sm:$0xff] %v1230_v36   ;;  %1286 = vst [vmem:[%s1551_s17 + $0x78] sm:$0xff] %v1270_v37   ;;  %v1225_v40 = vpack.c.bf16 %v800_v38, %v799_v32  ;;  %v1265_v41 = vpack.c.bf16 %v816_v39, %v815_v33 }
 0x110   : > { %1277 = vst [vmem:[%s1551_s17 + $0x30] sm:$0xff] %v1225_v40   ;;  %1285 = vst [vmem:[%s1551_s17 + $0x70] sm:$0xff] %v1265_v41  }
 0x111 PF: > { %s13_s14 = sadd.s32 1, %s1445_s14   ;;  %s1608_s12 = smov %s1441_s13 }
 0x112   : > { %p10_p5 = scmp.ge.s32.totalorder %s13_s14, 5   ;;  %s1609_s13 = smov %s1611_s15 }
 0x114   :  { %12 = sbr.rel (!%p10_p5) target bundleno = 2 (0x2), region = 76 }

// kernel: _lambda_.22
= control target key start
LH: loop header
LB: loop body
LE: loop exit
PB: predicated region body
PF: predicated region fallthrough
CT: control target
= control target key end

     0   :  { %s1499_s12 = smov 0   ;;  %s1501_s13 = smov 0   ;;  %s1636_s0 = inlined_call_operand.vmem [shape: bf16[768,128], index: 0, kind: input, shape index: {}]   ;;  %s1637_s1 = inlined_call_operand.vmem [shape: bf16[128,128], index: 1, kind: input, shape index: {}]   ;;  %s1638_s2 = inlined_call_operand.vmem [shape: f32[1,128], index: 2, kind: input, shape index: {}]   ;;  %s1639_s3 = inlined_call_operand.vmem [shape: bf16[768,128], index: 3, kind: output, shape index: {}]  }
   0x1   :  { %s1503_s14 = smov 0  }
   0x2 LB: > { %s32_s15 = sadd.s32 1, %s1473_s13  ;;  %p1128_p0 = scmp.ge.s32.totalorder %s1477_s14, 1  ;;  %s1477_s14 = sphi %s1503_s14, %s13_s14   ;;  %s1473_s13 = sphi %s1501_s13, %s1641_s13   ;;  %s1469_s12 = sphi %s1499_s12, %s1640_s12  }
   0x3   : > { %p34_p1 = scmp.ge.s32.totalorder %s32_s15, 3  ;;  %p188_p2 = scmp.lt.s32.totalorder %s1477_s14, 4 }
   0x5   : > { %s1643_s15 = smov (%p34_p1, %s32_s15), 0  ;;  %p189_p3 = pnand %p1128_p0, %p188_p2 }
   0x6   : > { %s1129_s18 = sshll.u32 (!%p189_p3), %s1469_s12, 5 }
   0x7   : > { %192 = sbr.rel (%p189_p3) target bundleno = 275 (0x113), region = 32  ;;  %p230_p4 = scmp.lt.s32.totalorder (!%p189_p3), %s1129_s18, 95 }
   0xc   : > { %v1431_v0 = vld [vmem:[%s1637_s1 + $0x38] sm:$0xff]   ;;  %v1432_v1 = vld [vmem:[%s1637_s1 + $0x30] sm:$0xff]   ;;  %s1645_s18 = smov (!%p230_p4, %s1129_s18), 95  ;;  %v1433_v2 = vld [vmem:[%s1637_s1 + $0x28] sm:$0xff]  }
   0xd   : > { %1343 = vmatprep.subr.bf16.mxu0 %v1431_v0  ;;  %1391 = vmatprep.subr.bf16.mxu1 %v1431_v0  ;;  %s1130_s23 = sshll.u32 %s1645_s18, 2  ;;  %v1434_v3 = vld [vmem:[%s1637_s1 + $0x20] sm:$0xff]   ;;  %v1435_v6 = vld [vmem:[%s1637_s1 + $0x18] sm:$0xff]   ;;  %v1436_v7 = vld [vmem:[%s1637_s1 + $0x10] sm:$0xff]  }
   0xe   : > { %1344 = vmatpush3.bf16.msra.mxu0 %v1431_v0  ;;  %1399 = vmatpush3.bf16.msra.mxu1 %v1431_v0  ;;  %s1534_s26 = scalar_lea.vmem %s1636_s0, %s1130_s23  ;;  %v1437_v8 = vld [vmem:[%s1637_s1 + $0x8] sm:$0xff]   ;;  %v1438_v9 = vld [vmem:[%s1637_s1] sm:$0xff]   ;;  %s1585_s17 = scalar_lea.vmem %s1639_s3, %s1130_s23 }
   0xf   : > { %1345 = vmatprep.subr.bf16.mxu0 %v1432_v1  ;;  %1392 = vmatprep.subr.bf16.mxu1 %v1432_v1  ;;  %v1439_v4 = vld [vmem:[%s1534_s26] sm:$0xff]   ;;  %v1441_v10 = vld [vmem:[%s1534_s26 + $0x8] sm:$0xff]   ;;  %v1443_v12 = vld [vmem:[%s1534_s26 + $0x10] sm:$0xff]  }
  0x10   : > { %v1440_v5 = vld [vmem:[%s1534_s26 + $0x40] sm:$0xff]   ;;  %1359 = vmatprep.mubr.bf16.mxu0 %v1439_v4  ;;  %v1442_v11 = vld [vmem:[%s1534_s26 + $0x48] sm:$0xff]   ;;  %v1444_v13 = vld [vmem:[%s1534_s26 + $0x50] sm:$0xff]  }
  0x11   : > { %1375 = vmatprep.mubr.bf16.mxu1 %v1440_v5  ;;  %v1445_v14 = vld [vmem:[%s1534_s26 + $0x18] sm:$0xff]   ;;  %v1447_v16 = vld [vmem:[%s1534_s26 + $0x20] sm:$0xff]   ;;  %v1449_v18 = vld [vmem:[%s1534_s26 + $0x28] sm:$0xff]  }
  0x12   : > { %1346 = vmatpush3.bf16.msra.mxu0 %v1432_v1  ;;  %1400 = vmatpush3.bf16.msra.mxu1 %v1432_v1  ;;  %v1446_v15 = vld [vmem:[%s1534_s26 + $0x58] sm:$0xff]   ;;  %v1448_v17 = vld [vmem:[%s1534_s26 + $0x60] sm:$0xff]   ;;  %v1450_v19 = vld [vmem:[%s1534_s26 + $0x68] sm:$0xff]  }
  0x13   : > { %1347 = vmatprep.subr.bf16.mxu0 %v1433_v2  ;;  %1393 = vmatprep.subr.bf16.mxu1 %v1433_v2  ;;  %v1451_v20 = vld [vmem:[%s1534_s26 + $0x30] sm:$0xff]   ;;  %v1453_v22 = vld [vmem:[%s1534_s26 + $0x38] sm:$0xff]   ;;  %v1570_v24 = vld [vmem:[%s1638_s2] ss:$0 sm:$0xff] }
  0x14   : > { %v1452_v21 = vld [vmem:[%s1534_s26 + $0x70] sm:$0xff]   ;;  %v1454_v23 = vld [vmem:[%s1534_s26 + $0x78] sm:$0xff]  }
  0x16   : > { %1348 = vmatpush3.bf16.msra.mxu0 %v1433_v2  ;;  %1401 = vmatpush3.bf16.msra.mxu1 %v1433_v2 }
  0x17   : > { %1349 = vmatprep.subr.bf16.mxu0 %v1434_v3  ;;  %1394 = vmatprep.subr.bf16.mxu1 %v1434_v3 }
  0x1a   : > { %1350 = vmatpush3.bf16.msra.mxu0 %v1434_v3  ;;  %1402 = vmatpush3.bf16.msra.mxu1 %v1434_v3 }
  0x1b   : > { %1351 = vmatprep.subr.bf16.mxu0 %v1435_v6  ;;  %1395 = vmatprep.subr.bf16.mxu1 %v1435_v6 }
  0x1e   : > { %1352 = vmatpush3.bf16.msra.mxu0 %v1435_v6  ;;  %1403 = vmatpush3.bf16.msra.mxu1 %v1435_v6 }
  0x1f   : > { %1353 = vmatprep.subr.bf16.mxu0 %v1436_v7  ;;  %1396 = vmatprep.subr.bf16.mxu1 %v1436_v7 }
  0x22   : > { %1354 = vmatpush3.bf16.msra.mxu0 %v1436_v7  ;;  %1404 = vmatpush3.bf16.msra.mxu1 %v1436_v7 }
  0x23   : > { %1355 = vmatprep.subr.bf16.mxu0 %v1437_v8  ;;  %1397 = vmatprep.subr.bf16.mxu1 %v1437_v8 }
  0x26   : > { %1356 = vmatpush3.bf16.msra.mxu0 %v1437_v8  ;;  %1405 = vmatpush3.bf16.msra.mxu1 %v1437_v8 }
  0x27   : > { %1357 = vmatprep.subr.bf16.mxu0 %v1438_v9  ;;  %1398 = vmatprep.subr.bf16.mxu1 %v1438_v9 }
  0x2a   : > { %1358 = vmatpush3.bf16.msra.mxu0 %v1438_v9  ;;  %1406 = vmatpush3.bf16.msra.mxu1 %v1438_v9 }
  0x2d   : > { %1360 = vmatmul.mubr.bf16.vlgmr.msra.gmra.mxu0 %v1441_v10  ;;  %1376 = vmatmul.mubr.bf16.vlgmr.msra.gmra.mxu1 %v1442_v11 }
  0x2e   : > { %1363 = vmatprep.mubr.bf16.mxu0 %v1443_v12  ;;  %1379 = vmatprep.mubr.bf16.mxu1 %v1444_v13 }
  0x35   : > { %1364 = vmatmul.mubr.bf16.gmra.mxu0 %v1445_v14  ;;  %1380 = vmatmul.mubr.bf16.gmra.mxu1 %v1446_v15 }
  0x36   : > { %1367 = vmatprep.mubr.bf16.mxu0 %v1447_v16  ;;  %1383 = vmatprep.mubr.bf16.mxu1 %v1448_v17 }
  0x3d   : > { %1368 = vmatmul.mubr.bf16.gmra.mxu0 %v1449_v18  ;;  %1384 = vmatmul.mubr.bf16.gmra.mxu1 %v1450_v19 }
  0x3e   : > { %1371 = vmatprep.mubr.bf16.mxu0 %v1451_v20  ;;  %1387 = vmatprep.mubr.bf16.mxu1 %v1452_v21 }
  0x45   : > { %1372 = vmatmul.mubr.bf16.gmra.mxu0 %v1453_v22  ;;  %1388 = vmatmul.mubr.bf16.gmra.mxu1 %v1454_v23 }
  0xed   : > { %v1361_v25 = vpop.f32.mrf.mxu0  ;;  %v1377_v26 = vpop.f32.mrf.mxu1 }
  0xee   : > { %v789_v27 = vadd.f32 %v1361_v25, %v1570_v24  ;;  %v805_v28 = vadd.f32 %v1377_v26, %v1570_v24 }
  0xef   : > { %v554_v29 = vpop.f32.mrf.mxu0  ;;  %v618_v30 = vpop.f32.mrf.mxu1 }
  0xf0   : > { %v787_v31 = vadd.f32 %v1570_v24, %v554_v29  ;;  %v803_v32 = vadd.f32 %v1570_v24, %v618_v30  ;;  %v821_v37 = vmax.f32 %v789_v27, 0.0  ;;  %v837_v38 = vmax.f32 %v805_v28, 0.0 }
  0xf1   : > { %v1362_v33 = vpop.f32.mrf.mxu0  ;;  %v1378_v34 = vpop.f32.mrf.mxu1 }
  0xf2   : > { %v790_v35 = vadd.f32 %v1362_v33, %v1570_v24  ;;  %v806_v36 = vadd.f32 %v1378_v34, %v1570_v24  ;;  %v819_v45 = vmax.f32 %v787_v31, 0.0  ;;  %v835_v46 = vmax.f32 %v803_v32, 0.0 }
  0xf3   : > { %v557_v39 = vpop.f32.mrf.mxu0  ;;  %v621_v40 = vpop.f32.mrf.mxu1 }
  0xf4   : > { %v822_v41 = vmax.f32 %v790_v35, 0.0  ;;  %v838_v42 = vmax.f32 %v806_v36, 0.0  ;;  %v788_v43 = vadd.f32 %v1570_v24, %v557_v39  ;;  %v804_v44 = vadd.f32 %v1570_v24, %v621_v40 }
  0xf5   : > { %v1365_v47 = vpop.f32.mrf.mxu0  ;;  %v1381_v48 = vpop.f32.mrf.mxu1 }
  0xf6   : > { %v1232_v49 = vpack.c.bf16 %v822_v41, %v821_v37  ;;  %v1272_v50 = vpack.c.bf16 %v838_v42, %v837_v38  ;;  %v820_v51 = vmax.f32 %v788_v43, 0.0  ;;  %v836_v52 = vmax.f32 %v804_v44, 0.0 }
  0xf7   : > { %v793_v53 = vadd.f32 %v1365_v47, %v1570_v24  ;;  %v809_v54 = vadd.f32 %v1381_v48, %v1570_v24  ;;  %v570_v55 = vpop.f32.mrf.mxu0  ;;  %v634_v56 = vpop.f32.mrf.mxu1 }
  0xf8   : > { %1304 = vst [vmem:[%s1585_s17 + $0x8] sm:$0xff] %v1232_v49   ;;  %1312 = vst [vmem:[%s1585_s17 + $0x48] sm:$0xff] %v1272_v50   ;;  %v1227_v57 = vpack.c.bf16 %v820_v51, %v819_v45  ;;  %v1267_v58 = vpack.c.bf16 %v836_v52, %v835_v46  ;;  %v791_v59 = vadd.f32 %v1570_v24, %v570_v55 }
  0xf9   : > { %v807_v60 = vadd.f32 %v1570_v24, %v634_v56  ;;  %v1366_v61 = vpop.f32.mrf.mxu0  ;;  %v1382_v62 = vpop.f32.mrf.mxu1  ;;  %v825_v1 = vmax.f32 %v793_v53, 0.0  ;;  %v841_v2 = vmax.f32 %v809_v54, 0.0 }
  0xfa   : > { %1228 = vst [vmem:[%s1585_s17] sm:$0xff] %v1227_v57   ;;  %1311 = vst [vmem:[%s1585_s17 + $0x40] sm:$0xff] %v1267_v58   ;;  %v794_v63 = vadd.f32 %v1366_v61, %v1570_v24  ;;  %v810_v0 = vadd.f32 %v1382_v62, %v1570_v24  ;;  %v823_v9 = vmax.f32 %v791_v59, 0.0 }
  0xfb   : > { %v573_v3 = vpop.f32.mrf.mxu0  ;;  %v637_v4 = vpop.f32.mrf.mxu1  ;;  %v839_v10 = vmax.f32 %v807_v60, 0.0 }
  0xfc   : > { %v826_v5 = vmax.f32 %v794_v63, 0.0  ;;  %v842_v6 = vmax.f32 %v810_v0, 0.0  ;;  %v792_v7 = vadd.f32 %v1570_v24, %v573_v3  ;;  %v808_v8 = vadd.f32 %v1570_v24, %v637_v4 }
  0xfd   : > { %v1369_v11 = vpop.f32.mrf.mxu0  ;;  %v1385_v12 = vpop.f32.mrf.mxu1 }
  0xfe   : > { %v1242_v13 = vpack.c.bf16 %v826_v5, %v825_v1  ;;  %v1282_v14 = vpack.c.bf16 %v842_v6, %v841_v2  ;;  %v824_v15 = vmax.f32 %v792_v7, 0.0  ;;  %v840_v16 = vmax.f32 %v808_v8, 0.0 }
  0xff   : > { %v797_v17 = vadd.f32 %v1369_v11, %v1570_v24  ;;  %v813_v18 = vadd.f32 %v1385_v12, %v1570_v24  ;;  %v586_v19 = vpop.f32.mrf.mxu0  ;;  %v650_v20 = vpop.f32.mrf.mxu1 }
 0x100   : > { %1306 = vst [vmem:[%s1585_s17 + $0x18] sm:$0xff] %v1242_v13   ;;  %1314 = vst [vmem:[%s1585_s17 + $0x58] sm:$0xff] %v1282_v14   ;;  %v1237_v21 = vpack.c.bf16 %v824_v15, %v823_v9  ;;  %v1277_v22 = vpack.c.bf16 %v840_v16, %v839_v10  ;;  %v795_v23 = vadd.f32 %v1570_v24, %v586_v19 }
 0x101   : > { %v811_v25 = vadd.f32 %v1570_v24, %v650_v20  ;;  %v1370_v26 = vpop.f32.mrf.mxu0  ;;  %v1386_v27 = vpop.f32.mrf.mxu1  ;;  %v829_v30 = vmax.f32 %v797_v17, 0.0  ;;  %v845_v31 = vmax.f32 %v813_v18, 0.0 }
 0x102   : > { %1305 = vst [vmem:[%s1585_s17 + $0x10] sm:$0xff] %v1237_v21   ;;  %1313 = vst [vmem:[%s1585_s17 + $0x50] sm:$0xff] %v1277_v22   ;;  %v798_v28 = vadd.f32 %v1370_v26, %v1570_v24  ;;  %v814_v29 = vadd.f32 %v1386_v27, %v1570_v24  ;;  %v827_v38 = vmax.f32 %v795_v23, 0.0 }
 0x103   : > { %v589_v32 = vpop.f32.mrf.mxu0  ;;  %v653_v33 = vpop.f32.mrf.mxu1  ;;  %v843_v39 = vmax.f32 %v811_v25, 0.0 }
 0x104   : > { %v830_v34 = vmax.f32 %v798_v28, 0.0  ;;  %v846_v35 = vmax.f32 %v814_v29, 0.0  ;;  %v796_v36 = vadd.f32 %v1570_v24, %v589_v32  ;;  %v812_v37 = vadd.f32 %v1570_v24, %v653_v33 }
 0x105   : > { %v1373_v40 = vpop.f32.mrf.mxu0  ;;  %v1389_v41 = vpop.f32.mrf.mxu1 }
 0x106   : > { %v1252_v42 = vpack.c.bf16 %v830_v34, %v829_v30  ;;  %v1292_v43 = vpack.c.bf16 %v846_v35, %v845_v31  ;;  %v828_v44 = vmax.f32 %v796_v36, 0.0  ;;  %v844_v45 = vmax.f32 %v812_v37, 0.0 }
 0x107   : > { %v801_v46 = vadd.f32 %v1373_v40, %v1570_v24  ;;  %v817_v47 = vadd.f32 %v1389_v41, %v1570_v24  ;;  %v602_v48 = vpop.f32.mrf.mxu0  ;;  %v666_v49 = vpop.f32.mrf.mxu1 }
 0x108   : > { %1308 = vst [vmem:[%s1585_s17 + $0x28] sm:$0xff] %v1252_v42   ;;  %1316 = vst [vmem:[%s1585_s17 + $0x68] sm:$0xff] %v1292_v43   ;;  %v1247_v50 = vpack.c.bf16 %v828_v44, %v827_v38  ;;  %v1287_v51 = vpack.c.bf16 %v844_v45, %v843_v39  ;;  %v799_v52 = vadd.f32 %v1570_v24, %v602_v48 }
 0x109   : > { %v815_v53 = vadd.f32 %v1570_v24, %v666_v49  ;;  %v1374_v54 = vpop.f32.mrf.mxu0  ;;  %v1390_v55 = vpop.f32.mrf.mxu1  ;;  %v833_v58 = vmax.f32 %v801_v46, 0.0  ;;  %v849_v59 = vmax.f32 %v817_v47, 0.0 }
 0x10a   : > { %1307 = vst [vmem:[%s1585_s17 + $0x20] sm:$0xff] %v1247_v50   ;;  %1315 = vst [vmem:[%s1585_s17 + $0x60] sm:$0xff] %v1287_v51   ;;  %v802_v56 = vadd.f32 %v1374_v54, %v1570_v24  ;;  %v818_v57 = vadd.f32 %v1390_v55, %v1570_v24  ;;  %v831_v2 = vmax.f32 %v799_v52, 0.0 }
 0x10b   : > { %v605_v60 = vpop.f32.mrf.mxu0  ;;  %v669_v61 = vpop.f32.mrf.mxu1  ;;  %v847_v3 = vmax.f32 %v815_v53, 0.0 }
 0x10c   : > { %v834_v62 = vmax.f32 %v802_v56, 0.0  ;;  %v850_v63 = vmax.f32 %v818_v57, 0.0  ;;  %v800_v0 = vadd.f32 %v1570_v24, %v605_v60  ;;  %v816_v1 = vadd.f32 %v1570_v24, %v669_v61 }
 0x10e   : > { %v1262_v4 = vpack.c.bf16 %v834_v62, %v833_v58  ;;  %v1302_v5 = vpack.c.bf16 %v850_v63, %v849_v59  ;;  %v832_v6 = vmax.f32 %v800_v0, 0.0  ;;  %v848_v7 = vmax.f32 %v816_v1, 0.0 }
 0x110   : > { %1310 = vst [vmem:[%s1585_s17 + $0x38] sm:$0xff] %v1262_v4   ;;  %1318 = vst [vmem:[%s1585_s17 + $0x78] sm:$0xff] %v1302_v5   ;;  %v1257_v8 = vpack.c.bf16 %v832_v6, %v831_v2  ;;  %v1297_v9 = vpack.c.bf16 %v848_v7, %v847_v3 }
 0x112   : > { %1309 = vst [vmem:[%s1585_s17 + $0x30] sm:$0xff] %v1257_v8   ;;  %1317 = vst [vmem:[%s1585_s17 + $0x70] sm:$0xff] %v1297_v9  }
 0x113 PF: > { %s13_s14 = sadd.s32 1, %s1477_s14   ;;  %s1640_s12 = smov %s1473_s13 }
 0x114   : > { %p10_p5 = scmp.ge.s32.totalorder %s13_s14, 5   ;;  %s1641_s13 = smov %s1643_s15 }
 0x116   :  { %12 = sbr.rel (!%p10_p5) target bundleno = 2 (0x2), region = 76 }

// kernel: _lambda_.21
= control target key start
LH: loop header
LB: loop body
LE: loop exit
PB: predicated region body
PF: predicated region fallthrough
CT: control target
= control target key end

     0   :  { %s1756_s15 = smov 0   ;;  %s1758_s16 = smov 0   ;;  %s1996_s0 = inlined_call_operand.vmem [shape: bf16[768,128], index: 0, kind: input, shape index: {}]   ;;  %s1997_s1 = inlined_call_operand.vmem [shape: bf16[128,128], index: 1, kind: input, shape index: {}]   ;;  %s1998_s2 = inlined_call_operand.vmem [shape: f32[1,128], index: 2, kind: input, shape index: {}]   ;;  %s1999_s3 = inlined_call_operand.vmem [shape: bf16[768,128], index: 3, kind: input, shape index: {}]   ;;  %s2000_s4 = inlined_call_operand.vmem [shape: bf16[768,128], index: 4, kind: output, shape index: {}]  }
   0x1   :  { %s1760_s17 = smov 0  }
   0x2 LB: > { %s33_s18 = sadd.s32 1, %s1725_s16  ;;  %p1299_p0 = scmp.ge.s32.totalorder %s1729_s17, 1  ;;  %s1729_s17 = sphi %s1760_s17, %s14_s17   ;;  %s1725_s16 = sphi %s1758_s16, %s2002_s16   ;;  %s1721_s15 = sphi %s1756_s15, %s2001_s15  }
   0x3   : > { %p35_p1 = scmp.ge.s32.totalorder %s33_s18, 3  ;;  %p229_p2 = scmp.lt.s32.totalorder %s1729_s17, 4 }
   0x5   : > { %s2004_s18 = smov (%p35_p1, %s33_s18), 0  ;;  %p230_p3 = pnand %p1299_p0, %p229_p2 }
   0x6   : > { %s1300_s21 = sshll.u32 (!%p230_p3), %s1721_s15, 5 }
   0x7   : > { %233 = sbr.rel (%p230_p3) target bundleno = 277 (0x115), region = 36  ;;  %p281_p4 = scmp.lt.s32.totalorder (!%p230_p3), %s1300_s21, 95 }
   0xc   : > { %v1683_v0 = vld [vmem:[%s1997_s1 + $0x38] sm:$0xff]   ;;  %v1684_v1 = vld [vmem:[%s1997_s1 + $0x30] sm:$0xff]   ;;  %s2006_s21 = smov (!%p281_p4, %s1300_s21), 95  ;;  %v1685_v2 = vld [vmem:[%s1997_s1 + $0x28] sm:$0xff]  }
   0xd   : > { %1595 = vmatprep.subr.bf16.mxu0 %v1683_v0  ;;  %1643 = vmatprep.subr.bf16.mxu1 %v1683_v0  ;;  %s1783_s26 = sshll.u32 %s2006_s21, 2  ;;  %v1686_v3 = vld [vmem:[%s1997_s1 + $0x20] sm:$0xff]   ;;  %v1687_v6 = vld [vmem:[%s1997_s1 + $0x18] sm:$0xff]   ;;  %v1688_v7 = vld [vmem:[%s1997_s1 + $0x10] sm:$0xff]  }
   0xe   : > { %1596 = vmatpush3.bf16.msra.mxu0 %v1683_v0  ;;  %1651 = vmatpush3.bf16.msra.mxu1 %v1683_v0  ;;  %s1789_s29 = scalar_lea.vmem %s1996_s0, %s1783_s26  ;;  %v1689_v8 = vld [vmem:[%s1997_s1 + $0x8] sm:$0xff]   ;;  %v1690_v9 = vld [vmem:[%s1997_s1] sm:$0xff]   ;;  %s1826_s19 = scalar_lea.vmem %s1999_s3, %s1783_s26 }
   0xf   : > { %1597 = vmatprep.subr.bf16.mxu0 %v1684_v1  ;;  %1644 = vmatprep.subr.bf16.mxu1 %v1684_v1  ;;  %v1691_v4 = vld [vmem:[%s1789_s29] sm:$0xff]   ;;  %v1693_v10 = vld [vmem:[%s1789_s29 + $0x8] sm:$0xff]   ;;  %v1695_v12 = vld [vmem:[%s1789_s29 + $0x10] sm:$0xff]   ;;  %s1889_s24 = scalar_lea.vmem %s2000_s4, %s1783_s26 }
  0x10   : > { %v1692_v5 = vld [vmem:[%s1789_s29 + $0x40] sm:$0xff]   ;;  %1611 = vmatprep.mubr.bf16.mxu0 %v1691_v4  ;;  %v1694_v11 = vld [vmem:[%s1789_s29 + $0x48] sm:$0xff]   ;;  %v1696_v13 = vld [vmem:[%s1789_s29 + $0x50] sm:$0xff]  }
  0x11   : > { %1627 = vmatprep.mubr.bf16.mxu1 %v1692_v5  ;;  %v1697_v14 = vld [vmem:[%s1789_s29 + $0x18] sm:$0xff]   ;;  %v1699_v16 = vld [vmem:[%s1789_s29 + $0x20] sm:$0xff]   ;;  %v1701_v18 = vld [vmem:[%s1789_s29 + $0x28] sm:$0xff]  }
  0x12   : > { %1598 = vmatpush3.bf16.msra.mxu0 %v1684_v1  ;;  %1652 = vmatpush3.bf16.msra.mxu1 %v1684_v1  ;;  %v1698_v15 = vld [vmem:[%s1789_s29 + $0x58] sm:$0xff]   ;;  %v1700_v17 = vld [vmem:[%s1789_s29 + $0x60] sm:$0xff]   ;;  %v1702_v19 = vld [vmem:[%s1789_s29 + $0x68] sm:$0xff]  }
  0x13   : > { %1599 = vmatprep.subr.bf16.mxu0 %v1685_v2  ;;  %1645 = vmatprep.subr.bf16.mxu1 %v1685_v2  ;;  %v1703_v20 = vld [vmem:[%s1789_s29 + $0x30] sm:$0xff]   ;;  %v1705_v22 = vld [vmem:[%s1789_s29 + $0x38] sm:$0xff]   ;;  %v1541_v24 = vld [vmem:[%s1826_s19 + $0x8] sm:$0xff]  }
  0x14   : > { %v1704_v21 = vld [vmem:[%s1789_s29 + $0x70] sm:$0xff]   ;;  %v1706_v23 = vld [vmem:[%s1789_s29 + $0x78] sm:$0xff]   ;;  %v1549_v25 = vld [vmem:[%s1826_s19 + $0x48] sm:$0xff]   ;;  %v1403_v32 = vunpack.c.l.bf16 %v1541_v24  ;;  %v1404_v41 = vunpack.c.h.bf16 %v1541_v24 }
  0x15   : > { %v1398_v26 = vld [vmem:[%s1826_s19] sm:$0xff]   ;;  %v1838_v29 = vld [vmem:[%s1826_s19 + $0x18] sm:$0xff]   ;;  %v1435_v34 = vunpack.c.l.bf16 %v1549_v25  ;;  %v1844_v37 = vld [vmem:[%s1826_s19 + $0x10] sm:$0xff]   ;;  %v1436_v42 = vunpack.c.h.bf16 %v1549_v25 }
  0x16   : > { %1600 = vmatpush3.bf16.msra.mxu0 %v1685_v2  ;;  %1653 = vmatpush3.bf16.msra.mxu1 %v1685_v2  ;;  %v1548_v27 = vld [vmem:[%s1826_s19 + $0x40] sm:$0xff]   ;;  %v1841_v30 = vld [vmem:[%s1826_s19 + $0x58] sm:$0xff]   ;;  %v1399_v35 = vunpack.c.l.bf16 %v1398_v26  ;;  %v1847_v38 = vld [vmem:[%s1826_s19 + $0x50] sm:$0xff]   ;;  %v1400_v45 = vunpack.c.h.bf16 %v1398_v26  ;;  %v1411_v47 = vunpack.c.l.bf16 %v1838_v29  ;;  %v1407_v53 = vunpack.c.l.bf16 %v1844_v37 }
  0x17   : > { %1601 = vmatprep.subr.bf16.mxu0 %v1686_v3  ;;  %1646 = vmatprep.subr.bf16.mxu1 %v1686_v3  ;;  %v1835_v28 = vld [vmem:[%s1998_s2] ss:$0 sm:$0xff]  ;;  %v1431_v36 = vunpack.c.l.bf16 %v1548_v27  ;;  %v1432_v46 = vunpack.c.h.bf16 %v1548_v27  ;;  %v1443_v48 = vunpack.c.l.bf16 %v1841_v30  ;;  %v1854_v49 = vld [vmem:[%s1826_s19 + $0x28] sm:$0xff]   ;;  %v1439_v54 = vunpack.c.l.bf16 %v1847_v38 }
  0x18   : > { %v1857_v50 = vld [vmem:[%s1826_s19 + $0x68] sm:$0xff]   ;;  %v1864_v55 = vld [vmem:[%s1826_s19 + $0x20] sm:$0xff]   ;;  %v1412_v59 = vunpack.c.h.bf16 %v1838_v29  ;;  %v1444_v60 = vunpack.c.h.bf16 %v1841_v30  ;;  %v1408_v61 = vunpack.c.h.bf16 %v1844_v37  ;;  %v1440_v62 = vunpack.c.h.bf16 %v1847_v38  ;;  %v1933_v38 = vld [vmem:[%s1826_s19 + $0x70] sm:$0xff]  }
  0x19   : > { %v1867_v56 = vld [vmem:[%s1826_s19 + $0x60] sm:$0xff]   ;;  %v1419_v1 = vunpack.c.l.bf16 %v1854_v49  ;;  %v1451_v2 = vunpack.c.l.bf16 %v1857_v50 }
  0x1a   : > { %1602 = vmatpush3.bf16.msra.mxu0 %v1686_v3  ;;  %1654 = vmatpush3.bf16.msra.mxu1 %v1686_v3 }
  0x1b   : > { %1603 = vmatprep.subr.bf16.mxu0 %v1687_v6  ;;  %1647 = vmatprep.subr.bf16.mxu1 %v1687_v6 }
  0x1e   : > { %1604 = vmatpush3.bf16.msra.mxu0 %v1687_v6  ;;  %1655 = vmatpush3.bf16.msra.mxu1 %v1687_v6 }
  0x1f   : > { %1605 = vmatprep.subr.bf16.mxu0 %v1688_v7  ;;  %1648 = vmatprep.subr.bf16.mxu1 %v1688_v7 }
  0x22   : > { %1606 = vmatpush3.bf16.msra.mxu0 %v1688_v7  ;;  %1656 = vmatpush3.bf16.msra.mxu1 %v1688_v7  ;;  %v1415_v7 = vunpack.c.l.bf16 %v1864_v55 }
  0x23   : > { %1607 = vmatprep.subr.bf16.mxu0 %v1689_v8  ;;  %1649 = vmatprep.subr.bf16.mxu1 %v1689_v8 }
  0x26   : > { %1608 = vmatpush3.bf16.msra.mxu0 %v1689_v8  ;;  %1657 = vmatpush3.bf16.msra.mxu1 %v1689_v8  ;;  %v1447_v8 = vunpack.c.l.bf16 %v1867_v56 }
  0x27   : > { %1609 = vmatprep.subr.bf16.mxu0 %v1690_v9  ;;  %1650 = vmatprep.subr.bf16.mxu1 %v1690_v9 }
  0x2a   : > { %1610 = vmatpush3.bf16.msra.mxu0 %v1690_v9  ;;  %1658 = vmatpush3.bf16.msra.mxu1 %v1690_v9 }
  0x2d   : > { %1612 = vmatmul.mubr.bf16.vlgmr.msra.gmra.mxu0 %v1693_v10  ;;  %1628 = vmatmul.mubr.bf16.vlgmr.msra.gmra.mxu1 %v1694_v11 }
  0x2e   : > { %1615 = vmatprep.mubr.bf16.mxu0 %v1695_v12  ;;  %1631 = vmatprep.mubr.bf16.mxu1 %v1696_v13 }
  0x35   : > { %1616 = vmatmul.mubr.bf16.gmra.mxu0 %v1697_v14  ;;  %1632 = vmatmul.mubr.bf16.gmra.mxu1 %v1698_v15 }
  0x36   : > { %1619 = vmatprep.mubr.bf16.mxu0 %v1699_v16  ;;  %1635 = vmatprep.mubr.bf16.mxu1 %v1700_v17  ;;  %v1420_v17 = vunpack.c.h.bf16 %v1854_v49 }
  0x3d   : > { %1620 = vmatmul.mubr.bf16.gmra.mxu0 %v1701_v18  ;;  %1636 = vmatmul.mubr.bf16.gmra.mxu1 %v1702_v19  ;;  %v1452_v18 = vunpack.c.h.bf16 %v1857_v50 }
  0x3e   : > { %1623 = vmatprep.mubr.bf16.mxu0 %v1703_v20  ;;  %1639 = vmatprep.mubr.bf16.mxu1 %v1704_v21 }
  0x45   : > { %1624 = vmatmul.mubr.bf16.gmra.mxu0 %v1705_v22  ;;  %1640 = vmatmul.mubr.bf16.gmra.mxu1 %v1706_v23 }
  0xed   : > { %v1613_v31 = vpop.f32.mrf.mxu0  ;;  %v1629_v33 = vpop.f32.mrf.mxu1 }
  0xee   : > { %v849_v39 = vadd.f32 %v1613_v31, %v1835_v28  ;;  %v865_v40 = vadd.f32 %v1629_v33, %v1835_v28 }
  0xef   : > { %v614_v43 = vpop.f32.mrf.mxu0  ;;  %v678_v44 = vpop.f32.mrf.mxu1 }
  0xf0   : > { %v847_v51 = vadd.f32 %v1835_v28, %v614_v43  ;;  %v863_v52 = vadd.f32 %v1835_v28, %v678_v44  ;;  %v945_v63 = vadd.f32 %v1403_v32, %v849_v39  ;;  %v961_v0 = vadd.f32 %v1435_v34, %v865_v40 }
  0xf1   : > { %v1614_v57 = vpop.f32.mrf.mxu0  ;;  %v1630_v58 = vpop.f32.mrf.mxu1 }
  0xf2   : > { %v850_v3 = vadd.f32 %v1614_v57, %v1835_v28  ;;  %v866_v4 = vadd.f32 %v1630_v58, %v1835_v28  ;;  %v943_v9 = vadd.f32 %v1399_v35, %v847_v51  ;;  %v959_v10 = vadd.f32 %v1431_v36, %v863_v52  ;;  %v1896_v52 = vld [vmem:[%s1826_s19 + $0x38] sm:$0xff]  }
  0xf3   : > { %v617_v5 = vpop.f32.mrf.mxu0  ;;  %v681_v6 = vpop.f32.mrf.mxu1  ;;  %v977_v19 = vmax.f32 %v945_v63, 0.0  ;;  %v993_v20 = vmax.f32 %v961_v0, 0.0  ;;  %v1448_v51 = vunpack.c.h.bf16 %v1867_v56  ;;  %v1899_v57 = vld [vmem:[%s1826_s19 + $0x78] sm:$0xff]  }
  0xf4   : > { %v848_v11 = vadd.f32 %v1835_v28, %v617_v5  ;;  %v864_v12 = vadd.f32 %v1835_v28, %v681_v6  ;;  %v946_v13 = vadd.f32 %v1404_v41, %v850_v3  ;;  %v962_v14 = vadd.f32 %v1436_v42, %v866_v4 }
  0xf5   : > { %v1617_v15 = vpop.f32.mrf.mxu0  ;;  %v1633_v16 = vpop.f32.mrf.mxu1  ;;  %v975_v32 = vmax.f32 %v943_v9, 0.0  ;;  %v991_v33 = vmax.f32 %v959_v10, 0.0 }
  0xf6   : > { %v944_v21 = vadd.f32 %v1400_v45, %v848_v11  ;;  %v960_v22 = vadd.f32 %v1432_v46, %v864_v12  ;;  %v978_v23 = vmax.f32 %v946_v13, 0.0  ;;  %v994_v24 = vmax.f32 %v962_v14, 0.0 }
  0xf7   : > { %v853_v25 = vadd.f32 %v1617_v15, %v1835_v28  ;;  %v869_v26 = vadd.f32 %v1633_v16, %v1835_v28  ;;  %v630_v27 = vpop.f32.mrf.mxu0  ;;  %v694_v31 = vpop.f32.mrf.mxu1  ;;  %v1416_v46 = vunpack.c.h.bf16 %v1864_v55  ;;  %v1427_v14 = vunpack.c.l.bf16 %v1896_v52 }
  0xf8   : > { %v976_v34 = vmax.f32 %v944_v21, 0.0  ;;  %v992_v35 = vmax.f32 %v960_v22, 0.0  ;;  %v1469_v36 = vpack.c.bf16 %v978_v23, %v977_v19  ;;  %v1509_v39 = vpack.c.bf16 %v994_v24, %v993_v20 }
  0xf9   : > { %v851_v40 = vadd.f32 %v1835_v28, %v630_v27  ;;  %v867_v41 = vadd.f32 %v1835_v28, %v694_v31  ;;  %v1618_v42 = vpop.f32.mrf.mxu0  ;;  %v1634_v43 = vpop.f32.mrf.mxu1  ;;  %v949_v58 = vadd.f32 %v1411_v47, %v853_v25  ;;  %v965_v63 = vadd.f32 %v1443_v48, %v869_v26 }
  0xfa   : > { %v1464_v44 = vpack.c.bf16 %v976_v34, %v975_v32  ;;  %v1504_v45 = vpack.c.bf16 %v992_v35, %v991_v33  ;;  %1556 = vst [vmem:[%s1889_s24 + $0x8] sm:$0xff] %v1469_v36   ;;  %1564 = vst [vmem:[%s1889_s24 + $0x48] sm:$0xff] %v1509_v39   ;;  %v854_v0 = vadd.f32 %v1618_v42, %v1835_v28 }
  0xfb   : > { %v870_v3 = vadd.f32 %v1634_v43, %v1835_v28  ;;  %v633_v4 = vpop.f32.mrf.mxu0  ;;  %v697_v5 = vpop.f32.mrf.mxu1  ;;  %v947_v6 = vadd.f32 %v1407_v53, %v851_v40  ;;  %v963_v9 = vadd.f32 %v1439_v54, %v867_v41  ;;  %v1459_v53 = vunpack.c.l.bf16 %v1899_v57 }
  0xfc   : > { %1465 = vst [vmem:[%s1889_s24] sm:$0xff] %v1464_v44   ;;  %1563 = vst [vmem:[%s1889_s24 + $0x40] sm:$0xff] %v1504_v45   ;;  %v852_v10 = vadd.f32 %v1835_v28, %v633_v4  ;;  %v868_v47 = vadd.f32 %v1835_v28, %v697_v5  ;;  %v950_v48 = vadd.f32 %v1412_v59, %v854_v0  ;;  %v981_v30 = vmax.f32 %v949_v58, 0.0 }
  0xfd   : > { %v966_v11 = vadd.f32 %v1444_v60, %v870_v3  ;;  %v1621_v12 = vpop.f32.mrf.mxu0  ;;  %v1637_v13 = vpop.f32.mrf.mxu1  ;;  %v997_v60 = vmax.f32 %v965_v63, 0.0  ;;  %v979_v22 = vmax.f32 %v947_v6, 0.0  ;;  %v995_v23 = vmax.f32 %v963_v9, 0.0 }
  0xfe   : > { %v948_v54 = vadd.f32 %v1408_v61, %v852_v10  ;;  %v964_v15 = vadd.f32 %v1440_v62, %v868_v47  ;;  %v857_v29 = vadd.f32 %v1621_v12, %v1835_v28  ;;  %v873_v59 = vadd.f32 %v1637_v13, %v1835_v28  ;;  %v1930_v61 = vld [vmem:[%s1826_s19 + $0x30] sm:$0xff]  }
  0xff   : > { %v982_v16 = vmax.f32 %v950_v48, 0.0  ;;  %v998_v19 = vmax.f32 %v966_v11, 0.0  ;;  %v646_v20 = vpop.f32.mrf.mxu0  ;;  %v710_v21 = vpop.f32.mrf.mxu1  ;;  %v1423_v43 = vunpack.c.l.bf16 %v1930_v61  ;;  %v1455_v44 = vunpack.c.l.bf16 %v1933_v38 }
 0x100   : > { %v980_v37 = vmax.f32 %v948_v54, 0.0  ;;  %v996_v24 = vmax.f32 %v964_v15, 0.0  ;;  %v855_v26 = vadd.f32 %v1835_v28, %v646_v20  ;;  %v871_v27 = vadd.f32 %v1835_v28, %v710_v21 }
 0x101   : > { %v1479_v62 = vpack.c.bf16 %v982_v16, %v981_v30  ;;  %v1519_v25 = vpack.c.bf16 %v998_v19, %v997_v60  ;;  %v1622_v31 = vpop.f32.mrf.mxu0  ;;  %v1638_v32 = vpop.f32.mrf.mxu1  ;;  %v953_v35 = vadd.f32 %v1419_v1, %v857_v29  ;;  %v969_v36 = vadd.f32 %v1451_v2, %v873_v59 }
 0x102   : > { %v1474_v33 = vpack.c.bf16 %v980_v37, %v979_v22  ;;  %v1514_v34 = vpack.c.bf16 %v996_v24, %v995_v23  ;;  %v858_v39 = vadd.f32 %v1622_v31, %v1835_v28  ;;  %v874_v40 = vadd.f32 %v1638_v32, %v1835_v28 }
 0x103   : > { %1558 = vst [vmem:[%s1889_s24 + $0x18] sm:$0xff] %v1479_v62   ;;  %1566 = vst [vmem:[%s1889_s24 + $0x58] sm:$0xff] %v1519_v25   ;;  %v649_v41 = vpop.f32.mrf.mxu0  ;;  %v713_v42 = vpop.f32.mrf.mxu1  ;;  %v951_v1 = vadd.f32 %v1415_v7, %v855_v26  ;;  %v967_v2 = vadd.f32 %v1447_v8, %v871_v27  ;;  %v1428_v5 = vunpack.c.h.bf16 %v1896_v52  ;;  %v1460_v6 = vunpack.c.h.bf16 %v1899_v57 }
 0x104   : > { %1557 = vst [vmem:[%s1889_s24 + $0x10] sm:$0xff] %v1474_v33   ;;  %1565 = vst [vmem:[%s1889_s24 + $0x50] sm:$0xff] %v1514_v34   ;;  %v856_v45 = vadd.f32 %v1835_v28, %v649_v41  ;;  %v872_v58 = vadd.f32 %v1835_v28, %v713_v42  ;;  %v954_v63 = vadd.f32 %v1420_v17, %v858_v39  ;;  %v985_v7 = vmax.f32 %v953_v35, 0.0 }
 0x105   : > { %v970_v0 = vadd.f32 %v1452_v18, %v874_v40  ;;  %v1625_v3 = vpop.f32.mrf.mxu0  ;;  %v1641_v4 = vpop.f32.mrf.mxu1  ;;  %v1001_v9 = vmax.f32 %v969_v36, 0.0  ;;  %v983_v11 = vmax.f32 %v951_v1, 0.0  ;;  %v999_v12 = vmax.f32 %v967_v2, 0.0 }
 0x106   : > { %v952_v8 = vadd.f32 %v1416_v46, %v856_v45  ;;  %v968_v10 = vadd.f32 %v1448_v51, %v872_v58  ;;  %v986_v47 = vmax.f32 %v954_v63, 0.0  ;;  %v861_v17 = vadd.f32 %v1625_v3, %v1835_v28 }
 0x107   : > { %v1002_v49 = vmax.f32 %v970_v0, 0.0  ;;  %v877_v50 = vadd.f32 %v1641_v4, %v1835_v28  ;;  %v662_v18 = vpop.f32.mrf.mxu0  ;;  %v726_v48 = vpop.f32.mrf.mxu1  ;;  %v1424_v60 = vunpack.c.h.bf16 %v1930_v61  ;;  %v1456_v16 = vunpack.c.h.bf16 %v1933_v38 }
 0x108   : > { %v984_v13 = vmax.f32 %v952_v8, 0.0  ;;  %v1000_v54 = vmax.f32 %v968_v10, 0.0  ;;  %v1489_v15 = vpack.c.bf16 %v986_v47, %v985_v7  ;;  %v859_v46 = vadd.f32 %v1835_v28, %v662_v18 }
 0x109   : > { %v1529_v55 = vpack.c.bf16 %v1002_v49, %v1001_v9  ;;  %v875_v56 = vadd.f32 %v1835_v28, %v726_v48  ;;  %v1626_v51 = vpop.f32.mrf.mxu0  ;;  %v1642_v29 = vpop.f32.mrf.mxu1  ;;  %v957_v19 = vadd.f32 %v1427_v14, %v861_v17  ;;  %v973_v20 = vadd.f32 %v1459_v53, %v877_v50 }
 0x10a   : > { %v1484_v59 = vpack.c.bf16 %v984_v13, %v983_v11  ;;  %v1524_v30 = vpack.c.bf16 %v1000_v54, %v999_v12  ;;  %1560 = vst [vmem:[%s1889_s24 + $0x28] sm:$0xff] %v1489_v15   ;;  %v862_v21 = vadd.f32 %v1626_v51, %v1835_v28  ;;  %v878_v22 = vadd.f32 %v1642_v29, %v1835_v28 }
 0x10b   : > { %1568 = vst [vmem:[%s1889_s24 + $0x68] sm:$0xff] %v1529_v55   ;;  %v665_v23 = vpop.f32.mrf.mxu0  ;;  %v729_v37 = vpop.f32.mrf.mxu1  ;;  %v955_v24 = vadd.f32 %v1423_v43, %v859_v46  ;;  %v971_v61 = vadd.f32 %v1455_v44, %v875_v56  ;;  %v989_v53 = vmax.f32 %v957_v19, 0.0  ;;  %v1005_v26 = vmax.f32 %v973_v20, 0.0 }
 0x10c   : > { %1559 = vst [vmem:[%s1889_s24 + $0x20] sm:$0xff] %v1484_v59   ;;  %1567 = vst [vmem:[%s1889_s24 + $0x60] sm:$0xff] %v1524_v30   ;;  %v860_v38 = vadd.f32 %v1835_v28, %v665_v23  ;;  %v876_v62 = vadd.f32 %v1835_v28, %v729_v37  ;;  %v958_v25 = vadd.f32 %v1428_v5, %v862_v21 }
 0x10d   : > { %v974_v52 = vadd.f32 %v1460_v6, %v878_v22  ;;  %v987_v32 = vmax.f32 %v955_v24, 0.0  ;;  %v1003_v33 = vmax.f32 %v971_v61, 0.0 }
 0x10e   : > { %v956_v57 = vadd.f32 %v1424_v60, %v860_v38  ;;  %v972_v14 = vadd.f32 %v1456_v16, %v876_v62  ;;  %v990_v27 = vmax.f32 %v958_v25, 0.0 }
 0x10f   : > { %v1006_v31 = vmax.f32 %v974_v52, 0.0 }
 0x110   : > { %v988_v34 = vmax.f32 %v956_v57, 0.0  ;;  %v1004_v35 = vmax.f32 %v972_v14, 0.0  ;;  %v1499_v36 = vpack.c.bf16 %v990_v27, %v989_v53 }
 0x111   : > { %v1539_v39 = vpack.c.bf16 %v1006_v31, %v1005_v26 }
 0x112   : > { %v1494_v40 = vpack.c.bf16 %v988_v34, %v987_v32  ;;  %v1534_v28 = vpack.c.bf16 %v1004_v35, %v1003_v33  ;;  %1562 = vst [vmem:[%s1889_s24 + $0x38] sm:$0xff] %v1499_v36  }
 0x113   : > { %1570 = vst [vmem:[%s1889_s24 + $0x78] sm:$0xff] %v1539_v39  }
 0x114   : > { %1561 = vst [vmem:[%s1889_s24 + $0x30] sm:$0xff] %v1494_v40   ;;  %1569 = vst [vmem:[%s1889_s24 + $0x70] sm:$0xff] %v1534_v28  }
 0x115 PF: > { %s14_s17 = sadd.s32 1, %s1729_s17   ;;  %s2001_s15 = smov %s1725_s16 }
 0x116   : > { %p11_p5 = scmp.ge.s32.totalorder %s14_s17, 5   ;;  %s2002_s16 = smov %s2004_s18 }
 0x118   :  { %13 = sbr.rel (!%p11_p5) target bundleno = 2 (0x2), region = 83 }

// kernel: _lambda_.23
= control target key start
LH: loop header
LB: loop body
LE: loop exit
PB: predicated region body
PF: predicated region fallthrough
CT: control target
= control target key end

     0   :  { %s1815_s1 = inlined_call_operand.vmem [shape: bf16[512,128], index: 1, kind: input, shape index: {}]   ;;  %s1816_s0 = inlined_call_operand.vmem [shape: bf16[176,512], index: 0, kind: input, shape index: {}]   ;;  %s1817_s2 = inlined_call_operand.vmem [shape: f32[1,128], index: 2, kind: input, shape index: {}]   ;;  %s1818_s3 = inlined_call_operand.vmem [shape: bf16[176,128], index: 3, kind: output, shape index: {}]  }
   0x1   :  { %v1409_v0 = vld [vmem:[%s1815_s1 + $0x78] sm:$0xff]   ;;  %v1413_v4 = vld [vmem:[%s1815_s1 + $0x70] sm:$0xff]   ;;  %v1417_v8 = vld [vmem:[%s1815_s1 + $0x68] sm:$0xff]  }
   0x2   :  { %v1410_v1 = vld [vmem:[%s1815_s1 + $0xf8] sm:$0xff]   ;;  %1245 = vmatprep.subr.bf16.mxu0 %v1409_v0  ;;  %v1414_v5 = vld [vmem:[%s1815_s1 + $0xf0] sm:$0xff]   ;;  %v1418_v9 = vld [vmem:[%s1815_s1 + $0xe8] sm:$0xff]  }
   0x3   :  { %v1411_v2 = vld [vmem:[%s1815_s1 + $0x38] sm:$0xff]   ;;  %1327 = vmatprep.subr.bf16.mxu1 %v1410_v1  ;;  %v1415_v6 = vld [vmem:[%s1815_s1 + $0x30] sm:$0xff]   ;;  %v1419_v10 = vld [vmem:[%s1815_s1 + $0x28] sm:$0xff]  }
   0x4   :  { %v1412_v3 = vld [vmem:[%s1815_s1 + $0xb8] sm:$0xff]   ;;  %1246 = vmatpush3.bf16.msra.mxu0 %v1411_v2  ;;  %v1416_v7 = vld [vmem:[%s1815_s1 + $0xb0] sm:$0xff]   ;;  %v1420_v11 = vld [vmem:[%s1815_s1 + $0xa8] sm:$0xff]  }
   0x5   :  { %1328 = vmatpush3.bf16.msra.mxu1 %v1412_v3  ;;  %1247 = vmatprep.subr.bf16.mxu0 %v1413_v4  ;;  %v1421_v12 = vld [vmem:[%s1815_s1 + $0x60] sm:$0xff]   ;;  %v1425_v16 = vld [vmem:[%s1815_s1 + $0x58] sm:$0xff]   ;;  %v1429_v20 = vld [vmem:[%s1815_s1 + $0x50] sm:$0xff]  }
   0x6   :  { %1329 = vmatprep.subr.bf16.mxu1 %v1414_v5  ;;  %v1422_v13 = vld [vmem:[%s1815_s1 + $0xe0] sm:$0xff]   ;;  %v1426_v17 = vld [vmem:[%s1815_s1 + $0xd8] sm:$0xff]   ;;  %v1430_v21 = vld [vmem:[%s1815_s1 + $0xd0] sm:$0xff]  }
   0x7   :  { %v1423_v14 = vld [vmem:[%s1815_s1 + $0x20] sm:$0xff]   ;;  %v1427_v18 = vld [vmem:[%s1815_s1 + $0x18] sm:$0xff]   ;;  %v1431_v22 = vld [vmem:[%s1815_s1 + $0x10] sm:$0xff]  }
   0x8   :  { %1248 = vmatpush3.bf16.msra.mxu0 %v1415_v6  ;;  %v1424_v15 = vld [vmem:[%s1815_s1 + $0xa0] sm:$0xff]   ;;  %v1428_v19 = vld [vmem:[%s1815_s1 + $0x98] sm:$0xff]   ;;  %v1432_v23 = vld [vmem:[%s1815_s1 + $0x90] sm:$0xff]  }
   0x9   :  { %1330 = vmatpush3.bf16.msra.mxu1 %v1416_v7  ;;  %1249 = vmatprep.subr.bf16.mxu0 %v1417_v8  ;;  %v1433_v24 = vld [vmem:[%s1815_s1 + $0x48] sm:$0xff]   ;;  %v1437_v28 = vld [vmem:[%s1815_s1 + $0x40] sm:$0xff]  }
   0xa   :  { %1331 = vmatprep.subr.bf16.mxu1 %v1418_v9  ;;  %v1434_v25 = vld [vmem:[%s1815_s1 + $0xc8] sm:$0xff]   ;;  %v1438_v29 = vld [vmem:[%s1815_s1 + $0xc0] sm:$0xff]  }
   0xb   :  { %v1435_v26 = vld [vmem:[%s1815_s1 + $0x8] sm:$0xff]   ;;  %v1439_v30 = vld [vmem:[%s1815_s1] sm:$0xff]  }
   0xc   :  { %1250 = vmatpush3.bf16.msra.mxu0 %v1419_v10  ;;  %v1436_v27 = vld [vmem:[%s1815_s1 + $0x88] sm:$0xff]   ;;  %v1440_v31 = vld [vmem:[%s1815_s1 + $0x80] sm:$0xff]  }
   0xd   :  { %1332 = vmatpush3.bf16.msra.mxu1 %v1420_v11  ;;  %1251 = vmatprep.subr.bf16.mxu0 %v1421_v12  ;;  %v1441_v32 = vld [vmem:[%s1816_s0] ss:$16 sps:$4 sm:$0xff]   ;;  %v1443_v33 = vld [vmem:[%s1816_s0 + $0x4] ss:$16 sps:$4 sm:$0xff]   ;;  %v1444_v34 = vld [vmem:[%s1816_s0 + $0x8] ss:$16 sps:$4 sm:$0xff]  }
   0xe   :  { %1333 = vmatprep.subr.bf16.mxu1 %v1422_v13  ;;  %v1446_v35 = vld [vmem:[%s1816_s0 + $0xc] ss:$16 sps:$4 sm:$0xff]   ;;  %615 = vmatprep.mubr.bf16.mxu0 %v1443_v33  ;;  %v1447_v36 = vld [vmem:[%s1816_s0 + $0x24] ss:$16 sps:$4 sm:$0xff]   ;;  %v1451_v38 = vld [vmem:[%s1816_s0 + $0x20] ss:$16 sps:$4 sm:$0xff]  }
   0xf   :  { %736 = vmatprep.mubr.bf16.mxu1 %v1446_v35  ;;  %v1449_v37 = vld [vmem:[%s1816_s0 + $0x2c] ss:$16 sps:$4 sm:$0xff]   ;;  %v1452_v39 = vld [vmem:[%s1816_s0 + $0x28] ss:$16 sps:$4 sm:$0xff]   ;;  %v1453_v40 = vld [vmem:[%s1816_s0 + $0x44] ss:$16 sps:$4 sm:$0xff]  }
  0x10   :  { %1252 = vmatpush3.bf16.msra.mxu0 %v1423_v14  ;;  %v1455_v41 = vld [vmem:[%s1816_s0 + $0x4c] ss:$16 sps:$4 sm:$0xff]   ;;  %v1457_v42 = vld [vmem:[%s1816_s0 + $0x40] ss:$16 sps:$4 sm:$0xff]   ;;  %v1458_v43 = vld [vmem:[%s1816_s0 + $0x48] ss:$16 sps:$4 sm:$0xff]  }
  0x11   :  { %1334 = vmatpush3.bf16.msra.mxu1 %v1424_v15  ;;  %1253 = vmatprep.subr.bf16.mxu0 %v1425_v16  ;;  %v1459_v44 = vld [vmem:[%s1816_s0 + $0x64] ss:$16 sps:$4 sm:$0xff]   ;;  %v1461_v45 = vld [vmem:[%s1816_s0 + $0x6c] ss:$16 sps:$4 sm:$0xff]   ;;  %v1463_v46 = vld [vmem:[%s1816_s0 + $0x60] ss:$16 sps:$4 sm:$0xff]  }
  0x12   :  { %1335 = vmatprep.subr.bf16.mxu1 %v1426_v17  ;;  %v1464_v47 = vld [vmem:[%s1816_s0 + $0x68] ss:$16 sps:$4 sm:$0xff]   ;;  %v1465_v48 = vld [vmem:[%s1816_s0 + $0x84] ss:$16 sps:$4 sm:$0xff]   ;;  %v1467_v49 = vld [vmem:[%s1816_s0 + $0x8c] ss:$16 sps:$4 sm:$0xff]  }
  0x13   :  { %v1469_v50 = vld [vmem:[%s1816_s0 + $0x80] ss:$16 sps:$4 sm:$0xff]   ;;  %v1470_v51 = vld [vmem:[%s1816_s0 + $0x88] ss:$16 sps:$4 sm:$0xff]   ;;  %v1471_v52 = vld [vmem:[%s1816_s0 + $0xa4] ss:$16 sps:$4 sm:$0xff]  }
  0x14   :  { %1254 = vmatpush3.bf16.msra.mxu0 %v1427_v18  ;;  %v1473_v53 = vld [vmem:[%s1816_s0 + $0xac] ss:$16 sps:$4 sm:$0xff]   ;;  %v1475_v54 = vld [vmem:[%s1816_s0 + $0xa0] ss:$16 sps:$4 sm:$0xff]   ;;  %v1476_v55 = vld [vmem:[%s1816_s0 + $0xa8] ss:$16 sps:$4 sm:$0xff]  }
  0x15   :  { %1336 = vmatpush3.bf16.msra.mxu1 %v1428_v19  ;;  %1255 = vmatprep.subr.bf16.mxu0 %v1429_v20  ;;  %v1477_v56 = vld [vmem:[%s1816_s0 + $0xc4] ss:$16 sps:$4 sm:$0xff]   ;;  %v1479_v57 = vld [vmem:[%s1816_s0 + $0xcc] ss:$16 sps:$4 sm:$0xff]   ;;  %v1481_v58 = vld [vmem:[%s1816_s0 + $0xc0] ss:$16 sps:$4 sm:$0xff]  }
  0x16   :  { %1337 = vmatprep.subr.bf16.mxu1 %v1430_v21  ;;  %v1482_v59 = vld [vmem:[%s1816_s0 + $0xc8] ss:$16 sps:$4 sm:$0xff]   ;;  %v1483_v60 = vld [vmem:[%s1816_s0 + $0xe4] ss:$16 sps:$4 sm:$0xff]   ;;  %v1485_v61 = vld [vmem:[%s1816_s0 + $0xec] ss:$16 sps:$4 sm:$0xff]  }
  0x17   :  { %v1487_v62 = vld [vmem:[%s1816_s0 + $0xe0] ss:$16 sps:$4 sm:$0xff]   ;;  %v1488_v63 = vld [vmem:[%s1816_s0 + $0xe8] ss:$16 sps:$4 sm:$0xff]   ;;  %v1489_v0 = vld [vmem:[%s1816_s0 + $0x104] ss:$16 sps:$4 sm:$0xff]  }
  0x18   :  { %1256 = vmatpush3.bf16.msra.mxu0 %v1431_v22  ;;  %v1491_v1 = vld [vmem:[%s1816_s0 + $0x10c] ss:$16 sps:$4 sm:$0xff]   ;;  %v1493_v2 = vld [vmem:[%s1816_s0 + $0x100] ss:$16 sps:$4 sm:$0xff]   ;;  %v1494_v3 = vld [vmem:[%s1816_s0 + $0x108] ss:$16 sps:$4 sm:$0xff]  }
  0x19   :  { %1338 = vmatpush3.bf16.msra.mxu1 %v1432_v23  ;;  %1257 = vmatprep.subr.bf16.mxu0 %v1433_v24  ;;  %v1495_v4 = vld [vmem:[%s1816_s0 + $0x124] ss:$16 sps:$4 sm:$0xff]   ;;  %v1497_v5 = vld [vmem:[%s1816_s0 + $0x12c] ss:$16 sps:$4 sm:$0xff]   ;;  %v1499_v6 = vld [vmem:[%s1816_s0 + $0x120] ss:$16 sps:$4 sm:$0xff]  }
  0x1a   :  { %1339 = vmatprep.subr.bf16.mxu1 %v1434_v25  ;;  %v1500_v7 = vld [vmem:[%s1816_s0 + $0x128] ss:$16 sps:$4 sm:$0xff]   ;;  %v1501_v8 = vld [vmem:[%s1816_s0 + $0x144] ss:$16 sps:$4 sm:$0xff]   ;;  %v1503_v9 = vld [vmem:[%s1816_s0 + $0x14c] ss:$16 sps:$4 sm:$0xff]  }
  0x1b   :  { %v1505_v10 = vld [vmem:[%s1816_s0 + $0x140] ss:$16 sps:$4 sm:$0xff]   ;;  %v1506_v11 = vld [vmem:[%s1816_s0 + $0x148] ss:$16 sps:$4 sm:$0xff]  }
  0x1c   :  { %1258 = vmatpush3.bf16.msra.mxu0 %v1435_v26  ;;  %v1758_v22 = vld [vmem:[%s1817_s2] ss:$0 sm:$0xff] }
  0x1d   :  { %1340 = vmatpush3.bf16.msra.mxu1 %v1436_v27  ;;  %1259 = vmatprep.subr.bf16.mxu0 %v1437_v28 }
  0x1e   :  { %1341 = vmatprep.subr.bf16.mxu1 %v1438_v29 }
  0x20   :  { %1260 = vmatpush3.bf16.msra.mxu0 %v1439_v30 }
  0x21   :  { %1342 = vmatpush3.bf16.msra.mxu1 %v1440_v31 }
  0x23   :  { %616 = vmatmul.mubr.bf16.vlgmr.msra.gmra.mxu0 %v1441_v32 }
  0x24   :  { %737 = vmatmul.mubr.bf16.vlgmr.msra.gmra.mxu1 %v1444_v34  ;;  %623 = vmatprep.mubr.bf16.mxu0 %v1447_v36 }
  0x25   :  { %744 = vmatprep.mubr.bf16.mxu1 %v1449_v37 }
  0x2b   :  { %624 = vmatmul.mubr.bf16.gmra.mxu0 %v1451_v38 }
  0x2c   :  { %745 = vmatmul.mubr.bf16.gmra.mxu1 %v1452_v39  ;;  %631 = vmatprep.mubr.bf16.mxu0 %v1453_v40 }
  0x2d   :  { %752 = vmatprep.mubr.bf16.mxu1 %v1455_v41 }
  0x33   :  { %632 = vmatmul.mubr.bf16.gmra.mxu0 %v1457_v42 }
  0x34   :  { %753 = vmatmul.mubr.bf16.gmra.mxu1 %v1458_v43  ;;  %639 = vmatprep.mubr.bf16.mxu0 %v1459_v44 }
  0x35   :  { %760 = vmatprep.mubr.bf16.mxu1 %v1461_v45 }
  0x3b   :  { %640 = vmatmul.mubr.bf16.gmra.mxu0 %v1463_v46 }
  0x3c   :  { %761 = vmatmul.mubr.bf16.gmra.mxu1 %v1464_v47  ;;  %647 = vmatprep.mubr.bf16.mxu0 %v1465_v48 }
  0x3d   :  { %768 = vmatprep.mubr.bf16.mxu1 %v1467_v49 }
  0x43   :  { %648 = vmatmul.mubr.bf16.gmra.mxu0 %v1469_v50 }
  0x44   :  { %769 = vmatmul.mubr.bf16.gmra.mxu1 %v1470_v51  ;;  %655 = vmatprep.mubr.bf16.mxu0 %v1471_v52 }
  0x45   :  { %776 = vmatprep.mubr.bf16.mxu1 %v1473_v53 }
  0x4b   :  { %656 = vmatmul.mubr.bf16.gmra.mxu0 %v1475_v54 }
  0x4c   :  { %777 = vmatmul.mubr.bf16.gmra.mxu1 %v1476_v55  ;;  %663 = vmatprep.mubr.bf16.mxu0 %v1477_v56 }
  0x4d   :  { %784 = vmatprep.mubr.bf16.mxu1 %v1479_v57 }
  0x53   :  { %664 = vmatmul.mubr.bf16.gmra.mxu0 %v1481_v58 }
  0x54   :  { %785 = vmatmul.mubr.bf16.gmra.mxu1 %v1482_v59  ;;  %671 = vmatprep.mubr.bf16.mxu0 %v1483_v60 }
  0x55   :  { %792 = vmatprep.mubr.bf16.mxu1 %v1485_v61 }
  0x5b   :  { %672 = vmatmul.mubr.bf16.gmra.mxu0 %v1487_v62 }
  0x5c   :  { %793 = vmatmul.mubr.bf16.gmra.mxu1 %v1488_v63  ;;  %679 = vmatprep.mubr.bf16.mxu0 %v1489_v0 }
  0x5d   :  { %800 = vmatprep.mubr.bf16.mxu1 %v1491_v1 }
  0x63   :  { %680 = vmatmul.mubr.bf16.gmra.mxu0 %v1493_v2 }
  0x64   :  { %801 = vmatmul.mubr.bf16.gmra.mxu1 %v1494_v3  ;;  %687 = vmatprep.mubr.bf16.mxu0 %v1495_v4 }
  0x65   :  { %808 = vmatprep.mubr.bf16.mxu1 %v1497_v5 }
  0x6b   :  { %688 = vmatmul.mubr.bf16.gmra.mxu0 %v1499_v6 }
  0x6c   :  { %809 = vmatmul.mubr.bf16.gmra.mxu1 %v1500_v7  ;;  %695 = vmatprep.mubr.bf16.mxu0 %v1501_v8 }
  0x6d   :  { %816 = vmatprep.mubr.bf16.mxu1 %v1503_v9 }
  0x73   :  { %696 = vmatmul.mubr.bf16.gmra.mxu0 %v1505_v10 }
  0x74   :  { %817 = vmatmul.mubr.bf16.gmra.mxu1 %v1506_v11 }
  0xe3   :  { %v1261_v12 = vpop.f32.mrf.mxu0 }
  0xe4   :  { %v1343_v13 = vpop.f32.mrf.mxu1 }
  0xe5   :  { %v1262_v14 = vpop.f32.mrf.mxu0 }
  0xe6   :  { %v1263_v15 = vadd.f32 %v1262_v14, %v1261_v12  ;;  %v1344_v16 = vpop.f32.mrf.mxu1 }
  0xe7   :  { %v1345_v17 = vadd.f32 %v1344_v16, %v1343_v13  ;;  %v1264_v18 = vpop.f32.mrf.mxu0 }
  0xe8   :  { %v1346_v19 = vpop.f32.mrf.mxu1 }
  0xe9   :  { %v739_v20 = vadd.f32 %v1345_v17, %v1263_v15  ;;  %v1265_v21 = vpop.f32.mrf.mxu0 }
  0xea   :  { %v1266_v23 = vadd.f32 %v1265_v21, %v1264_v18  ;;  %v1347_v24 = vpop.f32.mrf.mxu1 }
  0xeb   :  { %v1348_v25 = vadd.f32 %v1347_v24, %v1346_v19  ;;  %v1267_v26 = vpop.f32.mrf.mxu0  ;;  %v901_v28 = vadd.f32 %v1758_v22, %v739_v20 }
  0xec   :  { %v1349_v27 = vpop.f32.mrf.mxu1 }
  0xed   :  { %v742_v29 = vadd.f32 %v1348_v25, %v1266_v23  ;;  %v1268_v30 = vpop.f32.mrf.mxu0  ;;  %v923_v37 = vmax.f32 %v901_v28, 0.0 }
  0xee   :  { %v1269_v31 = vadd.f32 %v1268_v30, %v1267_v26  ;;  %v1350_v32 = vpop.f32.mrf.mxu1 }
  0xef   :  { %v902_v33 = vadd.f32 %v1758_v22, %v742_v29  ;;  %v1351_v34 = vadd.f32 %v1350_v32, %v1349_v27  ;;  %v1270_v35 = vpop.f32.mrf.mxu0 }
  0xf0   :  { %v1352_v36 = vpop.f32.mrf.mxu1 }
  0xf1   :  { %v924_v38 = vmax.f32 %v902_v33, 0.0  ;;  %v747_v39 = vadd.f32 %v1351_v34, %v1269_v31  ;;  %v1271_v40 = vpop.f32.mrf.mxu0 }
  0xf2   :  { %v1272_v41 = vadd.f32 %v1271_v40, %v1270_v35  ;;  %v1353_v42 = vpop.f32.mrf.mxu1 }
  0xf3   :  { %v1183_v43 = vpack.c.bf16 %v924_v38, %v923_v37  ;;  %v1354_v44 = vadd.f32 %v1353_v42, %v1352_v36  ;;  %v1273_v45 = vpop.f32.mrf.mxu0  ;;  %v903_v47 = vadd.f32 %v1758_v22, %v747_v39 }
  0xf4   :  { %v1355_v46 = vpop.f32.mrf.mxu1 }
  0xf5   :  { %1184 = vst [vmem:[%s1818_s3] sm:$0xff] %v1183_v43   ;;  %v750_v48 = vadd.f32 %v1354_v44, %v1272_v41  ;;  %v1274_v49 = vpop.f32.mrf.mxu0  ;;  %v925_v56 = vmax.f32 %v903_v47, 0.0 }
  0xf6   :  { %v1275_v50 = vadd.f32 %v1274_v49, %v1273_v45  ;;  %v1356_v51 = vpop.f32.mrf.mxu1 }
  0xf7   :  { %v904_v52 = vadd.f32 %v1758_v22, %v750_v48  ;;  %v1357_v53 = vadd.f32 %v1356_v51, %v1355_v46  ;;  %v1276_v54 = vpop.f32.mrf.mxu0 }
  0xf8   :  { %v1358_v55 = vpop.f32.mrf.mxu1 }
  0xf9   :  { %v926_v57 = vmax.f32 %v904_v52, 0.0  ;;  %v755_v58 = vadd.f32 %v1357_v53, %v1275_v50  ;;  %v1277_v59 = vpop.f32.mrf.mxu0 }
  0xfa   :  { %v1278_v60 = vadd.f32 %v1277_v59, %v1276_v54  ;;  %v1359_v61 = vpop.f32.mrf.mxu1 }
  0xfb   :  { %v1188_v62 = vpack.c.bf16 %v926_v57, %v925_v56  ;;  %v1360_v63 = vadd.f32 %v1359_v61, %v1358_v55  ;;  %v1279_v0 = vpop.f32.mrf.mxu0  ;;  %v905_v2 = vadd.f32 %v1758_v22, %v755_v58 }
  0xfc   :  { %v1361_v1 = vpop.f32.mrf.mxu1 }
  0xfd   :  { %1235 = vst [vmem:[%s1818_s3 + $0x8] sm:$0xff] %v1188_v62   ;;  %v758_v3 = vadd.f32 %v1360_v63, %v1278_v60  ;;  %v1280_v4 = vpop.f32.mrf.mxu0  ;;  %v927_v11 = vmax.f32 %v905_v2, 0.0 }
  0xfe   :  { %v1281_v5 = vadd.f32 %v1280_v4, %v1279_v0  ;;  %v1362_v6 = vpop.f32.mrf.mxu1 }
  0xff   :  { %v906_v7 = vadd.f32 %v1758_v22, %v758_v3  ;;  %v1363_v8 = vadd.f32 %v1362_v6, %v1361_v1  ;;  %v1282_v9 = vpop.f32.mrf.mxu0 }
 0x100   :  { %v1364_v10 = vpop.f32.mrf.mxu1 }
 0x101   :  { %v928_v12 = vmax.f32 %v906_v7, 0.0  ;;  %v763_v13 = vadd.f32 %v1363_v8, %v1281_v5  ;;  %v1283_v14 = vpop.f32.mrf.mxu0 }
 0x102   :  { %v1284_v15 = vadd.f32 %v1283_v14, %v1282_v9  ;;  %v1365_v16 = vpop.f32.mrf.mxu1 }
 0x103   :  { %v1193_v17 = vpack.c.bf16 %v928_v12, %v927_v11  ;;  %v1366_v18 = vadd.f32 %v1365_v16, %v1364_v10  ;;  %v1285_v19 = vpop.f32.mrf.mxu0  ;;  %v907_v21 = vadd.f32 %v1758_v22, %v763_v13 }
 0x104   :  { %v1367_v20 = vpop.f32.mrf.mxu1 }
 0x105   :  { %1236 = vst [vmem:[%s1818_s3 + $0x10] sm:$0xff] %v1193_v17   ;;  %v766_v23 = vadd.f32 %v1366_v18, %v1284_v15  ;;  %v1286_v24 = vpop.f32.mrf.mxu0  ;;  %v929_v31 = vmax.f32 %v907_v21, 0.0 }
 0x106   :  { %v1287_v25 = vadd.f32 %v1286_v24, %v1285_v19  ;;  %v1368_v26 = vpop.f32.mrf.mxu1 }
 0x107   :  { %v908_v27 = vadd.f32 %v1758_v22, %v766_v23  ;;  %v1369_v28 = vadd.f32 %v1368_v26, %v1367_v20  ;;  %v1288_v29 = vpop.f32.mrf.mxu0 }
 0x108   :  { %v1370_v30 = vpop.f32.mrf.mxu1 }
 0x109   :  { %v930_v32 = vmax.f32 %v908_v27, 0.0  ;;  %v771_v33 = vadd.f32 %v1369_v28, %v1287_v25  ;;  %v1289_v34 = vpop.f32.mrf.mxu0 }
 0x10a   :  { %v1290_v35 = vadd.f32 %v1289_v34, %v1288_v29  ;;  %v1371_v36 = vpop.f32.mrf.mxu1 }
 0x10b   :  { %v1198_v37 = vpack.c.bf16 %v930_v32, %v929_v31  ;;  %v1372_v38 = vadd.f32 %v1371_v36, %v1370_v30  ;;  %v1291_v39 = vpop.f32.mrf.mxu0  ;;  %v909_v41 = vadd.f32 %v1758_v22, %v771_v33 }
 0x10c   :  { %v1373_v40 = vpop.f32.mrf.mxu1 }
 0x10d   :  { %1237 = vst [vmem:[%s1818_s3 + $0x18] sm:$0xff] %v1198_v37   ;;  %v774_v42 = vadd.f32 %v1372_v38, %v1290_v35  ;;  %v1292_v43 = vpop.f32.mrf.mxu0  ;;  %v931_v50 = vmax.f32 %v909_v41, 0.0 }
 0x10e   :  { %v1293_v44 = vadd.f32 %v1292_v43, %v1291_v39  ;;  %v1374_v45 = vpop.f32.mrf.mxu1 }
 0x10f   :  { %v910_v46 = vadd.f32 %v1758_v22, %v774_v42  ;;  %v1375_v47 = vadd.f32 %v1374_v45, %v1373_v40  ;;  %v1294_v48 = vpop.f32.mrf.mxu0 }
 0x110   :  { %v1376_v49 = vpop.f32.mrf.mxu1 }
 0x111   :  { %v932_v51 = vmax.f32 %v910_v46, 0.0  ;;  %v779_v52 = vadd.f32 %v1375_v47, %v1293_v44  ;;  %v1295_v53 = vpop.f32.mrf.mxu0 }
 0x112   :  { %v1296_v54 = vadd.f32 %v1295_v53, %v1294_v48  ;;  %v1377_v55 = vpop.f32.mrf.mxu1 }
 0x113   :  { %v1203_v56 = vpack.c.bf16 %v932_v51, %v931_v50  ;;  %v1378_v57 = vadd.f32 %v1377_v55, %v1376_v49  ;;  %v1297_v58 = vpop.f32.mrf.mxu0  ;;  %v911_v60 = vadd.f32 %v1758_v22, %v779_v52 }
 0x114   :  { %v1379_v59 = vpop.f32.mrf.mxu1 }
 0x115   :  { %1238 = vst [vmem:[%s1818_s3 + $0x20] sm:$0xff] %v1203_v56   ;;  %v782_v61 = vadd.f32 %v1378_v57, %v1296_v54  ;;  %v1298_v62 = vpop.f32.mrf.mxu0  ;;  %v933_v5 = vmax.f32 %v911_v60, 0.0 }
 0x116   :  { %v1299_v63 = vadd.f32 %v1298_v62, %v1297_v58  ;;  %v1380_v0 = vpop.f32.mrf.mxu1 }
 0x117   :  { %v912_v1 = vadd.f32 %v1758_v22, %v782_v61  ;;  %v1381_v2 = vadd.f32 %v1380_v0, %v1379_v59  ;;  %v1300_v3 = vpop.f32.mrf.mxu0 }
 0x118   :  { %v1382_v4 = vpop.f32.mrf.mxu1 }
 0x119   :  { %v934_v6 = vmax.f32 %v912_v1, 0.0  ;;  %v787_v7 = vadd.f32 %v1381_v2, %v1299_v63  ;;  %v1301_v8 = vpop.f32.mrf.mxu0 }
 0x11a   :  { %v1302_v9 = vadd.f32 %v1301_v8, %v1300_v3  ;;  %v1383_v10 = vpop.f32.mrf.mxu1 }
 0x11b   :  { %v1208_v11 = vpack.c.bf16 %v934_v6, %v933_v5  ;;  %v1384_v12 = vadd.f32 %v1383_v10, %v1382_v4  ;;  %v1303_v13 = vpop.f32.mrf.mxu0  ;;  %v913_v15 = vadd.f32 %v1758_v22, %v787_v7 }
 0x11c   :  { %v1385_v14 = vpop.f32.mrf.mxu1 }
 0x11d   :  { %1239 = vst [vmem:[%s1818_s3 + $0x28] sm:$0xff] %v1208_v11   ;;  %v790_v16 = vadd.f32 %v1384_v12, %v1302_v9  ;;  %v1304_v17 = vpop.f32.mrf.mxu0  ;;  %v935_v25 = vmax.f32 %v913_v15, 0.0 }
 0x11e   :  { %v1305_v18 = vadd.f32 %v1304_v17, %v1303_v13  ;;  %v1386_v19 = vpop.f32.mrf.mxu1 }
 0x11f   :  { %v914_v20 = vadd.f32 %v1758_v22, %v790_v16  ;;  %v1387_v21 = vadd.f32 %v1386_v19, %v1385_v14  ;;  %v1306_v23 = vpop.f32.mrf.mxu0 }
 0x120   :  { %v1388_v24 = vpop.f32.mrf.mxu1 }
 0x121   :  { %v936_v26 = vmax.f32 %v914_v20, 0.0  ;;  %v795_v27 = vadd.f32 %v1387_v21, %v1305_v18  ;;  %v1307_v28 = vpop.f32.mrf.mxu0 }
 0x122   :  { %v1308_v29 = vadd.f32 %v1307_v28, %v1306_v23  ;;  %v1389_v30 = vpop.f32.mrf.mxu1 }
 0x123   :  { %v1213_v31 = vpack.c.bf16 %v936_v26, %v935_v25  ;;  %v1390_v32 = vadd.f32 %v1389_v30, %v1388_v24  ;;  %v1309_v33 = vpop.f32.mrf.mxu0  ;;  %v915_v35 = vadd.f32 %v1758_v22, %v795_v27 }
 0x124   :  { %v1391_v34 = vpop.f32.mrf.mxu1 }
 0x125   :  { %1240 = vst [vmem:[%s1818_s3 + $0x30] sm:$0xff] %v1213_v31   ;;  %v798_v36 = vadd.f32 %v1390_v32, %v1308_v29  ;;  %v1310_v37 = vpop.f32.mrf.mxu0  ;;  %v937_v44 = vmax.f32 %v915_v35, 0.0 }
 0x126   :  { %v1311_v38 = vadd.f32 %v1310_v37, %v1309_v33  ;;  %v1392_v39 = vpop.f32.mrf.mxu1 }
 0x127   :  { %v916_v40 = vadd.f32 %v1758_v22, %v798_v36  ;;  %v1393_v41 = vadd.f32 %v1392_v39, %v1391_v34  ;;  %v1312_v42 = vpop.f32.mrf.mxu0 }
 0x128   :  { %v1394_v43 = vpop.f32.mrf.mxu1 }
 0x129   :  { %v938_v45 = vmax.f32 %v916_v40, 0.0  ;;  %v803_v46 = vadd.f32 %v1393_v41, %v1311_v38  ;;  %v1313_v47 = vpop.f32.mrf.mxu0 }
 0x12a   :  { %v1314_v48 = vadd.f32 %v1313_v47, %v1312_v42  ;;  %v1395_v49 = vpop.f32.mrf.mxu1 }
 0x12b   :  { %v1218_v50 = vpack.c.bf16 %v938_v45, %v937_v44  ;;  %v1396_v51 = vadd.f32 %v1395_v49, %v1394_v43  ;;  %v1315_v52 = vpop.f32.mrf.mxu0  ;;  %v917_v54 = vadd.f32 %v1758_v22, %v803_v46 }
 0x12c   :  { %v1397_v53 = vpop.f32.mrf.mxu1 }
 0x12d   :  { %1241 = vst [vmem:[%s1818_s3 + $0x38] sm:$0xff] %v1218_v50   ;;  %v806_v55 = vadd.f32 %v1396_v51, %v1314_v48  ;;  %v1316_v56 = vpop.f32.mrf.mxu0  ;;  %v939_v63 = vmax.f32 %v917_v54, 0.0 }
 0x12e   :  { %v1317_v57 = vadd.f32 %v1316_v56, %v1315_v52  ;;  %v1398_v58 = vpop.f32.mrf.mxu1 }
 0x12f   :  { %v918_v59 = vadd.f32 %v1758_v22, %v806_v55  ;;  %v1399_v60 = vadd.f32 %v1398_v58, %v1397_v53  ;;  %v1318_v61 = vpop.f32.mrf.mxu0 }
 0x130   :  { %v1400_v62 = vpop.f32.mrf.mxu1 }
 0x131   :  { %v940_v0 = vmax.f32 %v918_v59, 0.0  ;;  %v811_v1 = vadd.f32 %v1399_v60, %v1317_v57  ;;  %v1319_v2 = vpop.f32.mrf.mxu0 }
 0x132   :  { %v1320_v3 = vadd.f32 %v1319_v2, %v1318_v61  ;;  %v1401_v4 = vpop.f32.mrf.mxu1 }
 0x133   :  { %v1223_v5 = vpack.c.bf16 %v940_v0, %v939_v63  ;;  %v1402_v6 = vadd.f32 %v1401_v4, %v1400_v62  ;;  %v1321_v7 = vpop.f32.mrf.mxu0  ;;  %v919_v9 = vadd.f32 %v1758_v22, %v811_v1 }
 0x134   :  { %v1403_v8 = vpop.f32.mrf.mxu1 }
 0x135   :  { %1242 = vst [vmem:[%s1818_s3 + $0x40] sm:$0xff] %v1223_v5   ;;  %v814_v10 = vadd.f32 %v1402_v6, %v1320_v3  ;;  %v1322_v11 = vpop.f32.mrf.mxu0  ;;  %v941_v18 = vmax.f32 %v919_v9, 0.0 }
 0x136   :  { %v1323_v12 = vadd.f32 %v1322_v11, %v1321_v7  ;;  %v1404_v13 = vpop.f32.mrf.mxu1 }
 0x137   :  { %v920_v14 = vadd.f32 %v1758_v22, %v814_v10  ;;  %v1405_v15 = vadd.f32 %v1404_v13, %v1403_v8  ;;  %v1324_v16 = vpop.f32.mrf.mxu0 }
 0x138   :  { %v1406_v17 = vpop.f32.mrf.mxu1 }
 0x139   :  { %v942_v19 = vmax.f32 %v920_v14, 0.0  ;;  %v819_v20 = vadd.f32 %v1405_v15, %v1323_v12  ;;  %v1325_v21 = vpop.f32.mrf.mxu0 }
 0x13a   :  { %v1326_v23 = vadd.f32 %v1325_v21, %v1324_v16  ;;  %v1407_v24 = vpop.f32.mrf.mxu1 }
 0x13b   :  { %v1228_v25 = vpack.c.bf16 %v942_v19, %v941_v18  ;;  %v1408_v26 = vadd.f32 %v1407_v24, %v1406_v17  ;;  %v921_v27 = vadd.f32 %v1758_v22, %v819_v20 }
 0x13d   :  { %1243 = vst [vmem:[%s1818_s3 + $0x48] sm:$0xff] %v1228_v25   ;;  %v822_v28 = vadd.f32 %v1408_v26, %v1326_v23  ;;  %v943_v30 = vmax.f32 %v921_v27, 0.0 }
 0x13f   :  { %v922_v29 = vadd.f32 %v1758_v22, %v822_v28 }
 0x141   :  { %v944_v31 = vmax.f32 %v922_v29, 0.0 }
 0x143   :  { %v1233_v32 = vpack.c.bf16 %v944_v31, %v943_v30 }
 0x145   :  { %1244 = vst [vmem:[%s1818_s3 + $0x50] sm:$0xff] %v1233_v32  }

// kernel: _lambda_.24
= control target key start
LH: loop header
LB: loop body
LE: loop exit
PB: predicated region body
PF: predicated region fallthrough
CT: control target
= control target key end

     0   :  { %v793_v0 = vmov 0.0   ;;  %vm794_vm0 = vmmov 0   ;;  %s970_s1 = inlined_call_operand.vmem [shape: bf16[128,128], index: 1, kind: input, shape index: {}]   ;;  %s971_s0 = inlined_call_operand.vmem [shape: bf16[176,128], index: 0, kind: input, shape index: {}]   ;;  %s972_s2 = inlined_call_operand.vmem [shape: f32[1,128], index: 2, kind: input, shape index: {}]   ;;  %s973_s3 = inlined_call_operand.vmem [shape: bf16[176,128], index: 3, kind: output, shape index: {}]  }
   0x1   :  { %696 = vmatprep.subr.bf16.mxu0 %v793_v0  ;;  %v774_v1 = vld [vmem:[%s970_s1 + $0x38] sm:$0xff]   ;;  %756 = vmatprep.subr.bf16.mxu1 %v793_v0  ;;  %v775_v2 = vld [vmem:[%s970_s1 + $0x30] sm:$0xff]   ;;  %v776_v3 = vld [vmem:[%s970_s1 + $0x28] sm:$0xff]  }
   0x2   :  { %712 = vmatprep.mubr.msk.bf16.mxu0 %vm794_vm0, %v793_v0  ;;  %736 = vmatprep.mubr.msk.bf16.mxu1 %vm794_vm0, %v793_v0  ;;  %v777_v4 = vld [vmem:[%s970_s1 + $0x20] sm:$0xff]   ;;  %v778_v5 = vld [vmem:[%s970_s1 + $0x18] sm:$0xff]   ;;  %v779_v6 = vld [vmem:[%s970_s1 + $0x10] sm:$0xff]  }
   0x3   :  { %697 = vmatpush3.bf16.msra.mxu0 %v774_v1  ;;  %764 = vmatpush3.bf16.msra.mxu1 %v774_v1  ;;  %v780_v7 = vld [vmem:[%s970_s1 + $0x8] sm:$0xff]   ;;  %v781_v8 = vld [vmem:[%s970_s1] sm:$0xff]   ;;  %v783_v10 = vld [vmem:[%s971_s0 + $0x30] sm:$0xff]  }
   0x4   :  { %698 = vmatprep.subr.bf16.mxu0 %v793_v0  ;;  %757 = vmatprep.subr.bf16.mxu1 %v793_v0  ;;  %v782_v9 = vld [vmem:[%s971_s0] sm:$0xff]   ;;  %v784_v11 = vld [vmem:[%s971_s0 + $0x8] sm:$0xff]   ;;  %v785_v12 = vld [vmem:[%s971_s0 + $0x38] sm:$0xff]  }
   0x5   :  { %v786_v13 = vld [vmem:[%s971_s0 + $0x10] sm:$0xff]   ;;  %v787_v14 = vld [vmem:[%s971_s0 + $0x40] sm:$0xff]   ;;  %v788_v15 = vld [vmem:[%s971_s0 + $0x18] sm:$0xff]  }
   0x6   :  { %v789_v16 = vld [vmem:[%s971_s0 + $0x48] sm:$0xff]   ;;  %v790_v17 = vld [vmem:[%s971_s0 + $0x20] sm:$0xff]   ;;  %v791_v18 = vld [vmem:[%s971_s0 + $0x50] sm:$0xff]  }
   0x7   :  { %699 = vmatpush3.bf16.msra.mxu0 %v775_v2  ;;  %765 = vmatpush3.bf16.msra.mxu1 %v775_v2  ;;  %v792_v19 = vld [vmem:[%s971_s0 + $0x28] sm:$0xff]   ;;  %v913_v22 = vld [vmem:[%s972_s2] ss:$0 sm:$0xff] }
   0x8   :  { %700 = vmatprep.subr.bf16.mxu0 %v793_v0  ;;  %758 = vmatprep.subr.bf16.mxu1 %v793_v0 }
   0xb   :  { %701 = vmatpush3.bf16.msra.mxu0 %v776_v3  ;;  %766 = vmatpush3.bf16.msra.mxu1 %v776_v3 }
   0xc   :  { %702 = vmatprep.subr.bf16.mxu0 %v793_v0  ;;  %759 = vmatprep.subr.bf16.mxu1 %v793_v0 }
   0xf   :  { %703 = vmatpush3.bf16.msra.mxu0 %v777_v4  ;;  %767 = vmatpush3.bf16.msra.mxu1 %v777_v4 }
  0x10   :  { %704 = vmatprep.subr.bf16.mxu0 %v793_v0  ;;  %760 = vmatprep.subr.bf16.mxu1 %v793_v0 }
  0x13   :  { %705 = vmatpush3.bf16.msra.mxu0 %v778_v5  ;;  %768 = vmatpush3.bf16.msra.mxu1 %v778_v5 }
  0x14   :  { %706 = vmatprep.subr.bf16.mxu0 %v793_v0  ;;  %761 = vmatprep.subr.bf16.mxu1 %v793_v0 }
  0x17   :  { %707 = vmatpush3.bf16.msra.mxu0 %v779_v6  ;;  %769 = vmatpush3.bf16.msra.mxu1 %v779_v6 }
  0x18   :  { %708 = vmatprep.subr.bf16.mxu0 %v793_v0  ;;  %762 = vmatprep.subr.bf16.mxu1 %v793_v0 }
  0x1b   :  { %709 = vmatpush3.bf16.msra.mxu0 %v780_v7  ;;  %770 = vmatpush3.bf16.msra.mxu1 %v780_v7 }
  0x1c   :  { %710 = vmatprep.subr.bf16.mxu0 %v793_v0  ;;  %763 = vmatprep.subr.bf16.mxu1 %v793_v0 }
  0x1f   :  { %711 = vmatpush3.bf16.msra.mxu0 %v781_v8  ;;  %771 = vmatpush3.bf16.msra.mxu1 %v781_v8 }
  0x22   :  { %713 = vmatmul.mubr.bf16.vlgmr.msra.gmra.mxu0 %v782_v9  ;;  %737 = vmatmul.mubr.bf16.vlgmr.msra.gmra.mxu1 %v783_v10 }
  0x23   :  { %716 = vmatprep.mubr.msk.bf16.mxu0 %vm794_vm0, %v793_v0  ;;  %740 = vmatprep.mubr.msk.bf16.mxu1 %vm794_vm0, %v793_v0 }
  0x2a   :  { %717 = vmatmul.mubr.bf16.gmra.mxu0 %v784_v11  ;;  %741 = vmatmul.mubr.bf16.gmra.mxu1 %v785_v12 }
  0x2b   :  { %720 = vmatprep.mubr.msk.bf16.mxu0 %vm794_vm0, %v793_v0  ;;  %744 = vmatprep.mubr.msk.bf16.mxu1 %vm794_vm0, %v793_v0 }
  0x32   :  { %721 = vmatmul.mubr.bf16.gmra.mxu0 %v786_v13  ;;  %745 = vmatmul.mubr.bf16.gmra.mxu1 %v787_v14 }
  0x33   :  { %724 = vmatprep.mubr.msk.bf16.mxu0 %vm794_vm0, %v793_v0  ;;  %748 = vmatprep.mubr.msk.bf16.mxu1 %vm794_vm0, %v793_v0 }
  0x3a   :  { %725 = vmatmul.mubr.bf16.gmra.mxu0 %v788_v15  ;;  %749 = vmatmul.mubr.bf16.gmra.mxu1 %v789_v16 }
  0x3b   :  { %728 = vmatprep.mubr.msk.bf16.mxu0 %vm794_vm0, %v793_v0  ;;  %752 = vmatprep.mubr.msk.bf16.mxu1 %vm794_vm0, %v793_v0 }
  0x42   :  { %729 = vmatmul.mubr.bf16.gmra.mxu0 %v790_v17  ;;  %753 = vmatmul.mubr.bf16.gmra.mxu1 %v791_v18 }
  0x43   :  { %732 = vmatprep.mubr.msk.bf16.mxu0 %vm794_vm0, %v793_v0 }
  0x4a   :  { %733 = vmatmul.mubr.bf16.gmra.mxu0 %v792_v19 }
  0xe2   :  { %v249_v20 = vpop.f32.mrf.mxu0  ;;  %v297_v21 = vpop.f32.mrf.mxu1 }
  0xe3   :  { %v424_v25 = vadd.f32 %v913_v22, %v297_v21  ;;  %v412_v28 = vadd.f32 %v913_v22, %v249_v20 }
  0xe4   :  { %v714_v23 = vpop.f32.mrf.mxu0  ;;  %v738_v24 = vpop.f32.mrf.mxu1 }
  0xe6   :  { %v252_v26 = vpop.f32.mrf.mxu0  ;;  %v300_v27 = vpop.f32.mrf.mxu1 }
  0xe7   :  { %v413_v29 = vadd.f32 %v913_v22, %v252_v26  ;;  %v425_v30 = vadd.f32 %v913_v22, %v300_v27 }
  0xe8   :  { %v715_v31 = vpop.f32.mrf.mxu0  ;;  %v739_v32 = vpop.f32.mrf.mxu1 }
  0xe9   :  { %v615_v33 = vpack.c.bf16 %v413_v29, %v412_v28  ;;  %v645_v34 = vpack.c.bf16 %v425_v30, %v424_v25 }
  0xea   :  { %v257_v35 = vpop.f32.mrf.mxu0  ;;  %v305_v36 = vpop.f32.mrf.mxu1 }
  0xeb   :  { %616 = vst [vmem:[%s973_s3] sm:$0xff] %v615_v33   ;;  %672 = vst [vmem:[%s973_s3 + $0x30] sm:$0xff] %v645_v34   ;;  %v426_v39 = vadd.f32 %v913_v22, %v305_v36  ;;  %v414_v42 = vadd.f32 %v913_v22, %v257_v35 }
  0xec   :  { %v718_v37 = vpop.f32.mrf.mxu0  ;;  %v742_v38 = vpop.f32.mrf.mxu1 }
  0xee   :  { %v260_v40 = vpop.f32.mrf.mxu0  ;;  %v308_v41 = vpop.f32.mrf.mxu1 }
  0xef   :  { %v415_v43 = vadd.f32 %v913_v22, %v260_v40  ;;  %v427_v44 = vadd.f32 %v913_v22, %v308_v41 }
  0xf0   :  { %v719_v45 = vpop.f32.mrf.mxu0  ;;  %v743_v46 = vpop.f32.mrf.mxu1 }
  0xf1   :  { %v620_v47 = vpack.c.bf16 %v415_v43, %v414_v42  ;;  %v650_v48 = vpack.c.bf16 %v427_v44, %v426_v39 }
  0xf2   :  { %v265_v49 = vpop.f32.mrf.mxu0  ;;  %v313_v50 = vpop.f32.mrf.mxu1 }
  0xf3   :  { %667 = vst [vmem:[%s973_s3 + $0x8] sm:$0xff] %v620_v47   ;;  %673 = vst [vmem:[%s973_s3 + $0x38] sm:$0xff] %v650_v48   ;;  %v428_v53 = vadd.f32 %v913_v22, %v313_v50  ;;  %v416_v56 = vadd.f32 %v913_v22, %v265_v49 }
  0xf4   :  { %v722_v51 = vpop.f32.mrf.mxu0  ;;  %v746_v52 = vpop.f32.mrf.mxu1 }
  0xf6   :  { %v268_v54 = vpop.f32.mrf.mxu0  ;;  %v316_v55 = vpop.f32.mrf.mxu1 }
  0xf7   :  { %v417_v57 = vadd.f32 %v913_v22, %v268_v54  ;;  %v429_v58 = vadd.f32 %v913_v22, %v316_v55 }
  0xf8   :  { %v723_v59 = vpop.f32.mrf.mxu0  ;;  %v747_v60 = vpop.f32.mrf.mxu1 }
  0xf9   :  { %v625_v61 = vpack.c.bf16 %v417_v57, %v416_v56  ;;  %v655_v62 = vpack.c.bf16 %v429_v58, %v428_v53 }
  0xfa   :  { %v273_v63 = vpop.f32.mrf.mxu0  ;;  %v321_v0 = vpop.f32.mrf.mxu1 }
  0xfb   :  { %668 = vst [vmem:[%s973_s3 + $0x10] sm:$0xff] %v625_v61   ;;  %674 = vst [vmem:[%s973_s3 + $0x40] sm:$0xff] %v655_v62   ;;  %v430_v3 = vadd.f32 %v913_v22, %v321_v0  ;;  %v418_v6 = vadd.f32 %v913_v22, %v273_v63 }
  0xfc   :  { %v726_v1 = vpop.f32.mrf.mxu0  ;;  %v750_v2 = vpop.f32.mrf.mxu1 }
  0xfe   :  { %v276_v4 = vpop.f32.mrf.mxu0  ;;  %v324_v5 = vpop.f32.mrf.mxu1 }
  0xff   :  { %v419_v7 = vadd.f32 %v913_v22, %v276_v4  ;;  %v431_v8 = vadd.f32 %v913_v22, %v324_v5 }
 0x100   :  { %v727_v9 = vpop.f32.mrf.mxu0  ;;  %v751_v10 = vpop.f32.mrf.mxu1 }
 0x101   :  { %v630_v11 = vpack.c.bf16 %v419_v7, %v418_v6  ;;  %v660_v12 = vpack.c.bf16 %v431_v8, %v430_v3 }
 0x102   :  { %v281_v13 = vpop.f32.mrf.mxu0  ;;  %v329_v14 = vpop.f32.mrf.mxu1 }
 0x103   :  { %669 = vst [vmem:[%s973_s3 + $0x18] sm:$0xff] %v630_v11   ;;  %675 = vst [vmem:[%s973_s3 + $0x48] sm:$0xff] %v660_v12   ;;  %v432_v17 = vadd.f32 %v913_v22, %v329_v14  ;;  %v420_v20 = vadd.f32 %v913_v22, %v281_v13 }
 0x104   :  { %v730_v15 = vpop.f32.mrf.mxu0  ;;  %v754_v16 = vpop.f32.mrf.mxu1 }
 0x106   :  { %v284_v18 = vpop.f32.mrf.mxu0  ;;  %v332_v19 = vpop.f32.mrf.mxu1 }
 0x107   :  { %v421_v21 = vadd.f32 %v913_v22, %v284_v18  ;;  %v433_v23 = vadd.f32 %v913_v22, %v332_v19 }
 0x108   :  { %v731_v24 = vpop.f32.mrf.mxu0  ;;  %v755_v25 = vpop.f32.mrf.mxu1 }
 0x109   :  { %v635_v26 = vpack.c.bf16 %v421_v21, %v420_v20  ;;  %v665_v27 = vpack.c.bf16 %v433_v23, %v432_v17 }
 0x10a   :  { %v289_v28 = vpop.f32.mrf.mxu0 }
 0x10b   :  { %670 = vst [vmem:[%s973_s3 + $0x20] sm:$0xff] %v635_v26   ;;  %676 = vst [vmem:[%s973_s3 + $0x50] sm:$0xff] %v665_v27   ;;  %v422_v31 = vadd.f32 %v913_v22, %v289_v28 }
 0x10c   :  { %v734_v29 = vpop.f32.mrf.mxu0 }
 0x10e   :  { %v292_v30 = vpop.f32.mrf.mxu0 }
 0x10f   :  { %v423_v32 = vadd.f32 %v913_v22, %v292_v30 }
 0x110   :  { %v735_v33 = vpop.f32.mrf.mxu0 }
 0x111   :  { %v640_v34 = vpack.c.bf16 %v423_v32, %v422_v31 }
 0x113   :  { %671 = vst [vmem:[%s973_s3 + $0x28] sm:$0xff] %v640_v34  }

// kernel: _lambda_.25
= control target key start
LH: loop header
LB: loop body
LE: loop exit
PB: predicated region body
PF: predicated region fallthrough
CT: control target
= control target key end

     0   :  { %v938_v0 = vmov 0.0   ;;  %vm939_vm0 = vmmov 0   ;;  %s1153_s1 = inlined_call_operand.vmem [shape: bf16[128,128], index: 1, kind: input, shape index: {}]   ;;  %s1154_s0 = inlined_call_operand.vmem [shape: bf16[176,128], index: 0, kind: input, shape index: {}]   ;;  %s1155_s3 = inlined_call_operand.vmem [shape: bf16[176,128], index: 3, kind: input, shape index: {}]   ;;  %s1156_s2 = inlined_call_operand.vmem [shape: f32[1,128], index: 2, kind: input, shape index: {}]   ;;  %s1157_s4 = inlined_call_operand.vmem [shape: bf16[176,128], index: 4, kind: output, shape index: {}]  }
   0x1   :  { %841 = vmatprep.subr.bf16.mxu0 %v938_v0  ;;  %v919_v1 = vld [vmem:[%s1153_s1 + $0x38] sm:$0xff]   ;;  %901 = vmatprep.subr.bf16.mxu1 %v938_v0  ;;  %v920_v2 = vld [vmem:[%s1153_s1 + $0x30] sm:$0xff]   ;;  %v921_v3 = vld [vmem:[%s1153_s1 + $0x28] sm:$0xff]  }
   0x2   :  { %857 = vmatprep.mubr.msk.bf16.mxu0 %vm939_vm0, %v938_v0  ;;  %881 = vmatprep.mubr.msk.bf16.mxu1 %vm939_vm0, %v938_v0  ;;  %v922_v4 = vld [vmem:[%s1153_s1 + $0x20] sm:$0xff]   ;;  %v923_v5 = vld [vmem:[%s1153_s1 + $0x18] sm:$0xff]   ;;  %v924_v6 = vld [vmem:[%s1153_s1 + $0x10] sm:$0xff]  }
   0x3   :  { %842 = vmatpush3.bf16.msra.mxu0 %v919_v1  ;;  %909 = vmatpush3.bf16.msra.mxu1 %v919_v1  ;;  %v925_v7 = vld [vmem:[%s1153_s1 + $0x8] sm:$0xff]   ;;  %v926_v8 = vld [vmem:[%s1153_s1] sm:$0xff]   ;;  %v928_v10 = vld [vmem:[%s1154_s0 + $0x30] sm:$0xff]  }
   0x4   :  { %843 = vmatprep.subr.bf16.mxu0 %v938_v0  ;;  %902 = vmatprep.subr.bf16.mxu1 %v938_v0  ;;  %v927_v9 = vld [vmem:[%s1154_s0] sm:$0xff]   ;;  %v929_v11 = vld [vmem:[%s1154_s0 + $0x8] sm:$0xff]   ;;  %v930_v12 = vld [vmem:[%s1154_s0 + $0x38] sm:$0xff]  }
   0x5   :  { %v931_v13 = vld [vmem:[%s1154_s0 + $0x10] sm:$0xff]   ;;  %v932_v14 = vld [vmem:[%s1154_s0 + $0x40] sm:$0xff]   ;;  %v933_v15 = vld [vmem:[%s1154_s0 + $0x18] sm:$0xff]  }
   0x6   :  { %v934_v16 = vld [vmem:[%s1154_s0 + $0x48] sm:$0xff]   ;;  %v935_v17 = vld [vmem:[%s1154_s0 + $0x20] sm:$0xff]   ;;  %v936_v18 = vld [vmem:[%s1154_s0 + $0x50] sm:$0xff]  }
   0x7   :  { %844 = vmatpush3.bf16.msra.mxu0 %v920_v2  ;;  %910 = vmatpush3.bf16.msra.mxu1 %v920_v2  ;;  %v937_v19 = vld [vmem:[%s1154_s0 + $0x28] sm:$0xff]   ;;  %v807_v20 = vld [vmem:[%s1155_s3 + $0x30] sm:$0xff]   ;;  %v704_v21 = vld [vmem:[%s1155_s3] sm:$0xff]  }
   0x8   :  { %845 = vmatprep.subr.bf16.mxu0 %v938_v0  ;;  %903 = vmatprep.subr.bf16.mxu1 %v938_v0  ;;  %v1069_v22 = vld [vmem:[%s1156_s2] ss:$0 sm:$0xff]  ;;  %v729_v23 = vunpack.c.l.bf16 %v807_v20  ;;  %v705_v25 = vunpack.c.l.bf16 %v704_v21  ;;  %v706_v32 = vunpack.c.h.bf16 %v704_v21  ;;  %v730_v33 = vunpack.c.h.bf16 %v807_v20  ;;  %v808_v37 = vld [vmem:[%s1155_s3 + $0x38] sm:$0xff]   ;;  %v802_v40 = vld [vmem:[%s1155_s3 + $0x8] sm:$0xff]  }
   0x9   :  { %v733_v46 = vunpack.c.l.bf16 %v808_v37  ;;  %v709_v49 = vunpack.c.l.bf16 %v802_v40  ;;  %v710_v56 = vunpack.c.h.bf16 %v802_v40  ;;  %v734_v61 = vunpack.c.h.bf16 %v808_v37  ;;  %v809_v1 = vld [vmem:[%s1155_s3 + $0x40] sm:$0xff]  }
   0xb   :  { %846 = vmatpush3.bf16.msra.mxu0 %v921_v3  ;;  %911 = vmatpush3.bf16.msra.mxu1 %v921_v3 }
   0xc   :  { %847 = vmatprep.subr.bf16.mxu0 %v938_v0  ;;  %904 = vmatprep.subr.bf16.mxu1 %v938_v0 }
   0xf   :  { %848 = vmatpush3.bf16.msra.mxu0 %v922_v4  ;;  %912 = vmatpush3.bf16.msra.mxu1 %v922_v4  ;;  %v803_v4 = vld [vmem:[%s1155_s3 + $0x10] sm:$0xff]  }
  0x10   :  { %849 = vmatprep.subr.bf16.mxu0 %v938_v0  ;;  %905 = vmatprep.subr.bf16.mxu1 %v938_v0  ;;  %v714_v20 = vunpack.c.h.bf16 %v803_v4 }
  0x13   :  { %850 = vmatpush3.bf16.msra.mxu0 %v923_v5  ;;  %913 = vmatpush3.bf16.msra.mxu1 %v923_v5 }
  0x14   :  { %851 = vmatprep.subr.bf16.mxu0 %v938_v0  ;;  %906 = vmatprep.subr.bf16.mxu1 %v938_v0 }
  0x17   :  { %852 = vmatpush3.bf16.msra.mxu0 %v924_v6  ;;  %914 = vmatpush3.bf16.msra.mxu1 %v924_v6 }
  0x18   :  { %853 = vmatprep.subr.bf16.mxu0 %v938_v0  ;;  %907 = vmatprep.subr.bf16.mxu1 %v938_v0 }
  0x1b   :  { %854 = vmatpush3.bf16.msra.mxu0 %v925_v7  ;;  %915 = vmatpush3.bf16.msra.mxu1 %v925_v7 }
  0x1c   :  { %855 = vmatprep.subr.bf16.mxu0 %v938_v0  ;;  %908 = vmatprep.subr.bf16.mxu1 %v938_v0 }
  0x1f   :  { %856 = vmatpush3.bf16.msra.mxu0 %v926_v8  ;;  %916 = vmatpush3.bf16.msra.mxu1 %v926_v8 }
  0x22   :  { %858 = vmatmul.mubr.bf16.vlgmr.msra.gmra.mxu0 %v927_v9  ;;  %882 = vmatmul.mubr.bf16.vlgmr.msra.gmra.mxu1 %v928_v10  ;;  %v737_v10 = vunpack.c.l.bf16 %v809_v1 }
  0x23   :  { %861 = vmatprep.mubr.msk.bf16.mxu0 %vm939_vm0, %v938_v0  ;;  %885 = vmatprep.mubr.msk.bf16.mxu1 %vm939_vm0, %v938_v0 }
  0x2a   :  { %862 = vmatmul.mubr.bf16.gmra.mxu0 %v929_v11  ;;  %886 = vmatmul.mubr.bf16.gmra.mxu1 %v930_v12 }
  0x2b   :  { %865 = vmatprep.mubr.msk.bf16.mxu0 %vm939_vm0, %v938_v0  ;;  %889 = vmatprep.mubr.msk.bf16.mxu1 %vm939_vm0, %v938_v0 }
  0x32   :  { %866 = vmatmul.mubr.bf16.gmra.mxu0 %v931_v13  ;;  %890 = vmatmul.mubr.bf16.gmra.mxu1 %v932_v14  ;;  %v713_v13 = vunpack.c.l.bf16 %v803_v4 }
  0x33   :  { %869 = vmatprep.mubr.msk.bf16.mxu0 %vm939_vm0, %v938_v0  ;;  %893 = vmatprep.mubr.msk.bf16.mxu1 %vm939_vm0, %v938_v0 }
  0x3a   :  { %870 = vmatmul.mubr.bf16.gmra.mxu0 %v933_v15  ;;  %894 = vmatmul.mubr.bf16.gmra.mxu1 %v934_v16 }
  0x3b   :  { %873 = vmatprep.mubr.msk.bf16.mxu0 %vm939_vm0, %v938_v0  ;;  %897 = vmatprep.mubr.msk.bf16.mxu1 %vm939_vm0, %v938_v0 }
  0x42   :  { %874 = vmatmul.mubr.bf16.gmra.mxu0 %v935_v17  ;;  %898 = vmatmul.mubr.bf16.gmra.mxu1 %v936_v18 }
  0x43   :  { %877 = vmatprep.mubr.msk.bf16.mxu0 %vm939_vm0, %v938_v0 }
  0x4a   :  { %878 = vmatmul.mubr.bf16.gmra.mxu0 %v937_v19 }
  0xe2   :  { %v252_v24 = vpop.f32.mrf.mxu0  ;;  %v300_v26 = vpop.f32.mrf.mxu1 }
  0xe3   :  { %v415_v27 = vadd.f32 %v1069_v22, %v252_v24  ;;  %v427_v28 = vadd.f32 %v1069_v22, %v300_v26  ;;  %v738_v26 = vunpack.c.h.bf16 %v809_v1 }
  0xe4   :  { %v859_v29 = vpop.f32.mrf.mxu0  ;;  %v883_v30 = vpop.f32.mrf.mxu1 }
  0xe5   :  { %v493_v31 = vadd.f32 %v729_v23, %v427_v28  ;;  %v481_v34 = vadd.f32 %v705_v25, %v415_v27  ;;  %v810_v30 = vld [vmem:[%s1155_s3 + $0x48] sm:$0xff]  }
  0xe6   :  { %v255_v35 = vpop.f32.mrf.mxu0  ;;  %v303_v36 = vpop.f32.mrf.mxu1 }
  0xe7   :  { %v416_v38 = vadd.f32 %v1069_v22, %v255_v35  ;;  %v428_v39 = vadd.f32 %v1069_v22, %v303_v36  ;;  %v515_v43 = vmax.f32 %v493_v31, 0.0  ;;  %v503_v47 = vmax.f32 %v481_v34, 0.0 }
  0xe8   :  { %v860_v41 = vpop.f32.mrf.mxu0  ;;  %v884_v42 = vpop.f32.mrf.mxu1 }
  0xe9   :  { %v482_v44 = vadd.f32 %v706_v32, %v416_v38  ;;  %v494_v45 = vadd.f32 %v730_v33, %v428_v39  ;;  %v804_v33 = vld [vmem:[%s1155_s3 + $0x18] sm:$0xff]   ;;  %v741_v39 = vunpack.c.l.bf16 %v810_v30 }
  0xea   :  { %v260_v48 = vpop.f32.mrf.mxu0  ;;  %v308_v50 = vpop.f32.mrf.mxu1  ;;  %v717_v42 = vunpack.c.l.bf16 %v804_v33 }
  0xeb   :  { %v504_v51 = vmax.f32 %v482_v44, 0.0  ;;  %v516_v52 = vmax.f32 %v494_v45, 0.0  ;;  %v417_v53 = vadd.f32 %v1069_v22, %v260_v48  ;;  %v429_v54 = vadd.f32 %v1069_v22, %v308_v50 }
  0xec   :  { %v863_v55 = vpop.f32.mrf.mxu0  ;;  %v887_v57 = vpop.f32.mrf.mxu1 }
  0xed   :  { %v750_v58 = vpack.c.bf16 %v504_v51, %v503_v47  ;;  %v780_v59 = vpack.c.bf16 %v516_v52, %v515_v43  ;;  %v495_v60 = vadd.f32 %v733_v46, %v429_v54  ;;  %v483_v62 = vadd.f32 %v709_v49, %v417_v53 }
  0xee   :  { %v263_v63 = vpop.f32.mrf.mxu0  ;;  %v311_v0 = vpop.f32.mrf.mxu1  ;;  %v718_v49 = vunpack.c.h.bf16 %v804_v33  ;;  %v742_v54 = vunpack.c.h.bf16 %v810_v30 }
  0xef   :  { %751 = vst [vmem:[%s1157_s4] sm:$0xff] %v750_v58   ;;  %817 = vst [vmem:[%s1157_s4 + $0x30] sm:$0xff] %v780_v59   ;;  %v418_v2 = vadd.f32 %v1069_v22, %v263_v63  ;;  %v430_v3 = vadd.f32 %v1069_v22, %v311_v0  ;;  %v517_v7 = vmax.f32 %v495_v60, 0.0  ;;  %v505_v11 = vmax.f32 %v483_v62, 0.0  ;;  %v811_v58 = vld [vmem:[%s1155_s3 + $0x50] sm:$0xff]  }
  0xf0   :  { %v864_v5 = vpop.f32.mrf.mxu0  ;;  %v888_v6 = vpop.f32.mrf.mxu1 }
  0xf1   :  { %v484_v8 = vadd.f32 %v710_v56, %v418_v2  ;;  %v496_v9 = vadd.f32 %v734_v61, %v430_v3  ;;  %v805_v61 = vld [vmem:[%s1155_s3 + $0x20] sm:$0xff]   ;;  %v745_v3 = vunpack.c.l.bf16 %v811_v58 }
  0xf2   :  { %v268_v12 = vpop.f32.mrf.mxu0  ;;  %v316_v14 = vpop.f32.mrf.mxu1  ;;  %v721_v6 = vunpack.c.l.bf16 %v805_v61 }
  0xf3   :  { %v506_v15 = vmax.f32 %v484_v8, 0.0  ;;  %v518_v16 = vmax.f32 %v496_v9, 0.0  ;;  %v419_v17 = vadd.f32 %v1069_v22, %v268_v12  ;;  %v431_v18 = vadd.f32 %v1069_v22, %v316_v14 }
  0xf4   :  { %v867_v19 = vpop.f32.mrf.mxu0  ;;  %v891_v21 = vpop.f32.mrf.mxu1 }
  0xf5   :  { %v755_v23 = vpack.c.bf16 %v506_v15, %v505_v11  ;;  %v785_v24 = vpack.c.bf16 %v518_v16, %v517_v7  ;;  %v497_v25 = vadd.f32 %v737_v10, %v431_v18  ;;  %v485_v27 = vadd.f32 %v713_v13, %v419_v17 }
  0xf6   :  { %v271_v28 = vpop.f32.mrf.mxu0  ;;  %v319_v29 = vpop.f32.mrf.mxu1  ;;  %v722_v13 = vunpack.c.h.bf16 %v805_v61  ;;  %v746_v18 = vunpack.c.h.bf16 %v811_v58 }
  0xf7   :  { %812 = vst [vmem:[%s1157_s4 + $0x8] sm:$0xff] %v755_v23   ;;  %818 = vst [vmem:[%s1157_s4 + $0x38] sm:$0xff] %v785_v24   ;;  %v420_v31 = vadd.f32 %v1069_v22, %v271_v28  ;;  %v432_v32 = vadd.f32 %v1069_v22, %v319_v29  ;;  %v519_v36 = vmax.f32 %v497_v25, 0.0  ;;  %v507_v40 = vmax.f32 %v485_v27, 0.0  ;;  %v806_v25 = vld [vmem:[%s1155_s3 + $0x28] sm:$0xff]  }
  0xf8   :  { %v868_v34 = vpop.f32.mrf.mxu0  ;;  %v892_v35 = vpop.f32.mrf.mxu1 }
  0xf9   :  { %v486_v37 = vadd.f32 %v714_v20, %v420_v31  ;;  %v498_v38 = vadd.f32 %v738_v26, %v432_v32  ;;  %v725_v32 = vunpack.c.l.bf16 %v806_v25 }
  0xfa   :  { %v276_v41 = vpop.f32.mrf.mxu0  ;;  %v324_v43 = vpop.f32.mrf.mxu1 }
  0xfb   :  { %v508_v44 = vmax.f32 %v486_v37, 0.0  ;;  %v520_v45 = vmax.f32 %v498_v38, 0.0  ;;  %v421_v46 = vadd.f32 %v1069_v22, %v276_v41  ;;  %v433_v47 = vadd.f32 %v1069_v22, %v324_v43 }
  0xfc   :  { %v871_v48 = vpop.f32.mrf.mxu0  ;;  %v895_v50 = vpop.f32.mrf.mxu1 }
  0xfd   :  { %v760_v51 = vpack.c.bf16 %v508_v44, %v507_v40  ;;  %v790_v52 = vpack.c.bf16 %v520_v45, %v519_v36  ;;  %v499_v53 = vadd.f32 %v741_v39, %v433_v47  ;;  %v487_v55 = vadd.f32 %v717_v42, %v421_v46 }
  0xfe   :  { %v279_v56 = vpop.f32.mrf.mxu0  ;;  %v327_v57 = vpop.f32.mrf.mxu1  ;;  %v726_v40 = vunpack.c.h.bf16 %v806_v25 }
  0xff   :  { %813 = vst [vmem:[%s1157_s4 + $0x10] sm:$0xff] %v760_v51   ;;  %819 = vst [vmem:[%s1157_s4 + $0x40] sm:$0xff] %v790_v52   ;;  %v422_v59 = vadd.f32 %v1069_v22, %v279_v56  ;;  %v434_v60 = vadd.f32 %v1069_v22, %v327_v57  ;;  %v521_v0 = vmax.f32 %v499_v53, 0.0  ;;  %v509_v4 = vmax.f32 %v487_v55, 0.0 }
 0x100   :  { %v872_v62 = vpop.f32.mrf.mxu0  ;;  %v896_v63 = vpop.f32.mrf.mxu1 }
 0x101   :  { %v488_v1 = vadd.f32 %v718_v49, %v422_v59  ;;  %v500_v2 = vadd.f32 %v742_v54, %v434_v60 }
 0x102   :  { %v284_v5 = vpop.f32.mrf.mxu0  ;;  %v332_v7 = vpop.f32.mrf.mxu1 }
 0x103   :  { %v510_v8 = vmax.f32 %v488_v1, 0.0  ;;  %v522_v9 = vmax.f32 %v500_v2, 0.0  ;;  %v423_v10 = vadd.f32 %v1069_v22, %v284_v5  ;;  %v435_v11 = vadd.f32 %v1069_v22, %v332_v7 }
 0x104   :  { %v875_v12 = vpop.f32.mrf.mxu0  ;;  %v899_v14 = vpop.f32.mrf.mxu1 }
 0x105   :  { %v765_v15 = vpack.c.bf16 %v510_v8, %v509_v4  ;;  %v795_v16 = vpack.c.bf16 %v522_v9, %v521_v0  ;;  %v501_v17 = vadd.f32 %v745_v3, %v435_v11  ;;  %v489_v21 = vadd.f32 %v721_v6, %v423_v10 }
 0x106   :  { %v287_v19 = vpop.f32.mrf.mxu0  ;;  %v335_v20 = vpop.f32.mrf.mxu1 }
 0x107   :  { %814 = vst [vmem:[%s1157_s4 + $0x18] sm:$0xff] %v765_v15   ;;  %820 = vst [vmem:[%s1157_s4 + $0x48] sm:$0xff] %v795_v16   ;;  %v424_v23 = vadd.f32 %v1069_v22, %v287_v19  ;;  %v436_v24 = vadd.f32 %v1069_v22, %v335_v20  ;;  %v523_v28 = vmax.f32 %v501_v17, 0.0  ;;  %v511_v33 = vmax.f32 %v489_v21, 0.0 }
 0x108   :  { %v876_v26 = vpop.f32.mrf.mxu0  ;;  %v900_v27 = vpop.f32.mrf.mxu1 }
 0x109   :  { %v490_v29 = vadd.f32 %v722_v13, %v424_v23  ;;  %v502_v30 = vadd.f32 %v746_v18, %v436_v24 }
 0x10a   :  { %v292_v31 = vpop.f32.mrf.mxu0 }
 0x10b   :  { %v512_v34 = vmax.f32 %v490_v29, 0.0  ;;  %v524_v35 = vmax.f32 %v502_v30, 0.0  ;;  %v425_v36 = vadd.f32 %v1069_v22, %v292_v31 }
 0x10c   :  { %v879_v37 = vpop.f32.mrf.mxu0 }
 0x10d   :  { %v770_v38 = vpack.c.bf16 %v512_v34, %v511_v33  ;;  %v800_v39 = vpack.c.bf16 %v524_v35, %v523_v28  ;;  %v491_v42 = vadd.f32 %v725_v32, %v425_v36 }
 0x10e   :  { %v295_v41 = vpop.f32.mrf.mxu0 }
 0x10f   :  { %815 = vst [vmem:[%s1157_s4 + $0x20] sm:$0xff] %v770_v38   ;;  %821 = vst [vmem:[%s1157_s4 + $0x50] sm:$0xff] %v800_v39   ;;  %v426_v43 = vadd.f32 %v1069_v22, %v295_v41  ;;  %v513_v46 = vmax.f32 %v491_v42, 0.0 }
 0x110   :  { %v880_v44 = vpop.f32.mrf.mxu0 }
 0x111   :  { %v492_v45 = vadd.f32 %v726_v40, %v426_v43 }
 0x113   :  { %v514_v47 = vmax.f32 %v492_v45, 0.0 }
 0x115   :  { %v775_v48 = vpack.c.bf16 %v514_v47, %v513_v46 }
 0x117   :  { %816 = vst [vmem:[%s1157_s4 + $0x28] sm:$0xff] %v775_v48  }

// kernel: _lambda_.26
= control target key start
LH: loop header
LB: loop body
LE: loop exit
PB: predicated region body
PF: predicated region fallthrough
CT: control target
= control target key end

     0   :  { %v815_v0 = vmov 0.0   ;;  %vm816_vm0 = vmmov 0   ;;  %s992_s1 = inlined_call_operand.vmem [shape: bf16[128,128], index: 1, kind: input, shape index: {}]   ;;  %s993_s0 = inlined_call_operand.vmem [shape: bf16[176,128], index: 0, kind: input, shape index: {}]   ;;  %s994_s2 = inlined_call_operand.vmem [shape: f32[1,128], index: 2, kind: input, shape index: {}]   ;;  %s995_s3 = inlined_call_operand.vmem [shape: bf16[176,128], index: 3, kind: output, shape index: {}]  }
   0x1   :  { %718 = vmatprep.subr.bf16.mxu0 %v815_v0  ;;  %v796_v1 = vld [vmem:[%s992_s1 + $0x38] sm:$0xff]   ;;  %778 = vmatprep.subr.bf16.mxu1 %v815_v0  ;;  %v797_v2 = vld [vmem:[%s992_s1 + $0x30] sm:$0xff]   ;;  %v798_v3 = vld [vmem:[%s992_s1 + $0x28] sm:$0xff]  }
   0x2   :  { %734 = vmatprep.mubr.msk.bf16.mxu0 %vm816_vm0, %v815_v0  ;;  %758 = vmatprep.mubr.msk.bf16.mxu1 %vm816_vm0, %v815_v0  ;;  %v799_v4 = vld [vmem:[%s992_s1 + $0x20] sm:$0xff]   ;;  %v800_v5 = vld [vmem:[%s992_s1 + $0x18] sm:$0xff]   ;;  %v801_v6 = vld [vmem:[%s992_s1 + $0x10] sm:$0xff]  }
   0x3   :  { %719 = vmatpush3.bf16.msra.mxu0 %v796_v1  ;;  %786 = vmatpush3.bf16.msra.mxu1 %v796_v1  ;;  %v802_v7 = vld [vmem:[%s992_s1 + $0x8] sm:$0xff]   ;;  %v803_v8 = vld [vmem:[%s992_s1] sm:$0xff]   ;;  %v805_v10 = vld [vmem:[%s993_s0 + $0x30] sm:$0xff]  }
   0x4   :  { %720 = vmatprep.subr.bf16.mxu0 %v815_v0  ;;  %779 = vmatprep.subr.bf16.mxu1 %v815_v0  ;;  %v804_v9 = vld [vmem:[%s993_s0] sm:$0xff]   ;;  %v806_v11 = vld [vmem:[%s993_s0 + $0x8] sm:$0xff]   ;;  %v807_v12 = vld [vmem:[%s993_s0 + $0x38] sm:$0xff]  }
   0x5   :  { %v808_v13 = vld [vmem:[%s993_s0 + $0x10] sm:$0xff]   ;;  %v809_v14 = vld [vmem:[%s993_s0 + $0x40] sm:$0xff]   ;;  %v810_v15 = vld [vmem:[%s993_s0 + $0x18] sm:$0xff]  }
   0x6   :  { %v811_v16 = vld [vmem:[%s993_s0 + $0x48] sm:$0xff]   ;;  %v812_v17 = vld [vmem:[%s993_s0 + $0x20] sm:$0xff]   ;;  %v813_v18 = vld [vmem:[%s993_s0 + $0x50] sm:$0xff]  }
   0x7   :  { %721 = vmatpush3.bf16.msra.mxu0 %v797_v2  ;;  %787 = vmatpush3.bf16.msra.mxu1 %v797_v2  ;;  %v814_v19 = vld [vmem:[%s993_s0 + $0x28] sm:$0xff]   ;;  %v935_v21 = vld [vmem:[%s994_s2] ss:$0 sm:$0xff] }
   0x8   :  { %722 = vmatprep.subr.bf16.mxu0 %v815_v0  ;;  %780 = vmatprep.subr.bf16.mxu1 %v815_v0 }
   0xb   :  { %723 = vmatpush3.bf16.msra.mxu0 %v798_v3  ;;  %788 = vmatpush3.bf16.msra.mxu1 %v798_v3 }
   0xc   :  { %724 = vmatprep.subr.bf16.mxu0 %v815_v0  ;;  %781 = vmatprep.subr.bf16.mxu1 %v815_v0 }
   0xf   :  { %725 = vmatpush3.bf16.msra.mxu0 %v799_v4  ;;  %789 = vmatpush3.bf16.msra.mxu1 %v799_v4 }
  0x10   :  { %726 = vmatprep.subr.bf16.mxu0 %v815_v0  ;;  %782 = vmatprep.subr.bf16.mxu1 %v815_v0 }
  0x13   :  { %727 = vmatpush3.bf16.msra.mxu0 %v800_v5  ;;  %790 = vmatpush3.bf16.msra.mxu1 %v800_v5 }
  0x14   :  { %728 = vmatprep.subr.bf16.mxu0 %v815_v0  ;;  %783 = vmatprep.subr.bf16.mxu1 %v815_v0 }
  0x17   :  { %729 = vmatpush3.bf16.msra.mxu0 %v801_v6  ;;  %791 = vmatpush3.bf16.msra.mxu1 %v801_v6 }
  0x18   :  { %730 = vmatprep.subr.bf16.mxu0 %v815_v0  ;;  %784 = vmatprep.subr.bf16.mxu1 %v815_v0 }
  0x1b   :  { %731 = vmatpush3.bf16.msra.mxu0 %v802_v7  ;;  %792 = vmatpush3.bf16.msra.mxu1 %v802_v7 }
  0x1c   :  { %732 = vmatprep.subr.bf16.mxu0 %v815_v0  ;;  %785 = vmatprep.subr.bf16.mxu1 %v815_v0 }
  0x1f   :  { %733 = vmatpush3.bf16.msra.mxu0 %v803_v8  ;;  %793 = vmatpush3.bf16.msra.mxu1 %v803_v8 }
  0x22   :  { %735 = vmatmul.mubr.bf16.vlgmr.msra.gmra.mxu0 %v804_v9  ;;  %759 = vmatmul.mubr.bf16.vlgmr.msra.gmra.mxu1 %v805_v10 }
  0x23   :  { %738 = vmatprep.mubr.msk.bf16.mxu0 %vm816_vm0, %v815_v0  ;;  %762 = vmatprep.mubr.msk.bf16.mxu1 %vm816_vm0, %v815_v0 }
  0x2a   :  { %739 = vmatmul.mubr.bf16.gmra.mxu0 %v806_v11  ;;  %763 = vmatmul.mubr.bf16.gmra.mxu1 %v807_v12 }
  0x2b   :  { %742 = vmatprep.mubr.msk.bf16.mxu0 %vm816_vm0, %v815_v0  ;;  %766 = vmatprep.mubr.msk.bf16.mxu1 %vm816_vm0, %v815_v0 }
  0x32   :  { %743 = vmatmul.mubr.bf16.gmra.mxu0 %v808_v13  ;;  %767 = vmatmul.mubr.bf16.gmra.mxu1 %v809_v14 }
  0x33   :  { %746 = vmatprep.mubr.msk.bf16.mxu0 %vm816_vm0, %v815_v0  ;;  %770 = vmatprep.mubr.msk.bf16.mxu1 %vm816_vm0, %v815_v0 }
  0x3a   :  { %747 = vmatmul.mubr.bf16.gmra.mxu0 %v810_v15  ;;  %771 = vmatmul.mubr.bf16.gmra.mxu1 %v811_v16 }
  0x3b   :  { %750 = vmatprep.mubr.msk.bf16.mxu0 %vm816_vm0, %v815_v0  ;;  %774 = vmatprep.mubr.msk.bf16.mxu1 %vm816_vm0, %v815_v0 }
  0x42   :  { %751 = vmatmul.mubr.bf16.gmra.mxu0 %v812_v17  ;;  %775 = vmatmul.mubr.bf16.gmra.mxu1 %v813_v18 }
  0x43   :  { %754 = vmatprep.mubr.msk.bf16.mxu0 %vm816_vm0, %v815_v0 }
  0x4a   :  { %755 = vmatmul.mubr.bf16.gmra.mxu0 %v814_v19 }
  0xe2   :  { %v249_v20 = vpop.f32.mrf.mxu0  ;;  %v297_v22 = vpop.f32.mrf.mxu1 }
  0xe3   :  { %v424_v23 = vadd.f32 %v935_v21, %v297_v22  ;;  %v412_v26 = vadd.f32 %v935_v21, %v249_v20 }
  0xe4   :  { %v736_v24 = vpop.f32.mrf.mxu0  ;;  %v760_v25 = vpop.f32.mrf.mxu1 }
  0xe5   :  { %v446_v29 = vmax.f32 %v424_v23, 0.0  ;;  %v434_v34 = vmax.f32 %v412_v26, 0.0 }
  0xe6   :  { %v252_v27 = vpop.f32.mrf.mxu0  ;;  %v300_v28 = vpop.f32.mrf.mxu1 }
  0xe7   :  { %v413_v30 = vadd.f32 %v935_v21, %v252_v27  ;;  %v425_v31 = vadd.f32 %v935_v21, %v300_v28 }
  0xe8   :  { %v737_v32 = vpop.f32.mrf.mxu0  ;;  %v761_v33 = vpop.f32.mrf.mxu1 }
  0xe9   :  { %v435_v35 = vmax.f32 %v413_v30, 0.0  ;;  %v447_v36 = vmax.f32 %v425_v31, 0.0 }
  0xea   :  { %v257_v37 = vpop.f32.mrf.mxu0  ;;  %v305_v38 = vpop.f32.mrf.mxu1 }
  0xeb   :  { %v637_v39 = vpack.c.bf16 %v435_v35, %v434_v34  ;;  %v667_v40 = vpack.c.bf16 %v447_v36, %v446_v29  ;;  %v426_v41 = vadd.f32 %v935_v21, %v305_v38  ;;  %v414_v44 = vadd.f32 %v935_v21, %v257_v37 }
  0xec   :  { %v740_v42 = vpop.f32.mrf.mxu0  ;;  %v764_v43 = vpop.f32.mrf.mxu1 }
  0xed   :  { %638 = vst [vmem:[%s995_s3] sm:$0xff] %v637_v39   ;;  %694 = vst [vmem:[%s995_s3 + $0x30] sm:$0xff] %v667_v40   ;;  %v448_v47 = vmax.f32 %v426_v41, 0.0  ;;  %v436_v52 = vmax.f32 %v414_v44, 0.0 }
  0xee   :  { %v260_v45 = vpop.f32.mrf.mxu0  ;;  %v308_v46 = vpop.f32.mrf.mxu1 }
  0xef   :  { %v415_v48 = vadd.f32 %v935_v21, %v260_v45  ;;  %v427_v49 = vadd.f32 %v935_v21, %v308_v46 }
  0xf0   :  { %v741_v50 = vpop.f32.mrf.mxu0  ;;  %v765_v51 = vpop.f32.mrf.mxu1 }
  0xf1   :  { %v437_v53 = vmax.f32 %v415_v48, 0.0  ;;  %v449_v54 = vmax.f32 %v427_v49, 0.0 }
  0xf2   :  { %v265_v55 = vpop.f32.mrf.mxu0  ;;  %v313_v56 = vpop.f32.mrf.mxu1 }
  0xf3   :  { %v642_v57 = vpack.c.bf16 %v437_v53, %v436_v52  ;;  %v672_v58 = vpack.c.bf16 %v449_v54, %v448_v47  ;;  %v428_v59 = vadd.f32 %v935_v21, %v313_v56  ;;  %v416_v62 = vadd.f32 %v935_v21, %v265_v55 }
  0xf4   :  { %v744_v60 = vpop.f32.mrf.mxu0  ;;  %v768_v61 = vpop.f32.mrf.mxu1 }
  0xf5   :  { %689 = vst [vmem:[%s995_s3 + $0x8] sm:$0xff] %v642_v57   ;;  %695 = vst [vmem:[%s995_s3 + $0x38] sm:$0xff] %v672_v58   ;;  %v450_v1 = vmax.f32 %v428_v59, 0.0  ;;  %v438_v6 = vmax.f32 %v416_v62, 0.0 }
  0xf6   :  { %v268_v63 = vpop.f32.mrf.mxu0  ;;  %v316_v0 = vpop.f32.mrf.mxu1 }
  0xf7   :  { %v417_v2 = vadd.f32 %v935_v21, %v268_v63  ;;  %v429_v3 = vadd.f32 %v935_v21, %v316_v0 }
  0xf8   :  { %v745_v4 = vpop.f32.mrf.mxu0  ;;  %v769_v5 = vpop.f32.mrf.mxu1 }
  0xf9   :  { %v439_v7 = vmax.f32 %v417_v2, 0.0  ;;  %v451_v8 = vmax.f32 %v429_v3, 0.0 }
  0xfa   :  { %v273_v9 = vpop.f32.mrf.mxu0  ;;  %v321_v10 = vpop.f32.mrf.mxu1 }
  0xfb   :  { %v647_v11 = vpack.c.bf16 %v439_v7, %v438_v6  ;;  %v677_v12 = vpack.c.bf16 %v451_v8, %v450_v1  ;;  %v430_v13 = vadd.f32 %v935_v21, %v321_v10  ;;  %v418_v16 = vadd.f32 %v935_v21, %v273_v9 }
  0xfc   :  { %v748_v14 = vpop.f32.mrf.mxu0  ;;  %v772_v15 = vpop.f32.mrf.mxu1 }
  0xfd   :  { %690 = vst [vmem:[%s995_s3 + $0x10] sm:$0xff] %v647_v11   ;;  %696 = vst [vmem:[%s995_s3 + $0x40] sm:$0xff] %v677_v12   ;;  %v452_v19 = vmax.f32 %v430_v13, 0.0  ;;  %v440_v25 = vmax.f32 %v418_v16, 0.0 }
  0xfe   :  { %v276_v17 = vpop.f32.mrf.mxu0  ;;  %v324_v18 = vpop.f32.mrf.mxu1 }
  0xff   :  { %v419_v20 = vadd.f32 %v935_v21, %v276_v17  ;;  %v431_v22 = vadd.f32 %v935_v21, %v324_v18 }
 0x100   :  { %v749_v23 = vpop.f32.mrf.mxu0  ;;  %v773_v24 = vpop.f32.mrf.mxu1 }
 0x101   :  { %v441_v26 = vmax.f32 %v419_v20, 0.0  ;;  %v453_v27 = vmax.f32 %v431_v22, 0.0 }
 0x102   :  { %v281_v28 = vpop.f32.mrf.mxu0  ;;  %v329_v29 = vpop.f32.mrf.mxu1 }
 0x103   :  { %v652_v30 = vpack.c.bf16 %v441_v26, %v440_v25  ;;  %v682_v31 = vpack.c.bf16 %v453_v27, %v452_v19  ;;  %v432_v32 = vadd.f32 %v935_v21, %v329_v29  ;;  %v420_v35 = vadd.f32 %v935_v21, %v281_v28 }
 0x104   :  { %v752_v33 = vpop.f32.mrf.mxu0  ;;  %v776_v34 = vpop.f32.mrf.mxu1 }
 0x105   :  { %691 = vst [vmem:[%s995_s3 + $0x18] sm:$0xff] %v652_v30   ;;  %697 = vst [vmem:[%s995_s3 + $0x48] sm:$0xff] %v682_v31   ;;  %v454_v38 = vmax.f32 %v432_v32, 0.0  ;;  %v442_v43 = vmax.f32 %v420_v35, 0.0 }
 0x106   :  { %v284_v36 = vpop.f32.mrf.mxu0  ;;  %v332_v37 = vpop.f32.mrf.mxu1 }
 0x107   :  { %v421_v39 = vadd.f32 %v935_v21, %v284_v36  ;;  %v433_v40 = vadd.f32 %v935_v21, %v332_v37 }
 0x108   :  { %v753_v41 = vpop.f32.mrf.mxu0  ;;  %v777_v42 = vpop.f32.mrf.mxu1 }
 0x109   :  { %v443_v44 = vmax.f32 %v421_v39, 0.0  ;;  %v455_v45 = vmax.f32 %v433_v40, 0.0 }
 0x10a   :  { %v289_v46 = vpop.f32.mrf.mxu0 }
 0x10b   :  { %v657_v47 = vpack.c.bf16 %v443_v44, %v442_v43  ;;  %v687_v48 = vpack.c.bf16 %v455_v45, %v454_v38  ;;  %v422_v50 = vadd.f32 %v935_v21, %v289_v46 }
 0x10c   :  { %v756_v49 = vpop.f32.mrf.mxu0 }
 0x10d   :  { %692 = vst [vmem:[%s995_s3 + $0x20] sm:$0xff] %v657_v47   ;;  %698 = vst [vmem:[%s995_s3 + $0x50] sm:$0xff] %v687_v48   ;;  %v444_v54 = vmax.f32 %v422_v50, 0.0 }
 0x10e   :  { %v292_v51 = vpop.f32.mrf.mxu0 }
 0x10f   :  { %v423_v52 = vadd.f32 %v935_v21, %v292_v51 }
 0x110   :  { %v757_v53 = vpop.f32.mrf.mxu0 }
 0x111   :  { %v445_v55 = vmax.f32 %v423_v52, 0.0 }
 0x113   :  { %v662_v56 = vpack.c.bf16 %v445_v55, %v444_v54 }
 0x115   :  { %693 = vst [vmem:[%s995_s3 + $0x28] sm:$0xff] %v662_v56  }

// kernel: _lambda_.27
= control target key start
LH: loop header
LB: loop body
LE: loop exit
PB: predicated region body
PF: predicated region fallthrough
CT: control target
= control target key end

     0   :  { %s1352_s12 = smov 0   ;;  %s1354_s13 = smov 0   ;;  %s1504_s0 = inlined_call_operand.vmem [shape: bf16[64,1024], index: 0, kind: input, shape index: {}]   ;;  %s1505_s1 = inlined_call_operand.vmem [shape: bf16[1024,128], index: 1, kind: input, shape index: {}]   ;;  %s1506_s2 = inlined_call_operand.vmem [shape: f32[1,128], index: 2, kind: input, shape index: {}]   ;;  %s1507_s3 = inlined_call_operand.vmem [shape: bf16[64,128], index: 3, kind: output, shape index: {}]  }
   0x1   :  { %s1356_s14 = smov 0   ;;  %s1358_s15 = smov 0  }
   0x2   :  { %s1360_s16 = smov 0  }
   0x3 LB: > { %s25_s17 = sadd.s32 1, %s1325_s15  ;;  %p48_p1 = scmp.ne.s32.totalorder %s1317_s13, %s1313_s12  ;;  %s1329_s16 = sphi %s1360_s16, %s13_s16   ;;  %s1325_s15 = sphi %s1358_s15, %s1511_s15   ;;  %s1321_s14 = sphi %s1356_s14, %s1510_s14   ;;  %s1317_s13 = sphi %s1354_s13, %s1509_s13   ;;  %s1313_s12 = sphi %s1352_s12, %s1508_s12  }
   0x4   : > { %p26_p0 = scmp.ge.s32.totalorder %s25_s17, 2  ;;  %p49_p2 = scmp.eq.s32.totalorder %s1329_s16, 0 }
   0x5   : > { %s41_s19 = sadd.s32 1, %s1317_s13  ;;  %p1011_p5 = scmp.ge.s32.totalorder %s1329_s16, 2 }
   0x6   : > { %s1513_s17 = smov (%p26_p0, %s25_s17), 0  ;;  %p50_p3 = por %p49_p2, %p48_p1 }
   0x7   : > { %s37_s18 = ssub.s32 %s1325_s15, %s1513_s17  ;;  %162 = sbr.rel (%p1011_p5) target bundleno = 24 (0x18), region = 20 }
   0x8   : > { %p39_p4 = scmp.eq.s32.totalorder %s37_s18, 0 }
   0xa   : > { %s1387_s20 = scalar_select %p39_p4, %s1317_s13, %s41_s19  }
   0xc   : > { %165 = sbr.rel (!%p50_p3) target bundleno = 24 (0x18), region = 24  ;;  %s167_s21 = sand.u32 (%p50_p3), 1, %s1317_s13  }
   0xd   : > { %s1082_s22 = sshll.u32 (%p50_p3), %s1325_s15, 4  ;;  %s1012_s23 = sshll.u32 (%p50_p3), %s167_s21, 7 }
   0xe   : > { %s1395_s26 = scalar_lea.vmem (%p50_p3), %s1504_s0, %s1082_s22  ;;  %s169_s27 = scalar_lea.vmem (%p50_p3), [#allocation3], %s1012_s23 }
   0xf   : > { %v188_v0 = vld [vmem:[%s1395_s26] sm:$0xff] (%p50_p3)  ;;  %v190_v1 = vld [vmem:[%s1395_s26 + $0x8] sm:$0xff] (%p50_p3) }
  0x10   : > { %v192_v2 = vld [vmem:[%s1395_s26 + $0x20] sm:$0xff] (%p50_p3)  ;;  %189 = vst [vmem:[%s169_s27] sm:$0xff] (%p50_p3), %v188_v0  ;;  %191 = vst [vmem:[%s169_s27 + $0x8] sm:$0xff] (%p50_p3), %v190_v1  ;;  %v194_v3 = vld [vmem:[%s1395_s26 + $0x28] sm:$0xff] (%p50_p3) }
  0x11   : > { %193 = vst [vmem:[%s169_s27 + $0x10] sm:$0xff] %v192_v2  ;;  %v196_v4 = vld [vmem:[%s1395_s26 + $0x40] sm:$0xff]  ;;  %v198_v5 = vld [vmem:[%s1395_s26 + $0x48] sm:$0xff]  ;;  %195 = vst [vmem:[%s169_s27 + $0x18] sm:$0xff] %v194_v3 }
  0x12   : > { %197 = vst [vmem:[%s169_s27 + $0x20] sm:$0xff] %v196_v4  ;;  %199 = vst [vmem:[%s169_s27 + $0x28] sm:$0xff] %v198_v5  ;;  %v200_v6 = vld [vmem:[%s1395_s26 + $0x60] sm:$0xff]  ;;  %v202_v7 = vld [vmem:[%s1395_s26 + $0x68] sm:$0xff] }
  0x13   : > { %v204_v8 = vld [vmem:[%s1395_s26 + $0x80] sm:$0xff]  ;;  %201 = vst [vmem:[%s169_s27 + $0x30] sm:$0xff] %v200_v6  ;;  %203 = vst [vmem:[%s169_s27 + $0x38] sm:$0xff] %v202_v7  ;;  %v206_v9 = vld [vmem:[%s1395_s26 + $0x88] sm:$0xff] }
  0x14   : > { %205 = vst [vmem:[%s169_s27 + $0x40] sm:$0xff] %v204_v8  ;;  %v208_v10 = vld [vmem:[%s1395_s26 + $0xa0] sm:$0xff]  ;;  %v210_v11 = vld [vmem:[%s1395_s26 + $0xa8] sm:$0xff]  ;;  %207 = vst [vmem:[%s169_s27 + $0x48] sm:$0xff] %v206_v9 }
  0x15   : > { %209 = vst [vmem:[%s169_s27 + $0x50] sm:$0xff] %v208_v10  ;;  %211 = vst [vmem:[%s169_s27 + $0x58] sm:$0xff] %v210_v11  ;;  %v212_v12 = vld [vmem:[%s1395_s26 + $0xc0] sm:$0xff]  ;;  %v214_v13 = vld [vmem:[%s1395_s26 + $0xc8] sm:$0xff] }
  0x16   : > { %v216_v14 = vld [vmem:[%s1395_s26 + $0xe0] sm:$0xff]  ;;  %213 = vst [vmem:[%s169_s27 + $0x60] sm:$0xff] %v212_v12  ;;  %215 = vst [vmem:[%s169_s27 + $0x68] sm:$0xff] %v214_v13  ;;  %v218_v15 = vld [vmem:[%s1395_s26 + $0xe8] sm:$0xff] }
  0x17   : > { %217 = vst [vmem:[%s169_s27 + $0x70] sm:$0xff] %v216_v14  ;;  %219 = vst [vmem:[%s169_s27 + $0x78] sm:$0xff] %v218_v15 }
  0x18 PF: > { %p1015_p6 = scmp.ge.s32.totalorder %s1329_s16, 1  ;;  %p236_p7 = scmp.lt.s32.totalorder %s1329_s16, 3 }
  0x1a   : > { %p237_p8 = pnand %p1015_p6, %p236_p7 }
  0x1b   : > { %s243_s28 = sand.u32 (!%p237_p8), 1, %s1313_s12   ;;  %s1017_s29 = sshll.u32 (!%p237_p8), %s1321_s14, 6 }
  0x1c   : > { %240 = sbr.rel (%p237_p8) target bundleno = 322 (0x142), region = 51  ;;  %s1016_s30 = sshll.u32 (!%p237_p8), %s243_s28, 7 }
  0x1d   : > { %p283_p9 = scmp.lt.s32.totalorder (!%p237_p8), %s1017_s29, 127  ;;  %s1422_s8 = scalar_lea.vmem (!%p237_p8), [#allocation3], %s1016_s30 }
  0x1e   : > { %p1019_p10 = scmp.ne.s32.totalorder (!%p237_p8), %s1321_s14, 0 }
  0x21   : > { %s1515_s29 = smov (!%p283_p9, %s1017_s29), 127  ;;  %307 = sbr.rel (%p1019_p10) target bundleno = 43 (0x2b), region = 59 }
  0x22   : > { %s1018_s4 = sshll.u32 %s1515_s29, 2 }
  0x23   : > { %s1420_s7 = scalar_lea.vmem %s1505_s1, %s1018_s4 }
  0x26   : > { %v1331_v16 = vmov 0.0  }
  0x27   : > { %308 = vst [vmem:[#allocation2 + $0x30] sm:$0xff] %v1331_v16  ;;  %309 = vst [vmem:[#allocation2] sm:$0xff] %v1331_v16 }
  0x28   : > { %310 = vst [vmem:[#allocation2 + $0x18] sm:$0xff] %v1331_v16  ;;  %311 = vst [vmem:[#allocation2 + $0x10] sm:$0xff] %v1331_v16 }
  0x29   : > { %312 = vst [vmem:[#allocation2 + $0x8] sm:$0xff] %v1331_v16  ;;  %313 = vst [vmem:[#allocation2 + $0x20] sm:$0xff] %v1331_v16 }
  0x2a   : > { %314 = vst [vmem:[#allocation2 + $0x28] sm:$0xff] %v1331_v16  ;;  %315 = vst [vmem:[#allocation2 + $0x38] sm:$0xff] %v1331_v16 }
  0x2b PF: > { %v1235_v17 = vld [vmem:[%s1420_s7 + $0x78] sm:$0xff]   ;;  %v1239_v21 = vld [vmem:[%s1420_s7 + $0x70] sm:$0xff]   ;;  %v1243_v25 = vld [vmem:[%s1420_s7 + $0x68] sm:$0xff]   ;;  %p1068_p11 = scmp.ne.s32.totalorder %s1321_s14, 1 }
  0x2c   : > { %v1236_v18 = vld [vmem:[%s1420_s7 + $0xf8] sm:$0xff]   ;;  %1114 = vmatprep.subr.bf16.mxu0 %v1235_v17  ;;  %v1240_v22 = vld [vmem:[%s1420_s7 + $0xf0] sm:$0xff]   ;;  %v1244_v26 = vld [vmem:[%s1420_s7 + $0xe8] sm:$0xff]  }
  0x2d   : > { %v1237_v19 = vld [vmem:[%s1420_s7 + $0x38] sm:$0xff]   ;;  %1154 = vmatprep.subr.bf16.mxu1 %v1236_v18  ;;  %v1241_v23 = vld [vmem:[%s1420_s7 + $0x30] sm:$0xff]   ;;  %v1245_v27 = vld [vmem:[%s1420_s7 + $0x28] sm:$0xff]  }
  0x2e   : > { %v1238_v20 = vld [vmem:[%s1420_s7 + $0xb8] sm:$0xff]   ;;  %1115 = vmatpush3.bf16.msra.mxu0 %v1237_v19  ;;  %v1242_v24 = vld [vmem:[%s1420_s7 + $0xb0] sm:$0xff]   ;;  %v1246_v28 = vld [vmem:[%s1420_s7 + $0xa8] sm:$0xff]  }
  0x2f   : > { %1155 = vmatpush3.bf16.msra.mxu1 %v1238_v20  ;;  %1116 = vmatprep.subr.bf16.mxu0 %v1239_v21  ;;  %v1247_v29 = vld [vmem:[%s1420_s7 + $0x60] sm:$0xff]   ;;  %v1251_v33 = vld [vmem:[%s1420_s7 + $0x58] sm:$0xff]   ;;  %v1255_v37 = vld [vmem:[%s1420_s7 + $0x50] sm:$0xff]  }
  0x30   : > { %1156 = vmatprep.subr.bf16.mxu1 %v1240_v22  ;;  %v1248_v30 = vld [vmem:[%s1420_s7 + $0xe0] sm:$0xff]   ;;  %v1252_v34 = vld [vmem:[%s1420_s7 + $0xd8] sm:$0xff]   ;;  %v1256_v38 = vld [vmem:[%s1420_s7 + $0xd0] sm:$0xff]  }
  0x31   : > { %v1249_v31 = vld [vmem:[%s1420_s7 + $0x20] sm:$0xff]   ;;  %v1253_v35 = vld [vmem:[%s1420_s7 + $0x18] sm:$0xff]   ;;  %v1257_v39 = vld [vmem:[%s1420_s7 + $0x10] sm:$0xff]  }
  0x32   : > { %1117 = vmatpush3.bf16.msra.mxu0 %v1241_v23  ;;  %v1250_v32 = vld [vmem:[%s1420_s7 + $0xa0] sm:$0xff]   ;;  %v1254_v36 = vld [vmem:[%s1420_s7 + $0x98] sm:$0xff]   ;;  %v1258_v40 = vld [vmem:[%s1420_s7 + $0x90] sm:$0xff]  }
  0x33   : > { %1157 = vmatpush3.bf16.msra.mxu1 %v1242_v24  ;;  %1118 = vmatprep.subr.bf16.mxu0 %v1243_v25  ;;  %v1259_v41 = vld [vmem:[%s1420_s7 + $0x48] sm:$0xff]   ;;  %v1263_v45 = vld [vmem:[%s1420_s7 + $0x40] sm:$0xff]   ;;  %v316_v8 = vld [vmem:[#allocation2 + $0x30] sm:$0xff] }
  0x34   : > { %1158 = vmatprep.subr.bf16.mxu1 %v1244_v26  ;;  %v1260_v42 = vld [vmem:[%s1420_s7 + $0xc8] sm:$0xff]   ;;  %v1264_v46 = vld [vmem:[%s1420_s7 + $0xc0] sm:$0xff]   ;;  %v318_v26 = vld [vmem:[#allocation2 + $0x18] sm:$0xff] }
  0x35   : > { %v1261_v43 = vld [vmem:[%s1420_s7 + $0x8] sm:$0xff]   ;;  %v1265_v47 = vld [vmem:[%s1420_s7] sm:$0xff]  }
  0x36   : > { %1119 = vmatpush3.bf16.msra.mxu0 %v1245_v27  ;;  %v1262_v44 = vld [vmem:[%s1420_s7 + $0x88] sm:$0xff]   ;;  %v1266_v48 = vld [vmem:[%s1420_s7 + $0x80] sm:$0xff]  }
  0x37   : > { %1159 = vmatpush3.bf16.msra.mxu1 %v1246_v28  ;;  %1120 = vmatprep.subr.bf16.mxu0 %v1247_v29  ;;  %v1267_v49 = vld [vmem:[%s1422_s8] ss:$16 sps:$4 sm:$0xff]   ;;  %v1269_v50 = vld [vmem:[%s1422_s8 + $0x4] ss:$16 sps:$4 sm:$0xff]   ;;  %v1270_v51 = vld [vmem:[%s1422_s8 + $0x8] ss:$16 sps:$4 sm:$0xff]  }
  0x38   : > { %1160 = vmatprep.subr.bf16.mxu1 %v1248_v30  ;;  %v1272_v52 = vld [vmem:[%s1422_s8 + $0xc] ss:$16 sps:$4 sm:$0xff]   ;;  %708 = vmatprep.mubr.bf16.mxu0 %v1269_v50  ;;  %v1273_v53 = vld [vmem:[%s1422_s8 + $0x24] ss:$16 sps:$4 sm:$0xff]   ;;  %v1277_v55 = vld [vmem:[%s1422_s8 + $0x20] ss:$16 sps:$4 sm:$0xff]  }
  0x39   : > { %773 = vmatprep.mubr.bf16.mxu1 %v1272_v52  ;;  %v1275_v54 = vld [vmem:[%s1422_s8 + $0x2c] ss:$16 sps:$4 sm:$0xff]   ;;  %v1278_v56 = vld [vmem:[%s1422_s8 + $0x28] ss:$16 sps:$4 sm:$0xff]   ;;  %v1279_v57 = vld [vmem:[%s1422_s8 + $0x44] ss:$16 sps:$4 sm:$0xff]  }
  0x3a   : > { %1121 = vmatpush3.bf16.msra.mxu0 %v1249_v31  ;;  %v1281_v58 = vld [vmem:[%s1422_s8 + $0x4c] ss:$16 sps:$4 sm:$0xff]   ;;  %v1283_v59 = vld [vmem:[%s1422_s8 + $0x40] ss:$16 sps:$4 sm:$0xff]   ;;  %v1284_v60 = vld [vmem:[%s1422_s8 + $0x48] ss:$16 sps:$4 sm:$0xff]  }
  0x3b   : > { %1161 = vmatpush3.bf16.msra.mxu1 %v1250_v32  ;;  %1122 = vmatprep.subr.bf16.mxu0 %v1251_v33  ;;  %v1285_v61 = vld [vmem:[%s1422_s8 + $0x64] ss:$16 sps:$4 sm:$0xff]   ;;  %v1287_v62 = vld [vmem:[%s1422_s8 + $0x6c] ss:$16 sps:$4 sm:$0xff]   ;;  %v1289_v63 = vld [vmem:[%s1422_s8 + $0x60] ss:$16 sps:$4 sm:$0xff]  }
  0x3c   : > { %1162 = vmatprep.subr.bf16.mxu1 %v1252_v34  ;;  %v1290_v0 = vld [vmem:[%s1422_s8 + $0x68] ss:$16 sps:$4 sm:$0xff]   ;;  %v317_v17 = vld [vmem:[#allocation2] sm:$0xff] }
  0x3e   : > { %1123 = vmatpush3.bf16.msra.mxu0 %v1253_v35  ;;  %v319_v35 = vld [vmem:[#allocation2 + $0x10] sm:$0xff] }
  0x3f   : > { %1163 = vmatpush3.bf16.msra.mxu1 %v1254_v36  ;;  %1124 = vmatprep.subr.bf16.mxu0 %v1255_v37 }
  0x40   : > { %1164 = vmatprep.subr.bf16.mxu1 %v1256_v38 }
  0x42   : > { %1125 = vmatpush3.bf16.msra.mxu0 %v1257_v39 }
  0x43   : > { %1165 = vmatpush3.bf16.msra.mxu1 %v1258_v40  ;;  %1126 = vmatprep.subr.bf16.mxu0 %v1259_v41 }
  0x44   : > { %1166 = vmatprep.subr.bf16.mxu1 %v1260_v42 }
  0x46   : > { %1127 = vmatpush3.bf16.msra.mxu0 %v1261_v43 }
  0x47   : > { %1167 = vmatpush3.bf16.msra.mxu1 %v1262_v44  ;;  %1128 = vmatprep.subr.bf16.mxu0 %v1263_v45  ;;  %v320_v44 = vld [vmem:[#allocation2 + $0x8] sm:$0xff] }
  0x48   : > { %1168 = vmatprep.subr.bf16.mxu1 %v1264_v46 }
  0x4a   : > { %1129 = vmatpush3.bf16.msra.mxu0 %v1265_v47 }
  0x4b   : > { %1169 = vmatpush3.bf16.msra.mxu1 %v1266_v48 }
  0x4d   : > { %709 = vmatmul.mubr.bf16.vlgmr.msra.gmra.mxu0 %v1267_v49 }
  0x4e   : > { %774 = vmatmul.mubr.bf16.vlgmr.msra.gmra.mxu1 %v1270_v51  ;;  %716 = vmatprep.mubr.bf16.mxu0 %v1273_v53  ;;  %v321_v53 = vld [vmem:[#allocation2 + $0x20] sm:$0xff] }
  0x4f   : > { %781 = vmatprep.mubr.bf16.mxu1 %v1275_v54 }
  0x55   : > { %717 = vmatmul.mubr.bf16.gmra.mxu0 %v1277_v55 }
  0x56   : > { %782 = vmatmul.mubr.bf16.gmra.mxu1 %v1278_v56  ;;  %724 = vmatprep.mubr.bf16.mxu0 %v1279_v57 }
  0x57   : > { %789 = vmatprep.mubr.bf16.mxu1 %v1281_v58 }
  0x5d   : > { %725 = vmatmul.mubr.bf16.gmra.mxu0 %v1283_v59 }
  0x5e   : > { %790 = vmatmul.mubr.bf16.gmra.mxu1 %v1284_v60  ;;  %732 = vmatprep.mubr.bf16.mxu0 %v1285_v61 }
  0x5f   : > { %797 = vmatprep.mubr.bf16.mxu1 %v1287_v62  ;;  %v322_v62 = vld [vmem:[#allocation2 + $0x28] sm:$0xff] }
  0x65   : > { %733 = vmatmul.mubr.bf16.gmra.mxu0 %v1289_v63 }
  0x66   : > { %798 = vmatmul.mubr.bf16.gmra.mxu1 %v1290_v0 }
 0x10d   : > { %v1130_v1 = vpop.f32.mrf.mxu0 }
 0x10e   : > { %v1170_v2 = vpop.f32.mrf.mxu1 }
 0x10f   : > { %v1131_v3 = vpop.f32.mrf.mxu0 }
 0x110   : > { %v1132_v4 = vadd.f32 %v1131_v3, %v1130_v1  ;;  %v1171_v5 = vpop.f32.mrf.mxu1 }
 0x111   : > { %v1172_v6 = vadd.f32 %v1171_v5, %v1170_v2  ;;  %v1133_v7 = vpop.f32.mrf.mxu0 }
 0x112   : > { %v1173_v9 = vpop.f32.mrf.mxu1 }
 0x113   : > { %v776_v10 = vadd.f32 %v1172_v6, %v1132_v4  ;;  %v1134_v11 = vpop.f32.mrf.mxu0  ;;  %v323_v6 = vld [vmem:[#allocation2 + $0x38] sm:$0xff] }
 0x114   : > { %v1135_v12 = vadd.f32 %v1134_v11, %v1133_v7  ;;  %v1174_v13 = vpop.f32.mrf.mxu1 }
 0x115   : > { %v806_v14 = vadd.f32 %v776_v10, %v316_v8  ;;  %v1175_v15 = vadd.f32 %v1174_v13, %v1173_v9  ;;  %v1136_v16 = vpop.f32.mrf.mxu0 }
 0x116   : > { %v1176_v18 = vpop.f32.mrf.mxu1 }
 0x117   : > { %814 = vst [vmem:[#allocation2 + $0x30] sm:$0xff] %v806_v14  ;;  %v779_v19 = vadd.f32 %v1175_v15, %v1135_v12  ;;  %v1137_v20 = vpop.f32.mrf.mxu0 }
 0x118   : > { %v1138_v21 = vadd.f32 %v1137_v20, %v1136_v16  ;;  %v1177_v22 = vpop.f32.mrf.mxu1 }
 0x119   : > { %v807_v23 = vadd.f32 %v779_v19, %v317_v17  ;;  %v1178_v24 = vadd.f32 %v1177_v22, %v1176_v18  ;;  %v1139_v25 = vpop.f32.mrf.mxu0 }
 0x11a   : > { %v1179_v27 = vpop.f32.mrf.mxu1 }
 0x11b   : > { %815 = vst [vmem:[#allocation2] sm:$0xff] %v807_v23  ;;  %v784_v28 = vadd.f32 %v1178_v24, %v1138_v21  ;;  %v1140_v29 = vpop.f32.mrf.mxu0 }
 0x11c   : > { %v1141_v30 = vadd.f32 %v1140_v29, %v1139_v25  ;;  %v1180_v31 = vpop.f32.mrf.mxu1 }
 0x11d   : > { %v808_v32 = vadd.f32 %v784_v28, %v318_v26  ;;  %v1181_v33 = vadd.f32 %v1180_v31, %v1179_v27  ;;  %v1142_v34 = vpop.f32.mrf.mxu0 }
 0x11e   : > { %v1182_v36 = vpop.f32.mrf.mxu1 }
 0x11f   : > { %816 = vst [vmem:[#allocation2 + $0x18] sm:$0xff] %v808_v32  ;;  %v787_v37 = vadd.f32 %v1181_v33, %v1141_v30  ;;  %v1143_v38 = vpop.f32.mrf.mxu0 }
 0x120   : > { %v1144_v39 = vadd.f32 %v1143_v38, %v1142_v34  ;;  %v1183_v40 = vpop.f32.mrf.mxu1 }
 0x121   : > { %v809_v41 = vadd.f32 %v787_v37, %v319_v35  ;;  %v1184_v42 = vadd.f32 %v1183_v40, %v1182_v36  ;;  %v1145_v43 = vpop.f32.mrf.mxu0 }
 0x122   : > { %v1185_v45 = vpop.f32.mrf.mxu1 }
 0x123   : > { %817 = vst [vmem:[#allocation2 + $0x10] sm:$0xff] %v809_v41  ;;  %v792_v46 = vadd.f32 %v1184_v42, %v1144_v39  ;;  %v1146_v47 = vpop.f32.mrf.mxu0 }
 0x124   : > { %v1147_v48 = vadd.f32 %v1146_v47, %v1145_v43  ;;  %v1186_v49 = vpop.f32.mrf.mxu1 }
 0x125   : > { %v810_v50 = vadd.f32 %v792_v46, %v320_v44  ;;  %v1187_v51 = vadd.f32 %v1186_v49, %v1185_v45  ;;  %v1148_v52 = vpop.f32.mrf.mxu0 }
 0x126   : > { %v1188_v54 = vpop.f32.mrf.mxu1 }
 0x127   : > { %818 = vst [vmem:[#allocation2 + $0x8] sm:$0xff] %v810_v50  ;;  %v795_v55 = vadd.f32 %v1187_v51, %v1147_v48  ;;  %v1149_v56 = vpop.f32.mrf.mxu0 }
 0x128   : > { %v1150_v57 = vadd.f32 %v1149_v56, %v1148_v52  ;;  %v1189_v58 = vpop.f32.mrf.mxu1 }
 0x129   : > { %v811_v59 = vadd.f32 %v795_v55, %v321_v53  ;;  %v1190_v60 = vadd.f32 %v1189_v58, %v1188_v54  ;;  %v1151_v61 = vpop.f32.mrf.mxu0 }
 0x12a   : > { %v1191_v63 = vpop.f32.mrf.mxu1 }
 0x12b   : > { %819 = vst [vmem:[#allocation2 + $0x20] sm:$0xff] %v811_v59  ;;  %v800_v0 = vadd.f32 %v1190_v60, %v1150_v57  ;;  %v1152_v1 = vpop.f32.mrf.mxu0 }
 0x12c   : > { %v1153_v2 = vadd.f32 %v1152_v1, %v1151_v61  ;;  %v1192_v3 = vpop.f32.mrf.mxu1 }
 0x12d   : > { %v812_v4 = vadd.f32 %v800_v0, %v322_v62  ;;  %v1193_v5 = vadd.f32 %v1192_v3, %v1191_v63 }
 0x12f   : > { %820 = vst [vmem:[#allocation2 + $0x28] sm:$0xff] %v812_v4  ;;  %v803_v7 = vadd.f32 %v1193_v5, %v1153_v2  ;;  %825 = sbr.rel (%p1068_p11) target bundleno = 322 (0x142), region = 63 }
 0x131   : > { %v813_v8 = vadd.f32 %v803_v7, %v323_v6 }
 0x133   : > { %821 = vst [vmem:[#allocation2 + $0x38] sm:$0xff] %v813_v8 }
 0x134   : > { %v826_v9 = vld [vmem:[#allocation2 + $0x30] sm:$0xff]  ;;  %v827_v10 = vld [vmem:[#allocation2] sm:$0xff]  ;;  %v828_v14 = vld [vmem:[#allocation2 + $0x18] sm:$0xff] }
 0x135   : > { %v1069_v11 = vld [vmem:[%s1506_s2] ss:$0 sm:$0xff]  ;;  %v829_v15 = vld [vmem:[#allocation2 + $0x10] sm:$0xff]  ;;  %v830_v16 = vld [vmem:[#allocation2 + $0x8] sm:$0xff] }
 0x136   : > { %v841_v12 = vadd.f32 %v1069_v11, %v826_v9  ;;  %v842_v13 = vadd.f32 %v1069_v11, %v827_v10  ;;  %v843_v17 = vadd.f32 %v1069_v11, %v828_v14  ;;  %v844_v18 = vadd.f32 %v1069_v11, %v829_v15  ;;  %v831_v19 = vld [vmem:[#allocation2 + $0x20] sm:$0xff]  ;;  %v832_v21 = vld [vmem:[#allocation2 + $0x28] sm:$0xff] }
 0x137   : > { %v845_v20 = vadd.f32 %v1069_v11, %v830_v16  ;;  %v846_v25 = vadd.f32 %v1069_v11, %v831_v19  ;;  %v847_v26 = vadd.f32 %v1069_v11, %v832_v21 }
 0x138   : > { %v849_v23 = vmax.f32 %v841_v12, 0.0  ;;  %v850_v24 = vmax.f32 %v842_v13, 0.0  ;;  %v851_v27 = vmax.f32 %v843_v17, 0.0  ;;  %v852_v28 = vmax.f32 %v844_v18, 0.0 }
 0x139   : > { %v853_v29 = vmax.f32 %v845_v20, 0.0  ;;  %v854_v32 = vmax.f32 %v846_v25, 0.0  ;;  %v855_v33 = vmax.f32 %v847_v26, 0.0 }
 0x13a   : > { %v833_v22 = vld [vmem:[#allocation2 + $0x38] sm:$0xff]  ;;  %v1094_v31 = vpack.c.bf16 %v850_v24, %v849_v23  ;;  %v1099_v34 = vpack.c.bf16 %v852_v28, %v851_v27 }
 0x13b   : > { %v848_v30 = vadd.f32 %v1069_v11, %v833_v22  ;;  %v1104_v36 = vpack.c.bf16 %v854_v32, %v853_v29 }
 0x13c   : > { %1095 = vst [vmem:[%s1507_s3] sm:$0xff] %v1094_v31   ;;  %1111 = vst [vmem:[%s1507_s3 + $0x8] sm:$0xff] %v1099_v34  }
 0x13d   : > { %v856_v35 = vmax.f32 %v848_v30, 0.0  ;;  %1112 = vst [vmem:[%s1507_s3 + $0x10] sm:$0xff] %v1104_v36  }
 0x13f   : > { %v1109_v37 = vpack.c.bf16 %v856_v35, %v855_v33 }
 0x141   : > { %1113 = vst [vmem:[%s1507_s3 + $0x18] sm:$0xff] %v1109_v37  }
 0x142 PF: > { %s13_s16 = sadd.s32 1, %s1329_s16   ;;  %s1508_s12 = smov %s1317_s13 }
 0x143   : > { %p10_p12 = scmp.ge.s32.totalorder %s13_s16, 4   ;;  %s1509_s13 = smov %s1387_s20 }
 0x144   : > { %s1510_s14 = smov %s1325_s15  ;;  %s1511_s15 = smov %s1513_s17 }
 0x145   :  { %12 = sbr.rel (!%p10_p12) target bundleno = 3 (0x3), region = 104 }

// kernel: _lambda_.28
= control target key start
LH: loop header
LB: loop body
LE: loop exit
PB: predicated region body
PF: predicated region fallthrough
CT: control target
= control target key end

     0   :  { %v472_v1 = vmov 0   ;;  %v305_v21 = vlaneseq  ;;  %s580_s1 = inlined_call_operand.vmem [shape: bf16[128,256], index: 1, kind: input, shape index: {}]   ;;  %s581_s0 = inlined_call_operand.vmem [shape: bf16[64,128], index: 0, kind: input, shape index: {}]   ;;  %s582_s2 = inlined_call_operand.vmem [shape: f32[1,256], index: 2, kind: input, shape index: {}]   ;;  %s583_s3 = inlined_call_operand.vmem [shape: bf16[64,256], index: 3, kind: output, shape index: {}]  }
   0x1   :  { %v444_v0 = vld [vmem:[%s580_s1 + $0x74] ss:$8 sps:$4 sm:$0xff]   ;;  %211 = vmatprep.mubr.bf16.mxu0 %v472_v1  ;;  %231 = vmatprep.mubr.bf16.mxu1 %v472_v1  ;;  %v446_v2 = vld [vmem:[%s580_s1 + $0x70] ss:$8 sps:$4 sm:$0xff]   ;;  %v447_v3 = vld [vmem:[%s580_s1 + $0x64] ss:$8 sps:$4 sm:$0xff]  }
   0x2   :  { %179 = vmatprep.subr.bf16.mxu0 %v444_v0  ;;  %427 = vmatprep.subr.bf16.mxu1 %v444_v0  ;;  %v449_v4 = vld [vmem:[%s580_s1 + $0x60] ss:$8 sps:$4 sm:$0xff]   ;;  %v450_v5 = vld [vmem:[%s580_s1 + $0x54] ss:$8 sps:$4 sm:$0xff]   ;;  %v452_v6 = vld [vmem:[%s580_s1 + $0x50] ss:$8 sps:$4 sm:$0xff]  }
   0x3   :  { %180 = vmatpush1.bf16.msra.mxu0 %v446_v2  ;;  %435 = vmatpush1.bf16.msra.mxu1 %v446_v2  ;;  %v453_v7 = vld [vmem:[%s580_s1 + $0x44] ss:$8 sps:$4 sm:$0xff]   ;;  %v455_v8 = vld [vmem:[%s580_s1 + $0x40] ss:$8 sps:$4 sm:$0xff]   ;;  %v456_v9 = vld [vmem:[%s580_s1 + $0x34] ss:$8 sps:$4 sm:$0xff]  }
   0x4   :  { %181 = vmatprep.subr.bf16.mxu0 %v447_v3  ;;  %428 = vmatprep.subr.bf16.mxu1 %v447_v3  ;;  %v458_v10 = vld [vmem:[%s580_s1 + $0x30] ss:$8 sps:$4 sm:$0xff]   ;;  %v459_v11 = vld [vmem:[%s580_s1 + $0x24] ss:$8 sps:$4 sm:$0xff]   ;;  %v461_v12 = vld [vmem:[%s580_s1 + $0x20] ss:$8 sps:$4 sm:$0xff]  }
   0x5   :  { %v462_v13 = vld [vmem:[%s580_s1 + $0x14] ss:$8 sps:$4 sm:$0xff]   ;;  %v464_v14 = vld [vmem:[%s580_s1 + $0x10] ss:$8 sps:$4 sm:$0xff]   ;;  %v465_v15 = vld [vmem:[%s580_s1 + $0x4] ss:$8 sps:$4 sm:$0xff]  }
   0x6   :  { %v467_v16 = vld [vmem:[%s580_s1] ss:$8 sps:$4 sm:$0xff]   ;;  %v469_v18 = vld [vmem:[%s581_s0 + $0x10] sm:$0xff]   ;;  %v471_v20 = vld [vmem:[%s581_s0 + $0x18] sm:$0xff]   ;;  %v306_v22 = vshrl.u32 %v305_v21, 7 }
   0x7   :  { %182 = vmatpush1.bf16.msra.mxu0 %v449_v4  ;;  %436 = vmatpush1.bf16.msra.mxu1 %v449_v4  ;;  %v468_v17 = vld [vmem:[%s581_s0] sm:$0xff]   ;;  %v470_v19 = vld [vmem:[%s581_s0 + $0x8] sm:$0xff]  }
   0x8   :  { %183 = vmatprep.subr.bf16.mxu0 %v450_v5  ;;  %429 = vmatprep.subr.bf16.mxu1 %v450_v5  ;;  %v307_v23 = vsub.s32 0, %v306_v22  ;;  %v311_v24 = vsub.s32 1, %v306_v22  ;;  %v303_v25 = vld [vmem:[%s582_s2] sm:$0x3] }
   0xa   :  { %v308_v26 = vrot.slane %v303_v25, %v307_v23  ;;  %v312_v27 = vrot.slane %v303_v25, %v311_v24 }
   0xb   :  { %184 = vmatpush1.bf16.msra.mxu0 %v452_v6  ;;  %437 = vmatpush1.bf16.msra.mxu1 %v452_v6 }
   0xc   :  { %185 = vmatprep.subr.bf16.mxu0 %v453_v7  ;;  %430 = vmatprep.subr.bf16.mxu1 %v453_v7 }
   0xf   :  { %186 = vmatpush1.bf16.msra.mxu0 %v455_v8  ;;  %438 = vmatpush1.bf16.msra.mxu1 %v455_v8 }
  0x10   :  { %187 = vmatprep.subr.bf16.mxu0 %v456_v9  ;;  %431 = vmatprep.subr.bf16.mxu1 %v456_v9 }
  0x13   :  { %188 = vmatpush1.bf16.msra.mxu0 %v458_v10  ;;  %439 = vmatpush1.bf16.msra.mxu1 %v458_v10 }
  0x14   :  { %189 = vmatprep.subr.bf16.mxu0 %v459_v11  ;;  %432 = vmatprep.subr.bf16.mxu1 %v459_v11 }
  0x17   :  { %190 = vmatpush1.bf16.msra.mxu0 %v461_v12  ;;  %440 = vmatpush1.bf16.msra.mxu1 %v461_v12 }
  0x18   :  { %191 = vmatprep.subr.bf16.mxu0 %v462_v13  ;;  %433 = vmatprep.subr.bf16.mxu1 %v462_v13 }
  0x1b   :  { %192 = vmatpush1.bf16.msra.mxu0 %v464_v14  ;;  %441 = vmatpush1.bf16.msra.mxu1 %v464_v14 }
  0x1c   :  { %193 = vmatprep.subr.bf16.mxu0 %v465_v15  ;;  %434 = vmatprep.subr.bf16.mxu1 %v465_v15 }
  0x1f   :  { %194 = vmatpush1.bf16.msra.mxu0 %v467_v16  ;;  %442 = vmatpush1.bf16.msra.mxu1 %v467_v16 }
  0x22   :  { %212 = vmatmul.mubr.bf16.vlgmr.msra.gmra.mxu0 %v468_v17  ;;  %232 = vmatmul.mubr.bf16.vlgmr.msra.gmra.mxu1 %v469_v18 }
  0x23   :  { %221 = vmatprep.mubr.bf16.mxu0 %v472_v1  ;;  %241 = vmatprep.mubr.bf16.mxu1 %v472_v1 }
  0x2a   :  { %222 = vmatmul.mubr.bf16.gmra.mxu0 %v470_v19  ;;  %242 = vmatmul.mubr.bf16.gmra.mxu1 %v471_v20 }
  0xe2   :  { %v213_v28 = vpop.f32.mrf.mxu0  ;;  %v233_v29 = vpop.f32.mrf.mxu1 }
  0xe3   :  { %v315_v32 = vadd.f32 %v308_v26, %v213_v28  ;;  %v323_v33 = vadd.f32 %v308_v26, %v233_v29 }
  0xe4   :  { %v215_v30 = vpop.f32.mrf.mxu0  ;;  %v235_v31 = vpop.f32.mrf.mxu1 }
  0xe5   :  { %v316_v34 = vadd.f32 %v312_v27, %v215_v30  ;;  %v324_v35 = vadd.f32 %v312_v27, %v235_v31 }
  0xe6   :  { %v217_v36 = vpop.f32.mrf.mxu0  ;;  %v237_v37 = vpop.f32.mrf.mxu1 }
  0xe7   :  { %v419_v38 = vpack.c.bf16 %v316_v34, %v315_v32  ;;  %v423_v39 = vpack.c.bf16 %v324_v35, %v323_v33  ;;  %v317_v42 = vadd.f32 %v308_v26, %v217_v36  ;;  %v325_v43 = vadd.f32 %v308_v26, %v237_v37 }
  0xe8   :  { %v219_v40 = vpop.f32.mrf.mxu0  ;;  %v239_v41 = vpop.f32.mrf.mxu1 }
  0xe9   :  { %379 = vst [vmem:[%s583_s3] sm:$0xff] %v419_v38  ;;  %383 = vst [vmem:[%s583_s3 + $0x20] sm:$0xff] %v423_v39  ;;  %v318_v44 = vadd.f32 %v312_v27, %v219_v40  ;;  %v326_v45 = vadd.f32 %v312_v27, %v239_v41 }
  0xea   :  { %v223_v46 = vpop.f32.mrf.mxu0  ;;  %v243_v47 = vpop.f32.mrf.mxu1 }
  0xeb   :  { %v420_v48 = vpack.c.bf16 %v318_v44, %v317_v42  ;;  %v424_v49 = vpack.c.bf16 %v326_v45, %v325_v43  ;;  %v319_v52 = vadd.f32 %v308_v26, %v223_v46  ;;  %v327_v53 = vadd.f32 %v308_v26, %v243_v47 }
  0xec   :  { %v225_v50 = vpop.f32.mrf.mxu0  ;;  %v245_v51 = vpop.f32.mrf.mxu1 }
  0xed   :  { %380 = vst [vmem:[%s583_s3 + $0x8] sm:$0xff] %v420_v48  ;;  %384 = vst [vmem:[%s583_s3 + $0x28] sm:$0xff] %v424_v49  ;;  %v320_v54 = vadd.f32 %v312_v27, %v225_v50  ;;  %v328_v55 = vadd.f32 %v312_v27, %v245_v51 }
  0xee   :  { %v227_v56 = vpop.f32.mrf.mxu0  ;;  %v247_v57 = vpop.f32.mrf.mxu1 }
  0xef   :  { %v421_v58 = vpack.c.bf16 %v320_v54, %v319_v52  ;;  %v425_v59 = vpack.c.bf16 %v328_v55, %v327_v53  ;;  %v321_v62 = vadd.f32 %v308_v26, %v227_v56  ;;  %v329_v63 = vadd.f32 %v308_v26, %v247_v57 }
  0xf0   :  { %v229_v60 = vpop.f32.mrf.mxu0  ;;  %v249_v61 = vpop.f32.mrf.mxu1 }
  0xf1   :  { %381 = vst [vmem:[%s583_s3 + $0x10] sm:$0xff] %v421_v58  ;;  %385 = vst [vmem:[%s583_s3 + $0x30] sm:$0xff] %v425_v59  ;;  %v322_v0 = vadd.f32 %v312_v27, %v229_v60  ;;  %v330_v1 = vadd.f32 %v312_v27, %v249_v61 }
  0xf3   :  { %v422_v2 = vpack.c.bf16 %v322_v0, %v321_v62  ;;  %v426_v3 = vpack.c.bf16 %v330_v1, %v329_v63 }
  0xf5   :  { %382 = vst [vmem:[%s583_s3 + $0x18] sm:$0xff] %v422_v2  ;;  %386 = vst [vmem:[%s583_s3 + $0x38] sm:$0xff] %v426_v3 }

// kernel: _lambda_.29
= control target key start
LH: loop header
LB: loop body
LE: loop exit
PB: predicated region body
PF: predicated region fallthrough
CT: control target
= control target key end

     0   :  { %v531_v1 = vmov 0   ;;  %v308_v21 = vlaneseq  ;;  %s696_s1 = inlined_call_operand.vmem [shape: bf16[128,256], index: 1, kind: input, shape index: {}]   ;;  %s697_s0 = inlined_call_operand.vmem [shape: bf16[64,128], index: 0, kind: input, shape index: {}]   ;;  %s698_s2 = inlined_call_operand.vmem [shape: f32[1,256], index: 2, kind: input, shape index: {}]   ;;  %s699_s3 = inlined_call_operand.vmem [shape: bf16[64,256], index: 3, kind: input, shape index: {}]   ;;  %s700_s4 = inlined_call_operand.vmem [shape: bf16[64,256], index: 4, kind: output, shape index: {}]  }
   0x1   :  { %v503_v0 = vld [vmem:[%s696_s1 + $0x74] ss:$8 sps:$4 sm:$0xff]   ;;  %214 = vmatprep.mubr.bf16.mxu0 %v531_v1  ;;  %234 = vmatprep.mubr.bf16.mxu1 %v531_v1  ;;  %v505_v2 = vld [vmem:[%s696_s1 + $0x70] ss:$8 sps:$4 sm:$0xff]   ;;  %v506_v3 = vld [vmem:[%s696_s1 + $0x64] ss:$8 sps:$4 sm:$0xff]  }
   0x2   :  { %182 = vmatprep.subr.bf16.mxu0 %v503_v0  ;;  %486 = vmatprep.subr.bf16.mxu1 %v503_v0  ;;  %v508_v4 = vld [vmem:[%s696_s1 + $0x60] ss:$8 sps:$4 sm:$0xff]   ;;  %v509_v5 = vld [vmem:[%s696_s1 + $0x54] ss:$8 sps:$4 sm:$0xff]   ;;  %v511_v6 = vld [vmem:[%s696_s1 + $0x50] ss:$8 sps:$4 sm:$0xff]  }
   0x3   :  { %183 = vmatpush1.bf16.msra.mxu0 %v505_v2  ;;  %494 = vmatpush1.bf16.msra.mxu1 %v505_v2  ;;  %v512_v7 = vld [vmem:[%s696_s1 + $0x44] ss:$8 sps:$4 sm:$0xff]   ;;  %v514_v8 = vld [vmem:[%s696_s1 + $0x40] ss:$8 sps:$4 sm:$0xff]   ;;  %v515_v9 = vld [vmem:[%s696_s1 + $0x34] ss:$8 sps:$4 sm:$0xff]  }
   0x4   :  { %184 = vmatprep.subr.bf16.mxu0 %v506_v3  ;;  %487 = vmatprep.subr.bf16.mxu1 %v506_v3  ;;  %v517_v10 = vld [vmem:[%s696_s1 + $0x30] ss:$8 sps:$4 sm:$0xff]   ;;  %v518_v11 = vld [vmem:[%s696_s1 + $0x24] ss:$8 sps:$4 sm:$0xff]   ;;  %v520_v12 = vld [vmem:[%s696_s1 + $0x20] ss:$8 sps:$4 sm:$0xff]  }
   0x5   :  { %v521_v13 = vld [vmem:[%s696_s1 + $0x14] ss:$8 sps:$4 sm:$0xff]   ;;  %v523_v14 = vld [vmem:[%s696_s1 + $0x10] ss:$8 sps:$4 sm:$0xff]   ;;  %v524_v15 = vld [vmem:[%s696_s1 + $0x4] ss:$8 sps:$4 sm:$0xff]  }
   0x6   :  { %v526_v16 = vld [vmem:[%s696_s1] ss:$8 sps:$4 sm:$0xff]   ;;  %v528_v18 = vld [vmem:[%s697_s0 + $0x10] sm:$0xff]   ;;  %v530_v20 = vld [vmem:[%s697_s0 + $0x18] sm:$0xff]   ;;  %v309_v22 = vshrl.u32 %v308_v21, 7 }
   0x7   :  { %185 = vmatpush1.bf16.msra.mxu0 %v508_v4  ;;  %495 = vmatpush1.bf16.msra.mxu1 %v508_v4  ;;  %v527_v17 = vld [vmem:[%s697_s0] sm:$0xff]   ;;  %v529_v19 = vld [vmem:[%s697_s0 + $0x8] sm:$0xff]   ;;  %v641_v40 = vld [vmem:[%s699_s3 + $0x10] sm:$0xff] }
   0x8   :  { %186 = vmatprep.subr.bf16.mxu0 %v509_v5  ;;  %488 = vmatprep.subr.bf16.mxu1 %v509_v5  ;;  %v310_v23 = vsub.s32 0, %v309_v22  ;;  %v306_v24 = vld [vmem:[%s698_s2] sm:$0x3]  ;;  %v314_v25 = vsub.s32 1, %v309_v22  ;;  %v335_v32 = vld [vmem:[%s699_s3 + $0x8] sm:$0xff]  ;;  %v646_v41 = vld [vmem:[%s699_s3 + $0x30] sm:$0xff]  ;;  %v346_v54 = vunpack.c.l.bf16 %v641_v40  ;;  %v347_v58 = vunpack.c.h.bf16 %v641_v40 }
   0x9   :  { %v334_v26 = vld [vmem:[%s699_s3] sm:$0xff]  ;;  %v339_v33 = vld [vmem:[%s699_s3 + $0x28] sm:$0xff]  ;;  %v344_v44 = vunpack.c.l.bf16 %v335_v32  ;;  %v345_v52 = vunpack.c.h.bf16 %v335_v32  ;;  %v354_v55 = vunpack.c.l.bf16 %v646_v41  ;;  %v355_v59 = vunpack.c.h.bf16 %v646_v41  ;;  %v337_v60 = vld [vmem:[%s699_s3 + $0x18] sm:$0xff] }
   0xa   :  { %v338_v27 = vld [vmem:[%s699_s3 + $0x20] sm:$0xff]  ;;  %v626_v28 = vrot.slane %v306_v24, %v310_v23  ;;  %v342_v29 = vunpack.c.l.bf16 %v334_v26  ;;  %v628_v31 = vrot.slane %v306_v24, %v314_v25  ;;  %v343_v38 = vunpack.c.h.bf16 %v334_v26  ;;  %v341_v61 = vld [vmem:[%s699_s3 + $0x38] sm:$0xff] }
   0xb   :  { %187 = vmatpush1.bf16.msra.mxu0 %v511_v6  ;;  %496 = vmatpush1.bf16.msra.mxu1 %v511_v6  ;;  %v350_v30 = vunpack.c.l.bf16 %v338_v27  ;;  %v351_v39 = vunpack.c.h.bf16 %v338_v27  ;;  %v352_v45 = vunpack.c.l.bf16 %v339_v33  ;;  %v353_v53 = vunpack.c.h.bf16 %v339_v33 }
   0xc   :  { %188 = vmatprep.subr.bf16.mxu0 %v512_v7  ;;  %489 = vmatprep.subr.bf16.mxu1 %v512_v7 }
   0xf   :  { %189 = vmatpush1.bf16.msra.mxu0 %v514_v8  ;;  %497 = vmatpush1.bf16.msra.mxu1 %v514_v8 }
  0x10   :  { %190 = vmatprep.subr.bf16.mxu0 %v515_v9  ;;  %490 = vmatprep.subr.bf16.mxu1 %v515_v9 }
  0x13   :  { %191 = vmatpush1.bf16.msra.mxu0 %v517_v10  ;;  %498 = vmatpush1.bf16.msra.mxu1 %v517_v10 }
  0x14   :  { %192 = vmatprep.subr.bf16.mxu0 %v518_v11  ;;  %491 = vmatprep.subr.bf16.mxu1 %v518_v11 }
  0x17   :  { %193 = vmatpush1.bf16.msra.mxu0 %v520_v12  ;;  %499 = vmatpush1.bf16.msra.mxu1 %v520_v12  ;;  %v348_v12 = vunpack.c.l.bf16 %v337_v60 }
  0x18   :  { %194 = vmatprep.subr.bf16.mxu0 %v521_v13  ;;  %492 = vmatprep.subr.bf16.mxu1 %v521_v13  ;;  %v356_v13 = vunpack.c.l.bf16 %v341_v61 }
  0x1b   :  { %195 = vmatpush1.bf16.msra.mxu0 %v523_v14  ;;  %500 = vmatpush1.bf16.msra.mxu1 %v523_v14 }
  0x1c   :  { %196 = vmatprep.subr.bf16.mxu0 %v524_v15  ;;  %493 = vmatprep.subr.bf16.mxu1 %v524_v15 }
  0x1f   :  { %197 = vmatpush1.bf16.msra.mxu0 %v526_v16  ;;  %501 = vmatpush1.bf16.msra.mxu1 %v526_v16 }
  0x22   :  { %215 = vmatmul.mubr.bf16.vlgmr.msra.gmra.mxu0 %v527_v17  ;;  %235 = vmatmul.mubr.bf16.vlgmr.msra.gmra.mxu1 %v528_v18 }
  0x23   :  { %224 = vmatprep.mubr.bf16.mxu0 %v531_v1  ;;  %244 = vmatprep.mubr.bf16.mxu1 %v531_v1 }
  0x2a   :  { %225 = vmatmul.mubr.bf16.gmra.mxu0 %v529_v19  ;;  %245 = vmatmul.mubr.bf16.gmra.mxu1 %v530_v20 }
  0xe2   :  { %v216_v34 = vpop.f32.mrf.mxu0  ;;  %v236_v35 = vpop.f32.mrf.mxu1 }
  0xe3   :  { %v318_v36 = vadd.f32 %v626_v28, %v216_v34  ;;  %v326_v37 = vadd.f32 %v626_v28, %v236_v35  ;;  %v349_v34 = vunpack.c.h.bf16 %v337_v60  ;;  %v357_v35 = vunpack.c.h.bf16 %v341_v61 }
  0xe4   :  { %v218_v42 = vpop.f32.mrf.mxu0  ;;  %v238_v43 = vpop.f32.mrf.mxu1 }
  0xe5   :  { %v358_v46 = vadd.f32 %v342_v29, %v318_v36  ;;  %v366_v47 = vadd.f32 %v350_v30, %v326_v37  ;;  %v319_v48 = vadd.f32 %v628_v31, %v218_v42  ;;  %v327_v49 = vadd.f32 %v628_v31, %v238_v43 }
  0xe6   :  { %v220_v50 = vpop.f32.mrf.mxu0  ;;  %v240_v51 = vpop.f32.mrf.mxu1 }
  0xe7   :  { %v359_v56 = vadd.f32 %v343_v38, %v319_v48  ;;  %v367_v57 = vadd.f32 %v351_v39, %v327_v49  ;;  %v374_v62 = vmax.f32 %v358_v46, 0.0  ;;  %v382_v63 = vmax.f32 %v366_v47, 0.0 }
  0xe8   :  { %v320_v0 = vadd.f32 %v626_v28, %v220_v50  ;;  %v328_v1 = vadd.f32 %v626_v28, %v240_v51  ;;  %v222_v2 = vpop.f32.mrf.mxu0  ;;  %v242_v3 = vpop.f32.mrf.mxu1 }
  0xe9   :  { %v375_v4 = vmax.f32 %v359_v56, 0.0  ;;  %v383_v5 = vmax.f32 %v367_v57, 0.0  ;;  %v321_v6 = vadd.f32 %v628_v31, %v222_v2  ;;  %v329_v7 = vadd.f32 %v628_v31, %v242_v3 }
  0xea   :  { %v360_v8 = vadd.f32 %v344_v44, %v320_v0  ;;  %v368_v9 = vadd.f32 %v352_v45, %v328_v1  ;;  %v226_v10 = vpop.f32.mrf.mxu0  ;;  %v246_v11 = vpop.f32.mrf.mxu1 }
  0xeb   :  { %v478_v14 = vpack.c.bf16 %v375_v4, %v374_v62  ;;  %v482_v15 = vpack.c.bf16 %v383_v5, %v382_v63  ;;  %v361_v16 = vadd.f32 %v345_v52, %v321_v6  ;;  %v369_v17 = vadd.f32 %v353_v53, %v329_v7 }
  0xec   :  { %v376_v18 = vmax.f32 %v360_v8, 0.0  ;;  %v384_v19 = vmax.f32 %v368_v9, 0.0  ;;  %v322_v20 = vadd.f32 %v626_v28, %v226_v10  ;;  %v330_v21 = vadd.f32 %v626_v28, %v246_v11  ;;  %v228_v22 = vpop.f32.mrf.mxu0  ;;  %v248_v23 = vpop.f32.mrf.mxu1 }
  0xed   :  { %438 = vst [vmem:[%s700_s4] sm:$0xff] %v478_v14  ;;  %442 = vst [vmem:[%s700_s4 + $0x20] sm:$0xff] %v482_v15  ;;  %v377_v24 = vmax.f32 %v361_v16, 0.0  ;;  %v385_v25 = vmax.f32 %v369_v17, 0.0  ;;  %v323_v26 = vadd.f32 %v628_v31, %v228_v22  ;;  %v331_v27 = vadd.f32 %v628_v31, %v248_v23 }
  0xee   :  { %v362_v29 = vadd.f32 %v346_v54, %v322_v20  ;;  %v370_v30 = vadd.f32 %v354_v55, %v330_v21  ;;  %v230_v32 = vpop.f32.mrf.mxu0  ;;  %v250_v33 = vpop.f32.mrf.mxu1 }
  0xef   :  { %v479_v36 = vpack.c.bf16 %v377_v24, %v376_v18  ;;  %v483_v37 = vpack.c.bf16 %v385_v25, %v384_v19  ;;  %v363_v38 = vadd.f32 %v347_v58, %v323_v26  ;;  %v371_v39 = vadd.f32 %v355_v59, %v331_v27 }
  0xf0   :  { %v378_v40 = vmax.f32 %v362_v29, 0.0  ;;  %v386_v41 = vmax.f32 %v370_v30, 0.0  ;;  %v324_v42 = vadd.f32 %v626_v28, %v230_v32  ;;  %v332_v43 = vadd.f32 %v626_v28, %v250_v33  ;;  %v232_v44 = vpop.f32.mrf.mxu0  ;;  %v252_v45 = vpop.f32.mrf.mxu1 }
  0xf1   :  { %439 = vst [vmem:[%s700_s4 + $0x8] sm:$0xff] %v479_v36  ;;  %443 = vst [vmem:[%s700_s4 + $0x28] sm:$0xff] %v483_v37  ;;  %v379_v46 = vmax.f32 %v363_v38, 0.0  ;;  %v387_v47 = vmax.f32 %v371_v39, 0.0  ;;  %v325_v48 = vadd.f32 %v628_v31, %v232_v44  ;;  %v333_v49 = vadd.f32 %v628_v31, %v252_v45 }
  0xf2   :  { %v364_v50 = vadd.f32 %v348_v12, %v324_v42  ;;  %v372_v51 = vadd.f32 %v356_v13, %v332_v43 }
  0xf3   :  { %v480_v52 = vpack.c.bf16 %v379_v46, %v378_v40  ;;  %v484_v28 = vpack.c.bf16 %v387_v47, %v386_v41  ;;  %v365_v53 = vadd.f32 %v349_v34, %v325_v48  ;;  %v373_v54 = vadd.f32 %v357_v35, %v333_v49 }
  0xf4   :  { %v380_v55 = vmax.f32 %v364_v50, 0.0  ;;  %v388_v56 = vmax.f32 %v372_v51, 0.0 }
  0xf5   :  { %440 = vst [vmem:[%s700_s4 + $0x10] sm:$0xff] %v480_v52  ;;  %444 = vst [vmem:[%s700_s4 + $0x30] sm:$0xff] %v484_v28  ;;  %v381_v57 = vmax.f32 %v365_v53, 0.0  ;;  %v389_v58 = vmax.f32 %v373_v54, 0.0 }
  0xf7   :  { %v481_v59 = vpack.c.bf16 %v381_v57, %v380_v55  ;;  %v485_v31 = vpack.c.bf16 %v389_v58, %v388_v56 }
  0xf9   :  { %441 = vst [vmem:[%s700_s4 + $0x18] sm:$0xff] %v481_v59  ;;  %445 = vst [vmem:[%s700_s4 + $0x38] sm:$0xff] %v485_v31 }

// kernel: _lambda_.30
= control target key start
LH: loop header
LB: loop body
LE: loop exit
PB: predicated region body
PF: predicated region fallthrough
CT: control target
= control target key end

     0   :  { %v416_v40 = vlaneseq  ;;  %s833_s1 = inlined_call_operand.vmem [shape: bf16[256,256], index: 1, kind: input, shape index: {}]   ;;  %s834_s0 = inlined_call_operand.vmem [shape: bf16[64,256], index: 0, kind: input, shape index: {}]   ;;  %s835_s2 = inlined_call_operand.vmem [shape: f32[1,256], index: 2, kind: input, shape index: {}]   ;;  %s836_s3 = inlined_call_operand.vmem [shape: bf16[64,256], index: 3, kind: output, shape index: {}]  }
   0x1   :  { %v606_v0 = vld [vmem:[%s833_s1 + $0x74] ss:$8 sps:$4 sm:$0xff]   ;;  %v608_v1 = vld [vmem:[%s833_s1 + $0x70] ss:$8 sps:$4 sm:$0xff]   ;;  %v609_v2 = vld [vmem:[%s833_s1 + $0x64] ss:$8 sps:$4 sm:$0xff]  }
   0x2   :  { %290 = vmatprep.subr.bf16.mxu0 %v606_v0  ;;  %574 = vmatprep.subr.bf16.mxu1 %v606_v0  ;;  %v611_v3 = vld [vmem:[%s833_s1 + $0x60] ss:$8 sps:$4 sm:$0xff]   ;;  %v612_v4 = vld [vmem:[%s833_s1 + $0x54] ss:$8 sps:$4 sm:$0xff]   ;;  %v614_v5 = vld [vmem:[%s833_s1 + $0x50] ss:$8 sps:$4 sm:$0xff]  }
   0x3   :  { %291 = vmatpush1.bf16.msra.mxu0 %v608_v1  ;;  %590 = vmatpush1.bf16.msra.mxu1 %v608_v1  ;;  %v615_v6 = vld [vmem:[%s833_s1 + $0x44] ss:$8 sps:$4 sm:$0xff]   ;;  %v617_v7 = vld [vmem:[%s833_s1 + $0x40] ss:$8 sps:$4 sm:$0xff]   ;;  %v618_v8 = vld [vmem:[%s833_s1 + $0x34] ss:$8 sps:$4 sm:$0xff]  }
   0x4   :  { %292 = vmatprep.subr.bf16.mxu0 %v609_v2  ;;  %575 = vmatprep.subr.bf16.mxu1 %v609_v2  ;;  %v620_v9 = vld [vmem:[%s833_s1 + $0x30] ss:$8 sps:$4 sm:$0xff]   ;;  %v621_v10 = vld [vmem:[%s833_s1 + $0x24] ss:$8 sps:$4 sm:$0xff]   ;;  %v623_v11 = vld [vmem:[%s833_s1 + $0x20] ss:$8 sps:$4 sm:$0xff]  }
   0x5   :  { %v624_v12 = vld [vmem:[%s833_s1 + $0x14] ss:$8 sps:$4 sm:$0xff]   ;;  %v656_v13 = vld [vmem:[%s834_s0 + $0x4] ss:$8 sps:$4 sm:$0xff]   ;;  %v626_v14 = vld [vmem:[%s833_s1 + $0x10] ss:$8 sps:$4 sm:$0xff]  }
   0x6   :  { %v659_v15 = vld [vmem:[%s834_s0 + $0x24] ss:$8 sps:$4 sm:$0xff]   ;;  %322 = vmatprep.mubr.bf16.mxu0 %v656_v13  ;;  %v629_v17 = vld [vmem:[%s833_s1] ss:$8 sps:$4 sm:$0xff]   ;;  %v630_v18 = vld [vmem:[%s833_s1 + $0xf4] ss:$8 sps:$4 sm:$0xff]  }
   0x7   :  { %293 = vmatpush1.bf16.msra.mxu0 %v611_v3  ;;  %591 = vmatpush1.bf16.msra.mxu1 %v611_v3  ;;  %v627_v16 = vld [vmem:[%s833_s1 + $0x4] ss:$8 sps:$4 sm:$0xff]   ;;  %v632_v19 = vld [vmem:[%s833_s1 + $0xf0] ss:$8 sps:$4 sm:$0xff]   ;;  %v635_v21 = vld [vmem:[%s833_s1 + $0xe0] ss:$8 sps:$4 sm:$0xff]  }
   0x8   :  { %294 = vmatprep.subr.bf16.mxu0 %v612_v4  ;;  %576 = vmatprep.subr.bf16.mxu1 %v612_v4  ;;  %v633_v20 = vld [vmem:[%s833_s1 + $0xe4] ss:$8 sps:$4 sm:$0xff]   ;;  %v636_v22 = vld [vmem:[%s833_s1 + $0xd4] ss:$8 sps:$4 sm:$0xff]   ;;  %v638_v23 = vld [vmem:[%s833_s1 + $0xd0] ss:$8 sps:$4 sm:$0xff]  }
   0x9   :  { %342 = vmatprep.mubr.bf16.mxu1 %v659_v15  ;;  %v639_v24 = vld [vmem:[%s833_s1 + $0xc4] ss:$8 sps:$4 sm:$0xff]   ;;  %v641_v25 = vld [vmem:[%s833_s1 + $0xc0] ss:$8 sps:$4 sm:$0xff]   ;;  %v642_v26 = vld [vmem:[%s833_s1 + $0xb4] ss:$8 sps:$4 sm:$0xff]  }
   0xa   :  { %v644_v27 = vld [vmem:[%s833_s1 + $0xb0] ss:$8 sps:$4 sm:$0xff]   ;;  %v645_v28 = vld [vmem:[%s833_s1 + $0xa4] ss:$8 sps:$4 sm:$0xff]   ;;  %v647_v29 = vld [vmem:[%s833_s1 + $0xa0] ss:$8 sps:$4 sm:$0xff]  }
   0xb   :  { %295 = vmatpush1.bf16.msra.mxu0 %v614_v5  ;;  %592 = vmatpush1.bf16.msra.mxu1 %v614_v5  ;;  %v648_v30 = vld [vmem:[%s833_s1 + $0x94] ss:$8 sps:$4 sm:$0xff]   ;;  %v650_v31 = vld [vmem:[%s833_s1 + $0x90] ss:$8 sps:$4 sm:$0xff]   ;;  %v651_v32 = vld [vmem:[%s833_s1 + $0x84] ss:$8 sps:$4 sm:$0xff]  }
   0xc   :  { %296 = vmatprep.subr.bf16.mxu0 %v615_v6  ;;  %577 = vmatprep.subr.bf16.mxu1 %v615_v6  ;;  %v653_v33 = vld [vmem:[%s833_s1 + $0x80] ss:$8 sps:$4 sm:$0xff]   ;;  %v660_v36 = vld [vmem:[%s834_s0 + $0x14] ss:$8 sps:$4 sm:$0xff]   ;;  %v664_v38 = vld [vmem:[%s834_s0 + $0x10] ss:$8 sps:$4 sm:$0xff]  }
   0xd   :  { %v654_v34 = vld [vmem:[%s834_s0] ss:$8 sps:$4 sm:$0xff]   ;;  %v662_v37 = vld [vmem:[%s834_s0 + $0x34] ss:$8 sps:$4 sm:$0xff]   ;;  %v665_v39 = vld [vmem:[%s834_s0 + $0x30] ss:$8 sps:$4 sm:$0xff]  }
   0xe   :  { %v657_v35 = vld [vmem:[%s834_s0 + $0x20] ss:$8 sps:$4 sm:$0xff]   ;;  %v417_v41 = vshrl.u32 %v416_v40, 7 }
   0xf   :  { %297 = vmatpush1.bf16.msra.mxu0 %v617_v7  ;;  %593 = vmatpush1.bf16.msra.mxu1 %v617_v7  ;;  %v414_v43 = vld [vmem:[%s835_s2] sm:$0x3] }
  0x10   :  { %298 = vmatprep.subr.bf16.mxu0 %v618_v8  ;;  %578 = vmatprep.subr.bf16.mxu1 %v618_v8  ;;  %v418_v42 = vsub.s32 0, %v417_v41  ;;  %v422_v44 = vsub.s32 1, %v417_v41 }
  0x12   :  { %v419_v45 = vrot.slane %v414_v43, %v418_v42  ;;  %v423_v46 = vrot.slane %v414_v43, %v422_v44 }
  0x13   :  { %299 = vmatpush1.bf16.msra.mxu0 %v620_v9  ;;  %594 = vmatpush1.bf16.msra.mxu1 %v620_v9 }
  0x14   :  { %300 = vmatprep.subr.bf16.mxu0 %v621_v10  ;;  %579 = vmatprep.subr.bf16.mxu1 %v621_v10 }
  0x17   :  { %301 = vmatpush1.bf16.msra.mxu0 %v623_v11  ;;  %595 = vmatpush1.bf16.msra.mxu1 %v623_v11 }
  0x18   :  { %302 = vmatprep.subr.bf16.mxu0 %v624_v12  ;;  %580 = vmatprep.subr.bf16.mxu1 %v624_v12 }
  0x1b   :  { %303 = vmatpush1.bf16.msra.mxu0 %v626_v14  ;;  %596 = vmatpush1.bf16.msra.mxu1 %v626_v14 }
  0x1c   :  { %304 = vmatprep.subr.bf16.mxu0 %v627_v16  ;;  %581 = vmatprep.subr.bf16.mxu1 %v627_v16 }
  0x1f   :  { %305 = vmatpush1.bf16.msra.mxu0 %v629_v17  ;;  %597 = vmatpush1.bf16.msra.mxu1 %v629_v17 }
  0x20   :  { %306 = vmatprep.subr.bf16.mxu0 %v630_v18  ;;  %582 = vmatprep.subr.bf16.mxu1 %v630_v18 }
  0x23   :  { %307 = vmatpush2.bf16.msra.mxu0 %v632_v19  ;;  %598 = vmatpush2.bf16.msra.mxu1 %v632_v19 }
  0x24   :  { %308 = vmatprep.subr.bf16.mxu0 %v633_v20  ;;  %583 = vmatprep.subr.bf16.mxu1 %v633_v20 }
  0x27   :  { %309 = vmatpush2.bf16.msra.mxu0 %v635_v21  ;;  %599 = vmatpush2.bf16.msra.mxu1 %v635_v21 }
  0x28   :  { %310 = vmatprep.subr.bf16.mxu0 %v636_v22  ;;  %584 = vmatprep.subr.bf16.mxu1 %v636_v22 }
  0x2b   :  { %311 = vmatpush2.bf16.msra.mxu0 %v638_v23  ;;  %600 = vmatpush2.bf16.msra.mxu1 %v638_v23 }
  0x2c   :  { %312 = vmatprep.subr.bf16.mxu0 %v639_v24  ;;  %585 = vmatprep.subr.bf16.mxu1 %v639_v24 }
  0x2f   :  { %313 = vmatpush2.bf16.msra.mxu0 %v641_v25  ;;  %601 = vmatpush2.bf16.msra.mxu1 %v641_v25 }
  0x30   :  { %314 = vmatprep.subr.bf16.mxu0 %v642_v26  ;;  %586 = vmatprep.subr.bf16.mxu1 %v642_v26 }
  0x33   :  { %315 = vmatpush2.bf16.msra.mxu0 %v644_v27  ;;  %602 = vmatpush2.bf16.msra.mxu1 %v644_v27 }
  0x34   :  { %316 = vmatprep.subr.bf16.mxu0 %v645_v28  ;;  %587 = vmatprep.subr.bf16.mxu1 %v645_v28 }
  0x37   :  { %317 = vmatpush2.bf16.msra.mxu0 %v647_v29  ;;  %603 = vmatpush2.bf16.msra.mxu1 %v647_v29 }
  0x38   :  { %318 = vmatprep.subr.bf16.mxu0 %v648_v30  ;;  %588 = vmatprep.subr.bf16.mxu1 %v648_v30 }
  0x3b   :  { %319 = vmatpush2.bf16.msra.mxu0 %v650_v31  ;;  %604 = vmatpush2.bf16.msra.mxu1 %v650_v31 }
  0x3c   :  { %320 = vmatprep.subr.bf16.mxu0 %v651_v32  ;;  %589 = vmatprep.subr.bf16.mxu1 %v651_v32 }
  0x3f   :  { %321 = vmatpush2.bf16.msra.mxu0 %v653_v33  ;;  %605 = vmatpush2.bf16.msra.mxu1 %v653_v33 }
  0x42   :  { %323 = vmatmul.mubr.bf16.vlgmr.msra.gmra.mxu0 %v654_v34  ;;  %343 = vmatmul.mubr.bf16.vlgmr.msra.gmra.mxu1 %v657_v35 }
  0x43   :  { %332 = vmatprep.mubr.bf16.mxu0 %v660_v36  ;;  %352 = vmatprep.mubr.bf16.mxu1 %v662_v37 }
  0x4a   :  { %333 = vmatmul.mubr.bf16.gmra.mxu0 %v664_v38  ;;  %353 = vmatmul.mubr.bf16.gmra.mxu1 %v665_v39 }
 0x102   :  { %v324_v47 = vpop.f32.mrf.mxu0  ;;  %v344_v48 = vpop.f32.mrf.mxu1 }
 0x103   :  { %v426_v49 = vadd.f32 %v419_v45, %v324_v47  ;;  %v434_v50 = vadd.f32 %v419_v45, %v344_v48 }
 0x104   :  { %v326_v51 = vpop.f32.mrf.mxu0  ;;  %v346_v52 = vpop.f32.mrf.mxu1 }
 0x105   :  { %v427_v53 = vadd.f32 %v423_v46, %v326_v51  ;;  %v435_v54 = vadd.f32 %v423_v46, %v346_v52  ;;  %v442_v57 = vmax.f32 %v426_v49, 0.0  ;;  %v450_v58 = vmax.f32 %v434_v50, 0.0 }
 0x106   :  { %v328_v55 = vpop.f32.mrf.mxu0  ;;  %v348_v56 = vpop.f32.mrf.mxu1 }
 0x107   :  { %v443_v59 = vmax.f32 %v427_v53, 0.0  ;;  %v451_v60 = vmax.f32 %v435_v54, 0.0  ;;  %v428_v61 = vadd.f32 %v419_v45, %v328_v55  ;;  %v436_v62 = vadd.f32 %v419_v45, %v348_v56 }
 0x108   :  { %v330_v63 = vpop.f32.mrf.mxu0  ;;  %v350_v0 = vpop.f32.mrf.mxu1 }
 0x109   :  { %v566_v1 = vpack.c.bf16 %v443_v59, %v442_v57  ;;  %v570_v2 = vpack.c.bf16 %v451_v60, %v450_v58  ;;  %v429_v3 = vadd.f32 %v423_v46, %v330_v63  ;;  %v437_v4 = vadd.f32 %v423_v46, %v350_v0 }
 0x10a   :  { %v334_v5 = vpop.f32.mrf.mxu0  ;;  %v354_v6 = vpop.f32.mrf.mxu1  ;;  %v444_v9 = vmax.f32 %v428_v61, 0.0  ;;  %v452_v10 = vmax.f32 %v436_v62, 0.0 }
 0x10b   :  { %506 = vst [vmem:[%s836_s3] sm:$0xff] %v566_v1  ;;  %510 = vst [vmem:[%s836_s3 + $0x20] sm:$0xff] %v570_v2  ;;  %v430_v7 = vadd.f32 %v419_v45, %v334_v5  ;;  %v438_v8 = vadd.f32 %v419_v45, %v354_v6  ;;  %v445_v11 = vmax.f32 %v429_v3, 0.0  ;;  %v453_v12 = vmax.f32 %v437_v4, 0.0 }
 0x10c   :  { %v336_v13 = vpop.f32.mrf.mxu0  ;;  %v356_v14 = vpop.f32.mrf.mxu1 }
 0x10d   :  { %v431_v15 = vadd.f32 %v423_v46, %v336_v13  ;;  %v439_v16 = vadd.f32 %v423_v46, %v356_v14  ;;  %v567_v17 = vpack.c.bf16 %v445_v11, %v444_v9  ;;  %v571_v18 = vpack.c.bf16 %v453_v12, %v452_v10 }
 0x10e   :  { %v338_v19 = vpop.f32.mrf.mxu0  ;;  %v358_v20 = vpop.f32.mrf.mxu1  ;;  %v446_v21 = vmax.f32 %v430_v7, 0.0  ;;  %v454_v22 = vmax.f32 %v438_v8, 0.0 }
 0x10f   :  { %v447_v23 = vmax.f32 %v431_v15, 0.0  ;;  %v455_v24 = vmax.f32 %v439_v16, 0.0  ;;  %507 = vst [vmem:[%s836_s3 + $0x8] sm:$0xff] %v567_v17  ;;  %511 = vst [vmem:[%s836_s3 + $0x28] sm:$0xff] %v571_v18  ;;  %v432_v25 = vadd.f32 %v419_v45, %v338_v19  ;;  %v440_v26 = vadd.f32 %v419_v45, %v358_v20 }
 0x110   :  { %v340_v27 = vpop.f32.mrf.mxu0  ;;  %v360_v28 = vpop.f32.mrf.mxu1 }
 0x111   :  { %v568_v29 = vpack.c.bf16 %v447_v23, %v446_v21  ;;  %v572_v30 = vpack.c.bf16 %v455_v24, %v454_v22  ;;  %v433_v31 = vadd.f32 %v423_v46, %v340_v27  ;;  %v441_v32 = vadd.f32 %v423_v46, %v360_v28 }
 0x112   :  { %v448_v33 = vmax.f32 %v432_v25, 0.0  ;;  %v456_v34 = vmax.f32 %v440_v26, 0.0 }
 0x113   :  { %508 = vst [vmem:[%s836_s3 + $0x10] sm:$0xff] %v568_v29  ;;  %512 = vst [vmem:[%s836_s3 + $0x30] sm:$0xff] %v572_v30  ;;  %v449_v35 = vmax.f32 %v433_v31, 0.0  ;;  %v457_v36 = vmax.f32 %v441_v32, 0.0 }
 0x115   :  { %v569_v37 = vpack.c.bf16 %v449_v35, %v448_v33  ;;  %v573_v38 = vpack.c.bf16 %v457_v36, %v456_v34 }
 0x117   :  { %509 = vst [vmem:[%s836_s3 + $0x18] sm:$0xff] %v569_v37  ;;  %513 = vst [vmem:[%s836_s3 + $0x38] sm:$0xff] %v573_v38 }

// kernel: _lambda_.31
= control target key start
LH: loop header
LB: loop body
LE: loop exit
PB: predicated region body
PF: predicated region fallthrough
CT: control target
= control target key end

     0   :  { %s1380_s12 = smov 0   ;;  %s1382_s13 = smov 0   ;;  %s1538_s0 = inlined_call_operand.vmem [shape: bf16[32,2048], index: 0, kind: input, shape index: {}]   ;;  %s1539_s1 = inlined_call_operand.vmem [shape: bf16[2048,256], index: 1, kind: input, shape index: {}]   ;;  %s1540_s2 = inlined_call_operand.vmem [shape: f32[1,256], index: 2, kind: input, shape index: {}]   ;;  %s1541_s3 = inlined_call_operand.vmem [shape: bf16[32,256], index: 3, kind: output, shape index: {}]  }
   0x1   :  { %s1384_s14 = smov 0   ;;  %s1386_s15 = smov 0  }
   0x2   :  { %s1388_s16 = smov 0  }
   0x3 LB: > { %s25_s17 = sadd.s32 1, %s1353_s15  ;;  %p48_p1 = scmp.ne.s32.totalorder %s1345_s13, %s1341_s12  ;;  %s1357_s16 = sphi %s1388_s16, %s13_s16   ;;  %s1353_s15 = sphi %s1386_s15, %s1545_s15   ;;  %s1349_s14 = sphi %s1384_s14, %s1544_s14   ;;  %s1345_s13 = sphi %s1382_s13, %s1543_s13   ;;  %s1341_s12 = sphi %s1380_s12, %s1542_s12  }
   0x4   : > { %p26_p0 = scmp.ge.s32.totalorder %s25_s17, 4  ;;  %p49_p2 = scmp.eq.s32.totalorder %s1357_s16, 0 }
   0x5   : > { %s41_s19 = sadd.s32 1, %s1345_s13  ;;  %p1073_p5 = scmp.ge.s32.totalorder %s1357_s16, 4 }
   0x6   : > { %s1547_s17 = smov (%p26_p0, %s25_s17), 0  ;;  %p50_p3 = por %p49_p2, %p48_p1 }
   0x7   : > { %s37_s18 = ssub.s32 %s1353_s15, %s1547_s17  ;;  %164 = sbr.rel (%p1073_p5) target bundleno = 20 (0x14), region = 20 }
   0x8   : > { %p39_p4 = scmp.eq.s32.totalorder %s37_s18, 0 }
   0xa   : > { %s1415_s20 = scalar_select %p39_p4, %s1345_s13, %s41_s19  }
   0xc   : > { %167 = sbr.rel (!%p50_p3) target bundleno = 20 (0x14), region = 24  ;;  %s169_s21 = sand.u32 (%p50_p3), 1, %s1345_s13  }
   0xd   : > { %s1164_s22 = sshll.u32 (%p50_p3), %s1353_s15, 4  ;;  %s1074_s23 = sshll.u32 (%p50_p3), %s169_s21, 6 }
   0xe   : > { %s177_s26 = scalar_lea.vmem (%p50_p3), %s1538_s0, %s1164_s22  ;;  %s171_s27 = scalar_lea.vmem (%p50_p3), [#allocation3], %s1074_s23 }
   0xf   : > { %v190_v0 = vld [vmem:[%s177_s26] sm:$0xff] (%p50_p3)  ;;  %v192_v1 = vld [vmem:[%s177_s26 + $0x8] sm:$0xff] (%p50_p3) }
  0x10   : > { %v194_v2 = vld [vmem:[%s177_s26 + $0x40] sm:$0xff] (%p50_p3)  ;;  %191 = vst [vmem:[%s171_s27] sm:$0xff] (%p50_p3), %v190_v0  ;;  %193 = vst [vmem:[%s171_s27 + $0x8] sm:$0xff] (%p50_p3), %v192_v1  ;;  %v196_v3 = vld [vmem:[%s177_s26 + $0x48] sm:$0xff] (%p50_p3) }
  0x11   : > { %195 = vst [vmem:[%s171_s27 + $0x10] sm:$0xff] %v194_v2  ;;  %v198_v4 = vld [vmem:[%s177_s26 + $0x80] sm:$0xff]  ;;  %v200_v5 = vld [vmem:[%s177_s26 + $0x88] sm:$0xff]  ;;  %197 = vst [vmem:[%s171_s27 + $0x18] sm:$0xff] %v196_v3 }
  0x12   : > { %199 = vst [vmem:[%s171_s27 + $0x20] sm:$0xff] %v198_v4  ;;  %201 = vst [vmem:[%s171_s27 + $0x28] sm:$0xff] %v200_v5  ;;  %v202_v6 = vld [vmem:[%s177_s26 + $0xc0] sm:$0xff]  ;;  %v204_v7 = vld [vmem:[%s177_s26 + $0xc8] sm:$0xff] }
  0x13   : > { %203 = vst [vmem:[%s171_s27 + $0x30] sm:$0xff] %v202_v6  ;;  %205 = vst [vmem:[%s171_s27 + $0x38] sm:$0xff] %v204_v7 }
  0x14 PF: > { %p1077_p6 = scmp.ge.s32.totalorder %s1357_s16, 1  ;;  %p225_p7 = scmp.lt.s32.totalorder %s1357_s16, 5 }
  0x16   : > { %p226_p8 = pnand %p1077_p6, %p225_p7 }
  0x17   : > { %s232_s28 = sand.u32 (!%p226_p8), 1, %s1341_s12   ;;  %s1079_s29 = sshll.u32 (!%p226_p8), %s1349_s14, 6 }
  0x18   : > { %229 = sbr.rel (%p226_p8) target bundleno = 333 (0x14d), region = 51  ;;  %s1078_s30 = sshll.u32 (!%p226_p8), %s232_s28, 6 }
  0x19   : > { %p278_p9 = scmp.lt.s32.totalorder (!%p226_p8), %s1079_s29, 255  ;;  %s1432_s8 = scalar_lea.vmem (!%p226_p8), [#allocation3], %s1078_s30 }
  0x1a   : > { %p1082_p10 = scmp.ne.s32.totalorder (!%p226_p8), %s1349_s14, 0 }
  0x1d   : > { %s1549_s29 = smov (!%p278_p9, %s1079_s29), 255  ;;  %308 = sbr.rel (%p1082_p10) target bundleno = 39 (0x27), region = 59 }
  0x1e   : > { %s1165_s4 = sshll.u32 %s1549_s29, 3 }
  0x1f   : > { %s1430_s7 = scalar_lea.vmem %s1539_s1, %s1165_s4 }
  0x22   : > { %v1359_v8 = vmov 0.0  }
  0x23   : > { %309 = vst [vmem:[#allocation2 + $0x30] sm:$0xff] %v1359_v8  ;;  %310 = vst [vmem:[#allocation2] sm:$0xff] %v1359_v8 }
  0x24   : > { %311 = vst [vmem:[#allocation2 + $0x18] sm:$0xff] %v1359_v8  ;;  %312 = vst [vmem:[#allocation2 + $0x10] sm:$0xff] %v1359_v8 }
  0x25   : > { %313 = vst [vmem:[#allocation2 + $0x8] sm:$0xff] %v1359_v8  ;;  %314 = vst [vmem:[#allocation2 + $0x20] sm:$0xff] %v1359_v8 }
  0x26   : > { %315 = vst [vmem:[#allocation2 + $0x28] sm:$0xff] %v1359_v8  ;;  %316 = vst [vmem:[#allocation2 + $0x38] sm:$0xff] %v1359_v8 }
  0x27 PF: > { %v1211_v9 = vld [vmem:[%s1430_s7 + $0x74] ss:$8 sps:$4 sm:$0xff]   ;;  %v1215_v11 = vld [vmem:[%s1430_s7 + $0x70] ss:$8 sps:$4 sm:$0xff]   ;;  %v1217_v13 = vld [vmem:[%s1430_s7 + $0x64] ss:$8 sps:$4 sm:$0xff]  }
  0x28   : > { %v1213_v10 = vld [vmem:[%s1430_s7 + $0x174] ss:$8 sps:$4 sm:$0xff]   ;;  %757 = vmatprep.subr.bf16.mxu0 %v1211_v9  ;;  %v1216_v12 = vld [vmem:[%s1430_s7 + $0x170] ss:$8 sps:$4 sm:$0xff]   ;;  %v1219_v14 = vld [vmem:[%s1430_s7 + $0x164] ss:$8 sps:$4 sm:$0xff]  }
  0x29   : > { %810 = vmatprep.subr.bf16.mxu1 %v1213_v10  ;;  %758 = vmatpush1.bf16.msra.mxu0 %v1215_v11  ;;  %v1221_v15 = vld [vmem:[%s1430_s7 + $0x60] ss:$8 sps:$4 sm:$0xff]   ;;  %v1223_v17 = vld [vmem:[%s1430_s7 + $0x54] ss:$8 sps:$4 sm:$0xff]   ;;  %v1227_v19 = vld [vmem:[%s1430_s7 + $0x50] ss:$8 sps:$4 sm:$0xff]  }
  0x2a   : > { %811 = vmatpush1.bf16.msra.mxu1 %v1216_v12  ;;  %759 = vmatprep.subr.bf16.mxu0 %v1217_v13  ;;  %v1222_v16 = vld [vmem:[%s1430_s7 + $0x160] ss:$8 sps:$4 sm:$0xff]   ;;  %v1225_v18 = vld [vmem:[%s1430_s7 + $0x154] ss:$8 sps:$4 sm:$0xff]   ;;  %v1228_v20 = vld [vmem:[%s1430_s7 + $0x150] ss:$8 sps:$4 sm:$0xff]  }
  0x2b   : > { %812 = vmatprep.subr.bf16.mxu1 %v1219_v14  ;;  %v1229_v21 = vld [vmem:[%s1430_s7 + $0x44] ss:$8 sps:$4 sm:$0xff]   ;;  %v1233_v23 = vld [vmem:[%s1430_s7 + $0x40] ss:$8 sps:$4 sm:$0xff]   ;;  %v1235_v25 = vld [vmem:[%s1430_s7 + $0x34] ss:$8 sps:$4 sm:$0xff]  }
  0x2c   : > { %v1231_v22 = vld [vmem:[%s1430_s7 + $0x144] ss:$8 sps:$4 sm:$0xff]   ;;  %v1234_v24 = vld [vmem:[%s1430_s7 + $0x140] ss:$8 sps:$4 sm:$0xff]   ;;  %v1237_v26 = vld [vmem:[%s1430_s7 + $0x134] ss:$8 sps:$4 sm:$0xff]  }
  0x2d   : > { %760 = vmatpush1.bf16.msra.mxu0 %v1221_v15  ;;  %v1239_v27 = vld [vmem:[%s1430_s7 + $0x30] ss:$8 sps:$4 sm:$0xff]   ;;  %v1241_v29 = vld [vmem:[%s1430_s7 + $0x24] ss:$8 sps:$4 sm:$0xff]   ;;  %v1245_v31 = vld [vmem:[%s1430_s7 + $0x20] ss:$8 sps:$4 sm:$0xff]  }
  0x2e   : > { %813 = vmatpush1.bf16.msra.mxu1 %v1222_v16  ;;  %761 = vmatprep.subr.bf16.mxu0 %v1223_v17  ;;  %v1240_v28 = vld [vmem:[%s1430_s7 + $0x130] ss:$8 sps:$4 sm:$0xff]   ;;  %v1243_v30 = vld [vmem:[%s1430_s7 + $0x124] ss:$8 sps:$4 sm:$0xff]   ;;  %v1246_v32 = vld [vmem:[%s1430_s7 + $0x120] ss:$8 sps:$4 sm:$0xff]  }
  0x2f   : > { %814 = vmatprep.subr.bf16.mxu1 %v1225_v18  ;;  %v1247_v33 = vld [vmem:[%s1430_s7 + $0x14] ss:$8 sps:$4 sm:$0xff]   ;;  %v1251_v35 = vld [vmem:[%s1430_s7 + $0x10] ss:$8 sps:$4 sm:$0xff]   ;;  %v1253_v37 = vld [vmem:[%s1430_s7 + $0x4] ss:$8 sps:$4 sm:$0xff]  }
  0x30   : > { %v1249_v34 = vld [vmem:[%s1430_s7 + $0x114] ss:$8 sps:$4 sm:$0xff]   ;;  %v1252_v36 = vld [vmem:[%s1430_s7 + $0x110] ss:$8 sps:$4 sm:$0xff]   ;;  %v1255_v38 = vld [vmem:[%s1430_s7 + $0x104] ss:$8 sps:$4 sm:$0xff]  }
  0x31   : > { %762 = vmatpush1.bf16.msra.mxu0 %v1227_v19  ;;  %v1257_v39 = vld [vmem:[%s1430_s7] ss:$8 sps:$4 sm:$0xff]   ;;  %v1259_v41 = vld [vmem:[%s1430_s7 + $0xf4] ss:$8 sps:$4 sm:$0xff]   ;;  %v1263_v43 = vld [vmem:[%s1430_s7 + $0xf0] ss:$8 sps:$4 sm:$0xff]  }
  0x32   : > { %815 = vmatpush1.bf16.msra.mxu1 %v1228_v20  ;;  %763 = vmatprep.subr.bf16.mxu0 %v1229_v21  ;;  %v1258_v40 = vld [vmem:[%s1430_s7 + $0x100] ss:$8 sps:$4 sm:$0xff]   ;;  %v1261_v42 = vld [vmem:[%s1430_s7 + $0x1f4] ss:$8 sps:$4 sm:$0xff]   ;;  %v1264_v44 = vld [vmem:[%s1430_s7 + $0x1f0] ss:$8 sps:$4 sm:$0xff]  }
  0x33   : > { %816 = vmatprep.subr.bf16.mxu1 %v1231_v22  ;;  %v1265_v45 = vld [vmem:[%s1430_s7 + $0xe4] ss:$8 sps:$4 sm:$0xff]   ;;  %v1269_v47 = vld [vmem:[%s1430_s7 + $0xe0] ss:$8 sps:$4 sm:$0xff]   ;;  %v1271_v49 = vld [vmem:[%s1430_s7 + $0xd4] ss:$8 sps:$4 sm:$0xff]  }
  0x34   : > { %v1267_v46 = vld [vmem:[%s1430_s7 + $0x1e4] ss:$8 sps:$4 sm:$0xff]   ;;  %v1270_v48 = vld [vmem:[%s1430_s7 + $0x1e0] ss:$8 sps:$4 sm:$0xff]   ;;  %v1273_v50 = vld [vmem:[%s1430_s7 + $0x1d4] ss:$8 sps:$4 sm:$0xff]  }
  0x35   : > { %764 = vmatpush1.bf16.msra.mxu0 %v1233_v23  ;;  %v1275_v51 = vld [vmem:[%s1430_s7 + $0xd0] ss:$8 sps:$4 sm:$0xff]   ;;  %v1277_v53 = vld [vmem:[%s1430_s7 + $0xc4] ss:$8 sps:$4 sm:$0xff]   ;;  %v1281_v55 = vld [vmem:[%s1430_s7 + $0xc0] ss:$8 sps:$4 sm:$0xff]  }
  0x36   : > { %817 = vmatpush1.bf16.msra.mxu1 %v1234_v24  ;;  %765 = vmatprep.subr.bf16.mxu0 %v1235_v25  ;;  %v1276_v52 = vld [vmem:[%s1430_s7 + $0x1d0] ss:$8 sps:$4 sm:$0xff]   ;;  %v1279_v54 = vld [vmem:[%s1430_s7 + $0x1c4] ss:$8 sps:$4 sm:$0xff]   ;;  %v1282_v56 = vld [vmem:[%s1430_s7 + $0x1c0] ss:$8 sps:$4 sm:$0xff]  }
  0x37   : > { %818 = vmatprep.subr.bf16.mxu1 %v1237_v26  ;;  %v1283_v57 = vld [vmem:[%s1430_s7 + $0xb4] ss:$8 sps:$4 sm:$0xff]   ;;  %v1287_v61 = vld [vmem:[%s1430_s7 + $0xb0] ss:$8 sps:$4 sm:$0xff]   ;;  %v1289_v63 = vld [vmem:[%s1430_s7 + $0xa4] ss:$8 sps:$4 sm:$0xff]  }
  0x38   : > { %v1309_v58 = vld [vmem:[%s1432_s8 + $0x4] ss:$16 sps:$4 sm:$0xff]   ;;  %v1312_v60 = vld [vmem:[%s1432_s8 + $0xc] ss:$16 sps:$4 sm:$0xff]   ;;  %v1288_v62 = vld [vmem:[%s1430_s7 + $0x1b0] ss:$8 sps:$4 sm:$0xff]  }
  0x39   : > { %766 = vmatpush1.bf16.msra.mxu0 %v1239_v27  ;;  %v1285_v59 = vld [vmem:[%s1430_s7 + $0x1b4] ss:$8 sps:$4 sm:$0xff]   ;;  %789 = vmatprep.mubr.bf16.mxu0 %v1309_v58  ;;  %v1291_v0 = vld [vmem:[%s1430_s7 + $0x1a4] ss:$8 sps:$4 sm:$0xff]   ;;  %v1293_v1 = vld [vmem:[%s1430_s7 + $0xa0] ss:$8 sps:$4 sm:$0xff]  }
  0x3a   : > { %819 = vmatpush1.bf16.msra.mxu1 %v1240_v28  ;;  %767 = vmatprep.subr.bf16.mxu0 %v1241_v29  ;;  %v1294_v2 = vld [vmem:[%s1430_s7 + $0x1a0] ss:$8 sps:$4 sm:$0xff]   ;;  %v1295_v3 = vld [vmem:[%s1430_s7 + $0x94] ss:$8 sps:$4 sm:$0xff]   ;;  %v1299_v5 = vld [vmem:[%s1430_s7 + $0x90] ss:$8 sps:$4 sm:$0xff]  }
  0x3b   : > { %820 = vmatprep.subr.bf16.mxu1 %v1243_v30  ;;  %842 = vmatprep.mubr.bf16.mxu1 %v1312_v60  ;;  %v1297_v4 = vld [vmem:[%s1430_s7 + $0x194] ss:$8 sps:$4 sm:$0xff]   ;;  %v1300_v6 = vld [vmem:[%s1430_s7 + $0x190] ss:$8 sps:$4 sm:$0xff]   ;;  %v1301_v7 = vld [vmem:[%s1430_s7 + $0x84] ss:$8 sps:$4 sm:$0xff]  }
  0x3c   : > { %v1303_v8 = vld [vmem:[%s1430_s7 + $0x184] ss:$8 sps:$4 sm:$0xff]   ;;  %v1305_v9 = vld [vmem:[%s1430_s7 + $0x80] ss:$8 sps:$4 sm:$0xff]   ;;  %v317_v18 = vld [vmem:[#allocation2 + $0x30] sm:$0xff]  ;;  %p1155_p11 = scmp.ne.s32.totalorder %s1349_s14, 3 }
  0x3d   : > { %768 = vmatpush1.bf16.msra.mxu0 %v1245_v31  ;;  %v1306_v10 = vld [vmem:[%s1430_s7 + $0x180] ss:$8 sps:$4 sm:$0xff]   ;;  %v1313_v13 = vld [vmem:[%s1432_s8 + $0x24] ss:$16 sps:$4 sm:$0xff]   ;;  %v1315_v14 = vld [vmem:[%s1432_s8 + $0x2c] ss:$16 sps:$4 sm:$0xff]  }
  0x3e   : > { %821 = vmatpush1.bf16.msra.mxu1 %v1246_v32  ;;  %769 = vmatprep.subr.bf16.mxu0 %v1247_v33  ;;  %v1307_v11 = vld [vmem:[%s1432_s8] ss:$16 sps:$4 sm:$0xff]   ;;  %v1310_v12 = vld [vmem:[%s1432_s8 + $0x8] ss:$16 sps:$4 sm:$0xff]  }
  0x3f   : > { %822 = vmatprep.subr.bf16.mxu1 %v1249_v34  ;;  %v1317_v15 = vld [vmem:[%s1432_s8 + $0x20] ss:$16 sps:$4 sm:$0xff]   ;;  %v1318_v16 = vld [vmem:[%s1432_s8 + $0x28] ss:$16 sps:$4 sm:$0xff]  }
  0x40   : > { %v318_v22 = vld [vmem:[#allocation2] sm:$0xff]  ;;  %v319_v27 = vld [vmem:[#allocation2 + $0x18] sm:$0xff]  ;;  %v320_v32 = vld [vmem:[#allocation2 + $0x10] sm:$0xff] }
  0x41   : > { %770 = vmatpush1.bf16.msra.mxu0 %v1251_v35 }
  0x42   : > { %823 = vmatpush1.bf16.msra.mxu1 %v1252_v36  ;;  %771 = vmatprep.subr.bf16.mxu0 %v1253_v37  ;;  %v321_v37 = vld [vmem:[#allocation2 + $0x8] sm:$0xff] }
  0x43   : > { %824 = vmatprep.subr.bf16.mxu1 %v1255_v38 }
  0x45   : > { %772 = vmatpush1.bf16.msra.mxu0 %v1257_v39 }
  0x46   : > { %825 = vmatpush1.bf16.msra.mxu1 %v1258_v40  ;;  %773 = vmatprep.subr.bf16.mxu0 %v1259_v41 }
  0x47   : > { %826 = vmatprep.subr.bf16.mxu1 %v1261_v42  ;;  %v322_v42 = vld [vmem:[#allocation2 + $0x20] sm:$0xff] }
  0x49   : > { %774 = vmatpush2.bf16.msra.mxu0 %v1263_v43 }
  0x4a   : > { %827 = vmatpush2.bf16.msra.mxu1 %v1264_v44  ;;  %775 = vmatprep.subr.bf16.mxu0 %v1265_v45 }
  0x4b   : > { %828 = vmatprep.subr.bf16.mxu1 %v1267_v46 }
  0x4d   : > { %776 = vmatpush2.bf16.msra.mxu0 %v1269_v47  ;;  %v323_v47 = vld [vmem:[#allocation2 + $0x28] sm:$0xff] }
  0x4e   : > { %829 = vmatpush2.bf16.msra.mxu1 %v1270_v48  ;;  %777 = vmatprep.subr.bf16.mxu0 %v1271_v49 }
  0x4f   : > { %830 = vmatprep.subr.bf16.mxu1 %v1273_v50 }
  0x51   : > { %778 = vmatpush2.bf16.msra.mxu0 %v1275_v51 }
  0x52   : > { %831 = vmatpush2.bf16.msra.mxu1 %v1276_v52  ;;  %779 = vmatprep.subr.bf16.mxu0 %v1277_v53  ;;  %v324_v52 = vld [vmem:[#allocation2 + $0x38] sm:$0xff] }
  0x53   : > { %832 = vmatprep.subr.bf16.mxu1 %v1279_v54 }
  0x55   : > { %780 = vmatpush2.bf16.msra.mxu0 %v1281_v55 }
  0x56   : > { %833 = vmatpush2.bf16.msra.mxu1 %v1282_v56  ;;  %781 = vmatprep.subr.bf16.mxu0 %v1283_v57 }
  0x57   : > { %834 = vmatprep.subr.bf16.mxu1 %v1285_v59 }
  0x59   : > { %782 = vmatpush2.bf16.msra.mxu0 %v1287_v61 }
  0x5a   : > { %835 = vmatpush2.bf16.msra.mxu1 %v1288_v62  ;;  %783 = vmatprep.subr.bf16.mxu0 %v1289_v63 }
  0x5b   : > { %836 = vmatprep.subr.bf16.mxu1 %v1291_v0 }
  0x5d   : > { %784 = vmatpush2.bf16.msra.mxu0 %v1293_v1 }
  0x5e   : > { %837 = vmatpush2.bf16.msra.mxu1 %v1294_v2  ;;  %785 = vmatprep.subr.bf16.mxu0 %v1295_v3 }
  0x5f   : > { %838 = vmatprep.subr.bf16.mxu1 %v1297_v4 }
  0x61   : > { %786 = vmatpush2.bf16.msra.mxu0 %v1299_v5 }
  0x62   : > { %839 = vmatpush2.bf16.msra.mxu1 %v1300_v6  ;;  %787 = vmatprep.subr.bf16.mxu0 %v1301_v7 }
  0x63   : > { %840 = vmatprep.subr.bf16.mxu1 %v1303_v8 }
  0x65   : > { %788 = vmatpush2.bf16.msra.mxu0 %v1305_v9 }
  0x66   : > { %841 = vmatpush2.bf16.msra.mxu1 %v1306_v10 }
  0x68   : > { %790 = vmatmul.mubr.bf16.vlgmr.msra.gmra.mxu0 %v1307_v11 }
  0x69   : > { %843 = vmatmul.mubr.bf16.vlgmr.msra.gmra.mxu1 %v1310_v12  ;;  %799 = vmatprep.mubr.bf16.mxu0 %v1313_v13 }
  0x6a   : > { %852 = vmatprep.mubr.bf16.mxu1 %v1315_v14 }
  0x70   : > { %800 = vmatmul.mubr.bf16.gmra.mxu0 %v1317_v15 }
  0x71   : > { %853 = vmatmul.mubr.bf16.gmra.mxu1 %v1318_v16 }
 0x128   : > { %v791_v17 = vpop.f32.mrf.mxu0 }
 0x129   : > { %v844_v19 = vpop.f32.mrf.mxu1 }
 0x12a   : > { %v845_v20 = vadd.f32 %v844_v19, %v791_v17  ;;  %v793_v21 = vpop.f32.mrf.mxu0 }
 0x12b   : > { %v846_v23 = vpop.f32.mrf.mxu1 }
 0x12c   : > { %v863_v24 = vadd.f32 %v845_v20, %v317_v18  ;;  %v847_v25 = vadd.f32 %v846_v23, %v793_v21  ;;  %v795_v26 = vpop.f32.mrf.mxu0 }
 0x12d   : > { %v848_v28 = vpop.f32.mrf.mxu1 }
 0x12e   : > { %871 = vst [vmem:[#allocation2 + $0x30] sm:$0xff] %v863_v24  ;;  %v864_v29 = vadd.f32 %v847_v25, %v318_v22  ;;  %v849_v30 = vadd.f32 %v848_v28, %v795_v26  ;;  %v797_v31 = vpop.f32.mrf.mxu0 }
 0x12f   : > { %v850_v33 = vpop.f32.mrf.mxu1 }
 0x130   : > { %872 = vst [vmem:[#allocation2] sm:$0xff] %v864_v29  ;;  %v865_v34 = vadd.f32 %v849_v30, %v319_v27  ;;  %v851_v35 = vadd.f32 %v850_v33, %v797_v31  ;;  %v801_v36 = vpop.f32.mrf.mxu0 }
 0x131   : > { %v854_v38 = vpop.f32.mrf.mxu1 }
 0x132   : > { %873 = vst [vmem:[#allocation2 + $0x18] sm:$0xff] %v865_v34  ;;  %v866_v39 = vadd.f32 %v851_v35, %v320_v32  ;;  %v855_v40 = vadd.f32 %v854_v38, %v801_v36  ;;  %v803_v41 = vpop.f32.mrf.mxu0 }
 0x133   : > { %v856_v43 = vpop.f32.mrf.mxu1 }
 0x134   : > { %874 = vst [vmem:[#allocation2 + $0x10] sm:$0xff] %v866_v39  ;;  %v867_v44 = vadd.f32 %v855_v40, %v321_v37  ;;  %v857_v45 = vadd.f32 %v856_v43, %v803_v41  ;;  %v805_v46 = vpop.f32.mrf.mxu0 }
 0x135   : > { %v858_v48 = vpop.f32.mrf.mxu1 }
 0x136   : > { %875 = vst [vmem:[#allocation2 + $0x8] sm:$0xff] %v867_v44  ;;  %v868_v49 = vadd.f32 %v857_v45, %v322_v42  ;;  %v859_v50 = vadd.f32 %v858_v48, %v805_v46  ;;  %v807_v51 = vpop.f32.mrf.mxu0 }
 0x137   : > { %v860_v53 = vpop.f32.mrf.mxu1 }
 0x138   : > { %876 = vst [vmem:[#allocation2 + $0x20] sm:$0xff] %v868_v49  ;;  %v869_v54 = vadd.f32 %v859_v50, %v323_v47  ;;  %v861_v55 = vadd.f32 %v860_v53, %v807_v51  ;;  %882 = sbr.rel (%p1155_p11) target bundleno = 333 (0x14d), region = 63 }
 0x13a   : > { %877 = vst [vmem:[#allocation2 + $0x28] sm:$0xff] %v869_v54  ;;  %v870_v56 = vadd.f32 %v861_v55, %v324_v52 }
 0x13c   : > { %878 = vst [vmem:[#allocation2 + $0x38] sm:$0xff] %v870_v56 }
 0x13d   : > { %v893_v57 = vlaneseq  ;;  %v891_v59 = vld [vmem:[%s1540_s2] sm:$0x3]  ;;  %v883_v60 = vld [vmem:[#allocation2 + $0x30] sm:$0xff]  ;;  %v885_v0 = vld [vmem:[#allocation2 + $0x18] sm:$0xff] }
 0x13e   : > { %v884_v61 = vld [vmem:[#allocation2] sm:$0xff]  ;;  %v886_v1 = vld [vmem:[#allocation2 + $0x10] sm:$0xff]  ;;  %v887_v2 = vld [vmem:[#allocation2 + $0x8] sm:$0xff] }
 0x13f   : > { %v894_v58 = vshrl.u32 %v893_v57, 7  ;;  %v888_v5 = vld [vmem:[#allocation2 + $0x20] sm:$0xff] }
 0x141   : > { %v895_v62 = vsub.s32 0, %v894_v58  ;;  %v899_v63 = vsub.s32 1, %v894_v58  ;;  %v889_v6 = vld [vmem:[#allocation2 + $0x28] sm:$0xff] }
 0x143   : > { %v896_v3 = vrot.slane %v891_v59, %v895_v62  ;;  %v900_v4 = vrot.slane %v891_v59, %v899_v63  ;;  %v890_v7 = vld [vmem:[#allocation2 + $0x38] sm:$0xff] }
 0x145   : > { %v903_v8 = vadd.f32 %v896_v3, %v883_v60  ;;  %v904_v9 = vadd.f32 %v900_v4, %v884_v61  ;;  %v905_v10 = vadd.f32 %v896_v3, %v885_v0  ;;  %v906_v11 = vadd.f32 %v900_v4, %v886_v1 }
 0x146   : > { %v907_v12 = vadd.f32 %v896_v3, %v887_v2  ;;  %v908_v13 = vadd.f32 %v900_v4, %v888_v5  ;;  %v909_v14 = vadd.f32 %v896_v3, %v889_v6  ;;  %v910_v15 = vadd.f32 %v900_v4, %v890_v7 }
 0x147   : > { %v911_v16 = vmax.f32 %v903_v8, 0.0  ;;  %v912_v17 = vmax.f32 %v904_v9, 0.0  ;;  %v913_v18 = vmax.f32 %v905_v10, 0.0  ;;  %v914_v19 = vmax.f32 %v906_v11, 0.0 }
 0x148   : > { %v915_v20 = vmax.f32 %v907_v12, 0.0  ;;  %v916_v21 = vmax.f32 %v908_v13, 0.0  ;;  %v917_v22 = vmax.f32 %v909_v14, 0.0  ;;  %v918_v23 = vmax.f32 %v910_v15, 0.0 }
 0x149   : > { %v1166_v24 = vpack.c.bf16 %v912_v17, %v911_v16  ;;  %v1167_v25 = vpack.c.bf16 %v914_v19, %v913_v18 }
 0x14a   : > { %v1168_v26 = vpack.c.bf16 %v916_v21, %v915_v20  ;;  %v1169_v27 = vpack.c.bf16 %v918_v23, %v917_v22 }
 0x14b   : > { %943 = vst [vmem:[%s1541_s3] sm:$0xff] %v1166_v24  ;;  %944 = vst [vmem:[%s1541_s3 + $0x8] sm:$0xff] %v1167_v25 }
 0x14c   : > { %945 = vst [vmem:[%s1541_s3 + $0x10] sm:$0xff] %v1168_v26  ;;  %946 = vst [vmem:[%s1541_s3 + $0x18] sm:$0xff] %v1169_v27 }
 0x14d PF: > { %s13_s16 = sadd.s32 1, %s1357_s16   ;;  %s1542_s12 = smov %s1345_s13 }
 0x14e   : > { %p10_p12 = scmp.ge.s32.totalorder %s13_s16, 6   ;;  %s1543_s13 = smov %s1415_s20 }
 0x14f   : > { %s1544_s14 = smov %s1353_s15  ;;  %s1545_s15 = smov %s1547_s17 }
 0x150   :  { %12 = sbr.rel (!%p10_p12) target bundleno = 3 (0x3), region = 104 }

// kernel: _lambda_.33
= control target key start
LH: loop header
LB: loop body
LE: loop exit
PB: predicated region body
PF: predicated region fallthrough
CT: control target
= control target key end

     0   :  { %s1351_s15 = smov 0   ;;  %s1353_s16 = smov 0   ;;  %s1562_s0 = inlined_call_operand.vmem [shape: bf16[32,256], index: 0, kind: input, shape index: {}]   ;;  %s1563_s1 = inlined_call_operand.vmem [shape: bf16[256,512], index: 1, kind: input, shape index: {}]   ;;  %s1564_s2 = inlined_call_operand.vmem [shape: f32[1,512], index: 2, kind: input, shape index: {}]   ;;  %s1565_s3 = inlined_call_operand.vmem [shape: bf16[32,512], index: 3, kind: input, shape index: {}]   ;;  %s1566_s4 = inlined_call_operand.vmem [shape: bf16[32,512], index: 4, kind: output, shape index: {}]  }
   0x1   :  { %s1355_s17 = smov 0   ;;  %s1357_s18 = smov 0  }
   0x2   :  { %s1359_s19 = smov 0  }
   0x3 LB: > { %s29_s20 = sadd.s32 1, %s1320_s18  ;;  %s1092_s21 = sadd.s32 4294967295, %s1324_s19   ;;  %s1324_s19 = sphi %s1359_s19, %s14_s19   ;;  %s1320_s18 = sphi %s1357_s18, %s1572_s18   ;;  %s1316_s17 = sphi %s1355_s17, %s1571_s17   ;;  %s1312_s16 = sphi %s1353_s16, %s1570_s16   ;;  %s1308_s15 = sphi %s1351_s15, %s1569_s15  }
   0x4   : > { %p31_p0 = scmp.ge.s32.totalorder %s29_s20, 2  ;;  %p77_p1 = scmp.ne.s32.totalorder %s1312_s16, %s1308_s15 }
   0x5   : > { %p78_p2 = scmp.eq.s32.totalorder %s1324_s19, 0  ;;  %p163_p4 = scmp.eq.s32.totalorder %s1092_s21, 1 }
   0x6   : > { %s1574_s20 = smov (%p31_p0, %s29_s20), 0  ;;  %s70_s24 = sadd.s32 1, %s1312_s16 }
   0x7   : > { %p1383_p3 = por %p78_p2, %p77_p1  ;;  %s66_s23 = ssub.s32 %s1320_s18, %s1574_s20 }
   0x8   : > { %p68_p5 = scmp.eq.s32.totalorder %s66_s23, 0  ;;  %p1390_p6 = por %p163_p4, %p77_p1 }
   0x9   : > { %p1096_p7 = scmp.ge.s32.totalorder %s1324_s19, 2 }
   0xa   : > { %s1395_s26 = scalar_select %p68_p5, %s1312_s16, %s70_s24  }
   0xb   : > { %200 = sbr.rel (%p1096_p7) target bundleno = 42 (0x2a), region = 20 }
  0x10   : > { %203 = sbr.rel (!%p1383_p3) target bundleno = 36 (0x24), region = 24  ;;  %s205_s27 = sand.u32 (%p1383_p3), 1, %s1312_s16  }
  0x11   : > { %s1153_s28 = sshll.u32 (%p1383_p3), %s1320_s18, 3  ;;  %s1097_s29 = sshll.u32 (%p1383_p3), %s205_s27, 8 }
  0x12   : > { %s1405_s6 = scalar_lea.vmem (%p1383_p3), %s1563_s1, %s1153_s28  ;;  %s1410_s7 = scalar_lea.vmem (%p1383_p3), [#allocation3], %s1097_s29 }
  0x13   : > { %v304_v0 = vld [vmem:[%s1405_s6] sm:$0xff] (%p1383_p3)  ;;  %v306_v1 = vld [vmem:[%s1405_s6 + $0x10] sm:$0xff] (%p1383_p3) }
  0x14   : > { %v308_v2 = vld [vmem:[%s1405_s6 + $0x20] sm:$0xff] (%p1383_p3)  ;;  %305 = vst [vmem:[%s1410_s7] sm:$0xff] (%p1383_p3), %v304_v0  ;;  %307 = vst [vmem:[%s1410_s7 + $0x8] sm:$0xff] (%p1383_p3), %v306_v1  ;;  %v310_v3 = vld [vmem:[%s1405_s6 + $0x30] sm:$0xff] (%p1383_p3) }
  0x15   : > { %309 = vst [vmem:[%s1410_s7 + $0x10] sm:$0xff] %v308_v2  ;;  %v312_v4 = vld [vmem:[%s1405_s6 + $0x40] sm:$0xff]  ;;  %v314_v5 = vld [vmem:[%s1405_s6 + $0x50] sm:$0xff]  ;;  %311 = vst [vmem:[%s1410_s7 + $0x18] sm:$0xff] %v310_v3 }
  0x16   : > { %313 = vst [vmem:[%s1410_s7 + $0x20] sm:$0xff] %v312_v4  ;;  %315 = vst [vmem:[%s1410_s7 + $0x28] sm:$0xff] %v314_v5  ;;  %v316_v6 = vld [vmem:[%s1405_s6 + $0x60] sm:$0xff]  ;;  %v318_v7 = vld [vmem:[%s1405_s6 + $0x70] sm:$0xff] }
  0x17   : > { %v320_v8 = vld [vmem:[%s1405_s6 + $0x80] sm:$0xff]  ;;  %317 = vst [vmem:[%s1410_s7 + $0x30] sm:$0xff] %v316_v6  ;;  %319 = vst [vmem:[%s1410_s7 + $0x38] sm:$0xff] %v318_v7  ;;  %v322_v9 = vld [vmem:[%s1405_s6 + $0x90] sm:$0xff] }
  0x18   : > { %321 = vst [vmem:[%s1410_s7 + $0x40] sm:$0xff] %v320_v8  ;;  %v324_v10 = vld [vmem:[%s1405_s6 + $0xa0] sm:$0xff]  ;;  %v326_v11 = vld [vmem:[%s1405_s6 + $0xb0] sm:$0xff]  ;;  %323 = vst [vmem:[%s1410_s7 + $0x48] sm:$0xff] %v322_v9 }
  0x19   : > { %325 = vst [vmem:[%s1410_s7 + $0x50] sm:$0xff] %v324_v10  ;;  %327 = vst [vmem:[%s1410_s7 + $0x58] sm:$0xff] %v326_v11  ;;  %v328_v12 = vld [vmem:[%s1405_s6 + $0xc0] sm:$0xff]  ;;  %v330_v13 = vld [vmem:[%s1405_s6 + $0xd0] sm:$0xff] }
  0x1a   : > { %v332_v14 = vld [vmem:[%s1405_s6 + $0xe0] sm:$0xff]  ;;  %329 = vst [vmem:[%s1410_s7 + $0x60] sm:$0xff] %v328_v12  ;;  %331 = vst [vmem:[%s1410_s7 + $0x68] sm:$0xff] %v330_v13  ;;  %v334_v15 = vld [vmem:[%s1405_s6 + $0xf0] sm:$0xff] }
  0x1b   : > { %333 = vst [vmem:[%s1410_s7 + $0x70] sm:$0xff] %v332_v14  ;;  %v336_v16 = vld [vmem:[%s1405_s6 + $0x100] sm:$0xff]  ;;  %v338_v17 = vld [vmem:[%s1405_s6 + $0x110] sm:$0xff]  ;;  %335 = vst [vmem:[%s1410_s7 + $0x78] sm:$0xff] %v334_v15 }
  0x1c   : > { %337 = vst [vmem:[%s1410_s7 + $0x80] sm:$0xff] %v336_v16  ;;  %339 = vst [vmem:[%s1410_s7 + $0x88] sm:$0xff] %v338_v17  ;;  %v340_v18 = vld [vmem:[%s1405_s6 + $0x120] sm:$0xff]  ;;  %v342_v19 = vld [vmem:[%s1405_s6 + $0x130] sm:$0xff] }
  0x1d   : > { %v344_v20 = vld [vmem:[%s1405_s6 + $0x140] sm:$0xff]  ;;  %341 = vst [vmem:[%s1410_s7 + $0x90] sm:$0xff] %v340_v18  ;;  %343 = vst [vmem:[%s1410_s7 + $0x98] sm:$0xff] %v342_v19  ;;  %v346_v21 = vld [vmem:[%s1405_s6 + $0x150] sm:$0xff] }
  0x1e   : > { %345 = vst [vmem:[%s1410_s7 + $0xa0] sm:$0xff] %v344_v20  ;;  %v348_v22 = vld [vmem:[%s1405_s6 + $0x160] sm:$0xff]  ;;  %v350_v23 = vld [vmem:[%s1405_s6 + $0x170] sm:$0xff]  ;;  %347 = vst [vmem:[%s1410_s7 + $0xa8] sm:$0xff] %v346_v21 }
  0x1f   : > { %349 = vst [vmem:[%s1410_s7 + $0xb0] sm:$0xff] %v348_v22  ;;  %351 = vst [vmem:[%s1410_s7 + $0xb8] sm:$0xff] %v350_v23  ;;  %v352_v24 = vld [vmem:[%s1405_s6 + $0x180] sm:$0xff]  ;;  %v354_v25 = vld [vmem:[%s1405_s6 + $0x190] sm:$0xff] }
  0x20   : > { %v356_v26 = vld [vmem:[%s1405_s6 + $0x1a0] sm:$0xff]  ;;  %353 = vst [vmem:[%s1410_s7 + $0xc0] sm:$0xff] %v352_v24  ;;  %355 = vst [vmem:[%s1410_s7 + $0xc8] sm:$0xff] %v354_v25  ;;  %v358_v27 = vld [vmem:[%s1405_s6 + $0x1b0] sm:$0xff] }
  0x21   : > { %357 = vst [vmem:[%s1410_s7 + $0xd0] sm:$0xff] %v356_v26  ;;  %v360_v28 = vld [vmem:[%s1405_s6 + $0x1c0] sm:$0xff]  ;;  %v362_v29 = vld [vmem:[%s1405_s6 + $0x1d0] sm:$0xff]  ;;  %359 = vst [vmem:[%s1410_s7 + $0xd8] sm:$0xff] %v358_v27 }
  0x22   : > { %361 = vst [vmem:[%s1410_s7 + $0xe0] sm:$0xff] %v360_v28  ;;  %363 = vst [vmem:[%s1410_s7 + $0xe8] sm:$0xff] %v362_v29  ;;  %v364_v30 = vld [vmem:[%s1405_s6 + $0x1e0] sm:$0xff]  ;;  %v366_v31 = vld [vmem:[%s1405_s6 + $0x1f0] sm:$0xff] }
  0x23   : > { %365 = vst [vmem:[%s1410_s7 + $0xf0] sm:$0xff] %v364_v30  ;;  %367 = vst [vmem:[%s1410_s7 + $0xf8] sm:$0xff] %v366_v31 }
  0x24 PF: > { %381 = sbr.rel (!%p1383_p3) target bundleno = 42 (0x2a), region = 66  ;;  %s383_s8 = sand.u32 (%p1383_p3), 1, %s1312_s16  }
  0x25   : > { %s1154_s9 = sshll.u32 (%p1383_p3), %s1320_s18, 3  ;;  %s1100_s10 = sshll.u32 (%p1383_p3), %s383_s8, 5 }
  0x26   : > { %s391_s13 = scalar_lea.vmem (%p1383_p3), %s1565_s3, %s1154_s9  ;;  %s385_s14 = scalar_lea.vmem (%p1383_p3), [#allocation4], %s1100_s10 }
  0x27   : > { %v426_v32 = vld [vmem:[%s391_s13] sm:$0xff] (%p1383_p3)  ;;  %v428_v33 = vld [vmem:[%s391_s13 + $0x10] sm:$0xff] (%p1383_p3) }
  0x28   : > { %v430_v34 = vld [vmem:[%s391_s13 + $0x20] sm:$0xff] (%p1383_p3)  ;;  %427 = vst [vmem:[%s385_s14] sm:$0xff] (%p1383_p3), %v426_v32  ;;  %429 = vst [vmem:[%s385_s14 + $0x8] sm:$0xff] (%p1383_p3), %v428_v33  ;;  %v432_v35 = vld [vmem:[%s391_s13 + $0x30] sm:$0xff] (%p1383_p3) }
  0x29   : > { %431 = vst [vmem:[%s385_s14 + $0x10] sm:$0xff] %v430_v34  ;;  %433 = vst [vmem:[%s385_s14 + $0x18] sm:$0xff] %v432_v35 }
  0x2a PF: > { %p1103_p8 = scmp.ge.s32.totalorder %s1324_s19, 1  ;;  %p438_p9 = scmp.lt.s32.totalorder %s1324_s19, 3 }
  0x2c   : > { %p439_p10 = pnand %p1103_p8, %p438_p9 }
  0x2d   : > { %s445_s21 = sand.u32 (!%p439_p10), 1, %s1308_s15   ;;  %s1107_s8 = sshll.u32 (!%p439_p10), %s1316_s17, 1 }
  0x2e   : > { %442 = sbr.rel (%p439_p10) target bundleno = 333 (0x14d), region = 104  ;;  %s1104_s22 = sshll.u32 (!%p439_p10), %s445_s21, 8 }
  0x2f   : > { %s1491_s29 = scalar_lea.vmem (!%p439_p10), [#allocation3], %s1104_s22  ;;  %p509_p11 = scmp.lt.s32.totalorder (!%p439_p10), %s1107_s8, 3 }
  0x30   : > { %s1534_s9 = sshll.u32 (!%p439_p10), %s445_s21, 5 }
  0x31   : > { %s454_s13 = scalar_lea.vmem (!%p439_p10), [#allocation4], %s1534_s9  ;;  %s493_s15 = scalar_lea.vmem (!%p439_p10), [#allocation5], %s1534_s9 }
  0x33   : > { %v1282_v36 = vld [vmem:[%s1562_s0 + $0x4] ss:$8 sps:$4 sm:$0xff]   ;;  %v1285_v37 = vld [vmem:[%s1562_s0 + $0x14] ss:$8 sps:$4 sm:$0xff]   ;;  %v1234_v39 = vld [vmem:[%s1491_s29 + $0x70] ss:$8 sps:$4 sm:$0xff]   ;;  %v835_v8 = vlaneseq }
  0x34   : > { %v1232_v38 = vld [vmem:[%s1491_s29 + $0x74] ss:$8 sps:$4 sm:$0xff]   ;;  %785 = vmatprep.mubr.bf16.mxu0 %v1282_v36  ;;  %795 = vmatprep.mubr.bf16.mxu1 %v1285_v37  ;;  %v1235_v40 = vld [vmem:[%s1491_s29 + $0x64] ss:$8 sps:$4 sm:$0xff]   ;;  %v1237_v41 = vld [vmem:[%s1491_s29 + $0x60] ss:$8 sps:$4 sm:$0xff]  }
  0x35   : > { %753 = vmatprep.subr.bf16.mxu0 %v1232_v38  ;;  %1160 = vmatprep.subr.bf16.mxu1 %v1232_v38  ;;  %v1238_v42 = vld [vmem:[%s1491_s29 + $0x54] ss:$8 sps:$4 sm:$0xff]   ;;  %v1240_v43 = vld [vmem:[%s1491_s29 + $0x50] ss:$8 sps:$4 sm:$0xff]   ;;  %v1241_v44 = vld [vmem:[%s1491_s29 + $0x44] ss:$8 sps:$4 sm:$0xff]  }
  0x36   : > { %754 = vmatpush1.bf16.msra.mxu0 %v1234_v39  ;;  %1176 = vmatpush1.bf16.msra.mxu1 %v1234_v39  ;;  %v1243_v45 = vld [vmem:[%s1491_s29 + $0x40] ss:$8 sps:$4 sm:$0xff]   ;;  %v1244_v46 = vld [vmem:[%s1491_s29 + $0x34] ss:$8 sps:$4 sm:$0xff]   ;;  %v1246_v47 = vld [vmem:[%s1491_s29 + $0x30] ss:$8 sps:$4 sm:$0xff]  }
  0x37   : > { %755 = vmatprep.subr.bf16.mxu0 %v1235_v40  ;;  %1161 = vmatprep.subr.bf16.mxu1 %v1235_v40  ;;  %v1247_v48 = vld [vmem:[%s1491_s29 + $0x24] ss:$8 sps:$4 sm:$0xff]   ;;  %v1249_v49 = vld [vmem:[%s1491_s29 + $0x20] ss:$8 sps:$4 sm:$0xff]   ;;  %v1250_v50 = vld [vmem:[%s1491_s29 + $0x14] ss:$8 sps:$4 sm:$0xff]  }
  0x38   : > { %v1252_v51 = vld [vmem:[%s1491_s29 + $0x10] ss:$8 sps:$4 sm:$0xff]   ;;  %v1253_v52 = vld [vmem:[%s1491_s29 + $0x4] ss:$8 sps:$4 sm:$0xff]   ;;  %v1255_v53 = vld [vmem:[%s1491_s29] ss:$8 sps:$4 sm:$0xff]  }
  0x39   : > { %v1256_v54 = vld [vmem:[%s1491_s29 + $0xf4] ss:$8 sps:$4 sm:$0xff]   ;;  %v1258_v55 = vld [vmem:[%s1491_s29 + $0xf0] ss:$8 sps:$4 sm:$0xff]   ;;  %v1259_v56 = vld [vmem:[%s1491_s29 + $0xe4] ss:$8 sps:$4 sm:$0xff]  }
  0x3a   : > { %756 = vmatpush1.bf16.msra.mxu0 %v1237_v41  ;;  %1177 = vmatpush1.bf16.msra.mxu1 %v1237_v41  ;;  %v1261_v57 = vld [vmem:[%s1491_s29 + $0xe0] ss:$8 sps:$4 sm:$0xff]   ;;  %v1262_v58 = vld [vmem:[%s1491_s29 + $0xd4] ss:$8 sps:$4 sm:$0xff]   ;;  %v1264_v59 = vld [vmem:[%s1491_s29 + $0xd0] ss:$8 sps:$4 sm:$0xff]  }
  0x3b   : > { %757 = vmatprep.subr.bf16.mxu0 %v1238_v42  ;;  %1162 = vmatprep.subr.bf16.mxu1 %v1238_v42  ;;  %v1265_v60 = vld [vmem:[%s1491_s29 + $0xc4] ss:$8 sps:$4 sm:$0xff]   ;;  %v1267_v61 = vld [vmem:[%s1491_s29 + $0xc0] ss:$8 sps:$4 sm:$0xff]   ;;  %v1268_v62 = vld [vmem:[%s1491_s29 + $0xb4] ss:$8 sps:$4 sm:$0xff]  }
  0x3c   : > { %v1270_v63 = vld [vmem:[%s1491_s29 + $0xb0] ss:$8 sps:$4 sm:$0xff]   ;;  %v1271_v0 = vld [vmem:[%s1491_s29 + $0xa4] ss:$8 sps:$4 sm:$0xff]   ;;  %v1273_v1 = vld [vmem:[%s1491_s29 + $0xa0] ss:$8 sps:$4 sm:$0xff]  }
  0x3d   : > { %v1274_v2 = vld [vmem:[%s1491_s29 + $0x94] ss:$8 sps:$4 sm:$0xff]   ;;  %v1276_v3 = vld [vmem:[%s1491_s29 + $0x90] ss:$8 sps:$4 sm:$0xff]   ;;  %v1277_v4 = vld [vmem:[%s1491_s29 + $0x84] ss:$8 sps:$4 sm:$0xff]  }
  0x3e   : > { %758 = vmatpush1.bf16.msra.mxu0 %v1240_v43  ;;  %1178 = vmatpush1.bf16.msra.mxu1 %v1240_v43  ;;  %v1279_v5 = vld [vmem:[%s1491_s29 + $0x80] ss:$8 sps:$4 sm:$0xff]   ;;  %v1283_v7 = vld [vmem:[%s1562_s0 + $0x10] ss:$8 sps:$4 sm:$0xff]   ;;  %s1576_s8 = smov (!%p509_p11, %s1107_s8), 3  ;;  %v836_v9 = vshrl.u32 %v835_v8, 7 }
  0x3f   : > { %759 = vmatprep.subr.bf16.mxu0 %v1241_v44  ;;  %1163 = vmatprep.subr.bf16.mxu1 %v1241_v44  ;;  %v1280_v6 = vld [vmem:[%s1562_s0] ss:$8 sps:$4 sm:$0xff]   ;;  %s511_s12 = scalar_lea.vmem %s1564_s2, %s1576_s8  ;;  %v855_v14 = vld [vmem:[%s454_s13 + $0x10] sm:$0xff]  ;;  %v856_v26 = vld [vmem:[%s454_s13 + $0x18] sm:$0xff]  ;;  %s1159_s14 = sshll.u32 (%p1390_p6), %s1316_s17, 3 }
  0x40   : > { %v837_v10 = vsub.s32 0, %v836_v9  ;;  %v833_v11 = vld [vmem:[%s511_s12] sm:$0x3]  ;;  %v841_v12 = vsub.s32 1, %v836_v9  ;;  %v861_v17 = vunpack.c.l.bf16 %v855_v14  ;;  %v862_v24 = vunpack.c.h.bf16 %v855_v14  ;;  %v854_v25 = vld [vmem:[%s454_s13 + $0x8] sm:$0xff]  ;;  %s921_s23 = scalar_lea.vmem (%p1390_p6), %s1566_s4, %s1159_s14 }
  0x41   : > { %v853_v13 = vld [vmem:[%s454_s13] sm:$0xff]  ;;  %v859_v34 = vunpack.c.l.bf16 %v854_v25  ;;  %v863_v36 = vunpack.c.l.bf16 %v856_v26  ;;  %v860_v39 = vunpack.c.h.bf16 %v854_v25  ;;  %v864_v40 = vunpack.c.h.bf16 %v856_v26 }
  0x42   : > { %760 = vmatpush1.bf16.msra.mxu0 %v1243_v45  ;;  %1179 = vmatpush1.bf16.msra.mxu1 %v1243_v45  ;;  %v838_v15 = vrot.slane %v833_v11, %v837_v10  ;;  %v857_v16 = vunpack.c.l.bf16 %v853_v13  ;;  %v842_v18 = vrot.slane %v833_v11, %v841_v12  ;;  %v858_v23 = vunpack.c.h.bf16 %v853_v13 }
  0x43   : > { %761 = vmatprep.subr.bf16.mxu0 %v1244_v46  ;;  %1164 = vmatprep.subr.bf16.mxu1 %v1244_v46 }
  0x46   : > { %762 = vmatpush1.bf16.msra.mxu0 %v1246_v47  ;;  %1180 = vmatpush1.bf16.msra.mxu1 %v1246_v47 }
  0x47   : > { %763 = vmatprep.subr.bf16.mxu0 %v1247_v48  ;;  %1165 = vmatprep.subr.bf16.mxu1 %v1247_v48 }
  0x4a   : > { %764 = vmatpush1.bf16.msra.mxu0 %v1249_v49  ;;  %1181 = vmatpush1.bf16.msra.mxu1 %v1249_v49 }
  0x4b   : > { %765 = vmatprep.subr.bf16.mxu0 %v1250_v50  ;;  %1166 = vmatprep.subr.bf16.mxu1 %v1250_v50 }
  0x4e   : > { %766 = vmatpush1.bf16.msra.mxu0 %v1252_v51  ;;  %1182 = vmatpush1.bf16.msra.mxu1 %v1252_v51 }
  0x4f   : > { %767 = vmatprep.subr.bf16.mxu0 %v1253_v52  ;;  %1167 = vmatprep.subr.bf16.mxu1 %v1253_v52 }
  0x52   : > { %768 = vmatpush1.bf16.msra.mxu0 %v1255_v53  ;;  %1183 = vmatpush1.bf16.msra.mxu1 %v1255_v53 }
  0x53   : > { %769 = vmatprep.subr.bf16.mxu0 %v1256_v54  ;;  %1168 = vmatprep.subr.bf16.mxu1 %v1256_v54 }
  0x56   : > { %770 = vmatpush2.bf16.msra.mxu0 %v1258_v55  ;;  %1184 = vmatpush2.bf16.msra.mxu1 %v1258_v55 }
  0x57   : > { %771 = vmatprep.subr.bf16.mxu0 %v1259_v56  ;;  %1169 = vmatprep.subr.bf16.mxu1 %v1259_v56 }
  0x5a   : > { %772 = vmatpush2.bf16.msra.mxu0 %v1261_v57  ;;  %1185 = vmatpush2.bf16.msra.mxu1 %v1261_v57 }
  0x5b   : > { %773 = vmatprep.subr.bf16.mxu0 %v1262_v58  ;;  %1170 = vmatprep.subr.bf16.mxu1 %v1262_v58 }
  0x5e   : > { %774 = vmatpush2.bf16.msra.mxu0 %v1264_v59  ;;  %1186 = vmatpush2.bf16.msra.mxu1 %v1264_v59 }
  0x5f   : > { %775 = vmatprep.subr.bf16.mxu0 %v1265_v60  ;;  %1171 = vmatprep.subr.bf16.mxu1 %v1265_v60 }
  0x62   : > { %776 = vmatpush2.bf16.msra.mxu0 %v1267_v61  ;;  %1187 = vmatpush2.bf16.msra.mxu1 %v1267_v61 }
  0x63   : > { %777 = vmatprep.subr.bf16.mxu0 %v1268_v62  ;;  %1172 = vmatprep.subr.bf16.mxu1 %v1268_v62 }
  0x66   : > { %778 = vmatpush2.bf16.msra.mxu0 %v1270_v63  ;;  %1188 = vmatpush2.bf16.msra.mxu1 %v1270_v63 }
  0x67   : > { %779 = vmatprep.subr.bf16.mxu0 %v1271_v0  ;;  %1173 = vmatprep.subr.bf16.mxu1 %v1271_v0 }
  0x6a   : > { %780 = vmatpush2.bf16.msra.mxu0 %v1273_v1  ;;  %1189 = vmatpush2.bf16.msra.mxu1 %v1273_v1 }
  0x6b   : > { %781 = vmatprep.subr.bf16.mxu0 %v1274_v2  ;;  %1174 = vmatprep.subr.bf16.mxu1 %v1274_v2 }
  0x6e   : > { %782 = vmatpush2.bf16.msra.mxu0 %v1276_v3  ;;  %1190 = vmatpush2.bf16.msra.mxu1 %v1276_v3 }
  0x6f   : > { %783 = vmatprep.subr.bf16.mxu0 %v1277_v4  ;;  %1175 = vmatprep.subr.bf16.mxu1 %v1277_v4 }
  0x72   : > { %784 = vmatpush2.bf16.msra.mxu0 %v1279_v5  ;;  %1191 = vmatpush2.bf16.msra.mxu1 %v1279_v5 }
  0x75   : > { %786 = vmatmul.mubr.bf16.vlgmr.msra.gmra.mxu0 %v1280_v6  ;;  %796 = vmatmul.mubr.bf16.vlgmr.msra.gmra.mxu1 %v1283_v7 }
 0x135   : > { %v787_v19 = vpop.f32.mrf.mxu0  ;;  %v797_v20 = vpop.f32.mrf.mxu1 }
 0x136   : > { %v845_v21 = vadd.f32 %v838_v15, %v787_v19  ;;  %v849_v22 = vadd.f32 %v838_v15, %v797_v20 }
 0x137   : > { %v789_v27 = vpop.f32.mrf.mxu0  ;;  %v799_v28 = vpop.f32.mrf.mxu1 }
 0x138   : > { %v865_v29 = vadd.f32 %v857_v16, %v845_v21  ;;  %v869_v30 = vadd.f32 %v861_v17, %v849_v22  ;;  %v846_v31 = vadd.f32 %v842_v18, %v789_v27  ;;  %v850_v32 = vadd.f32 %v842_v18, %v799_v28 }
 0x139   : > { %v791_v33 = vpop.f32.mrf.mxu0  ;;  %v801_v35 = vpop.f32.mrf.mxu1 }
 0x13a   : > { %v866_v37 = vadd.f32 %v858_v23, %v846_v31  ;;  %v870_v38 = vadd.f32 %v862_v24, %v850_v32  ;;  %v873_v41 = vmax.f32 %v865_v29, 0.0  ;;  %v877_v42 = vmax.f32 %v869_v30, 0.0 }
 0x13b   : > { %v847_v43 = vadd.f32 %v838_v15, %v791_v33  ;;  %v851_v44 = vadd.f32 %v838_v15, %v801_v35  ;;  %v793_v45 = vpop.f32.mrf.mxu0  ;;  %v803_v46 = vpop.f32.mrf.mxu1 }
 0x13c   : > { %v874_v47 = vmax.f32 %v866_v37, 0.0  ;;  %v878_v48 = vmax.f32 %v870_v38, 0.0  ;;  %v848_v49 = vadd.f32 %v842_v18, %v793_v45  ;;  %v852_v50 = vadd.f32 %v842_v18, %v803_v46 }
 0x13d   : > { %v867_v51 = vadd.f32 %v859_v34, %v847_v43  ;;  %v871_v52 = vadd.f32 %v863_v36, %v851_v44 }
 0x13e   : > { %v1155_v53 = vpack.c.bf16 %v874_v47, %v873_v41  ;;  %v1157_v54 = vpack.c.bf16 %v878_v48, %v877_v42  ;;  %v868_v55 = vadd.f32 %v860_v39, %v848_v49  ;;  %v872_v56 = vadd.f32 %v864_v40, %v852_v50 }
 0x13f   : > { %v875_v57 = vmax.f32 %v867_v51, 0.0  ;;  %v879_v58 = vmax.f32 %v871_v52, 0.0 }
 0x140   : > { %905 = vst [vmem:[%s493_s15] sm:$0xff] %v1155_v53  ;;  %907 = vst [vmem:[%s493_s15 + $0x10] sm:$0xff] %v1157_v54  ;;  %v876_v59 = vmax.f32 %v868_v55, 0.0  ;;  %v880_v60 = vmax.f32 %v872_v56, 0.0  ;;  %915 = sbr.rel (!%p1390_p6) target bundleno = 333 (0x14d), region = 124 }
 0x142   : > { %v1156_v61 = vpack.c.bf16 %v876_v59, %v875_v57  ;;  %v1158_v62 = vpack.c.bf16 %v880_v60, %v879_v58 }
 0x144   : > { %906 = vst [vmem:[%s493_s15 + $0x8] sm:$0xff] %v1156_v61  ;;  %908 = vst [vmem:[%s493_s15 + $0x18] sm:$0xff] %v1158_v62 }
 0x147   : > { %v956_v63 = vld [vmem:[%s493_s15] sm:$0xff]  ;;  %v960_v1 = vld [vmem:[%s493_s15 + $0x10] sm:$0xff] }
 0x148   : > { %957 = vst [vmem:[%s921_s23] sm:$0xff] %v956_v63  ;;  %961 = vst [vmem:[%s921_s23 + $0x20] sm:$0xff] %v960_v1 }
 0x14b   : > { %v958_v0 = vld [vmem:[%s493_s15 + $0x8] sm:$0xff]  ;;  %v962_v2 = vld [vmem:[%s493_s15 + $0x18] sm:$0xff] }
 0x14c   : > { %959 = vst [vmem:[%s921_s23 + $0x10] sm:$0xff] %v958_v0  ;;  %963 = vst [vmem:[%s921_s23 + $0x30] sm:$0xff] %v962_v2 }
 0x14d PF: > { %s14_s19 = sadd.s32 1, %s1324_s19   ;;  %s1569_s15 = smov %s1312_s16 }
 0x14e   : > { %p11_p12 = scmp.ge.s32.totalorder %s14_s19, 4   ;;  %s1570_s16 = smov %s1395_s26 }
 0x14f   : > { %s1571_s17 = smov %s1320_s18  ;;  %s1572_s18 = smov %s1574_s20 }
 0x150   :  { %13 = sbr.rel (!%p11_p12) target bundleno = 3 (0x3), region = 207 }

// kernel: _lambda_.32
= control target key start
LH: loop header
LB: loop body
LE: loop exit
PB: predicated region body
PF: predicated region fallthrough
CT: control target
= control target key end

     0   :  { %s1190_s12 = smov 0   ;;  %s1192_s13 = smov 0   ;;  %s1384_s0 = inlined_call_operand.vmem [shape: bf16[32,256], index: 0, kind: input, shape index: {}]   ;;  %s1385_s1 = inlined_call_operand.vmem [shape: bf16[256,512], index: 1, kind: input, shape index: {}]   ;;  %s1386_s2 = inlined_call_operand.vmem [shape: f32[1,512], index: 2, kind: input, shape index: {}]   ;;  %s1387_s3 = inlined_call_operand.vmem [shape: bf16[32,512], index: 3, kind: output, shape index: {}]  }
   0x1   :  { %s1194_s14 = smov 0   ;;  %s1196_s15 = smov 0  }
   0x2   :  { %s1198_s16 = smov 0  }
   0x3 LB: > { %s28_s17 = sadd.s32 1, %s1164_s15  ;;  %s941_s18 = sadd.s32 4294967295, %s1168_s16   ;;  %s1168_s16 = sphi %s1198_s16, %s13_s16   ;;  %s1164_s15 = sphi %s1196_s15, %s1392_s15   ;;  %s1160_s14 = sphi %s1194_s14, %s1391_s14   ;;  %s1156_s13 = sphi %s1192_s13, %s1390_s13   ;;  %s1152_s12 = sphi %s1190_s12, %s1389_s12  }
   0x4   : > { %p30_p0 = scmp.ge.s32.totalorder %s28_s17, 2  ;;  %p76_p1 = scmp.ne.s32.totalorder %s1156_s13, %s1152_s12 }
   0x5   : > { %p77_p2 = scmp.eq.s32.totalorder %s1168_s16, 0  ;;  %p134_p4 = scmp.eq.s32.totalorder %s941_s18, 1 }
   0x6   : > { %s1394_s17 = smov (%p30_p0, %s28_s17), 0  ;;  %s69_s20 = sadd.s32 1, %s1156_s13 }
   0x7   : > { %p78_p3 = por %p77_p2, %p76_p1  ;;  %s65_s19 = ssub.s32 %s1164_s15, %s1394_s17 }
   0x8   : > { %p67_p5 = scmp.eq.s32.totalorder %s65_s19, 0  ;;  %p1225_p6 = por %p134_p4, %p76_p1 }
   0x9   : > { %p945_p7 = scmp.ge.s32.totalorder %s1168_s16, 2 }
   0xa   : > { %s1230_s22 = scalar_select %p67_p5, %s1156_s13, %s69_s20  }
   0xb   : > { %171 = sbr.rel (%p945_p7) target bundleno = 36 (0x24), region = 20 }
  0x10   : > { %174 = sbr.rel (!%p78_p3) target bundleno = 36 (0x24), region = 24  ;;  %s176_s23 = sand.u32 (%p78_p3), 1, %s1156_s13  }
  0x11   : > { %s998_s24 = sshll.u32 (%p78_p3), %s1164_s15, 3  ;;  %s946_s25 = sshll.u32 (%p78_p3), %s176_s23, 8 }
  0x12   : > { %s1238_s28 = scalar_lea.vmem (%p78_p3), %s1385_s1, %s998_s24  ;;  %s1243_s29 = scalar_lea.vmem (%p78_p3), [#allocation3], %s946_s25 }
  0x13   : > { %v275_v0 = vld [vmem:[%s1238_s28] sm:$0xff] (%p78_p3)  ;;  %v277_v1 = vld [vmem:[%s1238_s28 + $0x10] sm:$0xff] (%p78_p3) }
  0x14   : > { %v279_v2 = vld [vmem:[%s1238_s28 + $0x20] sm:$0xff] (%p78_p3)  ;;  %276 = vst [vmem:[%s1243_s29] sm:$0xff] (%p78_p3), %v275_v0  ;;  %278 = vst [vmem:[%s1243_s29 + $0x8] sm:$0xff] (%p78_p3), %v277_v1  ;;  %v281_v3 = vld [vmem:[%s1238_s28 + $0x30] sm:$0xff] (%p78_p3) }
  0x15   : > { %280 = vst [vmem:[%s1243_s29 + $0x10] sm:$0xff] %v279_v2  ;;  %v283_v4 = vld [vmem:[%s1238_s28 + $0x40] sm:$0xff]  ;;  %v285_v5 = vld [vmem:[%s1238_s28 + $0x50] sm:$0xff]  ;;  %282 = vst [vmem:[%s1243_s29 + $0x18] sm:$0xff] %v281_v3 }
  0x16   : > { %284 = vst [vmem:[%s1243_s29 + $0x20] sm:$0xff] %v283_v4  ;;  %286 = vst [vmem:[%s1243_s29 + $0x28] sm:$0xff] %v285_v5  ;;  %v287_v6 = vld [vmem:[%s1238_s28 + $0x60] sm:$0xff]  ;;  %v289_v7 = vld [vmem:[%s1238_s28 + $0x70] sm:$0xff] }
  0x17   : > { %v291_v8 = vld [vmem:[%s1238_s28 + $0x80] sm:$0xff]  ;;  %288 = vst [vmem:[%s1243_s29 + $0x30] sm:$0xff] %v287_v6  ;;  %290 = vst [vmem:[%s1243_s29 + $0x38] sm:$0xff] %v289_v7  ;;  %v293_v9 = vld [vmem:[%s1238_s28 + $0x90] sm:$0xff] }
  0x18   : > { %292 = vst [vmem:[%s1243_s29 + $0x40] sm:$0xff] %v291_v8  ;;  %v295_v10 = vld [vmem:[%s1238_s28 + $0xa0] sm:$0xff]  ;;  %v297_v11 = vld [vmem:[%s1238_s28 + $0xb0] sm:$0xff]  ;;  %294 = vst [vmem:[%s1243_s29 + $0x48] sm:$0xff] %v293_v9 }
  0x19   : > { %296 = vst [vmem:[%s1243_s29 + $0x50] sm:$0xff] %v295_v10  ;;  %298 = vst [vmem:[%s1243_s29 + $0x58] sm:$0xff] %v297_v11  ;;  %v299_v12 = vld [vmem:[%s1238_s28 + $0xc0] sm:$0xff]  ;;  %v301_v13 = vld [vmem:[%s1238_s28 + $0xd0] sm:$0xff] }
  0x1a   : > { %v303_v14 = vld [vmem:[%s1238_s28 + $0xe0] sm:$0xff]  ;;  %300 = vst [vmem:[%s1243_s29 + $0x60] sm:$0xff] %v299_v12  ;;  %302 = vst [vmem:[%s1243_s29 + $0x68] sm:$0xff] %v301_v13  ;;  %v305_v15 = vld [vmem:[%s1238_s28 + $0xf0] sm:$0xff] }
  0x1b   : > { %304 = vst [vmem:[%s1243_s29 + $0x70] sm:$0xff] %v303_v14  ;;  %v307_v16 = vld [vmem:[%s1238_s28 + $0x100] sm:$0xff]  ;;  %v309_v17 = vld [vmem:[%s1238_s28 + $0x110] sm:$0xff]  ;;  %306 = vst [vmem:[%s1243_s29 + $0x78] sm:$0xff] %v305_v15 }
  0x1c   : > { %308 = vst [vmem:[%s1243_s29 + $0x80] sm:$0xff] %v307_v16  ;;  %310 = vst [vmem:[%s1243_s29 + $0x88] sm:$0xff] %v309_v17  ;;  %v311_v18 = vld [vmem:[%s1238_s28 + $0x120] sm:$0xff]  ;;  %v313_v19 = vld [vmem:[%s1238_s28 + $0x130] sm:$0xff] }
  0x1d   : > { %v315_v20 = vld [vmem:[%s1238_s28 + $0x140] sm:$0xff]  ;;  %312 = vst [vmem:[%s1243_s29 + $0x90] sm:$0xff] %v311_v18  ;;  %314 = vst [vmem:[%s1243_s29 + $0x98] sm:$0xff] %v313_v19  ;;  %v317_v21 = vld [vmem:[%s1238_s28 + $0x150] sm:$0xff] }
  0x1e   : > { %316 = vst [vmem:[%s1243_s29 + $0xa0] sm:$0xff] %v315_v20  ;;  %v319_v22 = vld [vmem:[%s1238_s28 + $0x160] sm:$0xff]  ;;  %v321_v23 = vld [vmem:[%s1238_s28 + $0x170] sm:$0xff]  ;;  %318 = vst [vmem:[%s1243_s29 + $0xa8] sm:$0xff] %v317_v21 }
  0x1f   : > { %320 = vst [vmem:[%s1243_s29 + $0xb0] sm:$0xff] %v319_v22  ;;  %322 = vst [vmem:[%s1243_s29 + $0xb8] sm:$0xff] %v321_v23  ;;  %v323_v24 = vld [vmem:[%s1238_s28 + $0x180] sm:$0xff]  ;;  %v325_v25 = vld [vmem:[%s1238_s28 + $0x190] sm:$0xff] }
  0x20   : > { %v327_v26 = vld [vmem:[%s1238_s28 + $0x1a0] sm:$0xff]  ;;  %324 = vst [vmem:[%s1243_s29 + $0xc0] sm:$0xff] %v323_v24  ;;  %326 = vst [vmem:[%s1243_s29 + $0xc8] sm:$0xff] %v325_v25  ;;  %v329_v27 = vld [vmem:[%s1238_s28 + $0x1b0] sm:$0xff] }
  0x21   : > { %328 = vst [vmem:[%s1243_s29 + $0xd0] sm:$0xff] %v327_v26  ;;  %v331_v28 = vld [vmem:[%s1238_s28 + $0x1c0] sm:$0xff]  ;;  %v333_v29 = vld [vmem:[%s1238_s28 + $0x1d0] sm:$0xff]  ;;  %330 = vst [vmem:[%s1243_s29 + $0xd8] sm:$0xff] %v329_v27 }
  0x22   : > { %332 = vst [vmem:[%s1243_s29 + $0xe0] sm:$0xff] %v331_v28  ;;  %334 = vst [vmem:[%s1243_s29 + $0xe8] sm:$0xff] %v333_v29  ;;  %v335_v30 = vld [vmem:[%s1238_s28 + $0x1e0] sm:$0xff]  ;;  %v337_v31 = vld [vmem:[%s1238_s28 + $0x1f0] sm:$0xff] }
  0x23   : > { %336 = vst [vmem:[%s1243_s29 + $0xf0] sm:$0xff] %v335_v30  ;;  %338 = vst [vmem:[%s1243_s29 + $0xf8] sm:$0xff] %v337_v31 }
  0x24 PF: > { %p949_p8 = scmp.ge.s32.totalorder %s1168_s16, 1  ;;  %p351_p9 = scmp.lt.s32.totalorder %s1168_s16, 3 }
  0x26   : > { %p352_p10 = pnand %p949_p8, %p351_p9 }
  0x27   : > { %s358_s30 = sand.u32 (!%p352_p10), 1, %s1152_s12   ;;  %s952_s20 = sshll.u32 (!%p352_p10), %s1160_s14, 1 }
  0x28   : > { %355 = sbr.rel (%p352_p10) target bundleno = 323 (0x143), region = 66  ;;  %s950_s4 = sshll.u32 (!%p352_p10), %s358_s30, 8 }
  0x29   : > { %s1317_s9 = scalar_lea.vmem (!%p352_p10), [#allocation3], %s950_s4  ;;  %p409_p11 = scmp.lt.s32.totalorder (!%p352_p10), %s952_s20, 3 }
  0x2a   : > { %s951_s26 = sshll.u32 (!%p352_p10), %s358_s30, 5 }
  0x2b   : > { %s393_s27 = scalar_lea.vmem (!%p352_p10), [#allocation4], %s951_s26 }
  0x2d   : > { %v1126_v32 = vld [vmem:[%s1384_s0 + $0x4] ss:$8 sps:$4 sm:$0xff]   ;;  %v1129_v33 = vld [vmem:[%s1384_s0 + $0x14] ss:$8 sps:$4 sm:$0xff]   ;;  %v1078_v35 = vld [vmem:[%s1317_s9 + $0x70] ss:$8 sps:$4 sm:$0xff]   ;;  %v733_v4 = vlaneseq }
  0x2e   : > { %v1076_v34 = vld [vmem:[%s1317_s9 + $0x74] ss:$8 sps:$4 sm:$0xff]   ;;  %683 = vmatprep.mubr.bf16.mxu0 %v1126_v32  ;;  %693 = vmatprep.mubr.bf16.mxu1 %v1129_v33  ;;  %v1079_v36 = vld [vmem:[%s1317_s9 + $0x64] ss:$8 sps:$4 sm:$0xff]   ;;  %v1081_v37 = vld [vmem:[%s1317_s9 + $0x60] ss:$8 sps:$4 sm:$0xff]  }
  0x2f   : > { %651 = vmatprep.subr.bf16.mxu0 %v1076_v34  ;;  %1004 = vmatprep.subr.bf16.mxu1 %v1076_v34  ;;  %v1082_v38 = vld [vmem:[%s1317_s9 + $0x54] ss:$8 sps:$4 sm:$0xff]   ;;  %v1084_v39 = vld [vmem:[%s1317_s9 + $0x50] ss:$8 sps:$4 sm:$0xff]   ;;  %v1085_v40 = vld [vmem:[%s1317_s9 + $0x44] ss:$8 sps:$4 sm:$0xff]  }
  0x30   : > { %652 = vmatpush1.bf16.msra.mxu0 %v1078_v35  ;;  %1020 = vmatpush1.bf16.msra.mxu1 %v1078_v35  ;;  %v1087_v41 = vld [vmem:[%s1317_s9 + $0x40] ss:$8 sps:$4 sm:$0xff]   ;;  %v1088_v42 = vld [vmem:[%s1317_s9 + $0x34] ss:$8 sps:$4 sm:$0xff]   ;;  %v1090_v43 = vld [vmem:[%s1317_s9 + $0x30] ss:$8 sps:$4 sm:$0xff]  }
  0x31   : > { %653 = vmatprep.subr.bf16.mxu0 %v1079_v36  ;;  %1005 = vmatprep.subr.bf16.mxu1 %v1079_v36  ;;  %v1091_v44 = vld [vmem:[%s1317_s9 + $0x24] ss:$8 sps:$4 sm:$0xff]   ;;  %v1093_v45 = vld [vmem:[%s1317_s9 + $0x20] ss:$8 sps:$4 sm:$0xff]   ;;  %v1094_v46 = vld [vmem:[%s1317_s9 + $0x14] ss:$8 sps:$4 sm:$0xff]  }
  0x32   : > { %v1096_v47 = vld [vmem:[%s1317_s9 + $0x10] ss:$8 sps:$4 sm:$0xff]   ;;  %v1097_v48 = vld [vmem:[%s1317_s9 + $0x4] ss:$8 sps:$4 sm:$0xff]   ;;  %v1099_v49 = vld [vmem:[%s1317_s9] ss:$8 sps:$4 sm:$0xff]  }
  0x33   : > { %v1100_v50 = vld [vmem:[%s1317_s9 + $0xf4] ss:$8 sps:$4 sm:$0xff]   ;;  %v1102_v51 = vld [vmem:[%s1317_s9 + $0xf0] ss:$8 sps:$4 sm:$0xff]   ;;  %v1103_v52 = vld [vmem:[%s1317_s9 + $0xe4] ss:$8 sps:$4 sm:$0xff]  }
  0x34   : > { %654 = vmatpush1.bf16.msra.mxu0 %v1081_v37  ;;  %1021 = vmatpush1.bf16.msra.mxu1 %v1081_v37  ;;  %v1105_v53 = vld [vmem:[%s1317_s9 + $0xe0] ss:$8 sps:$4 sm:$0xff]   ;;  %v1106_v54 = vld [vmem:[%s1317_s9 + $0xd4] ss:$8 sps:$4 sm:$0xff]   ;;  %v1108_v55 = vld [vmem:[%s1317_s9 + $0xd0] ss:$8 sps:$4 sm:$0xff]  }
  0x35   : > { %655 = vmatprep.subr.bf16.mxu0 %v1082_v38  ;;  %1006 = vmatprep.subr.bf16.mxu1 %v1082_v38  ;;  %v1109_v56 = vld [vmem:[%s1317_s9 + $0xc4] ss:$8 sps:$4 sm:$0xff]   ;;  %v1111_v57 = vld [vmem:[%s1317_s9 + $0xc0] ss:$8 sps:$4 sm:$0xff]   ;;  %v1112_v58 = vld [vmem:[%s1317_s9 + $0xb4] ss:$8 sps:$4 sm:$0xff]  }
  0x36   : > { %v1114_v59 = vld [vmem:[%s1317_s9 + $0xb0] ss:$8 sps:$4 sm:$0xff]   ;;  %v1115_v60 = vld [vmem:[%s1317_s9 + $0xa4] ss:$8 sps:$4 sm:$0xff]   ;;  %v1117_v61 = vld [vmem:[%s1317_s9 + $0xa0] ss:$8 sps:$4 sm:$0xff]  }
  0x37   : > { %v1118_v62 = vld [vmem:[%s1317_s9 + $0x94] ss:$8 sps:$4 sm:$0xff]   ;;  %v1120_v63 = vld [vmem:[%s1317_s9 + $0x90] ss:$8 sps:$4 sm:$0xff]   ;;  %v1121_v0 = vld [vmem:[%s1317_s9 + $0x84] ss:$8 sps:$4 sm:$0xff]  }
  0x38   : > { %656 = vmatpush1.bf16.msra.mxu0 %v1084_v39  ;;  %1022 = vmatpush1.bf16.msra.mxu1 %v1084_v39  ;;  %v1123_v1 = vld [vmem:[%s1317_s9 + $0x80] ss:$8 sps:$4 sm:$0xff]   ;;  %v1127_v3 = vld [vmem:[%s1384_s0 + $0x10] ss:$8 sps:$4 sm:$0xff]   ;;  %s1396_s20 = smov (!%p409_p11, %s952_s20), 3  ;;  %v734_v5 = vshrl.u32 %v733_v4, 7 }
  0x39   : > { %657 = vmatprep.subr.bf16.mxu0 %v1085_v40  ;;  %1007 = vmatprep.subr.bf16.mxu1 %v1085_v40  ;;  %v1124_v2 = vld [vmem:[%s1384_s0] ss:$8 sps:$4 sm:$0xff]   ;;  %s411_s25 = scalar_lea.vmem %s1386_s2, %s1396_s20  ;;  %s1003_s12 = sshll.u32 (%p1225_p6), %s1160_s14, 3 }
  0x3a   : > { %v735_v6 = vsub.s32 0, %v734_v5  ;;  %v739_v7 = vsub.s32 1, %v734_v5  ;;  %v731_v8 = vld [vmem:[%s411_s25] sm:$0x3]  ;;  %s791_s30 = scalar_lea.vmem (%p1225_p6), %s1387_s3, %s1003_s12 }
  0x3c   : > { %658 = vmatpush1.bf16.msra.mxu0 %v1087_v41  ;;  %1023 = vmatpush1.bf16.msra.mxu1 %v1087_v41  ;;  %v736_v9 = vrot.slane %v731_v8, %v735_v6  ;;  %v740_v10 = vrot.slane %v731_v8, %v739_v7 }
  0x3d   : > { %659 = vmatprep.subr.bf16.mxu0 %v1088_v42  ;;  %1008 = vmatprep.subr.bf16.mxu1 %v1088_v42 }
  0x40   : > { %660 = vmatpush1.bf16.msra.mxu0 %v1090_v43  ;;  %1024 = vmatpush1.bf16.msra.mxu1 %v1090_v43 }
  0x41   : > { %661 = vmatprep.subr.bf16.mxu0 %v1091_v44  ;;  %1009 = vmatprep.subr.bf16.mxu1 %v1091_v44 }
  0x44   : > { %662 = vmatpush1.bf16.msra.mxu0 %v1093_v45  ;;  %1025 = vmatpush1.bf16.msra.mxu1 %v1093_v45 }
  0x45   : > { %663 = vmatprep.subr.bf16.mxu0 %v1094_v46  ;;  %1010 = vmatprep.subr.bf16.mxu1 %v1094_v46 }
  0x48   : > { %664 = vmatpush1.bf16.msra.mxu0 %v1096_v47  ;;  %1026 = vmatpush1.bf16.msra.mxu1 %v1096_v47 }
  0x49   : > { %665 = vmatprep.subr.bf16.mxu0 %v1097_v48  ;;  %1011 = vmatprep.subr.bf16.mxu1 %v1097_v48 }
  0x4c   : > { %666 = vmatpush1.bf16.msra.mxu0 %v1099_v49  ;;  %1027 = vmatpush1.bf16.msra.mxu1 %v1099_v49 }
  0x4d   : > { %667 = vmatprep.subr.bf16.mxu0 %v1100_v50  ;;  %1012 = vmatprep.subr.bf16.mxu1 %v1100_v50 }
  0x50   : > { %668 = vmatpush2.bf16.msra.mxu0 %v1102_v51  ;;  %1028 = vmatpush2.bf16.msra.mxu1 %v1102_v51 }
  0x51   : > { %669 = vmatprep.subr.bf16.mxu0 %v1103_v52  ;;  %1013 = vmatprep.subr.bf16.mxu1 %v1103_v52 }
  0x54   : > { %670 = vmatpush2.bf16.msra.mxu0 %v1105_v53  ;;  %1029 = vmatpush2.bf16.msra.mxu1 %v1105_v53 }
  0x55   : > { %671 = vmatprep.subr.bf16.mxu0 %v1106_v54  ;;  %1014 = vmatprep.subr.bf16.mxu1 %v1106_v54 }
  0x58   : > { %672 = vmatpush2.bf16.msra.mxu0 %v1108_v55  ;;  %1030 = vmatpush2.bf16.msra.mxu1 %v1108_v55 }
  0x59   : > { %673 = vmatprep.subr.bf16.mxu0 %v1109_v56  ;;  %1015 = vmatprep.subr.bf16.mxu1 %v1109_v56 }
  0x5c   : > { %674 = vmatpush2.bf16.msra.mxu0 %v1111_v57  ;;  %1031 = vmatpush2.bf16.msra.mxu1 %v1111_v57 }
  0x5d   : > { %675 = vmatprep.subr.bf16.mxu0 %v1112_v58  ;;  %1016 = vmatprep.subr.bf16.mxu1 %v1112_v58 }
  0x60   : > { %676 = vmatpush2.bf16.msra.mxu0 %v1114_v59  ;;  %1032 = vmatpush2.bf16.msra.mxu1 %v1114_v59 }
  0x61   : > { %677 = vmatprep.subr.bf16.mxu0 %v1115_v60  ;;  %1017 = vmatprep.subr.bf16.mxu1 %v1115_v60 }
  0x64   : > { %678 = vmatpush2.bf16.msra.mxu0 %v1117_v61  ;;  %1033 = vmatpush2.bf16.msra.mxu1 %v1117_v61 }
  0x65   : > { %679 = vmatprep.subr.bf16.mxu0 %v1118_v62  ;;  %1018 = vmatprep.subr.bf16.mxu1 %v1118_v62 }
  0x68   : > { %680 = vmatpush2.bf16.msra.mxu0 %v1120_v63  ;;  %1034 = vmatpush2.bf16.msra.mxu1 %v1120_v63 }
  0x69   : > { %681 = vmatprep.subr.bf16.mxu0 %v1121_v0  ;;  %1019 = vmatprep.subr.bf16.mxu1 %v1121_v0 }
  0x6c   : > { %682 = vmatpush2.bf16.msra.mxu0 %v1123_v1  ;;  %1035 = vmatpush2.bf16.msra.mxu1 %v1123_v1 }
  0x6f   : > { %684 = vmatmul.mubr.bf16.vlgmr.msra.gmra.mxu0 %v1124_v2  ;;  %694 = vmatmul.mubr.bf16.vlgmr.msra.gmra.mxu1 %v1127_v3 }
 0x12f   : > { %v685_v11 = vpop.f32.mrf.mxu0  ;;  %v695_v12 = vpop.f32.mrf.mxu1 }
 0x130   : > { %v743_v15 = vadd.f32 %v736_v9, %v685_v11  ;;  %v747_v16 = vadd.f32 %v736_v9, %v695_v12 }
 0x131   : > { %v687_v13 = vpop.f32.mrf.mxu0  ;;  %v697_v14 = vpop.f32.mrf.mxu1 }
 0x132   : > { %v744_v17 = vadd.f32 %v740_v10, %v687_v13  ;;  %v748_v18 = vadd.f32 %v740_v10, %v697_v14 }
 0x133   : > { %v689_v19 = vpop.f32.mrf.mxu0  ;;  %v699_v20 = vpop.f32.mrf.mxu1 }
 0x134   : > { %v999_v21 = vpack.c.bf16 %v744_v17, %v743_v15  ;;  %v1001_v22 = vpack.c.bf16 %v748_v18, %v747_v16  ;;  %v745_v25 = vadd.f32 %v736_v9, %v689_v19  ;;  %v749_v26 = vadd.f32 %v736_v9, %v699_v20 }
 0x135   : > { %v691_v23 = vpop.f32.mrf.mxu0  ;;  %v701_v24 = vpop.f32.mrf.mxu1 }
 0x136   : > { %775 = vst [vmem:[%s393_s27] sm:$0xff] %v999_v21  ;;  %777 = vst [vmem:[%s393_s27 + $0x10] sm:$0xff] %v1001_v22  ;;  %v746_v27 = vadd.f32 %v740_v10, %v691_v23  ;;  %v750_v28 = vadd.f32 %v740_v10, %v701_v24  ;;  %785 = sbr.rel (!%p1225_p6) target bundleno = 323 (0x143), region = 82 }
 0x138   : > { %v1000_v29 = vpack.c.bf16 %v746_v27, %v745_v25  ;;  %v1002_v30 = vpack.c.bf16 %v750_v28, %v749_v26 }
 0x13a   : > { %776 = vst [vmem:[%s393_s27 + $0x8] sm:$0xff] %v1000_v29  ;;  %778 = vst [vmem:[%s393_s27 + $0x18] sm:$0xff] %v1002_v30 }
 0x13d   : > { %v826_v31 = vld [vmem:[%s393_s27] sm:$0xff]  ;;  %v830_v33 = vld [vmem:[%s393_s27 + $0x10] sm:$0xff] }
 0x13e   : > { %827 = vst [vmem:[%s791_s30] sm:$0xff] %v826_v31  ;;  %831 = vst [vmem:[%s791_s30 + $0x20] sm:$0xff] %v830_v33 }
 0x141   : > { %v828_v32 = vld [vmem:[%s393_s27 + $0x8] sm:$0xff]  ;;  %v832_v34 = vld [vmem:[%s393_s27 + $0x18] sm:$0xff] }
 0x142   : > { %829 = vst [vmem:[%s791_s30 + $0x10] sm:$0xff] %v828_v32  ;;  %833 = vst [vmem:[%s791_s30 + $0x30] sm:$0xff] %v832_v34 }
 0x143 PF: > { %s13_s16 = sadd.s32 1, %s1168_s16   ;;  %s1389_s12 = smov %s1156_s13 }
 0x144   : > { %p10_p12 = scmp.ge.s32.totalorder %s13_s16, 4   ;;  %s1390_s13 = smov %s1230_s22 }
 0x145   : > { %s1391_s14 = smov %s1164_s15  ;;  %s1392_s15 = smov %s1394_s17 }
 0x146   :  { %12 = sbr.rel (!%p10_p12) target bundleno = 3 (0x3), region = 157 }

</bundles_post_ra>
